<compile_context>
chip_gen: v6e
topology: v6e:2x2x1
jax: 0.10.0
libtpu: 0.0.40
codegen_flags: <defaults>
</compile_context>

<pallas_src>
import functools
import numpy as np
import jax
import jax.numpy as jnp
from jax.experimental import pallas as pl
from jax.experimental.pallas import tpu as pltpu

LANE = 128


def _round_up(x, m):
    return ((x + m - 1) // m) * m


# ----------------------------- Pallas kernels ------------------------------

def _conv_kernel(x_ref, w_ref, b_ref, o_ref, *, kh, kw, apply_relu):
    """Direct VALID stride-1 conv on a VMEM-resident image.

    x_ref: (1, H, W, C)        image (original stride folded via space-to-depth)
    w_ref: (kh*kw*C, Coutp)    weights, K ordered (kh, kw, C), lanes padded to 128
    b_ref: (1, Coutp)          bias (f32)
    o_ref: (1, OH, OW, Coutp)  output (+ReLU), channel-padded to 128 lanes
    """
    _, _, _, C = x_ref.shape
    _, OH, OW, Coutp = o_ref.shape
    bias = b_ref[...].astype(jnp.float32)                         # (1, Coutp)
    for a in range(OH):                                           # output row
        acc = jnp.zeros((OW, Coutp), jnp.float32)
        for i in range(kh):
            for j in range(kw):
                # static, contiguous slice of the VMEM-resident image
                patch = x_ref[0, a + i, j:j + OW, :].astype(jnp.bfloat16)  # (OW, C)
                w_ij = w_ref[(i * kw + j) * C:(i * kw + j + 1) * C, :]      # (C, Coutp)
                acc = acc + jnp.dot(patch, w_ij,
                                    preferred_element_type=jnp.float32)
        y = acc + bias
        if apply_relu:
            y = jnp.maximum(y, 0.0)
        o_ref[0, a] = y.astype(o_ref.dtype)


def _head_kernel(*refs, n_layers, num_actions):
    """Fused dueling head: [V-MLP | A-MLP] as padded block matmuls + combine.

    refs = (feat_ref, w_0, b_0, ..., w_{L-1}, b_{L-1}, q_ref)
    Layer activations are laid out as [V-branch | A-branch | zero pad] on lanes;
    after the last layer, column 0 is v and columns 1..num_actions are a.
    """
    feat_ref = refs[0]
    q_ref = refs[-1]
    h = feat_ref[...].astype(jnp.float32)
    for l in range(n_layers):
        w = refs[1 + 2 * l][...]                                  # bf16 (K, Np)
        b = refs[2 + 2 * l][...].astype(jnp.float32)              # (1, Np)
        h = jnp.dot(h.astype(jnp.bfloat16), w,
                    preferred_element_type=jnp.float32) + b
        if l < n_layers - 1:
            h = jnp.maximum(h, 0.0)
    col = jax.lax.broadcasted_iota(jnp.int32, h.shape, 1)
    v = jnp.sum(jnp.where(col == 0, h, 0.0), axis=1, keepdims=True)
    a_mask = jnp.logical_and(col >= 1, col <= num_actions)       # real actions only
    a_mean = jnp.sum(jnp.where(a_mask, h, 0.0), axis=1, keepdims=True) / num_actions
    # columns 1..num_actions now hold q = v + a - mean(a); other columns are scratch
    q_ref[...] = v + h - a_mean


# ------------------------------ Pallas wrappers -----------------------------

def space_to_depth(x, s):
    """(N,H,W,C) -> (N,H/s,W/s,s*s*C), channel packing (ri, rj, c)."""
    if s == 1:
        return x
    n, h, w, c = x.shape
    assert h % s == 0 and w % s == 0
    x = x.reshape(n, h // s, s, w // s, s, c)
    x = jnp.transpose(x, (0, 1, 3, 2, 4, 5))
    return x.reshape(n, h // s, w // s, s * s * c)


def conv_pallas(x, w_mat, b_row, kq, kwq, out_dtype, relu=True):
    n, h, w, c = x.shape
    oh, ow = h - kq + 1, w - kwq + 1
    coutp = w_mat.shape[1]
    assert w_mat.shape[0] == kq * kwq * c
    return pl.pallas_call(
        functools.partial(_conv_kernel, kh=kq, kw=kwq, apply_relu=relu),
        grid=(n,),
        in_specs=[
            pl.BlockSpec((1, h, w, c), lambda i: (i, 0, 0, 0)),
            pl.BlockSpec((kq * kwq * c, coutp), lambda i: (0, 0)),
            pl.BlockSpec((1, coutp), lambda i: (0, 0)),
        ],
        out_specs=pl.BlockSpec((1, oh, ow, coutp), lambda i: (i, 0, 0, 0)),
        out_shape=jax.ShapeDtypeStruct((n, oh, ow, coutp), out_dtype),
        compiler_params=pltpu.CompilerParams(
            dimension_semantics=("parallel",)),   # batch shards across v7x TCs
    )(x, w_mat, b_row)


def head_pallas(feat, fused_layers, num_actions):
    b = feat.shape[0]
    out_pad = fused_layers[-1][0].shape[1]
    args = [feat]
    for w, bias in fused_layers:
        args.extend([w, bias])
    # Whole head fits in VMEM: single launch, full-array blocks (no grid).
    return pl.pallas_call(
        functools.partial(_head_kernel, n_layers=len(fused_layers),
                          num_actions=num_actions),
        out_shape=jax.ShapeDtypeStruct((b, out_pad), jnp.float32),
    )(*args)


# ------------------------------ parameter init -------------------------------

def _conv_params(key, cout, cin, kh, kw):
    kw_, kb_ = jax.random.split(key)
    fan_in = cin * kh * kw
    w = jax.random.normal(kw_, (cout, cin, kh, kw), jnp.float32) / np.sqrt(fan_in)
    b = 0.01 * jax.random.normal(kb_, (cout,), jnp.float32)
    return w, b


def _linear_params(key, fan_in, fan_out):
    kw_, kb_ = jax.random.split(key)
    # stored as (in, out); PyTorch stores (out, in) — same math, transposed storage
    w = jax.random.normal(kw_, (fan_in, fan_out), jnp.float32) / np.sqrt(fan_in)
    b = 0.01 * jax.random.normal(kb_, (fan_out,), jnp.float32)
    return w, b


def init_critic_params(key, obs_channels, spatial, num_actions, hidden_dim,
                       hidden_depth):
    keys = jax.random.split(key, 8)
    params = {}
    params['conv1'] = _conv_params(keys[0], 32, obs_channels, 8, 8)
    params['conv2'] = _conv_params(keys[1], 64, 32, 4, 4)
    params['conv3'] = _conv_params(keys[2], 64, 64, 3, 3)

    s1 = (spatial - 8) // 4 + 1
    s2 = (s1 - 4) // 2 + 1
    s3 = s2 - 3 + 1
    feature_dim = 64 * s3 * s3

    def mlp_params(base_key, in_dim, out_dim):
        layers = []
        ks = jax.random.split(base_key, hidden_depth + 1)
        if hidden_depth == 0:
            layers.append(_linear_params(ks[0], in_dim, out_dim))
        else:
            layers.append(_linear_params(ks[0], in_dim, hidden_dim))
            for d in range(1, hidden_depth):
                layers.append(_linear_params(ks[d], hidden_dim, hidden_dim))
            layers.append(_linear_params(ks[hidden_depth], hidden_dim, out_dim))
        return layers

    params['V'] = mlp_params(keys[3], feature_dim, 1)
    params['A'] = mlp_params(keys[4], feature_dim, num_actions)
    return params, feature_dim


# ------------------------- kernel-layout param prep ---------------------------

def _prep_conv(w_oihw, b, stride, scale=1.0):
    """OIHW conv weight -> stride-folded (space-to-depth) matmul weight.

    Returns (w_mat bf16 (kq*kwq*s*s*Cin, 128), bias f32 (1,128), kq, kwq).
    """
    cout, cin, kh, kw = w_oihw.shape
    assert kh % stride == 0 and kw % stride == 0 and cout <= LANE
    kq, kwq = kh // stride, kw // stride
    w = (w_oihw * scale).reshape(cout, cin, kq, stride, kwq, stride)
    w = jnp.transpose(w, (2, 4, 3, 5, 1, 0))      # (kq, kwq, ri, rj, cin, cout)
    w = w.reshape(kq * kwq * stride * stride * cin, cout)
    w = jnp.pad(w, ((0, 0), (0, LANE - cout)))     # lane-dense output columns
    bias = jnp.pad(b, (0, LANE - cout)).reshape(1, LANE)
    return w.astype(jnp.bfloat16), bias.astype(jnp.float32), kq, kwq


def _fuse_heads(v_layers, a_layers):
    """Concatenate the V and A MLPs into one padded stack of (K, 128k) matmuls."""
    fused = []
    prev_pad = prev_ov = prev_oa = None
    for l, ((wv, bv), (wa, ba)) in enumerate(zip(v_layers, a_layers)):
        ov, oa = wv.shape[1], wa.shape[1]
        out_pad = _round_up(ov + oa, LANE)
        if l == 0:
            k = wv.shape[0]
            w = jnp.zeros((k, out_pad), jnp.float32)
            w = w.at[:, :ov].set(wv).at[:, ov:ov + oa].set(wa)
        else:
            w = jnp.zeros((prev_pad, out_pad), jnp.float32)
            w = w.at[:prev_ov, :ov].set(wv)
            w = w.at[prev_ov:prev_ov + prev_oa, ov:ov + oa].set(wa)
        bias = jnp.zeros((1, out_pad), jnp.float32)
        bias = bias.at[0, :ov].set(bv).at[0, ov:ov + oa].set(ba)
        fused.append((w.astype(jnp.bfloat16), bias))
        prev_pad, prev_ov, prev_oa = out_pad, ov, oa
    return fused


def prepare_kernel_params(params):
    prep = {}
    # obs/255 folded into conv1 weights (bias unscaled).
    prep['conv1'] = _prep_conv(*params['conv1'], stride=4, scale=1.0 / 255.0)
    prep['conv2'] = _prep_conv(*params['conv2'], stride=2)
    prep['conv3'] = _prep_conv(*params['conv3'], stride=1)
    prep['cout'] = (params['conv1'][0].shape[0],
                    params['conv2'][0].shape[0],
                    params['conv3'][0].shape[0])
    prep['head'] = _fuse_heads(params['V'], params['A'])
    return prep


# ------------------------------- forward pass --------------------------------

def critic_forward(obs_nchw, prep, num_actions):
    """Returns (encoder_features, q). obs_nchw: float32, values in [0, 255]."""
    # TODO(synk): random data augmentations (kornia crop/flip/rotate, Intensity
    # noise) only run when use_aug=True; the inference path (use_aug=False) is
    # implemented here.
    c1, c2, c3 = prep['cout']
    x = jnp.transpose(obs_nchw, (0, 2, 3, 1))                  # NCHW -> NHWC
    x = space_to_depth(x, 4).astype(jnp.bfloat16)              # fold stride 4
    w, b, kq, kwq = prep['conv1']
    h = conv_pallas(x, w, b, kq, kwq, jnp.bfloat16)            # (N, s1, s1, 128)
    h = space_to_depth(h[..., :c1], 2)                         # fold stride 2 -> C=128
    w, b, kq, kwq = prep['conv2']
    h = conv_pallas(h, w, b, kq, kwq, jnp.bfloat16)            # (N, s2, s2, 128)
    h = h[..., :c2]                                            # (N, s2, s2, 64)
    w, b, kq, kwq = prep['conv3']
    h = conv_pallas(h, w, b, kq, kwq, jnp.float32)             # (N, s3, s3, 128)
    h = h[..., :c3]                                            # (N, s3, s3, 64)
    # flatten exactly like torch: NCHW .view(N, -1)  (channel slowest)
    feat = jnp.transpose(h, (0, 3, 1, 2)).reshape(h.shape[0], -1)
    q_pad = head_pallas(feat, prep['head'], num_actions)       # (N, 128)
    q = q_pad[:, 1:1 + num_actions]
    return feat, q


# ------------------------------ pure-JAX reference ----------------------------

def reference_forward(obs_nchw, params):
    x = obs_nchw / 255.0

    def conv(z, wb, stride):
        w, b = wb
        y = jax.lax.conv_general_dilated(
            z, w, window_strides=(stride, stride), padding='VALID',
            dimension_numbers=('NCHW', 'OIHW', 'NCHW'))
        return jax.nn.relu(y + b[None, :, None, None])

    h = conv(x, params['conv1'], 4)
    h = conv(h, params['conv2'], 2)
    h = conv(h, params['conv3'], 1)
    feat = h.reshape(h.shape[0], -1)

    def mlp(z, layers):
        for i, (w, b) in enumerate(layers):
            z = z @ w + b
            if i < len(layers) - 1:
                z = jax.nn.relu(z)
        return z

    v = mlp(feat, params['V'])
    a = mlp(feat, params['A'])
    q = v + a - a.mean(axis=1, keepdims=True)
    return feat, q


# ----------------------------------- main ------------------------------------

if __name__ == "__main__":
    key = jax.random.PRNGKey(0)
    k_obs, k_params = jax.random.split(key)

    batch, channels, spatial = 2, 4, 52       # small but conv-chain consistent
    num_actions, hidden_dim, hidden_depth = 6, 32, 1

    obs = jax.random.uniform(k_obs, (batch, channels, spatial, spatial),
                             jnp.float32, minval=0.0, maxval=255.0)

    params, feature_dim = init_critic_params(
        k_params, channels, spatial, num_actions, hidden_dim, hidden_depth)
    prep = prepare_kernel_params(params)

    fwd = jax.jit(lambda o: critic_forward(o, prep, num_actions))
    feat, q = fwd(obs)
    jax.block_until_ready((feat, q))

    assert feat.shape == (batch, feature_dim)
    assert q.shape == (batch, num_actions)

    # loose tolerance: kernels use bf16 operands with f32 accumulation
    feat_r, q_r = reference_forward(obs, params)
    np.testing.assert_allclose(np.asarray(feat), np.asarray(feat_r),
                               atol=0.2, rtol=0.1)
    np.testing.assert_allclose(np.asarray(q), np.asarray(q_r),
                               atol=0.2, rtol=0.1)

    print("KERNEL_OK")
</pallas_src>

<mosaic_0001>
module attributes {stable_mosaic.version = 11 : i64} {
  func.func @_conv_kernel(%arg0: i32, %arg1: memref<1x13x13x64xbf16, #tpu.memory_space<vmem>>, %arg2: memref<256x128xbf16, #tpu.memory_space<vmem>>, %arg3: memref<1x128xf32, #tpu.memory_space<vmem>>, %arg4: memref<1x12x12x128xbf16, #tpu.memory_space<vmem>>) attributes {dimension_semantics = [#tpu.dimension_semantics<parallel>], iteration_bounds = array<i64: 2>, scalar_prefetch = 0 : i64, scratch_operands = 0 : i64, tpu.core_type = #tpu.core_type<tc>, window_params = [{transform_indices = @transform_0, window_bounds = array<i64: 1, 13, 13, 64>}, {pipeline_mode = #tpu.pipeline_mode<synchronous>, transform_indices = @transform_1, window_bounds = array<i64: 256, 128>}, {pipeline_mode = #tpu.pipeline_mode<synchronous>, transform_indices = @transform_2, window_bounds = array<i64: 1, 128>}, {transform_indices = @transform_3, window_bounds = array<i64: 1, 12, 12, 128>}]} {
    %c0 = arith.constant 0 : index
    %c0_0 = arith.constant 0 : index
    %0 = vector.load %arg3[%c0, %c0_0] : memref<1x128xf32, #tpu.memory_space<vmem>>, vector<1x128xf32>
    %cst = arith.constant 0.000000e+00 : f32
    %1 = vector.broadcast %cst : f32 to vector<12x128xf32>
    %c0_1 = arith.constant 0 : index
    %c0_2 = arith.constant 0 : index
    %c0_3 = arith.constant 0 : index
    %c0_4 = arith.constant 0 : index
    %2 = vector.load %arg1[%c0_1, %c0_2, %c0_3, %c0_4] : memref<1x13x13x64xbf16, #tpu.memory_space<vmem>>, vector<1x1x12x64xbf16>
    %3 = vector.shape_cast %2 : vector<1x1x12x64xbf16> to vector<12x64xbf16>
    %c0_5 = arith.constant 0 : index
    %c0_6 = arith.constant 0 : index
    %4 = vector.load %arg2[%c0_5, %c0_6] : memref<256x128xbf16, #tpu.memory_space<vmem>>, vector<64x128xbf16>
    %cst_7 = arith.constant dense<0.000000e+00> : vector<12x128xf32>
    %5 = tpu.matmul %3, %4, %cst_7 {dimension_numbers = #tpu.dot_dimension_numbers<[1], [0], [0], [1], [0, 0, 1, 1], [], []>} : vector<12x64xbf16>, vector<64x128xbf16>, vector<12x128xf32> -> vector<12x128xf32>
    %6 = arith.addf %1, %5 : vector<12x128xf32>
    %c0_8 = arith.constant 0 : index
    %c0_9 = arith.constant 0 : index
    %c1 = arith.constant 1 : index
    %c0_10 = arith.constant 0 : index
    %7 = vector.load %arg1[%c0_8, %c0_9, %c1, %c0_10] : memref<1x13x13x64xbf16, #tpu.memory_space<vmem>>, vector<1x1x12x64xbf16>
    %8 = vector.shape_cast %7 : vector<1x1x12x64xbf16> to vector<12x64xbf16>
    %c64 = arith.constant 64 : index
    %c0_11 = arith.constant 0 : index
    %9 = vector.load %arg2[%c64, %c0_11] : memref<256x128xbf16, #tpu.memory_space<vmem>>, vector<64x128xbf16>
    %cst_12 = arith.constant dense<0.000000e+00> : vector<12x128xf32>
    %10 = tpu.matmul %8, %9, %cst_12 {dimension_numbers = #tpu.dot_dimension_numbers<[1], [0], [0], [1], [0, 0, 1, 1], [], []>} : vector<12x64xbf16>, vector<64x128xbf16>, vector<12x128xf32> -> vector<12x128xf32>
    %11 = arith.addf %6, %10 : vector<12x128xf32>
    %c0_13 = arith.constant 0 : index
    %c1_14 = arith.constant 1 : index
    %c0_15 = arith.constant 0 : index
    %c0_16 = arith.constant 0 : index
    %12 = vector.load %arg1[%c0_13, %c1_14, %c0_15, %c0_16] : memref<1x13x13x64xbf16, #tpu.memory_space<vmem>>, vector<1x1x12x64xbf16>
    %13 = vector.shape_cast %12 : vector<1x1x12x64xbf16> to vector<12x64xbf16>
    %c128 = arith.constant 128 : index
    %c0_17 = arith.constant 0 : index
    %14 = vector.load %arg2[%c128, %c0_17] : memref<256x128xbf16, #tpu.memory_space<vmem>>, vector<64x128xbf16>
    %cst_18 = arith.constant dense<0.000000e+00> : vector<12x128xf32>
    %15 = tpu.matmul %13, %14, %cst_18 {dimension_numbers = #tpu.dot_dimension_numbers<[1], [0], [0], [1], [0, 0, 1, 1], [], []>} : vector<12x64xbf16>, vector<64x128xbf16>, vector<12x128xf32> -> vector<12x128xf32>
    %16 = arith.addf %11, %15 : vector<12x128xf32>
    %c0_19 = arith.constant 0 : index
    %c1_20 = arith.constant 1 : index
    %c1_21 = arith.constant 1 : index
    %c0_22 = arith.constant 0 : index
    %17 = vector.load %arg1[%c0_19, %c1_20, %c1_21, %c0_22] : memref<1x13x13x64xbf16, #tpu.memory_space<vmem>>, vector<1x1x12x64xbf16>
    %18 = vector.shape_cast %17 : vector<1x1x12x64xbf16> to vector<12x64xbf16>
    %c192 = arith.constant 192 : index
    %c0_23 = arith.constant 0 : index
    %19 = vector.load %arg2[%c192, %c0_23] : memref<256x128xbf16, #tpu.memory_space<vmem>>, vector<64x128xbf16>
    %cst_24 = arith.constant dense<0.000000e+00> : vector<12x128xf32>
    %20 = tpu.matmul %18, %19, %cst_24 {dimension_numbers = #tpu.dot_dimension_numbers<[1], [0], [0], [1], [0, 0, 1, 1], [], []>} : vector<12x64xbf16>, vector<64x128xbf16>, vector<12x128xf32> -> vector<12x128xf32>
    %21 = arith.addf %16, %20 : vector<12x128xf32>
    %22 = vector.broadcast %0 : vector<1x128xf32> to vector<12x128xf32>
    %23 = arith.addf %21, %22 : vector<12x128xf32>
    %cst_25 = arith.constant 0.000000e+00 : f32
    %24 = vector.broadcast %cst_25 : f32 to vector<12x128xf32>
    %25 = arith.maximumf %23, %24 : vector<12x128xf32>
    %26 = arith.truncf %25 : vector<12x128xf32> to vector<12x128xbf16>
    %c0_26 = arith.constant 0 : index
    %c0_27 = arith.constant 0 : index
    %c0_28 = arith.constant 0 : index
    %c0_29 = arith.constant 0 : index
    %27 = vector.load %arg4[%c0_26, %c0_27, %c0_28, %c0_29] : memref<1x12x12x128xbf16, #tpu.memory_space<vmem>>, vector<1x1x12x128xbf16>
    %28 = vector.shape_cast %27 : vector<1x1x12x128xbf16> to vector<12x128xbf16>
    %29 = vector.shape_cast %26 : vector<12x128xbf16> to vector<1x1x12x128xbf16>
    tpu.vector_store %arg4[%c0_26, %c0_27, %c0_28, %c0_29], %29 {strides = array<i32>} : memref<1x12x12x128xbf16, #tpu.memory_space<vmem>>, vector<1x1x12x128xbf16>,
    %cst_30 = arith.constant 0.000000e+00 : f32
    %30 = vector.broadcast %cst_30 : f32 to vector<12x128xf32>
    %c0_31 = arith.constant 0 : index
    %c1_32 = arith.constant 1 : index
    %c0_33 = arith.constant 0 : index
    %c0_34 = arith.constant 0 : index
    %31 = vector.load %arg1[%c0_31, %c1_32, %c0_33, %c0_34] : memref<1x13x13x64xbf16, #tpu.memory_space<vmem>>, vector<1x1x12x64xbf16>
    %32 = vector.shape_cast %31 : vector<1x1x12x64xbf16> to vector<12x64xbf16>
    %c0_35 = arith.constant 0 : index
    %c0_36 = arith.constant 0 : index
    %33 = vector.load %arg2[%c0_35, %c0_36] : memref<256x128xbf16, #tpu.memory_space<vmem>>, vector<64x128xbf16>
    %cst_37 = arith.constant dense<0.000000e+00> : vector<12x128xf32>
    %34 = tpu.matmul %32, %33, %cst_37 {dimension_numbers = #tpu.dot_dimension_numbers<[1], [0], [0], [1], [0, 0, 1, 1], [], []>} : vector<12x64xbf16>, vector<64x128xbf16>, vector<12x128xf32> -> vector<12x128xf32>
    %35 = arith.addf %30, %34 : vector<12x128xf32>
    %c0_38 = arith.constant 0 : index
    %c1_39 = arith.constant 1 : index
    %c1_40 = arith.constant 1 : index
    %c0_41 = arith.constant 0 : index
    %36 = vector.load %arg1[%c0_38, %c1_39, %c1_40, %c0_41] : memref<1x13x13x64xbf16, #tpu.memory_space<vmem>>, vector<1x1x12x64xbf16>
    %37 = vector.shape_cast %36 : vector<1x1x12x64xbf16> to vector<12x64xbf16>
    %c64_42 = arith.constant 64 : index
    %c0_43 = arith.constant 0 : index
    %38 = vector.load %arg2[%c64_42, %c0_43] : memref<256x128xbf16, #tpu.memory_space<vmem>>, vector<64x128xbf16>
    %cst_44 = arith.constant dense<0.000000e+00> : vector<12x128xf32>
    %39 = tpu.matmul %37, %38, %cst_44 {dimension_numbers = #tpu.dot_dimension_numbers<[1], [0], [0], [1], [0, 0, 1, 1], [], []>} : vector<12x64xbf16>, vector<64x128xbf16>, vector<12x128xf32> -> vector<12x128xf32>
    %40 = arith.addf %35, %39 : vector<12x128xf32>
    %c0_45 = arith.constant 0 : index
    %c2 = arith.constant 2 : index
    %c0_46 = arith.constant 0 : index
    %c0_47 = arith.constant 0 : index
    %41 = vector.load %arg1[%c0_45, %c2, %c0_46, %c0_47] : memref<1x13x13x64xbf16, #tpu.memory_space<vmem>>, vector<1x1x12x64xbf16>
    %42 = vector.shape_cast %41 : vector<1x1x12x64xbf16> to vector<12x64xbf16>
    %c128_48 = arith.constant 128 : index
    %c0_49 = arith.constant 0 : index
    %43 = vector.load %arg2[%c128_48, %c0_49] : memref<256x128xbf16, #tpu.memory_space<vmem>>, vector<64x128xbf16>
    %cst_50 = arith.constant dense<0.000000e+00> : vector<12x128xf32>
    %44 = tpu.matmul %42, %43, %cst_50 {dimension_numbers = #tpu.dot_dimension_numbers<[1], [0], [0], [1], [0, 0, 1, 1], [], []>} : vector<12x64xbf16>, vector<64x128xbf16>, vector<12x128xf32> -> vector<12x128xf32>
    %45 = arith.addf %40, %44 : vector<12x128xf32>
    %c0_51 = arith.constant 0 : index
    %c2_52 = arith.constant 2 : index
    %c1_53 = arith.constant 1 : index
    %c0_54 = arith.constant 0 : index
    %46 = vector.load %arg1[%c0_51, %c2_52, %c1_53, %c0_54] : memref<1x13x13x64xbf16, #tpu.memory_space<vmem>>, vector<1x1x12x64xbf16>
    %47 = vector.shape_cast %46 : vector<1x1x12x64xbf16> to vector<12x64xbf16>
    %c192_55 = arith.constant 192 : index
    %c0_56 = arith.constant 0 : index
    %48 = vector.load %arg2[%c192_55, %c0_56] : memref<256x128xbf16, #tpu.memory_space<vmem>>, vector<64x128xbf16>
    %cst_57 = arith.constant dense<0.000000e+00> : vector<12x128xf32>
    %49 = tpu.matmul %47, %48, %cst_57 {dimension_numbers = #tpu.dot_dimension_numbers<[1], [0], [0], [1], [0, 0, 1, 1], [], []>} : vector<12x64xbf16>, vector<64x128xbf16>, vector<12x128xf32> -> vector<12x128xf32>
    %50 = arith.addf %45, %49 : vector<12x128xf32>
    %51 = vector.broadcast %0 : vector<1x128xf32> to vector<12x128xf32>
    %52 = arith.addf %50, %51 : vector<12x128xf32>
    %cst_58 = arith.constant 0.000000e+00 : f32
    %53 = vector.broadcast %cst_58 : f32 to vector<12x128xf32>
    %54 = arith.maximumf %52, %53 : vector<12x128xf32>
    %55 = arith.truncf %54 : vector<12x128xf32> to vector<12x128xbf16>
    %c0_59 = arith.constant 0 : index
    %c1_60 = arith.constant 1 : index
    %c0_61 = arith.constant 0 : index
    %c0_62 = arith.constant 0 : index
    %56 = vector.load %arg4[%c0_59, %c1_60, %c0_61, %c0_62] : memref<1x12x12x128xbf16, #tpu.memory_space<vmem>>, vector<1x1x12x128xbf16>
    %57 = vector.shape_cast %56 : vector<1x1x12x128xbf16> to vector<12x128xbf16>
    %58 = vector.shape_cast %55 : vector<12x128xbf16> to vector<1x1x12x128xbf16>
    tpu.vector_store %arg4[%c0_59, %c1_60, %c0_61, %c0_62], %58 {strides = array<i32>} : memref<1x12x12x128xbf16, #tpu.memory_space<vmem>>, vector<1x1x12x128xbf16>,
    %cst_63 = arith.constant 0.000000e+00 : f32
    %59 = vector.broadcast %cst_63 : f32 to vector<12x128xf32>
    %c0_64 = arith.constant 0 : index
    %c2_65 = arith.constant 2 : index
    %c0_66 = arith.constant 0 : index
    %c0_67 = arith.constant 0 : index
    %60 = vector.load %arg1[%c0_64, %c2_65, %c0_66, %c0_67] : memref<1x13x13x64xbf16, #tpu.memory_space<vmem>>, vector<1x1x12x64xbf16>
    %61 = vector.shape_cast %60 : vector<1x1x12x64xbf16> to vector<12x64xbf16>
    %c0_68 = arith.constant 0 : index
    %c0_69 = arith.constant 0 : index
    %62 = vector.load %arg2[%c0_68, %c0_69] : memref<256x128xbf16, #tpu.memory_space<vmem>>, vector<64x128xbf16>
    %cst_70 = arith.constant dense<0.000000e+00> : vector<12x128xf32>
    %63 = tpu.matmul %61, %62, %cst_70 {dimension_numbers = #tpu.dot_dimension_numbers<[1], [0], [0], [1], [0, 0, 1, 1], [], []>} : vector<12x64xbf16>, vector<64x128xbf16>, vector<12x128xf32> -> vector<12x128xf32>
    %64 = arith.addf %59, %63 : vector<12x128xf32>
    %c0_71 = arith.constant 0 : index
    %c2_72 = arith.constant 2 : index
    %c1_73 = arith.constant 1 : index
    %c0_74 = arith.constant 0 : index
    %65 = vector.load %arg1[%c0_71, %c2_72, %c1_73, %c0_74] : memref<1x13x13x64xbf16, #tpu.memory_space<vmem>>, vector<1x1x12x64xbf16>
    %66 = vector.shape_cast %65 : vector<1x1x12x64xbf16> to vector<12x64xbf16>
    %c64_75 = arith.constant 64 : index
    %c0_76 = arith.constant 0 : index
    %67 = vector.load %arg2[%c64_75, %c0_76] : memref<256x128xbf16, #tpu.memory_space<vmem>>, vector<64x128xbf16>
    %cst_77 = arith.constant dense<0.000000e+00> : vector<12x128xf32>
    %68 = tpu.matmul %66, %67, %cst_77 {dimension_numbers = #tpu.dot_dimension_numbers<[1], [0], [0], [1], [0, 0, 1, 1], [], []>} : vector<12x64xbf16>, vector<64x128xbf16>, vector<12x128xf32> -> vector<12x128xf32>
    %69 = arith.addf %64, %68 : vector<12x128xf32>
    %c0_78 = arith.constant 0 : index
    %c3 = arith.constant 3 : index
    %c0_79 = arith.constant 0 : index
    %c0_80 = arith.constant 0 : index
    %70 = vector.load %arg1[%c0_78, %c3, %c0_79, %c0_80] : memref<1x13x13x64xbf16, #tpu.memory_space<vmem>>, vector<1x1x12x64xbf16>
    %71 = vector.shape_cast %70 : vector<1x1x12x64xbf16> to vector<12x64xbf16>
    %c128_81 = arith.constant 128 : index
    %c0_82 = arith.constant 0 : index
    %72 = vector.load %arg2[%c128_81, %c0_82] : memref<256x128xbf16, #tpu.memory_space<vmem>>, vector<64x128xbf16>
    %cst_83 = arith.constant dense<0.000000e+00> : vector<12x128xf32>
    %73 = tpu.matmul %71, %72, %cst_83 {dimension_numbers = #tpu.dot_dimension_numbers<[1], [0], [0], [1], [0, 0, 1, 1], [], []>} : vector<12x64xbf16>, vector<64x128xbf16>, vector<12x128xf32> -> vector<12x128xf32>
    %74 = arith.addf %69, %73 : vector<12x128xf32>
    %c0_84 = arith.constant 0 : index
    %c3_85 = arith.constant 3 : index
    %c1_86 = arith.constant 1 : index
    %c0_87 = arith.constant 0 : index
    %75 = vector.load %arg1[%c0_84, %c3_85, %c1_86, %c0_87] : memref<1x13x13x64xbf16, #tpu.memory_space<vmem>>, vector<1x1x12x64xbf16>
    %76 = vector.shape_cast %75 : vector<1x1x12x64xbf16> to vector<12x64xbf16>
    %c192_88 = arith.constant 192 : index
    %c0_89 = arith.constant 0 : index
    %77 = vector.load %arg2[%c192_88, %c0_89] : memref<256x128xbf16, #tpu.memory_space<vmem>>, vector<64x128xbf16>
    %cst_90 = arith.constant dense<0.000000e+00> : vector<12x128xf32>
    %78 = tpu.matmul %76, %77, %cst_90 {dimension_numbers = #tpu.dot_dimension_numbers<[1], [0], [0], [1], [0, 0, 1, 1], [], []>} : vector<12x64xbf16>, vector<64x128xbf16>, vector<12x128xf32> -> vector<12x128xf32>
    %79 = arith.addf %74, %78 : vector<12x128xf32>
    %80 = vector.broadcast %0 : vector<1x128xf32> to vector<12x128xf32>
    %81 = arith.addf %79, %80 : vector<12x128xf32>
    %cst_91 = arith.constant 0.000000e+00 : f32
    %82 = vector.broadcast %cst_91 : f32 to vector<12x128xf32>
    %83 = arith.maximumf %81, %82 : vector<12x128xf32>
    %84 = arith.truncf %83 : vector<12x128xf32> to vector<12x128xbf16>
    %c0_92 = arith.constant 0 : index
    %c2_93 = arith.constant 2 : index
    %c0_94 = arith.constant 0 : index
    %c0_95 = arith.constant 0 : index
    %85 = vector.load %arg4[%c0_92, %c2_93, %c0_94, %c0_95] : memref<1x12x12x128xbf16, #tpu.memory_space<vmem>>, vector<1x1x12x128xbf16>
    %86 = vector.shape_cast %85 : vector<1x1x12x128xbf16> to vector<12x128xbf16>
    %87 = vector.shape_cast %84 : vector<12x128xbf16> to vector<1x1x12x128xbf16>
    tpu.vector_store %arg4[%c0_92, %c2_93, %c0_94, %c0_95], %87 {strides = array<i32>} : memref<1x12x12x128xbf16, #tpu.memory_space<vmem>>, vector<1x1x12x128xbf16>,
    %cst_96 = arith.constant 0.000000e+00 : f32
    %88 = vector.broadcast %cst_96 : f32 to vector<12x128xf32>
    %c0_97 = arith.constant 0 : index
    %c3_98 = arith.constant 3 : index
    %c0_99 = arith.constant 0 : index
    %c0_100 = arith.constant 0 : index
    %89 = vector.load %arg1[%c0_97, %c3_98, %c0_99, %c0_100] : memref<1x13x13x64xbf16, #tpu.memory_space<vmem>>, vector<1x1x12x64xbf16>
    %90 = vector.shape_cast %89 : vector<1x1x12x64xbf16> to vector<12x64xbf16>
    %c0_101 = arith.constant 0 : index
    %c0_102 = arith.constant 0 : index
    %91 = vector.load %arg2[%c0_101, %c0_102] : memref<256x128xbf16, #tpu.memory_space<vmem>>, vector<64x128xbf16>
    %cst_103 = arith.constant dense<0.000000e+00> : vector<12x128xf32>
    %92 = tpu.matmul %90, %91, %cst_103 {dimension_numbers = #tpu.dot_dimension_numbers<[1], [0], [0], [1], [0, 0, 1, 1], [], []>} : vector<12x64xbf16>, vector<64x128xbf16>, vector<12x128xf32> -> vector<12x128xf32>
    %93 = arith.addf %88, %92 : vector<12x128xf32>
    %c0_104 = arith.constant 0 : index
    %c3_105 = arith.constant 3 : index
    %c1_106 = arith.constant 1 : index
    %c0_107 = arith.constant 0 : index
    %94 = vector.load %arg1[%c0_104, %c3_105, %c1_106, %c0_107] : memref<1x13x13x64xbf16, #tpu.memory_space<vmem>>, vector<1x1x12x64xbf16>
    %95 = vector.shape_cast %94 : vector<1x1x12x64xbf16> to vector<12x64xbf16>
    %c64_108 = arith.constant 64 : index
    %c0_109 = arith.constant 0 : index
    %96 = vector.load %arg2[%c64_108, %c0_109] : memref<256x128xbf16, #tpu.memory_space<vmem>>, vector<64x128xbf16>
    %cst_110 = arith.constant dense<0.000000e+00> : vector<12x128xf32>
    %97 = tpu.matmul %95, %96, %cst_110 {dimension_numbers = #tpu.dot_dimension_numbers<[1], [0], [0], [1], [0, 0, 1, 1], [], []>} : vector<12x64xbf16>, vector<64x128xbf16>, vector<12x128xf32> -> vector<12x128xf32>
    %98 = arith.addf %93, %97 : vector<12x128xf32>
    %c0_111 = arith.constant 0 : index
    %c4 = arith.constant 4 : index
    %c0_112 = arith.constant 0 : index
    %c0_113 = arith.constant 0 : index
    %99 = vector.load %arg1[%c0_111, %c4, %c0_112, %c0_113] : memref<1x13x13x64xbf16, #tpu.memory_space<vmem>>, vector<1x1x12x64xbf16>
    %100 = vector.shape_cast %99 : vector<1x1x12x64xbf16> to vector<12x64xbf16>
    %c128_114 = arith.constant 128 : index
    %c0_115 = arith.constant 0 : index
    %101 = vector.load %arg2[%c128_114, %c0_115] : memref<256x128xbf16, #tpu.memory_space<vmem>>, vector<64x128xbf16>
    %cst_116 = arith.constant dense<0.000000e+00> : vector<12x128xf32>
    %102 = tpu.matmul %100, %101, %cst_116 {dimension_numbers = #tpu.dot_dimension_numbers<[1], [0], [0], [1], [0, 0, 1, 1], [], []>} : vector<12x64xbf16>, vector<64x128xbf16>, vector<12x128xf32> -> vector<12x128xf32>
    %103 = arith.addf %98, %102 : vector<12x128xf32>
    %c0_117 = arith.constant 0 : index
    %c4_118 = arith.constant 4 : index
    %c1_119 = arith.constant 1 : index
    %c0_120 = arith.constant 0 : index
    %104 = vector.load %arg1[%c0_117, %c4_118, %c1_119, %c0_120] : memref<1x13x13x64xbf16, #tpu.memory_space<vmem>>, vector<1x1x12x64xbf16>
    %105 = vector.shape_cast %104 : vector<1x1x12x64xbf16> to vector<12x64xbf16>
    %c192_121 = arith.constant 192 : index
    %c0_122 = arith.constant 0 : index
    %106 = vector.load %arg2[%c192_121, %c0_122] : memref<256x128xbf16, #tpu.memory_space<vmem>>, vector<64x128xbf16>
    %cst_123 = arith.constant dense<0.000000e+00> : vector<12x128xf32>
    %107 = tpu.matmul %105, %106, %cst_123 {dimension_numbers = #tpu.dot_dimension_numbers<[1], [0], [0], [1], [0, 0, 1, 1], [], []>} : vector<12x64xbf16>, vector<64x128xbf16>, vector<12x128xf32> -> vector<12x128xf32>
    %108 = arith.addf %103, %107 : vector<12x128xf32>
    %109 = vector.broadcast %0 : vector<1x128xf32> to vector<12x128xf32>
    %110 = arith.addf %108, %109 : vector<12x128xf32>
    %cst_124 = arith.constant 0.000000e+00 : f32
    %111 = vector.broadcast %cst_124 : f32 to vector<12x128xf32>
    %112 = arith.maximumf %110, %111 : vector<12x128xf32>
    %113 = arith.truncf %112 : vector<12x128xf32> to vector<12x128xbf16>
    %c0_125 = arith.constant 0 : index
    %c3_126 = arith.constant 3 : index
    %c0_127 = arith.constant 0 : index
    %c0_128 = arith.constant 0 : index
    %114 = vector.load %arg4[%c0_125, %c3_126, %c0_127, %c0_128] : memref<1x12x12x128xbf16, #tpu.memory_space<vmem>>, vector<1x1x12x128xbf16>
    %115 = vector.shape_cast %114 : vector<1x1x12x128xbf16> to vector<12x128xbf16>
    %116 = vector.shape_cast %113 : vector<12x128xbf16> to vector<1x1x12x128xbf16>
    tpu.vector_store %arg4[%c0_125, %c3_126, %c0_127, %c0_128], %116 {strides = array<i32>} : memref<1x12x12x128xbf16, #tpu.memory_space<vmem>>, vector<1x1x12x128xbf16>,
    %cst_129 = arith.constant 0.000000e+00 : f32
    %117 = vector.broadcast %cst_129 : f32 to vector<12x128xf32>
    %c0_130 = arith.constant 0 : index
    %c4_131 = arith.constant 4 : index
    %c0_132 = arith.constant 0 : index
    %c0_133 = arith.constant 0 : index
    %118 = vector.load %arg1[%c0_130, %c4_131, %c0_132, %c0_133] : memref<1x13x13x64xbf16, #tpu.memory_space<vmem>>, vector<1x1x12x64xbf16>
    %119 = vector.shape_cast %118 : vector<1x1x12x64xbf16> to vector<12x64xbf16>
    %c0_134 = arith.constant 0 : index
    %c0_135 = arith.constant 0 : index
    %120 = vector.load %arg2[%c0_134, %c0_135] : memref<256x128xbf16, #tpu.memory_space<vmem>>, vector<64x128xbf16>
    %cst_136 = arith.constant dense<0.000000e+00> : vector<12x128xf32>
    %121 = tpu.matmul %119, %120, %cst_136 {dimension_numbers = #tpu.dot_dimension_numbers<[1], [0], [0], [1], [0, 0, 1, 1], [], []>} : vector<12x64xbf16>, vector<64x128xbf16>, vector<12x128xf32> -> vector<12x128xf32>
    %122 = arith.addf %117, %121 : vector<12x128xf32>
    %c0_137 = arith.constant 0 : index
    %c4_138 = arith.constant 4 : index
    %c1_139 = arith.constant 1 : index
    %c0_140 = arith.constant 0 : index
    %123 = vector.load %arg1[%c0_137, %c4_138, %c1_139, %c0_140] : memref<1x13x13x64xbf16, #tpu.memory_space<vmem>>, vector<1x1x12x64xbf16>
    %124 = vector.shape_cast %123 : vector<1x1x12x64xbf16> to vector<12x64xbf16>
    %c64_141 = arith.constant 64 : index
    %c0_142 = arith.constant 0 : index
    %125 = vector.load %arg2[%c64_141, %c0_142] : memref<256x128xbf16, #tpu.memory_space<vmem>>, vector<64x128xbf16>
    %cst_143 = arith.constant dense<0.000000e+00> : vector<12x128xf32>
    %126 = tpu.matmul %124, %125, %cst_143 {dimension_numbers = #tpu.dot_dimension_numbers<[1], [0], [0], [1], [0, 0, 1, 1], [], []>} : vector<12x64xbf16>, vector<64x128xbf16>, vector<12x128xf32> -> vector<12x128xf32>
    %127 = arith.addf %122, %126 : vector<12x128xf32>
    %c0_144 = arith.constant 0 : index
    %c5 = arith.constant 5 : index
    %c0_145 = arith.constant 0 : index
    %c0_146 = arith.constant 0 : index
    %128 = vector.load %arg1[%c0_144, %c5, %c0_145, %c0_146] : memref<1x13x13x64xbf16, #tpu.memory_space<vmem>>, vector<1x1x12x64xbf16>
    %129 = vector.shape_cast %128 : vector<1x1x12x64xbf16> to vector<12x64xbf16>
    %c128_147 = arith.constant 128 : index
    %c0_148 = arith.constant 0 : index
    %130 = vector.load %arg2[%c128_147, %c0_148] : memref<256x128xbf16, #tpu.memory_space<vmem>>, vector<64x128xbf16>
    %cst_149 = arith.constant dense<0.000000e+00> : vector<12x128xf32>
    %131 = tpu.matmul %129, %130, %cst_149 {dimension_numbers = #tpu.dot_dimension_numbers<[1], [0], [0], [1], [0, 0, 1, 1], [], []>} : vector<12x64xbf16>, vector<64x128xbf16>, vector<12x128xf32> -> vector<12x128xf32>
    %132 = arith.addf %127, %131 : vector<12x128xf32>
    %c0_150 = arith.constant 0 : index
    %c5_151 = arith.constant 5 : index
    %c1_152 = arith.constant 1 : index
    %c0_153 = arith.constant 0 : index
    %133 = vector.load %arg1[%c0_150, %c5_151, %c1_152, %c0_153] : memref<1x13x13x64xbf16, #tpu.memory_space<vmem>>, vector<1x1x12x64xbf16>
    %134 = vector.shape_cast %133 : vector<1x1x12x64xbf16> to vector<12x64xbf16>
    %c192_154 = arith.constant 192 : index
    %c0_155 = arith.constant 0 : index
    %135 = vector.load %arg2[%c192_154, %c0_155] : memref<256x128xbf16, #tpu.memory_space<vmem>>, vector<64x128xbf16>
    %cst_156 = arith.constant dense<0.000000e+00> : vector<12x128xf32>
    %136 = tpu.matmul %134, %135, %cst_156 {dimension_numbers = #tpu.dot_dimension_numbers<[1], [0], [0], [1], [0, 0, 1, 1], [], []>} : vector<12x64xbf16>, vector<64x128xbf16>, vector<12x128xf32> -> vector<12x128xf32>
    %137 = arith.addf %132, %136 : vector<12x128xf32>
    %138 = vector.broadcast %0 : vector<1x128xf32> to vector<12x128xf32>
    %139 = arith.addf %137, %138 : vector<12x128xf32>
    %cst_157 = arith.constant 0.000000e+00 : f32
    %140 = vector.broadcast %cst_157 : f32 to vector<12x128xf32>
    %141 = arith.maximumf %139, %140 : vector<12x128xf32>
    %142 = arith.truncf %141 : vector<12x128xf32> to vector<12x128xbf16>
    %c0_158 = arith.constant 0 : index
    %c4_159 = arith.constant 4 : index
    %c0_160 = arith.constant 0 : index
    %c0_161 = arith.constant 0 : index
    %143 = vector.load %arg4[%c0_158, %c4_159, %c0_160, %c0_161] : memref<1x12x12x128xbf16, #tpu.memory_space<vmem>>, vector<1x1x12x128xbf16>
    %144 = vector.shape_cast %143 : vector<1x1x12x128xbf16> to vector<12x128xbf16>
    %145 = vector.shape_cast %142 : vector<12x128xbf16> to vector<1x1x12x128xbf16>
    tpu.vector_store %arg4[%c0_158, %c4_159, %c0_160, %c0_161], %145 {strides = array<i32>} : memref<1x12x12x128xbf16, #tpu.memory_space<vmem>>, vector<1x1x12x128xbf16>,
    %cst_162 = arith.constant 0.000000e+00 : f32
    %146 = vector.broadcast %cst_162 : f32 to vector<12x128xf32>
    %c0_163 = arith.constant 0 : index
    %c5_164 = arith.constant 5 : index
    %c0_165 = arith.constant 0 : index
    %c0_166 = arith.constant 0 : index
    %147 = vector.load %arg1[%c0_163, %c5_164, %c0_165, %c0_166] : memref<1x13x13x64xbf16, #tpu.memory_space<vmem>>, vector<1x1x12x64xbf16>
    %148 = vector.shape_cast %147 : vector<1x1x12x64xbf16> to vector<12x64xbf16>
    %c0_167 = arith.constant 0 : index
    %c0_168 = arith.constant 0 : index
    %149 = vector.load %arg2[%c0_167, %c0_168] : memref<256x128xbf16, #tpu.memory_space<vmem>>, vector<64x128xbf16>
    %cst_169 = arith.constant dense<0.000000e+00> : vector<12x128xf32>
    %150 = tpu.matmul %148, %149, %cst_169 {dimension_numbers = #tpu.dot_dimension_numbers<[1], [0], [0], [1], [0, 0, 1, 1], [], []>} : vector<12x64xbf16>, vector<64x128xbf16>, vector<12x128xf32> -> vector<12x128xf32>
    %151 = arith.addf %146, %150 : vector<12x128xf32>
    %c0_170 = arith.constant 0 : index
    %c5_171 = arith.constant 5 : index
    %c1_172 = arith.constant 1 : index
    %c0_173 = arith.constant 0 : index
    %152 = vector.load %arg1[%c0_170, %c5_171, %c1_172, %c0_173] : memref<1x13x13x64xbf16, #tpu.memory_space<vmem>>, vector<1x1x12x64xbf16>
    %153 = vector.shape_cast %152 : vector<1x1x12x64xbf16> to vector<12x64xbf16>
    %c64_174 = arith.constant 64 : index
    %c0_175 = arith.constant 0 : index
    %154 = vector.load %arg2[%c64_174, %c0_175] : memref<256x128xbf16, #tpu.memory_space<vmem>>, vector<64x128xbf16>
    %cst_176 = arith.constant dense<0.000000e+00> : vector<12x128xf32>
    %155 = tpu.matmul %153, %154, %cst_176 {dimension_numbers = #tpu.dot_dimension_numbers<[1], [0], [0], [1], [0, 0, 1, 1], [], []>} : vector<12x64xbf16>, vector<64x128xbf16>, vector<12x128xf32> -> vector<12x128xf32>
    %156 = arith.addf %151, %155 : vector<12x128xf32>
    %c0_177 = arith.constant 0 : index
    %c6 = arith.constant 6 : index
    %c0_178 = arith.constant 0 : index
    %c0_179 = arith.constant 0 : index
    %157 = vector.load %arg1[%c0_177, %c6, %c0_178, %c0_179] : memref<1x13x13x64xbf16, #tpu.memory_space<vmem>>, vector<1x1x12x64xbf16>
    %158 = vector.shape_cast %157 : vector<1x1x12x64xbf16> to vector<12x64xbf16>
    %c128_180 = arith.constant 128 : index
    %c0_181 = arith.constant 0 : index
    %159 = vector.load %arg2[%c128_180, %c0_181] : memref<256x128xbf16, #tpu.memory_space<vmem>>, vector<64x128xbf16>
    %cst_182 = arith.constant dense<0.000000e+00> : vector<12x128xf32>
    %160 = tpu.matmul %158, %159, %cst_182 {dimension_numbers = #tpu.dot_dimension_numbers<[1], [0], [0], [1], [0, 0, 1, 1], [], []>} : vector<12x64xbf16>, vector<64x128xbf16>, vector<12x128xf32> -> vector<12x128xf32>
    %161 = arith.addf %156, %160 : vector<12x128xf32>
    %c0_183 = arith.constant 0 : index
    %c6_184 = arith.constant 6 : index
    %c1_185 = arith.constant 1 : index
    %c0_186 = arith.constant 0 : index
    %162 = vector.load %arg1[%c0_183, %c6_184, %c1_185, %c0_186] : memref<1x13x13x64xbf16, #tpu.memory_space<vmem>>, vector<1x1x12x64xbf16>
    %163 = vector.shape_cast %162 : vector<1x1x12x64xbf16> to vector<12x64xbf16>
    %c192_187 = arith.constant 192 : index
    %c0_188 = arith.constant 0 : index
    %164 = vector.load %arg2[%c192_187, %c0_188] : memref<256x128xbf16, #tpu.memory_space<vmem>>, vector<64x128xbf16>
    %cst_189 = arith.constant dense<0.000000e+00> : vector<12x128xf32>
    %165 = tpu.matmul %163, %164, %cst_189 {dimension_numbers = #tpu.dot_dimension_numbers<[1], [0], [0], [1], [0, 0, 1, 1], [], []>} : vector<12x64xbf16>, vector<64x128xbf16>, vector<12x128xf32> -> vector<12x128xf32>
    %166 = arith.addf %161, %165 : vector<12x128xf32>
    %167 = vector.broadcast %0 : vector<1x128xf32> to vector<12x128xf32>
    %168 = arith.addf %166, %167 : vector<12x128xf32>
    %cst_190 = arith.constant 0.000000e+00 : f32
    %169 = vector.broadcast %cst_190 : f32 to vector<12x128xf32>
    %170 = arith.maximumf %168, %169 : vector<12x128xf32>
    %171 = arith.truncf %170 : vector<12x128xf32> to vector<12x128xbf16>
    %c0_191 = arith.constant 0 : index
    %c5_192 = arith.constant 5 : index
    %c0_193 = arith.constant 0 : index
    %c0_194 = arith.constant 0 : index
    %172 = vector.load %arg4[%c0_191, %c5_192, %c0_193, %c0_194] : memref<1x12x12x128xbf16, #tpu.memory_space<vmem>>, vector<1x1x12x128xbf16>
    %173 = vector.shape_cast %172 : vector<1x1x12x128xbf16> to vector<12x128xbf16>
    %174 = vector.shape_cast %171 : vector<12x128xbf16> to vector<1x1x12x128xbf16>
    tpu.vector_store %arg4[%c0_191, %c5_192, %c0_193, %c0_194], %174 {strides = array<i32>} : memref<1x12x12x128xbf16, #tpu.memory_space<vmem>>, vector<1x1x12x128xbf16>,
    %cst_195 = arith.constant 0.000000e+00 : f32
    %175 = vector.broadcast %cst_195 : f32 to vector<12x128xf32>
    %c0_196 = arith.constant 0 : index
    %c6_197 = arith.constant 6 : index
    %c0_198 = arith.constant 0 : index
    %c0_199 = arith.constant 0 : index
    %176 = vector.load %arg1[%c0_196, %c6_197, %c0_198, %c0_199] : memref<1x13x13x64xbf16, #tpu.memory_space<vmem>>, vector<1x1x12x64xbf16>
    %177 = vector.shape_cast %176 : vector<1x1x12x64xbf16> to vector<12x64xbf16>
    %c0_200 = arith.constant 0 : index
    %c0_201 = arith.constant 0 : index
    %178 = vector.load %arg2[%c0_200, %c0_201] : memref<256x128xbf16, #tpu.memory_space<vmem>>, vector<64x128xbf16>
    %cst_202 = arith.constant dense<0.000000e+00> : vector<12x128xf32>
    %179 = tpu.matmul %177, %178, %cst_202 {dimension_numbers = #tpu.dot_dimension_numbers<[1], [0], [0], [1], [0, 0, 1, 1], [], []>} : vector<12x64xbf16>, vector<64x128xbf16>, vector<12x128xf32> -> vector<12x128xf32>
    %180 = arith.addf %175, %179 : vector<12x128xf32>
    %c0_203 = arith.constant 0 : index
    %c6_204 = arith.constant 6 : index
    %c1_205 = arith.constant 1 : index
    %c0_206 = arith.constant 0 : index
    %181 = vector.load %arg1[%c0_203, %c6_204, %c1_205, %c0_206] : memref<1x13x13x64xbf16, #tpu.memory_space<vmem>>, vector<1x1x12x64xbf16>
    %182 = vector.shape_cast %181 : vector<1x1x12x64xbf16> to vector<12x64xbf16>
    %c64_207 = arith.constant 64 : index
    %c0_208 = arith.constant 0 : index
    %183 = vector.load %arg2[%c64_207, %c0_208] : memref<256x128xbf16, #tpu.memory_space<vmem>>, vector<64x128xbf16>
    %cst_209 = arith.constant dense<0.000000e+00> : vector<12x128xf32>
    %184 = tpu.matmul %182, %183, %cst_209 {dimension_numbers = #tpu.dot_dimension_numbers<[1], [0], [0], [1], [0, 0, 1, 1], [], []>} : vector<12x64xbf16>, vector<64x128xbf16>, vector<12x128xf32> -> vector<12x128xf32>
    %185 = arith.addf %180, %184 : vector<12x128xf32>
    %c0_210 = arith.constant 0 : index
    %c7 = arith.constant 7 : index
    %c0_211 = arith.constant 0 : index
    %c0_212 = arith.constant 0 : index
    %186 = vector.load %arg1[%c0_210, %c7, %c0_211, %c0_212] : memref<1x13x13x64xbf16, #tpu.memory_space<vmem>>, vector<1x1x12x64xbf16>
    %187 = vector.shape_cast %186 : vector<1x1x12x64xbf16> to vector<12x64xbf16>
    %c128_213 = arith.constant 128 : index
    %c0_214 = arith.constant 0 : index
    %188 = vector.load %arg2[%c128_213, %c0_214] : memref<256x128xbf16, #tpu.memory_space<vmem>>, vector<64x128xbf16>
    %cst_215 = arith.constant dense<0.000000e+00> : vector<12x128xf32>
    %189 = tpu.matmul %187, %188, %cst_215 {dimension_numbers = #tpu.dot_dimension_numbers<[1], [0], [0], [1], [0, 0, 1, 1], [], []>} : vector<12x64xbf16>, vector<64x128xbf16>, vector<12x128xf32> -> vector<12x128xf32>
    %190 = arith.addf %185, %189 : vector<12x128xf32>
    %c0_216 = arith.constant 0 : index
    %c7_217 = arith.constant 7 : index
    %c1_218 = arith.constant 1 : index
    %c0_219 = arith.constant 0 : index
    %191 = vector.load %arg1[%c0_216, %c7_217, %c1_218, %c0_219] : memref<1x13x13x64xbf16, #tpu.memory_space<vmem>>, vector<1x1x12x64xbf16>
    %192 = vector.shape_cast %191 : vector<1x1x12x64xbf16> to vector<12x64xbf16>
    %c192_220 = arith.constant 192 : index
    %c0_221 = arith.constant 0 : index
    %193 = vector.load %arg2[%c192_220, %c0_221] : memref<256x128xbf16, #tpu.memory_space<vmem>>, vector<64x128xbf16>
    %cst_222 = arith.constant dense<0.000000e+00> : vector<12x128xf32>
    %194 = tpu.matmul %192, %193, %cst_222 {dimension_numbers = #tpu.dot_dimension_numbers<[1], [0], [0], [1], [0, 0, 1, 1], [], []>} : vector<12x64xbf16>, vector<64x128xbf16>, vector<12x128xf32> -> vector<12x128xf32>
    %195 = arith.addf %190, %194 : vector<12x128xf32>
    %196 = vector.broadcast %0 : vector<1x128xf32> to vector<12x128xf32>
    %197 = arith.addf %195, %196 : vector<12x128xf32>
    %cst_223 = arith.constant 0.000000e+00 : f32
    %198 = vector.broadcast %cst_223 : f32 to vector<12x128xf32>
    %199 = arith.maximumf %197, %198 : vector<12x128xf32>
    %200 = arith.truncf %199 : vector<12x128xf32> to vector<12x128xbf16>
    %c0_224 = arith.constant 0 : index
    %c6_225 = arith.constant 6 : index
    %c0_226 = arith.constant 0 : index
    %c0_227 = arith.constant 0 : index
    %201 = vector.load %arg4[%c0_224, %c6_225, %c0_226, %c0_227] : memref<1x12x12x128xbf16, #tpu.memory_space<vmem>>, vector<1x1x12x128xbf16>
    %202 = vector.shape_cast %201 : vector<1x1x12x128xbf16> to vector<12x128xbf16>
    %203 = vector.shape_cast %200 : vector<12x128xbf16> to vector<1x1x12x128xbf16>
    tpu.vector_store %arg4[%c0_224, %c6_225, %c0_226, %c0_227], %203 {strides = array<i32>} : memref<1x12x12x128xbf16, #tpu.memory_space<vmem>>, vector<1x1x12x128xbf16>,
    %cst_228 = arith.constant 0.000000e+00 : f32
    %204 = vector.broadcast %cst_228 : f32 to vector<12x128xf32>
    %c0_229 = arith.constant 0 : index
    %c7_230 = arith.constant 7 : index
    %c0_231 = arith.constant 0 : index
    %c0_232 = arith.constant 0 : index
    %205 = vector.load %arg1[%c0_229, %c7_230, %c0_231, %c0_232] : memref<1x13x13x64xbf16, #tpu.memory_space<vmem>>, vector<1x1x12x64xbf16>
    %206 = vector.shape_cast %205 : vector<1x1x12x64xbf16> to vector<12x64xbf16>
    %c0_233 = arith.constant 0 : index
    %c0_234 = arith.constant 0 : index
    %207 = vector.load %arg2[%c0_233, %c0_234] : memref<256x128xbf16, #tpu.memory_space<vmem>>, vector<64x128xbf16>
    %cst_235 = arith.constant dense<0.000000e+00> : vector<12x128xf32>
    %208 = tpu.matmul %206, %207, %cst_235 {dimension_numbers = #tpu.dot_dimension_numbers<[1], [0], [0], [1], [0, 0, 1, 1], [], []>} : vector<12x64xbf16>, vector<64x128xbf16>, vector<12x128xf32> -> vector<12x128xf32>
    %209 = arith.addf %204, %208 : vector<12x128xf32>
    %c0_236 = arith.constant 0 : index
    %c7_237 = arith.constant 7 : index
    %c1_238 = arith.constant 1 : index
    %c0_239 = arith.constant 0 : index
    %210 = vector.load %arg1[%c0_236, %c7_237, %c1_238, %c0_239] : memref<1x13x13x64xbf16, #tpu.memory_space<vmem>>, vector<1x1x12x64xbf16>
    %211 = vector.shape_cast %210 : vector<1x1x12x64xbf16> to vector<12x64xbf16>
    %c64_240 = arith.constant 64 : index
    %c0_241 = arith.constant 0 : index
    %212 = vector.load %arg2[%c64_240, %c0_241] : memref<256x128xbf16, #tpu.memory_space<vmem>>, vector<64x128xbf16>
    %cst_242 = arith.constant dense<0.000000e+00> : vector<12x128xf32>
    %213 = tpu.matmul %211, %212, %cst_242 {dimension_numbers = #tpu.dot_dimension_numbers<[1], [0], [0], [1], [0, 0, 1, 1], [], []>} : vector<12x64xbf16>, vector<64x128xbf16>, vector<12x128xf32> -> vector<12x128xf32>
    %214 = arith.addf %209, %213 : vector<12x128xf32>
    %c0_243 = arith.constant 0 : index
    %c8 = arith.constant 8 : index
    %c0_244 = arith.constant 0 : index
    %c0_245 = arith.constant 0 : index
    %215 = vector.load %arg1[%c0_243, %c8, %c0_244, %c0_245] : memref<1x13x13x64xbf16, #tpu.memory_space<vmem>>, vector<1x1x12x64xbf16>
    %216 = vector.shape_cast %215 : vector<1x1x12x64xbf16> to vector<12x64xbf16>
    %c128_246 = arith.constant 128 : index
    %c0_247 = arith.constant 0 : index
    %217 = vector.load %arg2[%c128_246, %c0_247] : memref<256x128xbf16, #tpu.memory_space<vmem>>, vector<64x128xbf16>
    %cst_248 = arith.constant dense<0.000000e+00> : vector<12x128xf32>
    %218 = tpu.matmul %216, %217, %cst_248 {dimension_numbers = #tpu.dot_dimension_numbers<[1], [0], [0], [1], [0, 0, 1, 1], [], []>} : vector<12x64xbf16>, vector<64x128xbf16>, vector<12x128xf32> -> vector<12x128xf32>
    %219 = arith.addf %214, %218 : vector<12x128xf32>
    %c0_249 = arith.constant 0 : index
    %c8_250 = arith.constant 8 : index
    %c1_251 = arith.constant 1 : index
    %c0_252 = arith.constant 0 : index
    %220 = vector.load %arg1[%c0_249, %c8_250, %c1_251, %c0_252] : memref<1x13x13x64xbf16, #tpu.memory_space<vmem>>, vector<1x1x12x64xbf16>
    %221 = vector.shape_cast %220 : vector<1x1x12x64xbf16> to vector<12x64xbf16>
    %c192_253 = arith.constant 192 : index
    %c0_254 = arith.constant 0 : index
    %222 = vector.load %arg2[%c192_253, %c0_254] : memref<256x128xbf16, #tpu.memory_space<vmem>>, vector<64x128xbf16>
    %cst_255 = arith.constant dense<0.000000e+00> : vector<12x128xf32>
    %223 = tpu.matmul %221, %222, %cst_255 {dimension_numbers = #tpu.dot_dimension_numbers<[1], [0], [0], [1], [0, 0, 1, 1], [], []>} : vector<12x64xbf16>, vector<64x128xbf16>, vector<12x128xf32> -> vector<12x128xf32>
    %224 = arith.addf %219, %223 : vector<12x128xf32>
    %225 = vector.broadcast %0 : vector<1x128xf32> to vector<12x128xf32>
    %226 = arith.addf %224, %225 : vector<12x128xf32>
    %cst_256 = arith.constant 0.000000e+00 : f32
    %227 = vector.broadcast %cst_256 : f32 to vector<12x128xf32>
    %228 = arith.maximumf %226, %227 : vector<12x128xf32>
    %229 = arith.truncf %228 : vector<12x128xf32> to vector<12x128xbf16>
    %c0_257 = arith.constant 0 : index
    %c7_258 = arith.constant 7 : index
    %c0_259 = arith.constant 0 : index
    %c0_260 = arith.constant 0 : index
    %230 = vector.load %arg4[%c0_257, %c7_258, %c0_259, %c0_260] : memref<1x12x12x128xbf16, #tpu.memory_space<vmem>>, vector<1x1x12x128xbf16>
    %231 = vector.shape_cast %230 : vector<1x1x12x128xbf16> to vector<12x128xbf16>
    %232 = vector.shape_cast %229 : vector<12x128xbf16> to vector<1x1x12x128xbf16>
    tpu.vector_store %arg4[%c0_257, %c7_258, %c0_259, %c0_260], %232 {strides = array<i32>} : memref<1x12x12x128xbf16, #tpu.memory_space<vmem>>, vector<1x1x12x128xbf16>,
    %cst_261 = arith.constant 0.000000e+00 : f32
    %233 = vector.broadcast %cst_261 : f32 to vector<12x128xf32>
    %c0_262 = arith.constant 0 : index
    %c8_263 = arith.constant 8 : index
    %c0_264 = arith.constant 0 : index
    %c0_265 = arith.constant 0 : index
    %234 = vector.load %arg1[%c0_262, %c8_263, %c0_264, %c0_265] : memref<1x13x13x64xbf16, #tpu.memory_space<vmem>>, vector<1x1x12x64xbf16>
    %235 = vector.shape_cast %234 : vector<1x1x12x64xbf16> to vector<12x64xbf16>
    %c0_266 = arith.constant 0 : index
    %c0_267 = arith.constant 0 : index
    %236 = vector.load %arg2[%c0_266, %c0_267] : memref<256x128xbf16, #tpu.memory_space<vmem>>, vector<64x128xbf16>
    %cst_268 = arith.constant dense<0.000000e+00> : vector<12x128xf32>
    %237 = tpu.matmul %235, %236, %cst_268 {dimension_numbers = #tpu.dot_dimension_numbers<[1], [0], [0], [1], [0, 0, 1, 1], [], []>} : vector<12x64xbf16>, vector<64x128xbf16>, vector<12x128xf32> -> vector<12x128xf32>
    %238 = arith.addf %233, %237 : vector<12x128xf32>
    %c0_269 = arith.constant 0 : index
    %c8_270 = arith.constant 8 : index
    %c1_271 = arith.constant 1 : index
    %c0_272 = arith.constant 0 : index
    %239 = vector.load %arg1[%c0_269, %c8_270, %c1_271, %c0_272] : memref<1x13x13x64xbf16, #tpu.memory_space<vmem>>, vector<1x1x12x64xbf16>
    %240 = vector.shape_cast %239 : vector<1x1x12x64xbf16> to vector<12x64xbf16>
    %c64_273 = arith.constant 64 : index
    %c0_274 = arith.constant 0 : index
    %241 = vector.load %arg2[%c64_273, %c0_274] : memref<256x128xbf16, #tpu.memory_space<vmem>>, vector<64x128xbf16>
    %cst_275 = arith.constant dense<0.000000e+00> : vector<12x128xf32>
    %242 = tpu.matmul %240, %241, %cst_275 {dimension_numbers = #tpu.dot_dimension_numbers<[1], [0], [0], [1], [0, 0, 1, 1], [], []>} : vector<12x64xbf16>, vector<64x128xbf16>, vector<12x128xf32> -> vector<12x128xf32>
    %243 = arith.addf %238, %242 : vector<12x128xf32>
    %c0_276 = arith.constant 0 : index
    %c9 = arith.constant 9 : index
    %c0_277 = arith.constant 0 : index
    %c0_278 = arith.constant 0 : index
    %244 = vector.load %arg1[%c0_276, %c9, %c0_277, %c0_278] : memref<1x13x13x64xbf16, #tpu.memory_space<vmem>>, vector<1x1x12x64xbf16>
    %245 = vector.shape_cast %244 : vector<1x1x12x64xbf16> to vector<12x64xbf16>
    %c128_279 = arith.constant 128 : index
    %c0_280 = arith.constant 0 : index
    %246 = vector.load %arg2[%c128_279, %c0_280] : memref<256x128xbf16, #tpu.memory_space<vmem>>, vector<64x128xbf16>
    %cst_281 = arith.constant dense<0.000000e+00> : vector<12x128xf32>
    %247 = tpu.matmul %245, %246, %cst_281 {dimension_numbers = #tpu.dot_dimension_numbers<[1], [0], [0], [1], [0, 0, 1, 1], [], []>} : vector<12x64xbf16>, vector<64x128xbf16>, vector<12x128xf32> -> vector<12x128xf32>
    %248 = arith.addf %243, %247 : vector<12x128xf32>
    %c0_282 = arith.constant 0 : index
    %c9_283 = arith.constant 9 : index
    %c1_284 = arith.constant 1 : index
    %c0_285 = arith.constant 0 : index
    %249 = vector.load %arg1[%c0_282, %c9_283, %c1_284, %c0_285] : memref<1x13x13x64xbf16, #tpu.memory_space<vmem>>, vector<1x1x12x64xbf16>
    %250 = vector.shape_cast %249 : vector<1x1x12x64xbf16> to vector<12x64xbf16>
    %c192_286 = arith.constant 192 : index
    %c0_287 = arith.constant 0 : index
    %251 = vector.load %arg2[%c192_286, %c0_287] : memref<256x128xbf16, #tpu.memory_space<vmem>>, vector<64x128xbf16>
    %cst_288 = arith.constant dense<0.000000e+00> : vector<12x128xf32>
    %252 = tpu.matmul %250, %251, %cst_288 {dimension_numbers = #tpu.dot_dimension_numbers<[1], [0], [0], [1], [0, 0, 1, 1], [], []>} : vector<12x64xbf16>, vector<64x128xbf16>, vector<12x128xf32> -> vector<12x128xf32>
    %253 = arith.addf %248, %252 : vector<12x128xf32>
    %254 = vector.broadcast %0 : vector<1x128xf32> to vector<12x128xf32>
    %255 = arith.addf %253, %254 : vector<12x128xf32>
    %cst_289 = arith.constant 0.000000e+00 : f32
    %256 = vector.broadcast %cst_289 : f32 to vector<12x128xf32>
    %257 = arith.maximumf %255, %256 : vector<12x128xf32>
    %258 = arith.truncf %257 : vector<12x128xf32> to vector<12x128xbf16>
    %c0_290 = arith.constant 0 : index
    %c8_291 = arith.constant 8 : index
    %c0_292 = arith.constant 0 : index
    %c0_293 = arith.constant 0 : index
    %259 = vector.load %arg4[%c0_290, %c8_291, %c0_292, %c0_293] : memref<1x12x12x128xbf16, #tpu.memory_space<vmem>>, vector<1x1x12x128xbf16>
    %260 = vector.shape_cast %259 : vector<1x1x12x128xbf16> to vector<12x128xbf16>
    %261 = vector.shape_cast %258 : vector<12x128xbf16> to vector<1x1x12x128xbf16>
    tpu.vector_store %arg4[%c0_290, %c8_291, %c0_292, %c0_293], %261 {strides = array<i32>} : memref<1x12x12x128xbf16, #tpu.memory_space<vmem>>, vector<1x1x12x128xbf16>,
    %cst_294 = arith.constant 0.000000e+00 : f32
    %262 = vector.broadcast %cst_294 : f32 to vector<12x128xf32>
    %c0_295 = arith.constant 0 : index
    %c9_296 = arith.constant 9 : index
    %c0_297 = arith.constant 0 : index
    %c0_298 = arith.constant 0 : index
    %263 = vector.load %arg1[%c0_295, %c9_296, %c0_297, %c0_298] : memref<1x13x13x64xbf16, #tpu.memory_space<vmem>>, vector<1x1x12x64xbf16>
    %264 = vector.shape_cast %263 : vector<1x1x12x64xbf16> to vector<12x64xbf16>
    %c0_299 = arith.constant 0 : index
    %c0_300 = arith.constant 0 : index
    %265 = vector.load %arg2[%c0_299, %c0_300] : memref<256x128xbf16, #tpu.memory_space<vmem>>, vector<64x128xbf16>
    %cst_301 = arith.constant dense<0.000000e+00> : vector<12x128xf32>
    %266 = tpu.matmul %264, %265, %cst_301 {dimension_numbers = #tpu.dot_dimension_numbers<[1], [0], [0], [1], [0, 0, 1, 1], [], []>} : vector<12x64xbf16>, vector<64x128xbf16>, vector<12x128xf32> -> vector<12x128xf32>
    %267 = arith.addf %262, %266 : vector<12x128xf32>
    %c0_302 = arith.constant 0 : index
    %c9_303 = arith.constant 9 : index
    %c1_304 = arith.constant 1 : index
    %c0_305 = arith.constant 0 : index
    %268 = vector.load %arg1[%c0_302, %c9_303, %c1_304, %c0_305] : memref<1x13x13x64xbf16, #tpu.memory_space<vmem>>, vector<1x1x12x64xbf16>
    %269 = vector.shape_cast %268 : vector<1x1x12x64xbf16> to vector<12x64xbf16>
    %c64_306 = arith.constant 64 : index
    %c0_307 = arith.constant 0 : index
    %270 = vector.load %arg2[%c64_306, %c0_307] : memref<256x128xbf16, #tpu.memory_space<vmem>>, vector<64x128xbf16>
    %cst_308 = arith.constant dense<0.000000e+00> : vector<12x128xf32>
    %271 = tpu.matmul %269, %270, %cst_308 {dimension_numbers = #tpu.dot_dimension_numbers<[1], [0], [0], [1], [0, 0, 1, 1], [], []>} : vector<12x64xbf16>, vector<64x128xbf16>, vector<12x128xf32> -> vector<12x128xf32>
    %272 = arith.addf %267, %271 : vector<12x128xf32>
    %c0_309 = arith.constant 0 : index
    %c10 = arith.constant 10 : index
    %c0_310 = arith.constant 0 : index
    %c0_311 = arith.constant 0 : index
    %273 = vector.load %arg1[%c0_309, %c10, %c0_310, %c0_311] : memref<1x13x13x64xbf16, #tpu.memory_space<vmem>>, vector<1x1x12x64xbf16>
    %274 = vector.shape_cast %273 : vector<1x1x12x64xbf16> to vector<12x64xbf16>
    %c128_312 = arith.constant 128 : index
    %c0_313 = arith.constant 0 : index
    %275 = vector.load %arg2[%c128_312, %c0_313] : memref<256x128xbf16, #tpu.memory_space<vmem>>, vector<64x128xbf16>
    %cst_314 = arith.constant dense<0.000000e+00> : vector<12x128xf32>
    %276 = tpu.matmul %274, %275, %cst_314 {dimension_numbers = #tpu.dot_dimension_numbers<[1], [0], [0], [1], [0, 0, 1, 1], [], []>} : vector<12x64xbf16>, vector<64x128xbf16>, vector<12x128xf32> -> vector<12x128xf32>
    %277 = arith.addf %272, %276 : vector<12x128xf32>
    %c0_315 = arith.constant 0 : index
    %c10_316 = arith.constant 10 : index
    %c1_317 = arith.constant 1 : index
    %c0_318 = arith.constant 0 : index
    %278 = vector.load %arg1[%c0_315, %c10_316, %c1_317, %c0_318] : memref<1x13x13x64xbf16, #tpu.memory_space<vmem>>, vector<1x1x12x64xbf16>
    %279 = vector.shape_cast %278 : vector<1x1x12x64xbf16> to vector<12x64xbf16>
    %c192_319 = arith.constant 192 : index
    %c0_320 = arith.constant 0 : index
    %280 = vector.load %arg2[%c192_319, %c0_320] : memref<256x128xbf16, #tpu.memory_space<vmem>>, vector<64x128xbf16>
    %cst_321 = arith.constant dense<0.000000e+00> : vector<12x128xf32>
    %281 = tpu.matmul %279, %280, %cst_321 {dimension_numbers = #tpu.dot_dimension_numbers<[1], [0], [0], [1], [0, 0, 1, 1], [], []>} : vector<12x64xbf16>, vector<64x128xbf16>, vector<12x128xf32> -> vector<12x128xf32>
    %282 = arith.addf %277, %281 : vector<12x128xf32>
    %283 = vector.broadcast %0 : vector<1x128xf32> to vector<12x128xf32>
    %284 = arith.addf %282, %283 : vector<12x128xf32>
    %cst_322 = arith.constant 0.000000e+00 : f32
    %285 = vector.broadcast %cst_322 : f32 to vector<12x128xf32>
    %286 = arith.maximumf %284, %285 : vector<12x128xf32>
    %287 = arith.truncf %286 : vector<12x128xf32> to vector<12x128xbf16>
    %c0_323 = arith.constant 0 : index
    %c9_324 = arith.constant 9 : index
    %c0_325 = arith.constant 0 : index
    %c0_326 = arith.constant 0 : index
    %288 = vector.load %arg4[%c0_323, %c9_324, %c0_325, %c0_326] : memref<1x12x12x128xbf16, #tpu.memory_space<vmem>>, vector<1x1x12x128xbf16>
    %289 = vector.shape_cast %288 : vector<1x1x12x128xbf16> to vector<12x128xbf16>
    %290 = vector.shape_cast %287 : vector<12x128xbf16> to vector<1x1x12x128xbf16>
    tpu.vector_store %arg4[%c0_323, %c9_324, %c0_325, %c0_326], %290 {strides = array<i32>} : memref<1x12x12x128xbf16, #tpu.memory_space<vmem>>, vector<1x1x12x128xbf16>,
    %cst_327 = arith.constant 0.000000e+00 : f32
    %291 = vector.broadcast %cst_327 : f32 to vector<12x128xf32>
    %c0_328 = arith.constant 0 : index
    %c10_329 = arith.constant 10 : index
    %c0_330 = arith.constant 0 : index
    %c0_331 = arith.constant 0 : index
    %292 = vector.load %arg1[%c0_328, %c10_329, %c0_330, %c0_331] : memref<1x13x13x64xbf16, #tpu.memory_space<vmem>>, vector<1x1x12x64xbf16>
    %293 = vector.shape_cast %292 : vector<1x1x12x64xbf16> to vector<12x64xbf16>
    %c0_332 = arith.constant 0 : index
    %c0_333 = arith.constant 0 : index
    %294 = vector.load %arg2[%c0_332, %c0_333] : memref<256x128xbf16, #tpu.memory_space<vmem>>, vector<64x128xbf16>
    %cst_334 = arith.constant dense<0.000000e+00> : vector<12x128xf32>
    %295 = tpu.matmul %293, %294, %cst_334 {dimension_numbers = #tpu.dot_dimension_numbers<[1], [0], [0], [1], [0, 0, 1, 1], [], []>} : vector<12x64xbf16>, vector<64x128xbf16>, vector<12x128xf32> -> vector<12x128xf32>
    %296 = arith.addf %291, %295 : vector<12x128xf32>
    %c0_335 = arith.constant 0 : index
    %c10_336 = arith.constant 10 : index
    %c1_337 = arith.constant 1 : index
    %c0_338 = arith.constant 0 : index
    %297 = vector.load %arg1[%c0_335, %c10_336, %c1_337, %c0_338] : memref<1x13x13x64xbf16, #tpu.memory_space<vmem>>, vector<1x1x12x64xbf16>
    %298 = vector.shape_cast %297 : vector<1x1x12x64xbf16> to vector<12x64xbf16>
    %c64_339 = arith.constant 64 : index
    %c0_340 = arith.constant 0 : index
    %299 = vector.load %arg2[%c64_339, %c0_340] : memref<256x128xbf16, #tpu.memory_space<vmem>>, vector<64x128xbf16>
    %cst_341 = arith.constant dense<0.000000e+00> : vector<12x128xf32>
    %300 = tpu.matmul %298, %299, %cst_341 {dimension_numbers = #tpu.dot_dimension_numbers<[1], [0], [0], [1], [0, 0, 1, 1], [], []>} : vector<12x64xbf16>, vector<64x128xbf16>, vector<12x128xf32> -> vector<12x128xf32>
    %301 = arith.addf %296, %300 : vector<12x128xf32>
    %c0_342 = arith.constant 0 : index
    %c11 = arith.constant 11 : index
    %c0_343 = arith.constant 0 : index
    %c0_344 = arith.constant 0 : index
    %302 = vector.load %arg1[%c0_342, %c11, %c0_343, %c0_344] : memref<1x13x13x64xbf16, #tpu.memory_space<vmem>>, vector<1x1x12x64xbf16>
    %303 = vector.shape_cast %302 : vector<1x1x12x64xbf16> to vector<12x64xbf16>
    %c128_345 = arith.constant 128 : index
    %c0_346 = arith.constant 0 : index
    %304 = vector.load %arg2[%c128_345, %c0_346] : memref<256x128xbf16, #tpu.memory_space<vmem>>, vector<64x128xbf16>
    %cst_347 = arith.constant dense<0.000000e+00> : vector<12x128xf32>
    %305 = tpu.matmul %303, %304, %cst_347 {dimension_numbers = #tpu.dot_dimension_numbers<[1], [0], [0], [1], [0, 0, 1, 1], [], []>} : vector<12x64xbf16>, vector<64x128xbf16>, vector<12x128xf32> -> vector<12x128xf32>
    %306 = arith.addf %301, %305 : vector<12x128xf32>
    %c0_348 = arith.constant 0 : index
    %c11_349 = arith.constant 11 : index
    %c1_350 = arith.constant 1 : index
    %c0_351 = arith.constant 0 : index
    %307 = vector.load %arg1[%c0_348, %c11_349, %c1_350, %c0_351] : memref<1x13x13x64xbf16, #tpu.memory_space<vmem>>, vector<1x1x12x64xbf16>
    %308 = vector.shape_cast %307 : vector<1x1x12x64xbf16> to vector<12x64xbf16>
    %c192_352 = arith.constant 192 : index
    %c0_353 = arith.constant 0 : index
    %309 = vector.load %arg2[%c192_352, %c0_353] : memref<256x128xbf16, #tpu.memory_space<vmem>>, vector<64x128xbf16>
    %cst_354 = arith.constant dense<0.000000e+00> : vector<12x128xf32>
    %310 = tpu.matmul %308, %309, %cst_354 {dimension_numbers = #tpu.dot_dimension_numbers<[1], [0], [0], [1], [0, 0, 1, 1], [], []>} : vector<12x64xbf16>, vector<64x128xbf16>, vector<12x128xf32> -> vector<12x128xf32>
    %311 = arith.addf %306, %310 : vector<12x128xf32>
    %312 = vector.broadcast %0 : vector<1x128xf32> to vector<12x128xf32>
    %313 = arith.addf %311, %312 : vector<12x128xf32>
    %cst_355 = arith.constant 0.000000e+00 : f32
    %314 = vector.broadcast %cst_355 : f32 to vector<12x128xf32>
    %315 = arith.maximumf %313, %314 : vector<12x128xf32>
    %316 = arith.truncf %315 : vector<12x128xf32> to vector<12x128xbf16>
    %c0_356 = arith.constant 0 : index
    %c10_357 = arith.constant 10 : index
    %c0_358 = arith.constant 0 : index
    %c0_359 = arith.constant 0 : index
    %317 = vector.load %arg4[%c0_356, %c10_357, %c0_358, %c0_359] : memref<1x12x12x128xbf16, #tpu.memory_space<vmem>>, vector<1x1x12x128xbf16>
    %318 = vector.shape_cast %317 : vector<1x1x12x128xbf16> to vector<12x128xbf16>
    %319 = vector.shape_cast %316 : vector<12x128xbf16> to vector<1x1x12x128xbf16>
    tpu.vector_store %arg4[%c0_356, %c10_357, %c0_358, %c0_359], %319 {strides = array<i32>} : memref<1x12x12x128xbf16, #tpu.memory_space<vmem>>, vector<1x1x12x128xbf16>,
    %cst_360 = arith.constant 0.000000e+00 : f32
    %320 = vector.broadcast %cst_360 : f32 to vector<12x128xf32>
    %c0_361 = arith.constant 0 : index
    %c11_362 = arith.constant 11 : index
    %c0_363 = arith.constant 0 : index
    %c0_364 = arith.constant 0 : index
    %321 = vector.load %arg1[%c0_361, %c11_362, %c0_363, %c0_364] : memref<1x13x13x64xbf16, #tpu.memory_space<vmem>>, vector<1x1x12x64xbf16>
    %322 = vector.shape_cast %321 : vector<1x1x12x64xbf16> to vector<12x64xbf16>
    %c0_365 = arith.constant 0 : index
    %c0_366 = arith.constant 0 : index
    %323 = vector.load %arg2[%c0_365, %c0_366] : memref<256x128xbf16, #tpu.memory_space<vmem>>, vector<64x128xbf16>
    %cst_367 = arith.constant dense<0.000000e+00> : vector<12x128xf32>
    %324 = tpu.matmul %322, %323, %cst_367 {dimension_numbers = #tpu.dot_dimension_numbers<[1], [0], [0], [1], [0, 0, 1, 1], [], []>} : vector<12x64xbf16>, vector<64x128xbf16>, vector<12x128xf32> -> vector<12x128xf32>
    %325 = arith.addf %320, %324 : vector<12x128xf32>
    %c0_368 = arith.constant 0 : index
    %c11_369 = arith.constant 11 : index
    %c1_370 = arith.constant 1 : index
    %c0_371 = arith.constant 0 : index
    %326 = vector.load %arg1[%c0_368, %c11_369, %c1_370, %c0_371] : memref<1x13x13x64xbf16, #tpu.memory_space<vmem>>, vector<1x1x12x64xbf16>
    %327 = vector.shape_cast %326 : vector<1x1x12x64xbf16> to vector<12x64xbf16>
    %c64_372 = arith.constant 64 : index
    %c0_373 = arith.constant 0 : index
    %328 = vector.load %arg2[%c64_372, %c0_373] : memref<256x128xbf16, #tpu.memory_space<vmem>>, vector<64x128xbf16>
    %cst_374 = arith.constant dense<0.000000e+00> : vector<12x128xf32>
    %329 = tpu.matmul %327, %328, %cst_374 {dimension_numbers = #tpu.dot_dimension_numbers<[1], [0], [0], [1], [0, 0, 1, 1], [], []>} : vector<12x64xbf16>, vector<64x128xbf16>, vector<12x128xf32> -> vector<12x128xf32>
    %330 = arith.addf %325, %329 : vector<12x128xf32>
    %c0_375 = arith.constant 0 : index
    %c12 = arith.constant 12 : index
    %c0_376 = arith.constant 0 : index
    %c0_377 = arith.constant 0 : index
    %331 = vector.load %arg1[%c0_375, %c12, %c0_376, %c0_377] : memref<1x13x13x64xbf16, #tpu.memory_space<vmem>>, vector<1x1x12x64xbf16>
    %332 = vector.shape_cast %331 : vector<1x1x12x64xbf16> to vector<12x64xbf16>
    %c128_378 = arith.constant 128 : index
    %c0_379 = arith.constant 0 : index
    %333 = vector.load %arg2[%c128_378, %c0_379] : memref<256x128xbf16, #tpu.memory_space<vmem>>, vector<64x128xbf16>
    %cst_380 = arith.constant dense<0.000000e+00> : vector<12x128xf32>
    %334 = tpu.matmul %332, %333, %cst_380 {dimension_numbers = #tpu.dot_dimension_numbers<[1], [0], [0], [1], [0, 0, 1, 1], [], []>} : vector<12x64xbf16>, vector<64x128xbf16>, vector<12x128xf32> -> vector<12x128xf32>
    %335 = arith.addf %330, %334 : vector<12x128xf32>
    %c0_381 = arith.constant 0 : index
    %c12_382 = arith.constant 12 : index
    %c1_383 = arith.constant 1 : index
    %c0_384 = arith.constant 0 : index
    %336 = vector.load %arg1[%c0_381, %c12_382, %c1_383, %c0_384] : memref<1x13x13x64xbf16, #tpu.memory_space<vmem>>, vector<1x1x12x64xbf16>
    %337 = vector.shape_cast %336 : vector<1x1x12x64xbf16> to vector<12x64xbf16>
    %c192_385 = arith.constant 192 : index
    %c0_386 = arith.constant 0 : index
    %338 = vector.load %arg2[%c192_385, %c0_386] : memref<256x128xbf16, #tpu.memory_space<vmem>>, vector<64x128xbf16>
    %cst_387 = arith.constant dense<0.000000e+00> : vector<12x128xf32>
    %339 = tpu.matmul %337, %338, %cst_387 {dimension_numbers = #tpu.dot_dimension_numbers<[1], [0], [0], [1], [0, 0, 1, 1], [], []>} : vector<12x64xbf16>, vector<64x128xbf16>, vector<12x128xf32> -> vector<12x128xf32>
    %340 = arith.addf %335, %339 : vector<12x128xf32>
    %341 = vector.broadcast %0 : vector<1x128xf32> to vector<12x128xf32>
    %342 = arith.addf %340, %341 : vector<12x128xf32>
    %cst_388 = arith.constant 0.000000e+00 : f32
    %343 = vector.broadcast %cst_388 : f32 to vector<12x128xf32>
    %344 = arith.maximumf %342, %343 : vector<12x128xf32>
    %345 = arith.truncf %344 : vector<12x128xf32> to vector<12x128xbf16>
    %c0_389 = arith.constant 0 : index
    %c11_390 = arith.constant 11 : index
    %c0_391 = arith.constant 0 : index
    %c0_392 = arith.constant 0 : index
    %346 = vector.load %arg4[%c0_389, %c11_390, %c0_391, %c0_392] : memref<1x12x12x128xbf16, #tpu.memory_space<vmem>>, vector<1x1x12x128xbf16>
    %347 = vector.shape_cast %346 : vector<1x1x12x128xbf16> to vector<12x128xbf16>
    %348 = vector.shape_cast %345 : vector<12x128xbf16> to vector<1x1x12x128xbf16>
    tpu.vector_store %arg4[%c0_389, %c11_390, %c0_391, %c0_392], %348 {strides = array<i32>} : memref<1x12x12x128xbf16, #tpu.memory_space<vmem>>, vector<1x1x12x128xbf16>,
    return
  }
  func.func @transform_0(%arg0: i32) -> (i32, i32, i32, i32) {
    %c0_i32 = arith.constant 0 : i32
    %c0_i32_0 = arith.constant 0 : i32
    %c0_i32_1 = arith.constant 0 : i32
    %c0_i32_2 = arith.constant 0 : i32
    return %arg0, %c0_i32, %c0_i32_0, %c0_i32_1 : i32, i32, i32, i32
  }
  func.func @transform_1(%arg0: i32) -> (i32, i32) {
    %c0_i32 = arith.constant 0 : i32
    %c0_i32_0 = arith.constant 0 : i32
    %c0_i32_1 = arith.constant 0 : i32
    return %c0_i32, %c0_i32_0 : i32, i32
  }
  func.func @transform_2(%arg0: i32) -> (i32, i32) {
    %c0_i32 = arith.constant 0 : i32
    %c0_i32_0 = arith.constant 0 : i32
    %c0_i32_1 = arith.constant 0 : i32
    return %c0_i32, %c0_i32_0 : i32, i32
  }
  func.func @transform_3(%arg0: i32) -> (i32, i32, i32, i32) {
    %c0_i32 = arith.constant 0 : i32
    %c0_i32_0 = arith.constant 0 : i32
    %c0_i32_1 = arith.constant 0 : i32
    %c0_i32_2 = arith.constant 0 : i32
    return %arg0, %c0_i32, %c0_i32_0, %c0_i32_1 : i32, i32, i32, i32
  }
}

module attributes {stable_mosaic.version = 11 : i64} {
  func.func @_conv_kernel(%arg0: i32, %arg1: memref<1x6x6x128xbf16, #tpu.memory_space<vmem>>, %arg2: memref<512x128xbf16, #tpu.memory_space<vmem>>, %arg3: memref<1x128xf32, #tpu.memory_space<vmem>>, %arg4: memref<1x5x5x128xbf16, #tpu.memory_space<vmem>>) attributes {dimension_semantics = [#tpu.dimension_semantics<parallel>], iteration_bounds = array<i64: 2>, scalar_prefetch = 0 : i64, scratch_operands = 0 : i64, tpu.core_type = #tpu.core_type<tc>, window_params = [{transform_indices = @transform_0, window_bounds = array<i64: 1, 6, 6, 128>}, {pipeline_mode = #tpu.pipeline_mode<synchronous>, transform_indices = @transform_1, window_bounds = array<i64: 512, 128>}, {pipeline_mode = #tpu.pipeline_mode<synchronous>, transform_indices = @transform_2, window_bounds = array<i64: 1, 128>}, {transform_indices = @transform_3, window_bounds = array<i64: 1, 5, 5, 128>}]} {
    %c0 = arith.constant 0 : index
    %c0_0 = arith.constant 0 : index
    %0 = vector.load %arg3[%c0, %c0_0] : memref<1x128xf32, #tpu.memory_space<vmem>>, vector<1x128xf32>
    %cst = arith.constant 0.000000e+00 : f32
    %1 = vector.broadcast %cst : f32 to vector<5x128xf32>
    %c0_1 = arith.constant 0 : index
    %c0_2 = arith.constant 0 : index
    %c0_3 = arith.constant 0 : index
    %c0_4 = arith.constant 0 : index
    %2 = vector.load %arg1[%c0_1, %c0_2, %c0_3, %c0_4] : memref<1x6x6x128xbf16, #tpu.memory_space<vmem>>, vector<1x1x5x128xbf16>
    %3 = vector.shape_cast %2 : vector<1x1x5x128xbf16> to vector<5x128xbf16>
    %c0_5 = arith.constant 0 : index
    %c0_6 = arith.constant 0 : index
    %4 = vector.load %arg2[%c0_5, %c0_6] : memref<512x128xbf16, #tpu.memory_space<vmem>>, vector<128x128xbf16>
    %cst_7 = arith.constant dense<0.000000e+00> : vector<5x128xf32>
    %5 = tpu.matmul %3, %4, %cst_7 {dimension_numbers = #tpu.dot_dimension_numbers<[1], [0], [0], [1], [0, 0, 1, 1], [], []>} : vector<5x128xbf16>, vector<128x128xbf16>, vector<5x128xf32> -> vector<5x128xf32>
    %6 = arith.addf %1, %5 : vector<5x128xf32>
    %c0_8 = arith.constant 0 : index
    %c0_9 = arith.constant 0 : index
    %c1 = arith.constant 1 : index
    %c0_10 = arith.constant 0 : index
    %7 = vector.load %arg1[%c0_8, %c0_9, %c1, %c0_10] : memref<1x6x6x128xbf16, #tpu.memory_space<vmem>>, vector<1x1x5x128xbf16>
    %8 = vector.shape_cast %7 : vector<1x1x5x128xbf16> to vector<5x128xbf16>
    %c128 = arith.constant 128 : index
    %c0_11 = arith.constant 0 : index
    %9 = vector.load %arg2[%c128, %c0_11] : memref<512x128xbf16, #tpu.memory_space<vmem>>, vector<128x128xbf16>
    %cst_12 = arith.constant dense<0.000000e+00> : vector<5x128xf32>
    %10 = tpu.matmul %8, %9, %cst_12 {dimension_numbers = #tpu.dot_dimension_numbers<[1], [0], [0], [1], [0, 0, 1, 1], [], []>} : vector<5x128xbf16>, vector<128x128xbf16>, vector<5x128xf32> -> vector<5x128xf32>
    %11 = arith.addf %6, %10 : vector<5x128xf32>
    %c0_13 = arith.constant 0 : index
    %c1_14 = arith.constant 1 : index
    %c0_15 = arith.constant 0 : index
    %c0_16 = arith.constant 0 : index
    %12 = vector.load %arg1[%c0_13, %c1_14, %c0_15, %c0_16] : memref<1x6x6x128xbf16, #tpu.memory_space<vmem>>, vector<1x1x5x128xbf16>
    %13 = vector.shape_cast %12 : vector<1x1x5x128xbf16> to vector<5x128xbf16>
    %c256 = arith.constant 256 : index
    %c0_17 = arith.constant 0 : index
    %14 = vector.load %arg2[%c256, %c0_17] : memref<512x128xbf16, #tpu.memory_space<vmem>>, vector<128x128xbf16>
    %cst_18 = arith.constant dense<0.000000e+00> : vector<5x128xf32>
    %15 = tpu.matmul %13, %14, %cst_18 {dimension_numbers = #tpu.dot_dimension_numbers<[1], [0], [0], [1], [0, 0, 1, 1], [], []>} : vector<5x128xbf16>, vector<128x128xbf16>, vector<5x128xf32> -> vector<5x128xf32>
    %16 = arith.addf %11, %15 : vector<5x128xf32>
    %c0_19 = arith.constant 0 : index
    %c1_20 = arith.constant 1 : index
    %c1_21 = arith.constant 1 : index
    %c0_22 = arith.constant 0 : index
    %17 = vector.load %arg1[%c0_19, %c1_20, %c1_21, %c0_22] : memref<1x6x6x128xbf16, #tpu.memory_space<vmem>>, vector<1x1x5x128xbf16>
    %18 = vector.shape_cast %17 : vector<1x1x5x128xbf16> to vector<5x128xbf16>
    %c384 = arith.constant 384 : index
    %c0_23 = arith.constant 0 : index
    %19 = vector.load %arg2[%c384, %c0_23] : memref<512x128xbf16, #tpu.memory_space<vmem>>, vector<128x128xbf16>
    %cst_24 = arith.constant dense<0.000000e+00> : vector<5x128xf32>
    %20 = tpu.matmul %18, %19, %cst_24 {dimension_numbers = #tpu.dot_dimension_numbers<[1], [0], [0], [1], [0, 0, 1, 1], [], []>} : vector<5x128xbf16>, vector<128x128xbf16>, vector<5x128xf32> -> vector<5x128xf32>
    %21 = arith.addf %16, %20 : vector<5x128xf32>
    %22 = vector.broadcast %0 : vector<1x128xf32> to vector<5x128xf32>
    %23 = arith.addf %21, %22 : vector<5x128xf32>
    %cst_25 = arith.constant 0.000000e+00 : f32
    %24 = vector.broadcast %cst_25 : f32 to vector<5x128xf32>
    %25 = arith.maximumf %23, %24 : vector<5x128xf32>
    %26 = arith.truncf %25 : vector<5x128xf32> to vector<5x128xbf16>
    %c0_26 = arith.constant 0 : index
    %c0_27 = arith.constant 0 : index
    %c0_28 = arith.constant 0 : index
    %c0_29 = arith.constant 0 : index
    %27 = vector.load %arg4[%c0_26, %c0_27, %c0_28, %c0_29] : memref<1x5x5x128xbf16, #tpu.memory_space<vmem>>, vector<1x1x5x128xbf16>
    %28 = vector.shape_cast %27 : vector<1x1x5x128xbf16> to vector<5x128xbf16>
    %29 = vector.shape_cast %26 : vector<5x128xbf16> to vector<1x1x5x128xbf16>
    tpu.vector_store %arg4[%c0_26, %c0_27, %c0_28, %c0_29], %29 {strides = array<i32>} : memref<1x5x5x128xbf16, #tpu.memory_space<vmem>>, vector<1x1x5x128xbf16>,
    %cst_30 = arith.constant 0.000000e+00 : f32
    %30 = vector.broadcast %cst_30 : f32 to vector<5x128xf32>
    %c0_31 = arith.constant 0 : index
    %c1_32 = arith.constant 1 : index
    %c0_33 = arith.constant 0 : index
    %c0_34 = arith.constant 0 : index
    %31 = vector.load %arg1[%c0_31, %c1_32, %c0_33, %c0_34] : memref<1x6x6x128xbf16, #tpu.memory_space<vmem>>, vector<1x1x5x128xbf16>
    %32 = vector.shape_cast %31 : vector<1x1x5x128xbf16> to vector<5x128xbf16>
    %c0_35 = arith.constant 0 : index
    %c0_36 = arith.constant 0 : index
    %33 = vector.load %arg2[%c0_35, %c0_36] : memref<512x128xbf16, #tpu.memory_space<vmem>>, vector<128x128xbf16>
    %cst_37 = arith.constant dense<0.000000e+00> : vector<5x128xf32>
    %34 = tpu.matmul %32, %33, %cst_37 {dimension_numbers = #tpu.dot_dimension_numbers<[1], [0], [0], [1], [0, 0, 1, 1], [], []>} : vector<5x128xbf16>, vector<128x128xbf16>, vector<5x128xf32> -> vector<5x128xf32>
    %35 = arith.addf %30, %34 : vector<5x128xf32>
    %c0_38 = arith.constant 0 : index
    %c1_39 = arith.constant 1 : index
    %c1_40 = arith.constant 1 : index
    %c0_41 = arith.constant 0 : index
    %36 = vector.load %arg1[%c0_38, %c1_39, %c1_40, %c0_41] : memref<1x6x6x128xbf16, #tpu.memory_space<vmem>>, vector<1x1x5x128xbf16>
    %37 = vector.shape_cast %36 : vector<1x1x5x128xbf16> to vector<5x128xbf16>
    %c128_42 = arith.constant 128 : index
    %c0_43 = arith.constant 0 : index
    %38 = vector.load %arg2[%c128_42, %c0_43] : memref<512x128xbf16, #tpu.memory_space<vmem>>, vector<128x128xbf16>
    %cst_44 = arith.constant dense<0.000000e+00> : vector<5x128xf32>
    %39 = tpu.matmul %37, %38, %cst_44 {dimension_numbers = #tpu.dot_dimension_numbers<[1], [0], [0], [1], [0, 0, 1, 1], [], []>} : vector<5x128xbf16>, vector<128x128xbf16>, vector<5x128xf32> -> vector<5x128xf32>
    %40 = arith.addf %35, %39 : vector<5x128xf32>
    %c0_45 = arith.constant 0 : index
    %c2 = arith.constant 2 : index
    %c0_46 = arith.constant 0 : index
    %c0_47 = arith.constant 0 : index
    %41 = vector.load %arg1[%c0_45, %c2, %c0_46, %c0_47] : memref<1x6x6x128xbf16, #tpu.memory_space<vmem>>, vector<1x1x5x128xbf16>
    %42 = vector.shape_cast %41 : vector<1x1x5x128xbf16> to vector<5x128xbf16>
    %c256_48 = arith.constant 256 : index
    %c0_49 = arith.constant 0 : index
    %43 = vector.load %arg2[%c256_48, %c0_49] : memref<512x128xbf16, #tpu.memory_space<vmem>>, vector<128x128xbf16>
    %cst_50 = arith.constant dense<0.000000e+00> : vector<5x128xf32>
    %44 = tpu.matmul %42, %43, %cst_50 {dimension_numbers = #tpu.dot_dimension_numbers<[1], [0], [0], [1], [0, 0, 1, 1], [], []>} : vector<5x128xbf16>, vector<128x128xbf16>, vector<5x128xf32> -> vector<5x128xf32>
    %45 = arith.addf %40, %44 : vector<5x128xf32>
    %c0_51 = arith.constant 0 : index
    %c2_52 = arith.constant 2 : index
    %c1_53 = arith.constant 1 : index
    %c0_54 = arith.constant 0 : index
    %46 = vector.load %arg1[%c0_51, %c2_52, %c1_53, %c0_54] : memref<1x6x6x128xbf16, #tpu.memory_space<vmem>>, vector<1x1x5x128xbf16>
    %47 = vector.shape_cast %46 : vector<1x1x5x128xbf16> to vector<5x128xbf16>
    %c384_55 = arith.constant 384 : index
    %c0_56 = arith.constant 0 : index
    %48 = vector.load %arg2[%c384_55, %c0_56] : memref<512x128xbf16, #tpu.memory_space<vmem>>, vector<128x128xbf16>
    %cst_57 = arith.constant dense<0.000000e+00> : vector<5x128xf32>
    %49 = tpu.matmul %47, %48, %cst_57 {dimension_numbers = #tpu.dot_dimension_numbers<[1], [0], [0], [1], [0, 0, 1, 1], [], []>} : vector<5x128xbf16>, vector<128x128xbf16>, vector<5x128xf32> -> vector<5x128xf32>
    %50 = arith.addf %45, %49 : vector<5x128xf32>
    %51 = vector.broadcast %0 : vector<1x128xf32> to vector<5x128xf32>
    %52 = arith.addf %50, %51 : vector<5x128xf32>
    %cst_58 = arith.constant 0.000000e+00 : f32
    %53 = vector.broadcast %cst_58 : f32 to vector<5x128xf32>
    %54 = arith.maximumf %52, %53 : vector<5x128xf32>
    %55 = arith.truncf %54 : vector<5x128xf32> to vector<5x128xbf16>
    %c0_59 = arith.constant 0 : index
    %c1_60 = arith.constant 1 : index
    %c0_61 = arith.constant 0 : index
    %c0_62 = arith.constant 0 : index
    %56 = vector.load %arg4[%c0_59, %c1_60, %c0_61, %c0_62] : memref<1x5x5x128xbf16, #tpu.memory_space<vmem>>, vector<1x1x5x128xbf16>
    %57 = vector.shape_cast %56 : vector<1x1x5x128xbf16> to vector<5x128xbf16>
    %58 = vector.shape_cast %55 : vector<5x128xbf16> to vector<1x1x5x128xbf16>
    tpu.vector_store %arg4[%c0_59, %c1_60, %c0_61, %c0_62], %58 {strides = array<i32>} : memref<1x5x5x128xbf16, #tpu.memory_space<vmem>>, vector<1x1x5x128xbf16>,
    %cst_63 = arith.constant 0.000000e+00 : f32
    %59 = vector.broadcast %cst_63 : f32 to vector<5x128xf32>
    %c0_64 = arith.constant 0 : index
    %c2_65 = arith.constant 2 : index
    %c0_66 = arith.constant 0 : index
    %c0_67 = arith.constant 0 : index
    %60 = vector.load %arg1[%c0_64, %c2_65, %c0_66, %c0_67] : memref<1x6x6x128xbf16, #tpu.memory_space<vmem>>, vector<1x1x5x128xbf16>
    %61 = vector.shape_cast %60 : vector<1x1x5x128xbf16> to vector<5x128xbf16>
    %c0_68 = arith.constant 0 : index
    %c0_69 = arith.constant 0 : index
    %62 = vector.load %arg2[%c0_68, %c0_69] : memref<512x128xbf16, #tpu.memory_space<vmem>>, vector<128x128xbf16>
    %cst_70 = arith.constant dense<0.000000e+00> : vector<5x128xf32>
    %63 = tpu.matmul %61, %62, %cst_70 {dimension_numbers = #tpu.dot_dimension_numbers<[1], [0], [0], [1], [0, 0, 1, 1], [], []>} : vector<5x128xbf16>, vector<128x128xbf16>, vector<5x128xf32> -> vector<5x128xf32>
    %64 = arith.addf %59, %63 : vector<5x128xf32>
    %c0_71 = arith.constant 0 : index
    %c2_72 = arith.constant 2 : index
    %c1_73 = arith.constant 1 : index
    %c0_74 = arith.constant 0 : index
    %65 = vector.load %arg1[%c0_71, %c2_72, %c1_73, %c0_74] : memref<1x6x6x128xbf16, #tpu.memory_space<vmem>>, vector<1x1x5x128xbf16>
    %66 = vector.shape_cast %65 : vector<1x1x5x128xbf16> to vector<5x128xbf16>
    %c128_75 = arith.constant 128 : index
    %c0_76 = arith.constant 0 : index
    %67 = vector.load %arg2[%c128_75, %c0_76] : memref<512x128xbf16, #tpu.memory_space<vmem>>, vector<128x128xbf16>
    %cst_77 = arith.constant dense<0.000000e+00> : vector<5x128xf32>
    %68 = tpu.matmul %66, %67, %cst_77 {dimension_numbers = #tpu.dot_dimension_numbers<[1], [0], [0], [1], [0, 0, 1, 1], [], []>} : vector<5x128xbf16>, vector<128x128xbf16>, vector<5x128xf32> -> vector<5x128xf32>
    %69 = arith.addf %64, %68 : vector<5x128xf32>
    %c0_78 = arith.constant 0 : index
    %c3 = arith.constant 3 : index
    %c0_79 = arith.constant 0 : index
    %c0_80 = arith.constant 0 : index
    %70 = vector.load %arg1[%c0_78, %c3, %c0_79, %c0_80] : memref<1x6x6x128xbf16, #tpu.memory_space<vmem>>, vector<1x1x5x128xbf16>
    %71 = vector.shape_cast %70 : vector<1x1x5x128xbf16> to vector<5x128xbf16>
    %c256_81 = arith.constant 256 : index
    %c0_82 = arith.constant 0 : index
    %72 = vector.load %arg2[%c256_81, %c0_82] : memref<512x128xbf16, #tpu.memory_space<vmem>>, vector<128x128xbf16>
    %cst_83 = arith.constant dense<0.000000e+00> : vector<5x128xf32>
    %73 = tpu.matmul %71, %72, %cst_83 {dimension_numbers = #tpu.dot_dimension_numbers<[1], [0], [0], [1], [0, 0, 1, 1], [], []>} : vector<5x128xbf16>, vector<128x128xbf16>, vector<5x128xf32> -> vector<5x128xf32>
    %74 = arith.addf %69, %73 : vector<5x128xf32>
    %c0_84 = arith.constant 0 : index
    %c3_85 = arith.constant 3 : index
    %c1_86 = arith.constant 1 : index
    %c0_87 = arith.constant 0 : index
    %75 = vector.load %arg1[%c0_84, %c3_85, %c1_86, %c0_87] : memref<1x6x6x128xbf16, #tpu.memory_space<vmem>>, vector<1x1x5x128xbf16>
    %76 = vector.shape_cast %75 : vector<1x1x5x128xbf16> to vector<5x128xbf16>
    %c384_88 = arith.constant 384 : index
    %c0_89 = arith.constant 0 : index
    %77 = vector.load %arg2[%c384_88, %c0_89] : memref<512x128xbf16, #tpu.memory_space<vmem>>, vector<128x128xbf16>
    %cst_90 = arith.constant dense<0.000000e+00> : vector<5x128xf32>
    %78 = tpu.matmul %76, %77, %cst_90 {dimension_numbers = #tpu.dot_dimension_numbers<[1], [0], [0], [1], [0, 0, 1, 1], [], []>} : vector<5x128xbf16>, vector<128x128xbf16>, vector<5x128xf32> -> vector<5x128xf32>
    %79 = arith.addf %74, %78 : vector<5x128xf32>
    %80 = vector.broadcast %0 : vector<1x128xf32> to vector<5x128xf32>
    %81 = arith.addf %79, %80 : vector<5x128xf32>
    %cst_91 = arith.constant 0.000000e+00 : f32
    %82 = vector.broadcast %cst_91 : f32 to vector<5x128xf32>
    %83 = arith.maximumf %81, %82 : vector<5x128xf32>
    %84 = arith.truncf %83 : vector<5x128xf32> to vector<5x128xbf16>
    %c0_92 = arith.constant 0 : index
    %c2_93 = arith.constant 2 : index
    %c0_94 = arith.constant 0 : index
    %c0_95 = arith.constant 0 : index
    %85 = vector.load %arg4[%c0_92, %c2_93, %c0_94, %c0_95] : memref<1x5x5x128xbf16, #tpu.memory_space<vmem>>, vector<1x1x5x128xbf16>
    %86 = vector.shape_cast %85 : vector<1x1x5x128xbf16> to vector<5x128xbf16>
    %87 = vector.shape_cast %84 : vector<5x128xbf16> to vector<1x1x5x128xbf16>
    tpu.vector_store %arg4[%c0_92, %c2_93, %c0_94, %c0_95], %87 {strides = array<i32>} : memref<1x5x5x128xbf16, #tpu.memory_space<vmem>>, vector<1x1x5x128xbf16>,
    %cst_96 = arith.constant 0.000000e+00 : f32
    %88 = vector.broadcast %cst_96 : f32 to vector<5x128xf32>
    %c0_97 = arith.constant 0 : index
    %c3_98 = arith.constant 3 : index
    %c0_99 = arith.constant 0 : index
    %c0_100 = arith.constant 0 : index
    %89 = vector.load %arg1[%c0_97, %c3_98, %c0_99, %c0_100] : memref<1x6x6x128xbf16, #tpu.memory_space<vmem>>, vector<1x1x5x128xbf16>
    %90 = vector.shape_cast %89 : vector<1x1x5x128xbf16> to vector<5x128xbf16>
    %c0_101 = arith.constant 0 : index
    %c0_102 = arith.constant 0 : index
    %91 = vector.load %arg2[%c0_101, %c0_102] : memref<512x128xbf16, #tpu.memory_space<vmem>>, vector<128x128xbf16>
    %cst_103 = arith.constant dense<0.000000e+00> : vector<5x128xf32>
    %92 = tpu.matmul %90, %91, %cst_103 {dimension_numbers = #tpu.dot_dimension_numbers<[1], [0], [0], [1], [0, 0, 1, 1], [], []>} : vector<5x128xbf16>, vector<128x128xbf16>, vector<5x128xf32> -> vector<5x128xf32>
    %93 = arith.addf %88, %92 : vector<5x128xf32>
    %c0_104 = arith.constant 0 : index
    %c3_105 = arith.constant 3 : index
    %c1_106 = arith.constant 1 : index
    %c0_107 = arith.constant 0 : index
    %94 = vector.load %arg1[%c0_104, %c3_105, %c1_106, %c0_107] : memref<1x6x6x128xbf16, #tpu.memory_space<vmem>>, vector<1x1x5x128xbf16>
    %95 = vector.shape_cast %94 : vector<1x1x5x128xbf16> to vector<5x128xbf16>
    %c128_108 = arith.constant 128 : index
    %c0_109 = arith.constant 0 : index
    %96 = vector.load %arg2[%c128_108, %c0_109] : memref<512x128xbf16, #tpu.memory_space<vmem>>, vector<128x128xbf16>
    %cst_110 = arith.constant dense<0.000000e+00> : vector<5x128xf32>
    %97 = tpu.matmul %95, %96, %cst_110 {dimension_numbers = #tpu.dot_dimension_numbers<[1], [0], [0], [1], [0, 0, 1, 1], [], []>} : vector<5x128xbf16>, vector<128x128xbf16>, vector<5x128xf32> -> vector<5x128xf32>
    %98 = arith.addf %93, %97 : vector<5x128xf32>
    %c0_111 = arith.constant 0 : index
    %c4 = arith.constant 4 : index
    %c0_112 = arith.constant 0 : index
    %c0_113 = arith.constant 0 : index
    %99 = vector.load %arg1[%c0_111, %c4, %c0_112, %c0_113] : memref<1x6x6x128xbf16, #tpu.memory_space<vmem>>, vector<1x1x5x128xbf16>
    %100 = vector.shape_cast %99 : vector<1x1x5x128xbf16> to vector<5x128xbf16>
    %c256_114 = arith.constant 256 : index
    %c0_115 = arith.constant 0 : index
    %101 = vector.load %arg2[%c256_114, %c0_115] : memref<512x128xbf16, #tpu.memory_space<vmem>>, vector<128x128xbf16>
    %cst_116 = arith.constant dense<0.000000e+00> : vector<5x128xf32>
    %102 = tpu.matmul %100, %101, %cst_116 {dimension_numbers = #tpu.dot_dimension_numbers<[1], [0], [0], [1], [0, 0, 1, 1], [], []>} : vector<5x128xbf16>, vector<128x128xbf16>, vector<5x128xf32> -> vector<5x128xf32>
    %103 = arith.addf %98, %102 : vector<5x128xf32>
    %c0_117 = arith.constant 0 : index
    %c4_118 = arith.constant 4 : index
    %c1_119 = arith.constant 1 : index
    %c0_120 = arith.constant 0 : index
    %104 = vector.load %arg1[%c0_117, %c4_118, %c1_119, %c0_120] : memref<1x6x6x128xbf16, #tpu.memory_space<vmem>>, vector<1x1x5x128xbf16>
    %105 = vector.shape_cast %104 : vector<1x1x5x128xbf16> to vector<5x128xbf16>
    %c384_121 = arith.constant 384 : index
    %c0_122 = arith.constant 0 : index
    %106 = vector.load %arg2[%c384_121, %c0_122] : memref<512x128xbf16, #tpu.memory_space<vmem>>, vector<128x128xbf16>
    %cst_123 = arith.constant dense<0.000000e+00> : vector<5x128xf32>
    %107 = tpu.matmul %105, %106, %cst_123 {dimension_numbers = #tpu.dot_dimension_numbers<[1], [0], [0], [1], [0, 0, 1, 1], [], []>} : vector<5x128xbf16>, vector<128x128xbf16>, vector<5x128xf32> -> vector<5x128xf32>
    %108 = arith.addf %103, %107 : vector<5x128xf32>
    %109 = vector.broadcast %0 : vector<1x128xf32> to vector<5x128xf32>
    %110 = arith.addf %108, %109 : vector<5x128xf32>
    %cst_124 = arith.constant 0.000000e+00 : f32
    %111 = vector.broadcast %cst_124 : f32 to vector<5x128xf32>
    %112 = arith.maximumf %110, %111 : vector<5x128xf32>
    %113 = arith.truncf %112 : vector<5x128xf32> to vector<5x128xbf16>
    %c0_125 = arith.constant 0 : index
    %c3_126 = arith.constant 3 : index
    %c0_127 = arith.constant 0 : index
    %c0_128 = arith.constant 0 : index
    %114 = vector.load %arg4[%c0_125, %c3_126, %c0_127, %c0_128] : memref<1x5x5x128xbf16, #tpu.memory_space<vmem>>, vector<1x1x5x128xbf16>
    %115 = vector.shape_cast %114 : vector<1x1x5x128xbf16> to vector<5x128xbf16>
    %116 = vector.shape_cast %113 : vector<5x128xbf16> to vector<1x1x5x128xbf16>
    tpu.vector_store %arg4[%c0_125, %c3_126, %c0_127, %c0_128], %116 {strides = array<i32>} : memref<1x5x5x128xbf16, #tpu.memory_space<vmem>>, vector<1x1x5x128xbf16>,
    %cst_129 = arith.constant 0.000000e+00 : f32
    %117 = vector.broadcast %cst_129 : f32 to vector<5x128xf32>
    %c0_130 = arith.constant 0 : index
    %c4_131 = arith.constant 4 : index
    %c0_132 = arith.constant 0 : index
    %c0_133 = arith.constant 0 : index
    %118 = vector.load %arg1[%c0_130, %c4_131, %c0_132, %c0_133] : memref<1x6x6x128xbf16, #tpu.memory_space<vmem>>, vector<1x1x5x128xbf16>
    %119 = vector.shape_cast %118 : vector<1x1x5x128xbf16> to vector<5x128xbf16>
    %c0_134 = arith.constant 0 : index
    %c0_135 = arith.constant 0 : index
    %120 = vector.load %arg2[%c0_134, %c0_135] : memref<512x128xbf16, #tpu.memory_space<vmem>>, vector<128x128xbf16>
    %cst_136 = arith.constant dense<0.000000e+00> : vector<5x128xf32>
    %121 = tpu.matmul %119, %120, %cst_136 {dimension_numbers = #tpu.dot_dimension_numbers<[1], [0], [0], [1], [0, 0, 1, 1], [], []>} : vector<5x128xbf16>, vector<128x128xbf16>, vector<5x128xf32> -> vector<5x128xf32>
    %122 = arith.addf %117, %121 : vector<5x128xf32>
    %c0_137 = arith.constant 0 : index
    %c4_138 = arith.constant 4 : index
    %c1_139 = arith.constant 1 : index
    %c0_140 = arith.constant 0 : index
    %123 = vector.load %arg1[%c0_137, %c4_138, %c1_139, %c0_140] : memref<1x6x6x128xbf16, #tpu.memory_space<vmem>>, vector<1x1x5x128xbf16>
    %124 = vector.shape_cast %123 : vector<1x1x5x128xbf16> to vector<5x128xbf16>
    %c128_141 = arith.constant 128 : index
    %c0_142 = arith.constant 0 : index
    %125 = vector.load %arg2[%c128_141, %c0_142] : memref<512x128xbf16, #tpu.memory_space<vmem>>, vector<128x128xbf16>
    %cst_143 = arith.constant dense<0.000000e+00> : vector<5x128xf32>
    %126 = tpu.matmul %124, %125, %cst_143 {dimension_numbers = #tpu.dot_dimension_numbers<[1], [0], [0], [1], [0, 0, 1, 1], [], []>} : vector<5x128xbf16>, vector<128x128xbf16>, vector<5x128xf32> -> vector<5x128xf32>
    %127 = arith.addf %122, %126 : vector<5x128xf32>
    %c0_144 = arith.constant 0 : index
    %c5 = arith.constant 5 : index
    %c0_145 = arith.constant 0 : index
    %c0_146 = arith.constant 0 : index
    %128 = vector.load %arg1[%c0_144, %c5, %c0_145, %c0_146] : memref<1x6x6x128xbf16, #tpu.memory_space<vmem>>, vector<1x1x5x128xbf16>
    %129 = vector.shape_cast %128 : vector<1x1x5x128xbf16> to vector<5x128xbf16>
    %c256_147 = arith.constant 256 : index
    %c0_148 = arith.constant 0 : index
    %130 = vector.load %arg2[%c256_147, %c0_148] : memref<512x128xbf16, #tpu.memory_space<vmem>>, vector<128x128xbf16>
    %cst_149 = arith.constant dense<0.000000e+00> : vector<5x128xf32>
    %131 = tpu.matmul %129, %130, %cst_149 {dimension_numbers = #tpu.dot_dimension_numbers<[1], [0], [0], [1], [0, 0, 1, 1], [], []>} : vector<5x128xbf16>, vector<128x128xbf16>, vector<5x128xf32> -> vector<5x128xf32>
    %132 = arith.addf %127, %131 : vector<5x128xf32>
    %c0_150 = arith.constant 0 : index
    %c5_151 = arith.constant 5 : index
    %c1_152 = arith.constant 1 : index
    %c0_153 = arith.constant 0 : index
    %133 = vector.load %arg1[%c0_150, %c5_151, %c1_152, %c0_153] : memref<1x6x6x128xbf16, #tpu.memory_space<vmem>>, vector<1x1x5x128xbf16>
    %134 = vector.shape_cast %133 : vector<1x1x5x128xbf16> to vector<5x128xbf16>
    %c384_154 = arith.constant 384 : index
    %c0_155 = arith.constant 0 : index
    %135 = vector.load %arg2[%c384_154, %c0_155] : memref<512x128xbf16, #tpu.memory_space<vmem>>, vector<128x128xbf16>
    %cst_156 = arith.constant dense<0.000000e+00> : vector<5x128xf32>
    %136 = tpu.matmul %134, %135, %cst_156 {dimension_numbers = #tpu.dot_dimension_numbers<[1], [0], [0], [1], [0, 0, 1, 1], [], []>} : vector<5x128xbf16>, vector<128x128xbf16>, vector<5x128xf32> -> vector<5x128xf32>
    %137 = arith.addf %132, %136 : vector<5x128xf32>
    %138 = vector.broadcast %0 : vector<1x128xf32> to vector<5x128xf32>
    %139 = arith.addf %137, %138 : vector<5x128xf32>
    %cst_157 = arith.constant 0.000000e+00 : f32
    %140 = vector.broadcast %cst_157 : f32 to vector<5x128xf32>
    %141 = arith.maximumf %139, %140 : vector<5x128xf32>
    %142 = arith.truncf %141 : vector<5x128xf32> to vector<5x128xbf16>
    %c0_158 = arith.constant 0 : index
    %c4_159 = arith.constant 4 : index
    %c0_160 = arith.constant 0 : index
    %c0_161 = arith.constant 0 : index
    %143 = vector.load %arg4[%c0_158, %c4_159, %c0_160, %c0_161] : memref<1x5x5x128xbf16, #tpu.memory_space<vmem>>, vector<1x1x5x128xbf16>
    %144 = vector.shape_cast %143 : vector<1x1x5x128xbf16> to vector<5x128xbf16>
    %145 = vector.shape_cast %142 : vector<5x128xbf16> to vector<1x1x5x128xbf16>
    tpu.vector_store %arg4[%c0_158, %c4_159, %c0_160, %c0_161], %145 {strides = array<i32>} : memref<1x5x5x128xbf16, #tpu.memory_space<vmem>>, vector<1x1x5x128xbf16>,
    return
  }
  func.func @transform_0(%arg0: i32) -> (i32, i32, i32, i32) {
    %c0_i32 = arith.constant 0 : i32
    %c0_i32_0 = arith.constant 0 : i32
    %c0_i32_1 = arith.constant 0 : i32
    %c0_i32_2 = arith.constant 0 : i32
    return %arg0, %c0_i32, %c0_i32_0, %c0_i32_1 : i32, i32, i32, i32
  }
  func.func @transform_1(%arg0: i32) -> (i32, i32) {
    %c0_i32 = arith.constant 0 : i32
    %c0_i32_0 = arith.constant 0 : i32
    %c0_i32_1 = arith.constant 0 : i32
    return %c0_i32, %c0_i32_0 : i32, i32
  }
  func.func @transform_2(%arg0: i32) -> (i32, i32) {
    %c0_i32 = arith.constant 0 : i32
    %c0_i32_0 = arith.constant 0 : i32
    %c0_i32_1 = arith.constant 0 : i32
    return %c0_i32, %c0_i32_0 : i32, i32
  }
  func.func @transform_3(%arg0: i32) -> (i32, i32, i32, i32) {
    %c0_i32 = arith.constant 0 : i32
    %c0_i32_0 = arith.constant 0 : i32
    %c0_i32_1 = arith.constant 0 : i32
    %c0_i32_2 = arith.constant 0 : i32
    return %arg0, %c0_i32, %c0_i32_0, %c0_i32_1 : i32, i32, i32, i32
  }
}

module attributes {stable_mosaic.version = 11 : i64} {
  func.func @_conv_kernel(%arg0: i32, %arg1: memref<1x5x5x64xbf16, #tpu.memory_space<vmem>>, %arg2: memref<576x128xbf16, #tpu.memory_space<vmem>>, %arg3: memref<1x128xf32, #tpu.memory_space<vmem>>, %arg4: memref<1x3x3x128xf32, #tpu.memory_space<vmem>>) attributes {dimension_semantics = [#tpu.dimension_semantics<parallel>], iteration_bounds = array<i64: 2>, scalar_prefetch = 0 : i64, scratch_operands = 0 : i64, tpu.core_type = #tpu.core_type<tc>, window_params = [{transform_indices = @transform_0, window_bounds = array<i64: 1, 5, 5, 64>}, {pipeline_mode = #tpu.pipeline_mode<synchronous>, transform_indices = @transform_1, window_bounds = array<i64: 576, 128>}, {pipeline_mode = #tpu.pipeline_mode<synchronous>, transform_indices = @transform_2, window_bounds = array<i64: 1, 128>}, {transform_indices = @transform_3, window_bounds = array<i64: 1, 3, 3, 128>}]} {
    %c0 = arith.constant 0 : index
    %c0_0 = arith.constant 0 : index
    %0 = vector.load %arg3[%c0, %c0_0] : memref<1x128xf32, #tpu.memory_space<vmem>>, vector<1x128xf32>
    %cst = arith.constant 0.000000e+00 : f32
    %1 = vector.broadcast %cst : f32 to vector<3x128xf32>
    %c0_1 = arith.constant 0 : index
    %c0_2 = arith.constant 0 : index
    %c0_3 = arith.constant 0 : index
    %c0_4 = arith.constant 0 : index
    %2 = vector.load %arg1[%c0_1, %c0_2, %c0_3, %c0_4] : memref<1x5x5x64xbf16, #tpu.memory_space<vmem>>, vector<1x1x3x64xbf16>
    %3 = vector.shape_cast %2 : vector<1x1x3x64xbf16> to vector<3x64xbf16>
    %c0_5 = arith.constant 0 : index
    %c0_6 = arith.constant 0 : index
    %4 = vector.load %arg2[%c0_5, %c0_6] : memref<576x128xbf16, #tpu.memory_space<vmem>>, vector<64x128xbf16>
    %cst_7 = arith.constant dense<0.000000e+00> : vector<3x128xf32>
    %5 = tpu.matmul %3, %4, %cst_7 {dimension_numbers = #tpu.dot_dimension_numbers<[1], [0], [0], [1], [0, 0, 1, 1], [], []>} : vector<3x64xbf16>, vector<64x128xbf16>, vector<3x128xf32> -> vector<3x128xf32>
    %6 = arith.addf %1, %5 : vector<3x128xf32>
    %c0_8 = arith.constant 0 : index
    %c0_9 = arith.constant 0 : index
    %c1 = arith.constant 1 : index
    %c0_10 = arith.constant 0 : index
    %7 = vector.load %arg1[%c0_8, %c0_9, %c1, %c0_10] : memref<1x5x5x64xbf16, #tpu.memory_space<vmem>>, vector<1x1x3x64xbf16>
    %8 = vector.shape_cast %7 : vector<1x1x3x64xbf16> to vector<3x64xbf16>
    %c64 = arith.constant 64 : index
    %c0_11 = arith.constant 0 : index
    %9 = vector.load %arg2[%c64, %c0_11] : memref<576x128xbf16, #tpu.memory_space<vmem>>, vector<64x128xbf16>
    %cst_12 = arith.constant dense<0.000000e+00> : vector<3x128xf32>
    %10 = tpu.matmul %8, %9, %cst_12 {dimension_numbers = #tpu.dot_dimension_numbers<[1], [0], [0], [1], [0, 0, 1, 1], [], []>} : vector<3x64xbf16>, vector<64x128xbf16>, vector<3x128xf32> -> vector<3x128xf32>
    %11 = arith.addf %6, %10 : vector<3x128xf32>
    %c0_13 = arith.constant 0 : index
    %c0_14 = arith.constant 0 : index
    %c2 = arith.constant 2 : index
    %c0_15 = arith.constant 0 : index
    %12 = vector.load %arg1[%c0_13, %c0_14, %c2, %c0_15] : memref<1x5x5x64xbf16, #tpu.memory_space<vmem>>, vector<1x1x3x64xbf16>
    %13 = vector.shape_cast %12 : vector<1x1x3x64xbf16> to vector<3x64xbf16>
    %c128 = arith.constant 128 : index
    %c0_16 = arith.constant 0 : index
    %14 = vector.load %arg2[%c128, %c0_16] : memref<576x128xbf16, #tpu.memory_space<vmem>>, vector<64x128xbf16>
    %cst_17 = arith.constant dense<0.000000e+00> : vector<3x128xf32>
    %15 = tpu.matmul %13, %14, %cst_17 {dimension_numbers = #tpu.dot_dimension_numbers<[1], [0], [0], [1], [0, 0, 1, 1], [], []>} : vector<3x64xbf16>, vector<64x128xbf16>, vector<3x128xf32> -> vector<3x128xf32>
    %16 = arith.addf %11, %15 : vector<3x128xf32>
    %c0_18 = arith.constant 0 : index
    %c1_19 = arith.constant 1 : index
    %c0_20 = arith.constant 0 : index
    %c0_21 = arith.constant 0 : index
    %17 = vector.load %arg1[%c0_18, %c1_19, %c0_20, %c0_21] : memref<1x5x5x64xbf16, #tpu.memory_space<vmem>>, vector<1x1x3x64xbf16>
    %18 = vector.shape_cast %17 : vector<1x1x3x64xbf16> to vector<3x64xbf16>
    %c192 = arith.constant 192 : index
    %c0_22 = arith.constant 0 : index
    %19 = vector.load %arg2[%c192, %c0_22] : memref<576x128xbf16, #tpu.memory_space<vmem>>, vector<64x128xbf16>
    %cst_23 = arith.constant dense<0.000000e+00> : vector<3x128xf32>
    %20 = tpu.matmul %18, %19, %cst_23 {dimension_numbers = #tpu.dot_dimension_numbers<[1], [0], [0], [1], [0, 0, 1, 1], [], []>} : vector<3x64xbf16>, vector<64x128xbf16>, vector<3x128xf32> -> vector<3x128xf32>
    %21 = arith.addf %16, %20 : vector<3x128xf32>
    %c0_24 = arith.constant 0 : index
    %c1_25 = arith.constant 1 : index
    %c1_26 = arith.constant 1 : index
    %c0_27 = arith.constant 0 : index
    %22 = vector.load %arg1[%c0_24, %c1_25, %c1_26, %c0_27] : memref<1x5x5x64xbf16, #tpu.memory_space<vmem>>, vector<1x1x3x64xbf16>
    %23 = vector.shape_cast %22 : vector<1x1x3x64xbf16> to vector<3x64xbf16>
    %c256 = arith.constant 256 : index
    %c0_28 = arith.constant 0 : index
    %24 = vector.load %arg2[%c256, %c0_28] : memref<576x128xbf16, #tpu.memory_space<vmem>>, vector<64x128xbf16>
    %cst_29 = arith.constant dense<0.000000e+00> : vector<3x128xf32>
    %25 = tpu.matmul %23, %24, %cst_29 {dimension_numbers = #tpu.dot_dimension_numbers<[1], [0], [0], [1], [0, 0, 1, 1], [], []>} : vector<3x64xbf16>, vector<64x128xbf16>, vector<3x128xf32> -> vector<3x128xf32>
    %26 = arith.addf %21, %25 : vector<3x128xf32>
    %c0_30 = arith.constant 0 : index
    %c1_31 = arith.constant 1 : index
    %c2_32 = arith.constant 2 : index
    %c0_33 = arith.constant 0 : index
    %27 = vector.load %arg1[%c0_30, %c1_31, %c2_32, %c0_33] : memref<1x5x5x64xbf16, #tpu.memory_space<vmem>>, vector<1x1x3x64xbf16>
    %28 = vector.shape_cast %27 : vector<1x1x3x64xbf16> to vector<3x64xbf16>
    %c320 = arith.constant 320 : index
    %c0_34 = arith.constant 0 : index
    %29 = vector.load %arg2[%c320, %c0_34] : memref<576x128xbf16, #tpu.memory_space<vmem>>, vector<64x128xbf16>
    %cst_35 = arith.constant dense<0.000000e+00> : vector<3x128xf32>
    %30 = tpu.matmul %28, %29, %cst_35 {dimension_numbers = #tpu.dot_dimension_numbers<[1], [0], [0], [1], [0, 0, 1, 1], [], []>} : vector<3x64xbf16>, vector<64x128xbf16>, vector<3x128xf32> -> vector<3x128xf32>
    %31 = arith.addf %26, %30 : vector<3x128xf32>
    %c0_36 = arith.constant 0 : index
    %c2_37 = arith.constant 2 : index
    %c0_38 = arith.constant 0 : index
    %c0_39 = arith.constant 0 : index
    %32 = vector.load %arg1[%c0_36, %c2_37, %c0_38, %c0_39] : memref<1x5x5x64xbf16, #tpu.memory_space<vmem>>, vector<1x1x3x64xbf16>
    %33 = vector.shape_cast %32 : vector<1x1x3x64xbf16> to vector<3x64xbf16>
    %c384 = arith.constant 384 : index
    %c0_40 = arith.constant 0 : index
    %34 = vector.load %arg2[%c384, %c0_40] : memref<576x128xbf16, #tpu.memory_space<vmem>>, vector<64x128xbf16>
    %cst_41 = arith.constant dense<0.000000e+00> : vector<3x128xf32>
    %35 = tpu.matmul %33, %34, %cst_41 {dimension_numbers = #tpu.dot_dimension_numbers<[1], [0], [0], [1], [0, 0, 1, 1], [], []>} : vector<3x64xbf16>, vector<64x128xbf16>, vector<3x128xf32> -> vector<3x128xf32>
    %36 = arith.addf %31, %35 : vector<3x128xf32>
    %c0_42 = arith.constant 0 : index
    %c2_43 = arith.constant 2 : index
    %c1_44 = arith.constant 1 : index
    %c0_45 = arith.constant 0 : index
    %37 = vector.load %arg1[%c0_42, %c2_43, %c1_44, %c0_45] : memref<1x5x5x64xbf16, #tpu.memory_space<vmem>>, vector<1x1x3x64xbf16>
    %38 = vector.shape_cast %37 : vector<1x1x3x64xbf16> to vector<3x64xbf16>
    %c448 = arith.constant 448 : index
    %c0_46 = arith.constant 0 : index
    %39 = vector.load %arg2[%c448, %c0_46] : memref<576x128xbf16, #tpu.memory_space<vmem>>, vector<64x128xbf16>
    %cst_47 = arith.constant dense<0.000000e+00> : vector<3x128xf32>
    %40 = tpu.matmul %38, %39, %cst_47 {dimension_numbers = #tpu.dot_dimension_numbers<[1], [0], [0], [1], [0, 0, 1, 1], [], []>} : vector<3x64xbf16>, vector<64x128xbf16>, vector<3x128xf32> -> vector<3x128xf32>
    %41 = arith.addf %36, %40 : vector<3x128xf32>
    %c0_48 = arith.constant 0 : index
    %c2_49 = arith.constant 2 : index
    %c2_50 = arith.constant 2 : index
    %c0_51 = arith.constant 0 : index
    %42 = vector.load %arg1[%c0_48, %c2_49, %c2_50, %c0_51] : memref<1x5x5x64xbf16, #tpu.memory_space<vmem>>, vector<1x1x3x64xbf16>
    %43 = vector.shape_cast %42 : vector<1x1x3x64xbf16> to vector<3x64xbf16>
    %c512 = arith.constant 512 : index
    %c0_52 = arith.constant 0 : index
    %44 = vector.load %arg2[%c512, %c0_52] : memref<576x128xbf16, #tpu.memory_space<vmem>>, vector<64x128xbf16>
    %cst_53 = arith.constant dense<0.000000e+00> : vector<3x128xf32>
    %45 = tpu.matmul %43, %44, %cst_53 {dimension_numbers = #tpu.dot_dimension_numbers<[1], [0], [0], [1], [0, 0, 1, 1], [], []>} : vector<3x64xbf16>, vector<64x128xbf16>, vector<3x128xf32> -> vector<3x128xf32>
    %46 = arith.addf %41, %45 : vector<3x128xf32>
    %47 = vector.broadcast %0 : vector<1x128xf32> to vector<3x128xf32>
    %48 = arith.addf %46, %47 : vector<3x128xf32>
    %cst_54 = arith.constant 0.000000e+00 : f32
    %49 = vector.broadcast %cst_54 : f32 to vector<3x128xf32>
    %50 = arith.maximumf %48, %49 : vector<3x128xf32>
    %c0_55 = arith.constant 0 : index
    %c0_56 = arith.constant 0 : index
    %c0_57 = arith.constant 0 : index
    %c0_58 = arith.constant 0 : index
    %51 = vector.load %arg4[%c0_55, %c0_56, %c0_57, %c0_58] : memref<1x3x3x128xf32, #tpu.memory_space<vmem>>, vector<1x1x3x128xf32>
    %52 = vector.shape_cast %51 : vector<1x1x3x128xf32> to vector<3x128xf32>
    %53 = vector.shape_cast %50 : vector<3x128xf32> to vector<1x1x3x128xf32>
    tpu.vector_store %arg4[%c0_55, %c0_56, %c0_57, %c0_58], %53 {strides = array<i32>} : memref<1x3x3x128xf32, #tpu.memory_space<vmem>>, vector<1x1x3x128xf32>,
    %cst_59 = arith.constant 0.000000e+00 : f32
    %54 = vector.broadcast %cst_59 : f32 to vector<3x128xf32>
    %c0_60 = arith.constant 0 : index
    %c1_61 = arith.constant 1 : index
    %c0_62 = arith.constant 0 : index
    %c0_63 = arith.constant 0 : index
    %55 = vector.load %arg1[%c0_60, %c1_61, %c0_62, %c0_63] : memref<1x5x5x64xbf16, #tpu.memory_space<vmem>>, vector<1x1x3x64xbf16>
    %56 = vector.shape_cast %55 : vector<1x1x3x64xbf16> to vector<3x64xbf16>
    %c0_64 = arith.constant 0 : index
    %c0_65 = arith.constant 0 : index
    %57 = vector.load %arg2[%c0_64, %c0_65] : memref<576x128xbf16, #tpu.memory_space<vmem>>, vector<64x128xbf16>
    %cst_66 = arith.constant dense<0.000000e+00> : vector<3x128xf32>
    %58 = tpu.matmul %56, %57, %cst_66 {dimension_numbers = #tpu.dot_dimension_numbers<[1], [0], [0], [1], [0, 0, 1, 1], [], []>} : vector<3x64xbf16>, vector<64x128xbf16>, vector<3x128xf32> -> vector<3x128xf32>
    %59 = arith.addf %54, %58 : vector<3x128xf32>
    %c0_67 = arith.constant 0 : index
    %c1_68 = arith.constant 1 : index
    %c1_69 = arith.constant 1 : index
    %c0_70 = arith.constant 0 : index
    %60 = vector.load %arg1[%c0_67, %c1_68, %c1_69, %c0_70] : memref<1x5x5x64xbf16, #tpu.memory_space<vmem>>, vector<1x1x3x64xbf16>
    %61 = vector.shape_cast %60 : vector<1x1x3x64xbf16> to vector<3x64xbf16>
    %c64_71 = arith.constant 64 : index
    %c0_72 = arith.constant 0 : index
    %62 = vector.load %arg2[%c64_71, %c0_72] : memref<576x128xbf16, #tpu.memory_space<vmem>>, vector<64x128xbf16>
    %cst_73 = arith.constant dense<0.000000e+00> : vector<3x128xf32>
    %63 = tpu.matmul %61, %62, %cst_73 {dimension_numbers = #tpu.dot_dimension_numbers<[1], [0], [0], [1], [0, 0, 1, 1], [], []>} : vector<3x64xbf16>, vector<64x128xbf16>, vector<3x128xf32> -> vector<3x128xf32>
    %64 = arith.addf %59, %63 : vector<3x128xf32>
    %c0_74 = arith.constant 0 : index
    %c1_75 = arith.constant 1 : index
    %c2_76 = arith.constant 2 : index
    %c0_77 = arith.constant 0 : index
    %65 = vector.load %arg1[%c0_74, %c1_75, %c2_76, %c0_77] : memref<1x5x5x64xbf16, #tpu.memory_space<vmem>>, vector<1x1x3x64xbf16>
    %66 = vector.shape_cast %65 : vector<1x1x3x64xbf16> to vector<3x64xbf16>
    %c128_78 = arith.constant 128 : index
    %c0_79 = arith.constant 0 : index
    %67 = vector.load %arg2[%c128_78, %c0_79] : memref<576x128xbf16, #tpu.memory_space<vmem>>, vector<64x128xbf16>
    %cst_80 = arith.constant dense<0.000000e+00> : vector<3x128xf32>
    %68 = tpu.matmul %66, %67, %cst_80 {dimension_numbers = #tpu.dot_dimension_numbers<[1], [0], [0], [1], [0, 0, 1, 1], [], []>} : vector<3x64xbf16>, vector<64x128xbf16>, vector<3x128xf32> -> vector<3x128xf32>
    %69 = arith.addf %64, %68 : vector<3x128xf32>
    %c0_81 = arith.constant 0 : index
    %c2_82 = arith.constant 2 : index
    %c0_83 = arith.constant 0 : index
    %c0_84 = arith.constant 0 : index
    %70 = vector.load %arg1[%c0_81, %c2_82, %c0_83, %c0_84] : memref<1x5x5x64xbf16, #tpu.memory_space<vmem>>, vector<1x1x3x64xbf16>
    %71 = vector.shape_cast %70 : vector<1x1x3x64xbf16> to vector<3x64xbf16>
    %c192_85 = arith.constant 192 : index
    %c0_86 = arith.constant 0 : index
    %72 = vector.load %arg2[%c192_85, %c0_86] : memref<576x128xbf16, #tpu.memory_space<vmem>>, vector<64x128xbf16>
    %cst_87 = arith.constant dense<0.000000e+00> : vector<3x128xf32>
    %73 = tpu.matmul %71, %72, %cst_87 {dimension_numbers = #tpu.dot_dimension_numbers<[1], [0], [0], [1], [0, 0, 1, 1], [], []>} : vector<3x64xbf16>, vector<64x128xbf16>, vector<3x128xf32> -> vector<3x128xf32>
    %74 = arith.addf %69, %73 : vector<3x128xf32>
    %c0_88 = arith.constant 0 : index
    %c2_89 = arith.constant 2 : index
    %c1_90 = arith.constant 1 : index
    %c0_91 = arith.constant 0 : index
    %75 = vector.load %arg1[%c0_88, %c2_89, %c1_90, %c0_91] : memref<1x5x5x64xbf16, #tpu.memory_space<vmem>>, vector<1x1x3x64xbf16>
    %76 = vector.shape_cast %75 : vector<1x1x3x64xbf16> to vector<3x64xbf16>
    %c256_92 = arith.constant 256 : index
    %c0_93 = arith.constant 0 : index
    %77 = vector.load %arg2[%c256_92, %c0_93] : memref<576x128xbf16, #tpu.memory_space<vmem>>, vector<64x128xbf16>
    %cst_94 = arith.constant dense<0.000000e+00> : vector<3x128xf32>
    %78 = tpu.matmul %76, %77, %cst_94 {dimension_numbers = #tpu.dot_dimension_numbers<[1], [0], [0], [1], [0, 0, 1, 1], [], []>} : vector<3x64xbf16>, vector<64x128xbf16>, vector<3x128xf32> -> vector<3x128xf32>
    %79 = arith.addf %74, %78 : vector<3x128xf32>
    %c0_95 = arith.constant 0 : index
    %c2_96 = arith.constant 2 : index
    %c2_97 = arith.constant 2 : index
    %c0_98 = arith.constant 0 : index
    %80 = vector.load %arg1[%c0_95, %c2_96, %c2_97, %c0_98] : memref<1x5x5x64xbf16, #tpu.memory_space<vmem>>, vector<1x1x3x64xbf16>
    %81 = vector.shape_cast %80 : vector<1x1x3x64xbf16> to vector<3x64xbf16>
    %c320_99 = arith.constant 320 : index
    %c0_100 = arith.constant 0 : index
    %82 = vector.load %arg2[%c320_99, %c0_100] : memref<576x128xbf16, #tpu.memory_space<vmem>>, vector<64x128xbf16>
    %cst_101 = arith.constant dense<0.000000e+00> : vector<3x128xf32>
    %83 = tpu.matmul %81, %82, %cst_101 {dimension_numbers = #tpu.dot_dimension_numbers<[1], [0], [0], [1], [0, 0, 1, 1], [], []>} : vector<3x64xbf16>, vector<64x128xbf16>, vector<3x128xf32> -> vector<3x128xf32>
    %84 = arith.addf %79, %83 : vector<3x128xf32>
    %c0_102 = arith.constant 0 : index
    %c3 = arith.constant 3 : index
    %c0_103 = arith.constant 0 : index
    %c0_104 = arith.constant 0 : index
    %85 = vector.load %arg1[%c0_102, %c3, %c0_103, %c0_104] : memref<1x5x5x64xbf16, #tpu.memory_space<vmem>>, vector<1x1x3x64xbf16>
    %86 = vector.shape_cast %85 : vector<1x1x3x64xbf16> to vector<3x64xbf16>
    %c384_105 = arith.constant 384 : index
    %c0_106 = arith.constant 0 : index
    %87 = vector.load %arg2[%c384_105, %c0_106] : memref<576x128xbf16, #tpu.memory_space<vmem>>, vector<64x128xbf16>
    %cst_107 = arith.constant dense<0.000000e+00> : vector<3x128xf32>
    %88 = tpu.matmul %86, %87, %cst_107 {dimension_numbers = #tpu.dot_dimension_numbers<[1], [0], [0], [1], [0, 0, 1, 1], [], []>} : vector<3x64xbf16>, vector<64x128xbf16>, vector<3x128xf32> -> vector<3x128xf32>
    %89 = arith.addf %84, %88 : vector<3x128xf32>
    %c0_108 = arith.constant 0 : index
    %c3_109 = arith.constant 3 : index
    %c1_110 = arith.constant 1 : index
    %c0_111 = arith.constant 0 : index
    %90 = vector.load %arg1[%c0_108, %c3_109, %c1_110, %c0_111] : memref<1x5x5x64xbf16, #tpu.memory_space<vmem>>, vector<1x1x3x64xbf16>
    %91 = vector.shape_cast %90 : vector<1x1x3x64xbf16> to vector<3x64xbf16>
    %c448_112 = arith.constant 448 : index
    %c0_113 = arith.constant 0 : index
    %92 = vector.load %arg2[%c448_112, %c0_113] : memref<576x128xbf16, #tpu.memory_space<vmem>>, vector<64x128xbf16>
    %cst_114 = arith.constant dense<0.000000e+00> : vector<3x128xf32>
    %93 = tpu.matmul %91, %92, %cst_114 {dimension_numbers = #tpu.dot_dimension_numbers<[1], [0], [0], [1], [0, 0, 1, 1], [], []>} : vector<3x64xbf16>, vector<64x128xbf16>, vector<3x128xf32> -> vector<3x128xf32>
    %94 = arith.addf %89, %93 : vector<3x128xf32>
    %c0_115 = arith.constant 0 : index
    %c3_116 = arith.constant 3 : index
    %c2_117 = arith.constant 2 : index
    %c0_118 = arith.constant 0 : index
    %95 = vector.load %arg1[%c0_115, %c3_116, %c2_117, %c0_118] : memref<1x5x5x64xbf16, #tpu.memory_space<vmem>>, vector<1x1x3x64xbf16>
    %96 = vector.shape_cast %95 : vector<1x1x3x64xbf16> to vector<3x64xbf16>
    %c512_119 = arith.constant 512 : index
    %c0_120 = arith.constant 0 : index
    %97 = vector.load %arg2[%c512_119, %c0_120] : memref<576x128xbf16, #tpu.memory_space<vmem>>, vector<64x128xbf16>
    %cst_121 = arith.constant dense<0.000000e+00> : vector<3x128xf32>
    %98 = tpu.matmul %96, %97, %cst_121 {dimension_numbers = #tpu.dot_dimension_numbers<[1], [0], [0], [1], [0, 0, 1, 1], [], []>} : vector<3x64xbf16>, vector<64x128xbf16>, vector<3x128xf32> -> vector<3x128xf32>
    %99 = arith.addf %94, %98 : vector<3x128xf32>
    %100 = vector.broadcast %0 : vector<1x128xf32> to vector<3x128xf32>
    %101 = arith.addf %99, %100 : vector<3x128xf32>
    %cst_122 = arith.constant 0.000000e+00 : f32
    %102 = vector.broadcast %cst_122 : f32 to vector<3x128xf32>
    %103 = arith.maximumf %101, %102 : vector<3x128xf32>
    %c0_123 = arith.constant 0 : index
    %c1_124 = arith.constant 1 : index
    %c0_125 = arith.constant 0 : index
    %c0_126 = arith.constant 0 : index
    %104 = vector.load %arg4[%c0_123, %c1_124, %c0_125, %c0_126] : memref<1x3x3x128xf32, #tpu.memory_space<vmem>>, vector<1x1x3x128xf32>
    %105 = vector.shape_cast %104 : vector<1x1x3x128xf32> to vector<3x128xf32>
    %106 = vector.shape_cast %103 : vector<3x128xf32> to vector<1x1x3x128xf32>
    tpu.vector_store %arg4[%c0_123, %c1_124, %c0_125, %c0_126], %106 {strides = array<i32>} : memref<1x3x3x128xf32, #tpu.memory_space<vmem>>, vector<1x1x3x128xf32>,
    %cst_127 = arith.constant 0.000000e+00 : f32
    %107 = vector.broadcast %cst_127 : f32 to vector<3x128xf32>
    %c0_128 = arith.constant 0 : index
    %c2_129 = arith.constant 2 : index
    %c0_130 = arith.constant 0 : index
    %c0_131 = arith.constant 0 : index
    %108 = vector.load %arg1[%c0_128, %c2_129, %c0_130, %c0_131] : memref<1x5x5x64xbf16, #tpu.memory_space<vmem>>, vector<1x1x3x64xbf16>
    %109 = vector.shape_cast %108 : vector<1x1x3x64xbf16> to vector<3x64xbf16>
    %c0_132 = arith.constant 0 : index
    %c0_133 = arith.constant 0 : index
    %110 = vector.load %arg2[%c0_132, %c0_133] : memref<576x128xbf16, #tpu.memory_space<vmem>>, vector<64x128xbf16>
    %cst_134 = arith.constant dense<0.000000e+00> : vector<3x128xf32>
    %111 = tpu.matmul %109, %110, %cst_134 {dimension_numbers = #tpu.dot_dimension_numbers<[1], [0], [0], [1], [0, 0, 1, 1], [], []>} : vector<3x64xbf16>, vector<64x128xbf16>, vector<3x128xf32> -> vector<3x128xf32>
    %112 = arith.addf %107, %111 : vector<3x128xf32>
    %c0_135 = arith.constant 0 : index
    %c2_136 = arith.constant 2 : index
    %c1_137 = arith.constant 1 : index
    %c0_138 = arith.constant 0 : index
    %113 = vector.load %arg1[%c0_135, %c2_136, %c1_137, %c0_138] : memref<1x5x5x64xbf16, #tpu.memory_space<vmem>>, vector<1x1x3x64xbf16>
    %114 = vector.shape_cast %113 : vector<1x1x3x64xbf16> to vector<3x64xbf16>
    %c64_139 = arith.constant 64 : index
    %c0_140 = arith.constant 0 : index
    %115 = vector.load %arg2[%c64_139, %c0_140] : memref<576x128xbf16, #tpu.memory_space<vmem>>, vector<64x128xbf16>
    %cst_141 = arith.constant dense<0.000000e+00> : vector<3x128xf32>
    %116 = tpu.matmul %114, %115, %cst_141 {dimension_numbers = #tpu.dot_dimension_numbers<[1], [0], [0], [1], [0, 0, 1, 1], [], []>} : vector<3x64xbf16>, vector<64x128xbf16>, vector<3x128xf32> -> vector<3x128xf32>
    %117 = arith.addf %112, %116 : vector<3x128xf32>
    %c0_142 = arith.constant 0 : index
    %c2_143 = arith.constant 2 : index
    %c2_144 = arith.constant 2 : index
    %c0_145 = arith.constant 0 : index
    %118 = vector.load %arg1[%c0_142, %c2_143, %c2_144, %c0_145] : memref<1x5x5x64xbf16, #tpu.memory_space<vmem>>, vector<1x1x3x64xbf16>
    %119 = vector.shape_cast %118 : vector<1x1x3x64xbf16> to vector<3x64xbf16>
    %c128_146 = arith.constant 128 : index
    %c0_147 = arith.constant 0 : index
    %120 = vector.load %arg2[%c128_146, %c0_147] : memref<576x128xbf16, #tpu.memory_space<vmem>>, vector<64x128xbf16>
    %cst_148 = arith.constant dense<0.000000e+00> : vector<3x128xf32>
    %121 = tpu.matmul %119, %120, %cst_148 {dimension_numbers = #tpu.dot_dimension_numbers<[1], [0], [0], [1], [0, 0, 1, 1], [], []>} : vector<3x64xbf16>, vector<64x128xbf16>, vector<3x128xf32> -> vector<3x128xf32>
    %122 = arith.addf %117, %121 : vector<3x128xf32>
    %c0_149 = arith.constant 0 : index
    %c3_150 = arith.constant 3 : index
    %c0_151 = arith.constant 0 : index
    %c0_152 = arith.constant 0 : index
    %123 = vector.load %arg1[%c0_149, %c3_150, %c0_151, %c0_152] : memref<1x5x5x64xbf16, #tpu.memory_space<vmem>>, vector<1x1x3x64xbf16>
    %124 = vector.shape_cast %123 : vector<1x1x3x64xbf16> to vector<3x64xbf16>
    %c192_153 = arith.constant 192 : index
    %c0_154 = arith.constant 0 : index
    %125 = vector.load %arg2[%c192_153, %c0_154] : memref<576x128xbf16, #tpu.memory_space<vmem>>, vector<64x128xbf16>
    %cst_155 = arith.constant dense<0.000000e+00> : vector<3x128xf32>
    %126 = tpu.matmul %124, %125, %cst_155 {dimension_numbers = #tpu.dot_dimension_numbers<[1], [0], [0], [1], [0, 0, 1, 1], [], []>} : vector<3x64xbf16>, vector<64x128xbf16>, vector<3x128xf32> -> vector<3x128xf32>
    %127 = arith.addf %122, %126 : vector<3x128xf32>
    %c0_156 = arith.constant 0 : index
    %c3_157 = arith.constant 3 : index
    %c1_158 = arith.constant 1 : index
    %c0_159 = arith.constant 0 : index
    %128 = vector.load %arg1[%c0_156, %c3_157, %c1_158, %c0_159] : memref<1x5x5x64xbf16, #tpu.memory_space<vmem>>, vector<1x1x3x64xbf16>
    %129 = vector.shape_cast %128 : vector<1x1x3x64xbf16> to vector<3x64xbf16>
    %c256_160 = arith.constant 256 : index
    %c0_161 = arith.constant 0 : index
    %130 = vector.load %arg2[%c256_160, %c0_161] : memref<576x128xbf16, #tpu.memory_space<vmem>>, vector<64x128xbf16>
    %cst_162 = arith.constant dense<0.000000e+00> : vector<3x128xf32>
    %131 = tpu.matmul %129, %130, %cst_162 {dimension_numbers = #tpu.dot_dimension_numbers<[1], [0], [0], [1], [0, 0, 1, 1], [], []>} : vector<3x64xbf16>, vector<64x128xbf16>, vector<3x128xf32> -> vector<3x128xf32>
    %132 = arith.addf %127, %131 : vector<3x128xf32>
    %c0_163 = arith.constant 0 : index
    %c3_164 = arith.constant 3 : index
    %c2_165 = arith.constant 2 : index
    %c0_166 = arith.constant 0 : index
    %133 = vector.load %arg1[%c0_163, %c3_164, %c2_165, %c0_166] : memref<1x5x5x64xbf16, #tpu.memory_space<vmem>>, vector<1x1x3x64xbf16>
    %134 = vector.shape_cast %133 : vector<1x1x3x64xbf16> to vector<3x64xbf16>
    %c320_167 = arith.constant 320 : index
    %c0_168 = arith.constant 0 : index
    %135 = vector.load %arg2[%c320_167, %c0_168] : memref<576x128xbf16, #tpu.memory_space<vmem>>, vector<64x128xbf16>
    %cst_169 = arith.constant dense<0.000000e+00> : vector<3x128xf32>
    %136 = tpu.matmul %134, %135, %cst_169 {dimension_numbers = #tpu.dot_dimension_numbers<[1], [0], [0], [1], [0, 0, 1, 1], [], []>} : vector<3x64xbf16>, vector<64x128xbf16>, vector<3x128xf32> -> vector<3x128xf32>
    %137 = arith.addf %132, %136 : vector<3x128xf32>
    %c0_170 = arith.constant 0 : index
    %c4 = arith.constant 4 : index
    %c0_171 = arith.constant 0 : index
    %c0_172 = arith.constant 0 : index
    %138 = vector.load %arg1[%c0_170, %c4, %c0_171, %c0_172] : memref<1x5x5x64xbf16, #tpu.memory_space<vmem>>, vector<1x1x3x64xbf16>
    %139 = vector.shape_cast %138 : vector<1x1x3x64xbf16> to vector<3x64xbf16>
    %c384_173 = arith.constant 384 : index
    %c0_174 = arith.constant 0 : index
    %140 = vector.load %arg2[%c384_173, %c0_174] : memref<576x128xbf16, #tpu.memory_space<vmem>>, vector<64x128xbf16>
    %cst_175 = arith.constant dense<0.000000e+00> : vector<3x128xf32>
    %141 = tpu.matmul %139, %140, %cst_175 {dimension_numbers = #tpu.dot_dimension_numbers<[1], [0], [0], [1], [0, 0, 1, 1], [], []>} : vector<3x64xbf16>, vector<64x128xbf16>, vector<3x128xf32> -> vector<3x128xf32>
    %142 = arith.addf %137, %141 : vector<3x128xf32>
    %c0_176 = arith.constant 0 : index
    %c4_177 = arith.constant 4 : index
    %c1_178 = arith.constant 1 : index
    %c0_179 = arith.constant 0 : index
    %143 = vector.load %arg1[%c0_176, %c4_177, %c1_178, %c0_179] : memref<1x5x5x64xbf16, #tpu.memory_space<vmem>>, vector<1x1x3x64xbf16>
    %144 = vector.shape_cast %143 : vector<1x1x3x64xbf16> to vector<3x64xbf16>
    %c448_180 = arith.constant 448 : index
    %c0_181 = arith.constant 0 : index
    %145 = vector.load %arg2[%c448_180, %c0_181] : memref<576x128xbf16, #tpu.memory_space<vmem>>, vector<64x128xbf16>
    %cst_182 = arith.constant dense<0.000000e+00> : vector<3x128xf32>
    %146 = tpu.matmul %144, %145, %cst_182 {dimension_numbers = #tpu.dot_dimension_numbers<[1], [0], [0], [1], [0, 0, 1, 1], [], []>} : vector<3x64xbf16>, vector<64x128xbf16>, vector<3x128xf32> -> vector<3x128xf32>
    %147 = arith.addf %142, %146 : vector<3x128xf32>
    %c0_183 = arith.constant 0 : index
    %c4_184 = arith.constant 4 : index
    %c2_185 = arith.constant 2 : index
    %c0_186 = arith.constant 0 : index
    %148 = vector.load %arg1[%c0_183, %c4_184, %c2_185, %c0_186] : memref<1x5x5x64xbf16, #tpu.memory_space<vmem>>, vector<1x1x3x64xbf16>
    %149 = vector.shape_cast %148 : vector<1x1x3x64xbf16> to vector<3x64xbf16>
    %c512_187 = arith.constant 512 : index
    %c0_188 = arith.constant 0 : index
    %150 = vector.load %arg2[%c512_187, %c0_188] : memref<576x128xbf16, #tpu.memory_space<vmem>>, vector<64x128xbf16>
    %cst_189 = arith.constant dense<0.000000e+00> : vector<3x128xf32>
    %151 = tpu.matmul %149, %150, %cst_189 {dimension_numbers = #tpu.dot_dimension_numbers<[1], [0], [0], [1], [0, 0, 1, 1], [], []>} : vector<3x64xbf16>, vector<64x128xbf16>, vector<3x128xf32> -> vector<3x128xf32>
    %152 = arith.addf %147, %151 : vector<3x128xf32>
    %153 = vector.broadcast %0 : vector<1x128xf32> to vector<3x128xf32>
    %154 = arith.addf %152, %153 : vector<3x128xf32>
    %cst_190 = arith.constant 0.000000e+00 : f32
    %155 = vector.broadcast %cst_190 : f32 to vector<3x128xf32>
    %156 = arith.maximumf %154, %155 : vector<3x128xf32>
    %c0_191 = arith.constant 0 : index
    %c2_192 = arith.constant 2 : index
    %c0_193 = arith.constant 0 : index
    %c0_194 = arith.constant 0 : index
    %157 = vector.load %arg4[%c0_191, %c2_192, %c0_193, %c0_194] : memref<1x3x3x128xf32, #tpu.memory_space<vmem>>, vector<1x1x3x128xf32>
    %158 = vector.shape_cast %157 : vector<1x1x3x128xf32> to vector<3x128xf32>
    %159 = vector.shape_cast %156 : vector<3x128xf32> to vector<1x1x3x128xf32>
    tpu.vector_store %arg4[%c0_191, %c2_192, %c0_193, %c0_194], %159 {strides = array<i32>} : memref<1x3x3x128xf32, #tpu.memory_space<vmem>>, vector<1x1x3x128xf32>,
    return
  }
  func.func @transform_0(%arg0: i32) -> (i32, i32, i32, i32) {
    %c0_i32 = arith.constant 0 : i32
    %c0_i32_0 = arith.constant 0 : i32
    %c0_i32_1 = arith.constant 0 : i32
    %c0_i32_2 = arith.constant 0 : i32
    return %arg0, %c0_i32, %c0_i32_0, %c0_i32_1 : i32, i32, i32, i32
  }
  func.func @transform_1(%arg0: i32) -> (i32, i32) {
    %c0_i32 = arith.constant 0 : i32
    %c0_i32_0 = arith.constant 0 : i32
    %c0_i32_1 = arith.constant 0 : i32
    return %c0_i32, %c0_i32_0 : i32, i32
  }
  func.func @transform_2(%arg0: i32) -> (i32, i32) {
    %c0_i32 = arith.constant 0 : i32
    %c0_i32_0 = arith.constant 0 : i32
    %c0_i32_1 = arith.constant 0 : i32
    return %c0_i32, %c0_i32_0 : i32, i32
  }
  func.func @transform_3(%arg0: i32) -> (i32, i32, i32, i32) {
    %c0_i32 = arith.constant 0 : i32
    %c0_i32_0 = arith.constant 0 : i32
    %c0_i32_1 = arith.constant 0 : i32
    %c0_i32_2 = arith.constant 0 : i32
    return %arg0, %c0_i32, %c0_i32_0, %c0_i32_1 : i32, i32, i32, i32
  }
}

module attributes {stable_mosaic.version = 11 : i64} {
  func.func @_head_kernel(%arg0: memref<2x576xf32, #tpu.memory_space<vmem>>, %arg1: memref<576x128xbf16, #tpu.memory_space<vmem>>, %arg2: memref<1x128xf32, #tpu.memory_space<vmem>>, %arg3: memref<128x128xbf16, #tpu.memory_space<vmem>>, %arg4: memref<1x128xf32, #tpu.memory_space<vmem>>, %arg5: memref<2x128xf32, #tpu.memory_space<vmem>>) attributes {dimension_semantics = [], scalar_prefetch = 0 : i64, scratch_operands = 0 : i64, tpu.core_type = #tpu.core_type<tc>} {
    %c0 = arith.constant 0 : index
    %c0_0 = arith.constant 0 : index
    %0 = vector.load %arg0[%c0, %c0_0] : memref<2x576xf32, #tpu.memory_space<vmem>>, vector<2x576xf32>
    %c0_1 = arith.constant 0 : index
    %c0_2 = arith.constant 0 : index
    %1 = vector.load %arg1[%c0_1, %c0_2] : memref<576x128xbf16, #tpu.memory_space<vmem>>, vector<576x128xbf16>
    %c0_3 = arith.constant 0 : index
    %c0_4 = arith.constant 0 : index
    %2 = vector.load %arg2[%c0_3, %c0_4] : memref<1x128xf32, #tpu.memory_space<vmem>>, vector<1x128xf32>
    %3 = arith.truncf %0 : vector<2x576xf32> to vector<2x576xbf16>
    %cst = arith.constant dense<0.000000e+00> : vector<2x128xf32>
    %4 = tpu.matmul %3, %1, %cst {dimension_numbers = #tpu.dot_dimension_numbers<[1], [0], [0], [1], [0, 0, 1, 1], [], []>} : vector<2x576xbf16>, vector<576x128xbf16>, vector<2x128xf32> -> vector<2x128xf32>
    %5 = vector.broadcast %2 : vector<1x128xf32> to vector<2x128xf32>
    %6 = arith.addf %4, %5 : vector<2x128xf32>
    %cst_5 = arith.constant 0.000000e+00 : f32
    %7 = vector.broadcast %cst_5 : f32 to vector<2x128xf32>
    %8 = arith.maximumf %6, %7 : vector<2x128xf32>
    %c0_6 = arith.constant 0 : index
    %c0_7 = arith.constant 0 : index
    %9 = vector.load %arg3[%c0_6, %c0_7] : memref<128x128xbf16, #tpu.memory_space<vmem>>, vector<128x128xbf16>
    %c0_8 = arith.constant 0 : index
    %c0_9 = arith.constant 0 : index
    %10 = vector.load %arg4[%c0_8, %c0_9] : memref<1x128xf32, #tpu.memory_space<vmem>>, vector<1x128xf32>
    %11 = arith.truncf %8 : vector<2x128xf32> to vector<2x128xbf16>
    %cst_10 = arith.constant dense<0.000000e+00> : vector<2x128xf32>
    %12 = tpu.matmul %11, %9, %cst_10 {dimension_numbers = #tpu.dot_dimension_numbers<[1], [0], [0], [1], [0, 0, 1, 1], [], []>} : vector<2x128xbf16>, vector<128x128xbf16>, vector<2x128xf32> -> vector<2x128xf32>
    %13 = vector.broadcast %10 : vector<1x128xf32> to vector<2x128xf32>
    %14 = arith.addf %12, %13 : vector<2x128xf32>
    %15 = tpu.iota {dimensions = array<i32: 1>} : vector<2x128xi32>
    %c0_i32 = arith.constant 0 : i32
    %16 = vector.broadcast %c0_i32 : i32 to vector<2x128xi32>
    %17 = arith.cmpi eq, %15, %16 : vector<2x128xi32>
    %cst_11 = arith.constant 0.000000e+00 : f32
    %18 = vector.broadcast %cst_11 : f32 to vector<2x128xf32>
    %19 = arith.select %17, %14, %18 : vector<2x128xi1>, vector<2x128xf32>
    %cst_12 = arith.constant dense<0.000000e+00> : vector<2xf32>
    %20 = vector.multi_reduction <add>, %19, %cst_12 [1] : vector<2x128xf32> to vector<2xf32>
    %21 = vector.shape_cast %20 : vector<2xf32> to vector<2x1xf32>
    %c1_i32 = arith.constant 1 : i32
    %22 = vector.broadcast %c1_i32 : i32 to vector<2x128xi32>
    %23 = arith.cmpi sge, %15, %22 : vector<2x128xi32>
    %c6_i32 = arith.constant 6 : i32
    %24 = vector.broadcast %c6_i32 : i32 to vector<2x128xi32>
    %25 = arith.cmpi sle, %15, %24 : vector<2x128xi32>
    %26 = arith.andi %23, %25 : vector<2x128xi1>
    %cst_13 = arith.constant 0.000000e+00 : f32
    %27 = vector.broadcast %cst_13 : f32 to vector<2x128xf32>
    %28 = arith.select %26, %14, %27 : vector<2x128xi1>, vector<2x128xf32>
    %cst_14 = arith.constant dense<0.000000e+00> : vector<2xf32>
    %29 = vector.multi_reduction <add>, %28, %cst_14 [1] : vector<2x128xf32> to vector<2xf32>
    %30 = vector.shape_cast %29 : vector<2xf32> to vector<2x1xf32>
    %cst_15 = arith.constant 6.000000e+00 : f32
    %31 = vector.broadcast %cst_15 : f32 to vector<2x1xf32>
    %32 = arith.divf %30, %31 : vector<2x1xf32>
    %33 = vector.broadcast %21 : vector<2x1xf32> to vector<2x128xf32>
    %34 = arith.addf %33, %14 : vector<2x128xf32>
    %35 = vector.broadcast %32 : vector<2x1xf32> to vector<2x128xf32>
    %36 = arith.subf %34, %35 : vector<2x128xf32>
    %c0_16 = arith.constant 0 : index
    %c0_17 = arith.constant 0 : index
    %37 = vector.load %arg5[%c0_16, %c0_17] : memref<2x128xf32, #tpu.memory_space<vmem>>, vector<2x128xf32>
    tpu.vector_store %arg5[%c0_16, %c0_17], %36 {strides = array<i32>} : memref<2x128xf32, #tpu.memory_space<vmem>>, vector<2x128xf32>,
    return
  }
}

</mosaic_0001>

<bundles_post_ra>
// kernel: _lambda_.4
= control target key start
LH: loop header
LB: loop body
LE: loop exit
PB: predicated region body
PF: predicated region fallthrough
CT: control target
= control target key end

     0   :  { %s6090_s12 = smov 0   ;;  %s7177_s0 = inlined_call_operand.vmem [shape: bf16[2,13,13,64], index: 0, kind: input, shape index: {}]   ;;  %s7178_s1 = inlined_call_operand.vmem [shape: bf16[256,128], index: 1, kind: input, shape index: {}]   ;;  %s7179_s2 = inlined_call_operand.vmem [shape: f32[1,128], index: 2, kind: input, shape index: {}]   ;;  %s7180_s3 = inlined_call_operand.vmem [shape: bf16[2,12,12,128], index: 3, kind: output, shape index: {}]  }
   0x1 LB: > { %s4554_s13 = sadd.s32 4294967295, %s6066_s12   ;;  %p4558_p0 = scmp.ge.s32.totalorder %s6066_s12, 1  ;;  %s6066_s12 = sphi %s6090_s12, %s13_s12  }
   0x2   : > { %p137_p1 = scmp.lt.s32.totalorder %s6066_s12, 3 }
   0x4   : > { %p138_p2 = pnand %p4558_p0, %p137_p1 }
   0x5   : > { %p161_p3 = scmp.lt.s32.totalorder (!%p138_p2), %s4554_s13, 1 }
   0x6   : > { %141 = sbr.rel (%p138_p2) target bundleno = 604 (0x25c), region = 32 }
   0xb   : > { %v5819_v0 = vld [vmem:[%s7178_s1 + $0x38] sm:$0xff]   ;;  %v6068_v1 = vmov 0.0   ;;  %v5821_v3 = vld [vmem:[%s7178_s1 + $0x30] sm:$0xff]   ;;  %vm6069_vm0 = vmmov 0   ;;  %s7182_s13 = smov (!%p161_p3, %s4554_s13), 1  ;;  %v5823_v5 = vld [vmem:[%s7178_s1 + $0x28] sm:$0xff]  }
   0xc   : > { %5231 = vmatprep.subr.bf16.mxu0 %v6068_v1  ;;  %5243 = vmatprep.subr.bf16.mxu1 %v6068_v1  ;;  %v5820_v2 = vld [vmem:[%s7178_s1 + $0x18] sm:$0xff]   ;;  %v5822_v4 = vld [vmem:[%s7178_s1 + $0x10] sm:$0xff]   ;;  %s5807_s24 = smul.u32 104, %s7182_s13  ;;  %v5824_v6 = vld [vmem:[%s7178_s1 + $0x8] sm:$0xff]   ;;  %vm228_vm1 = vcmask 523264  }
   0xd   : > { %5232 = vmatpush3.bf16.msra.mxu0 %v5819_v0  ;;  %5239 = vmatprep.mubr.msk.bf16.mxu0 %vm6069_vm0, %v6068_v1  ;;  %v5825_v7 = vld [vmem:[%s7178_s1 + $0x20] sm:$0xff]   ;;  %v5829_v17 = vld [vmem:[%s7178_s1 + $0x58] sm:$0xff]   ;;  %v5831_v20 = vld [vmem:[%s7178_s1 + $0x50] sm:$0xff]   ;;  %s5808_s9 = smul.u32 96, %s7182_s13 }
   0xe   : > { %5244 = vmatpush3.bf16.msra.mxu1 %v5820_v2  ;;  %5233 = vmatprep.subr.bf16.mxu0 %v6068_v1  ;;  %s6132_s29 = scalar_lea.vmem %s7177_s0, %s5807_s24  ;;  %v5826_v10 = vld [vmem:[%s7178_s1] sm:$0xff]   ;;  %v5830_v18 = vld [vmem:[%s7178_s1 + $0x78] sm:$0xff]   ;;  %v5832_v23 = vld [vmem:[%s7178_s1 + $0x70] sm:$0xff]  }
   0xf   : > { %5245 = vmatprep.subr.bf16.mxu1 %v6068_v1  ;;  %5251 = vmatprep.mubr.msk.bf16.mxu1 %vm6069_vm0, %v6068_v1  ;;  %v173_v8 = vld [vmem:[%s6132_s29] sm:$0xf]  ;;  %v183_v9 = vld [vmem:[%s6132_s29 + $0x4] sm:$0x7]  ;;  %v4573_v21 = vld [vmem:[%s6132_s29 + $0x8] sm:$0xf]  ;;  %s6723_s17 = scalar_lea.vmem %s7180_s3, %s5808_s9 }
  0x10   : > { %v4561_v11 = vcombine.low %v173_v8, %v183_v9  ;;  %v174_v12 = vld [vmem:[%s6132_s29 + $0x4] sm:$0x3]  ;;  %v4581_v22 = vld [vmem:[%s6132_s29 + $0xc] sm:$0x7]  ;;  %v5839_v33 = vld [vmem:[%s7178_s1 + $0x38] sm:$0xff]  }
  0x11   : > { %5234 = vmatpush3.bf16.msra.mxu0 %v5821_v3  ;;  %v4567_v16 = vcombine.low %v173_v8, %v174_v12  ;;  %v4582_v24 = vcombine.low %v4573_v21, %v4581_v22  ;;  %v5833_v25 = vld [vmem:[%s7178_s1 + $0x48] sm:$0xff]   ;;  %v5835_v28 = vld [vmem:[%s7178_s1 + $0x40] sm:$0xff]   ;;  %v5840_v34 = vld [vmem:[%s7178_s1 + $0x18] sm:$0xff]  }
  0x12   : > { %5246 = vmatpush3.bf16.msra.mxu1 %v5822_v4  ;;  %5235 = vmatprep.subr.bf16.mxu0 %v6068_v1  ;;  %v198_v13 = vshrl.u32 %v4561_v11, 16  ;;  %v200_v14 = vshll.u32 %v4561_v11, 16  ;;  %v5834_v27 = vld [vmem:[%s7178_s1 + $0x68] sm:$0xff]   ;;  %v5836_v29 = vld [vmem:[%s7178_s1 + $0x60] sm:$0xff]   ;;  %v5841_v40 = vld [vmem:[%s7178_s1 + $0x30] sm:$0xff]  }
  0x13   : > { %5247 = vmatprep.subr.bf16.mxu1 %v6068_v1  ;;  %v445_v26 = vshll.u32 %v4582_v24, 16  ;;  %v443_v30 = vshrl.u32 %v4582_v24, 16  ;;  %v4574_v32 = vld [vmem:[%s6132_s29 + $0xc] sm:$0x3]  ;;  %v4591_v35 = vld [vmem:[%s6132_s29 + $0x8] sm:$0xf] }
  0x14   : > { %v202_v15 = vrot.slane %v200_v14, 1  ;;  %v4575_v36 = vcombine.low %v4573_v21, %v4574_v32  ;;  %v4593_v38 = vld [vmem:[%s6132_s29 + $0xc] sm:$0x7]  ;;  %v5842_v41 = vld [vmem:[%s7178_s1 + $0x10] sm:$0xff]   ;;  %v5845_v45 = vld [vmem:[%s7178_s1 + $0x20] sm:$0xff]  }
  0x15   : > { %5236 = vmatpush3.bf16.msra.mxu0 %v5823_v5  ;;  %v447_v31 = vrot.slane %v445_v26, 1  ;;  %v4594_v39 = vcombine.low %v4591_v35, %v4593_v38  ;;  %v5843_v43 = vld [vmem:[%s7178_s1 + $0x28] sm:$0xff]   ;;  %v5846_v46 = vld [vmem:[%s7178_s1] sm:$0xff]   ;;  %v4606_v50 = vld [vmem:[%s6132_s29 + $0x10] sm:$0xf] }
  0x16   : > { %5248 = vmatpush3.bf16.msra.mxu1 %v5824_v6  ;;  %5237 = vmatprep.subr.bf16.mxu0 %v6068_v1  ;;  %v203_v19 = vor.u32 %v202_v15, %v198_v13  ;;  %v5844_v44 = vld [vmem:[%s7178_s1 + $0x8] sm:$0xff]   ;;  %v4614_v53 = vld [vmem:[%s6132_s29 + $0x14] sm:$0x7]  ;;  %v5849_v54 = vld [vmem:[%s7178_s1 + $0x58] sm:$0xff]  }
  0x17   : > { %5249 = vmatprep.subr.bf16.mxu1 %v6068_v1  ;;  %v448_v37 = vor.u32 %v447_v31, %v443_v30  ;;  %v566_v42 = vshll.u32 %v4594_v39, 16  ;;  %v564_v47 = vshrl.u32 %v4594_v39, 16  ;;  %v4592_v49 = vld [vmem:[%s6132_s29 + $0xc] sm:$0x3]  ;;  %v5850_v55 = vld [vmem:[%s7178_s1 + $0x78] sm:$0xff]   ;;  %v4615_v56 = vcombine.low %v4606_v50, %v4614_v53  ;;  %v5851_v57 = vld [vmem:[%s7178_s1 + $0x50] sm:$0xff]  }
  0x18   : > { %v4600_v52 = vcombine.low %v4591_v35, %v4592_v49  ;;  %v5852_v58 = vld [vmem:[%s7178_s1 + $0x70] sm:$0xff]   ;;  %v5853_v60 = vld [vmem:[%s7178_s1 + $0x48] sm:$0xff]   ;;  %v5855_v62 = vld [vmem:[%s7178_s1 + $0x40] sm:$0xff]  }
  0x19   : > { %5238 = vmatpush3.bf16.msra.mxu0 %v5825_v7  ;;  %v568_v48 = vrot.slane %v566_v42, 1  ;;  %v810_v59 = vshll.u32 %v4615_v56, 16  ;;  %v5854_v61 = vld [vmem:[%s7178_s1 + $0x68] sm:$0xff]   ;;  %v5856_v63 = vld [vmem:[%s7178_s1 + $0x60] sm:$0xff]   ;;  %v808_v0 = vshrl.u32 %v4615_v56, 16  ;;  %v5859_v6 = vld [vmem:[%s7178_s1 + $0x38] sm:$0xff]  }
  0x1a   : > { %5250 = vmatpush3.bf16.msra.mxu1 %v5826_v10  ;;  %5255 = vmatprep.subr.bf16.mxu0 %v6068_v1  ;;  %v4607_v3 = vld [vmem:[%s6132_s29 + $0x14] sm:$0x3]  ;;  %v5860_v7 = vld [vmem:[%s7178_s1 + $0x18] sm:$0xff]   ;;  %v4625_v8 = vld [vmem:[%s6132_s29 + $0x10] sm:$0xf] }
  0x1b   : > { %5267 = vmatprep.subr.bf16.mxu1 %v6068_v1  ;;  %v569_v51 = vor.u32 %v568_v48, %v564_v47  ;;  %v812_v2 = vrot.slane %v810_v59, 1  ;;  %v4608_v4 = vcombine.low %v4606_v50, %v4607_v3  ;;  %v4627_v9 = vld [vmem:[%s6132_s29 + $0x14] sm:$0x7]  ;;  %v5863_v14 = vld [vmem:[%s7178_s1 + $0x28] sm:$0xff]   ;;  %v5869_v21 = vld [vmem:[%s7178_s1 + $0x58] sm:$0xff]  }
  0x1c   : > { %5240 = vmatmul.mubr.msk.bf16.vlgmr.msra.gmra.mxu0 %vm228_vm1, %v203_v19  ;;  %v5861_v10 = vld [vmem:[%s7178_s1 + $0x30] sm:$0xff]   ;;  %v4628_v11 = vcombine.low %v4625_v8, %v4627_v9  ;;  %v5864_v15 = vld [vmem:[%s7178_s1 + $0x8] sm:$0xff]   ;;  %v5866_v19 = vld [vmem:[%s7178_s1] sm:$0xff]  }
  0x1d   : > { %5252 = vmatmul.mubr.msk.bf16.vlgmr.msra.gmra.mxu1 %vm228_vm1, %v4567_v16  ;;  %5256 = vmatpush3.bf16.msra.mxu0 %v5829_v17  ;;  %v813_v5 = vor.u32 %v812_v2, %v808_v0  ;;  %v5862_v12 = vld [vmem:[%s7178_s1 + $0x10] sm:$0xff]   ;;  %v5865_v16 = vld [vmem:[%s7178_s1 + $0x20] sm:$0xff]   ;;  %v5870_v22 = vld [vmem:[%s7178_s1 + $0x78] sm:$0xff]  }
  0x1e   : > { %5268 = vmatpush3.bf16.msra.mxu1 %v5830_v18  ;;  %5257 = vmatprep.subr.bf16.mxu0 %v6068_v1  ;;  %v926_v13 = vshll.u32 %v4628_v11, 16  ;;  %v924_v17 = vshrl.u32 %v4628_v11, 16  ;;  %v4648_v26 = vld [vmem:[%s6132_s29 + $0x1c] sm:$0x7]  ;;  %v5873_v30 = vld [vmem:[%s7178_s1 + $0x48] sm:$0xff]   ;;  %v5886_v53 = vld [vmem:[%s7178_s1] sm:$0xff]  }
  0x1f   : > { %5269 = vmatprep.subr.bf16.mxu1 %v6068_v1  ;;  %5263 = vmatprep.mubr.msk.bf16.mxu0 %vm6069_vm0, %v6068_v1  ;;  %v5874_v32 = vld [vmem:[%s7178_s1 + $0x68] sm:$0xff]   ;;  %v5879_v38 = vld [vmem:[%s7178_s1 + $0x38] sm:$0xff]   ;;  %v4674_v59 = vld [vmem:[%s6132_s29 + $0x20] sm:$0xf] }
  0x20   : > { %5275 = vmatprep.mubr.msk.bf16.mxu1 %vm6069_vm0, %v6068_v1  ;;  %v928_v18 = vrot.slane %v926_v13, 1  ;;  %v4659_v39 = vld [vmem:[%s6132_s29 + $0x18] sm:$0xf]  ;;  %v5883_v47 = vld [vmem:[%s7178_s1 + $0x28] sm:$0xff]   ;;  %v4693_v13 = vld [vmem:[%s6132_s29 + $0x20] sm:$0xf] }
  0x21   : > { %5258 = vmatpush3.bf16.msra.mxu0 %v5831_v20  ;;  %v4626_v20 = vld [vmem:[%s6132_s29 + $0x14] sm:$0x3]  ;;  %v5884_v49 = vld [vmem:[%s7178_s1 + $0x8] sm:$0xff]   ;;  %v5899_v9 = vld [vmem:[%s7178_s1 + $0x38] sm:$0xff]  }
  0x22   : > { %5270 = vmatpush3.bf16.msra.mxu1 %v5832_v23  ;;  %5259 = vmatprep.subr.bf16.mxu0 %v6068_v1  ;;  %v929_v23 = vor.u32 %v928_v18, %v924_v17  ;;  %v4634_v24 = vcombine.low %v4625_v8, %v4626_v20  ;;  %v5893_v2 = vld [vmem:[%s7178_s1 + $0x48] sm:$0xff]   ;;  %v4675_v8 = vld [vmem:[%s6132_s29 + $0x24] sm:$0x3]  ;;  %v5902_v17 = vld [vmem:[%s7178_s1 + $0x10] sm:$0xff]  }
  0x23   : > { %5271 = vmatprep.subr.bf16.mxu1 %v6068_v1  ;;  %v5894_v3 = vld [vmem:[%s7178_s1 + $0x68] sm:$0xff]  }
  0x24   : > { %v5904_v20 = vld [vmem:[%s7178_s1 + $0x8] sm:$0xff]  }
  0x25   : > { %5260 = vmatpush3.bf16.msra.mxu0 %v5833_v25  ;;  %v4640_v25 = vld [vmem:[%s6132_s29 + $0x18] sm:$0xf] }
  0x26   : > { %5272 = vmatpush3.bf16.msra.mxu1 %v5834_v27  ;;  %5261 = vmatprep.subr.bf16.mxu0 %v6068_v1  ;;  %v4649_v27 = vcombine.low %v4640_v25, %v4648_v26  ;;  %v5909_v26 = vld [vmem:[%s7178_s1 + $0x58] sm:$0xff]  }
  0x27   : > { %5273 = vmatprep.subr.bf16.mxu1 %v6068_v1 }
  0x28   : > { %v1170_v31 = vshll.u32 %v4649_v27, 16  ;;  %v1168_v35 = vshrl.u32 %v4649_v27, 16 }
  0x29   : > { %5262 = vmatpush3.bf16.msra.mxu0 %v5835_v28  ;;  %v5871_v28 = vld [vmem:[%s7178_s1 + $0x50] sm:$0xff]  }
  0x2a   : > { %5274 = vmatpush3.bf16.msra.mxu1 %v5836_v29  ;;  %5279 = vmatprep.subr.bf16.mxu0 %v6068_v1  ;;  %v5872_v29 = vld [vmem:[%s7178_s1 + $0x70] sm:$0xff]  }
  0x2b   : > { %5291 = vmatprep.subr.bf16.mxu1 %v6068_v1 }
  0x2c   : > { %5264 = vmatmul.mubr.msk.bf16.vlgmr.msra.gmra.mxu0 %vm228_vm1, %v4575_v36  ;;  %v1172_v36 = vrot.slane %v1170_v31, 1  ;;  %v4716_v31 = vld [vmem:[%s6132_s29 + $0x2c] sm:$0x7] }
  0x2d   : > { %5276 = vmatmul.mubr.msk.bf16.vlgmr.msra.gmra.mxu1 %vm228_vm1, %v448_v37  ;;  %5280 = vmatpush3.bf16.msra.mxu0 %v5839_v33  ;;  %v5875_v33 = vld [vmem:[%s7178_s1 + $0x40] sm:$0xff]   ;;  %v4641_v37 = vld [vmem:[%s6132_s29 + $0x1c] sm:$0x3] }
  0x2e   : > { %5292 = vmatpush3.bf16.msra.mxu1 %v5840_v34  ;;  %5281 = vmatprep.subr.bf16.mxu0 %v6068_v1  ;;  %v5876_v34 = vld [vmem:[%s7178_s1 + $0x60] sm:$0xff]   ;;  %v1173_v42 = vor.u32 %v1172_v36, %v1168_v35  ;;  %v5913_v35 = vld [vmem:[%s7178_s1 + $0x48] sm:$0xff]  }
  0x2f   : > { %5293 = vmatprep.subr.bf16.mxu1 %v6068_v1  ;;  %5287 = vmatprep.mubr.msk.bf16.mxu0 %vm6069_vm0, %v6068_v1 }
  0x30   : > { %5299 = vmatprep.mubr.msk.bf16.mxu1 %vm6069_vm0, %v6068_v1 }
  0x31   : > { %5282 = vmatpush3.bf16.msra.mxu0 %v5841_v40  ;;  %v4661_v40 = vld [vmem:[%s6132_s29 + $0x1c] sm:$0x7] }
  0x32   : > { %5294 = vmatpush3.bf16.msra.mxu1 %v5842_v41  ;;  %5283 = vmatprep.subr.bf16.mxu0 %v6068_v1  ;;  %v4642_v41 = vcombine.low %v4640_v25, %v4641_v37  ;;  %v4694_v25 = vld [vmem:[%s6132_s29 + $0x24] sm:$0x3]  ;;  %v5914_v37 = vld [vmem:[%s7178_s1 + $0x68] sm:$0xff]  }
  0x33   : > { %5295 = vmatprep.subr.bf16.mxu1 %v6068_v1 }
  0x35   : > { %5284 = vmatpush3.bf16.msra.mxu0 %v5843_v43  ;;  %v5880_v43 = vld [vmem:[%s7178_s1 + $0x18] sm:$0xff]  }
  0x36   : > { %5296 = vmatpush3.bf16.msra.mxu1 %v5844_v44  ;;  %5285 = vmatprep.subr.bf16.mxu0 %v6068_v1  ;;  %v4662_v44 = vcombine.low %v4659_v39, %v4661_v40 }
  0x37   : > { %5297 = vmatprep.subr.bf16.mxu1 %v6068_v1 }
  0x38   : > { %v1286_v48 = vshll.u32 %v4662_v44, 16  ;;  %v1284_v50 = vshrl.u32 %v4662_v44, 16  ;;  %v5919_v44 = vld [vmem:[%s7178_s1 + $0x38] sm:$0xff]  }
  0x39   : > { %5286 = vmatpush3.bf16.msra.mxu0 %v5845_v45  ;;  %v5881_v45 = vld [vmem:[%s7178_s1 + $0x30] sm:$0xff]  }
  0x3a   : > { %5298 = vmatpush3.bf16.msra.mxu1 %v5846_v46  ;;  %5303 = vmatprep.subr.bf16.mxu0 %v6068_v1  ;;  %v5882_v46 = vld [vmem:[%s7178_s1 + $0x10] sm:$0xff]  }
  0x3b   : > { %5315 = vmatprep.subr.bf16.mxu1 %v6068_v1 }
  0x3c   : > { %5288 = vmatmul.mubr.msk.bf16.vlgmr.msra.gmra.mxu0 %vm228_vm1, %v569_v51  ;;  %v1288_v51 = vrot.slane %v1286_v48, 1  ;;  %v5920_v48 = vld [vmem:[%s7178_s1 + $0x18] sm:$0xff]  }
  0x3d   : > { %5300 = vmatmul.mubr.msk.bf16.vlgmr.msra.gmra.mxu1 %vm228_vm1, %v4600_v52  ;;  %5304 = vmatpush3.bf16.msra.mxu0 %v5849_v54  ;;  %v5885_v52 = vld [vmem:[%s7178_s1 + $0x20] sm:$0xff]   ;;  %v4660_v54 = vld [vmem:[%s6132_s29 + $0x1c] sm:$0x3] }
  0x3e   : > { %5316 = vmatpush3.bf16.msra.mxu1 %v5850_v55  ;;  %5305 = vmatprep.subr.bf16.mxu0 %v6068_v1  ;;  %v5889_v55 = vld [vmem:[%s7178_s1 + $0x58] sm:$0xff]   ;;  %v1289_v56 = vor.u32 %v1288_v51, %v1284_v50  ;;  %v5921_v50 = vld [vmem:[%s7178_s1 + $0x30] sm:$0xff]  }
  0x3f   : > { %5317 = vmatprep.subr.bf16.mxu1 %v6068_v1  ;;  %5311 = vmatprep.mubr.msk.bf16.mxu0 %vm6069_vm0, %v6068_v1  ;;  %v5922_v51 = vld [vmem:[%s7178_s1 + $0x10] sm:$0xff]  }
  0x40   : > { %5323 = vmatprep.mubr.msk.bf16.mxu1 %vm6069_vm0, %v6068_v1 }
  0x41   : > { %5306 = vmatpush3.bf16.msra.mxu0 %v5851_v57  ;;  %v4668_v57 = vcombine.low %v4659_v39, %v4660_v54  ;;  %v5916_v39 = vld [vmem:[%s7178_s1 + $0x60] sm:$0xff]   ;;  %v5924_v54 = vld [vmem:[%s7178_s1 + $0x8] sm:$0xff]  }
  0x42   : > { %5318 = vmatpush3.bf16.msra.mxu1 %v5852_v58  ;;  %5307 = vmatprep.subr.bf16.mxu0 %v6068_v1  ;;  %v5890_v58 = vld [vmem:[%s7178_s1 + $0x78] sm:$0xff]  }
  0x43   : > { %5319 = vmatprep.subr.bf16.mxu1 %v6068_v1 }
  0x45   : > { %5308 = vmatpush3.bf16.msra.mxu0 %v5853_v60  ;;  %v4682_v60 = vld [vmem:[%s6132_s29 + $0x24] sm:$0x7] }
  0x46   : > { %5320 = vmatpush3.bf16.msra.mxu1 %v5854_v61  ;;  %5309 = vmatprep.subr.bf16.mxu0 %v6068_v1  ;;  %v5891_v61 = vld [vmem:[%s7178_s1 + $0x50] sm:$0xff]  }
  0x47   : > { %5321 = vmatprep.subr.bf16.mxu1 %v6068_v1 }
  0x49   : > { %5310 = vmatpush3.bf16.msra.mxu0 %v5855_v62  ;;  %v4683_v62 = vcombine.low %v4674_v59, %v4682_v60  ;;  %v4742_v60 = vld [vmem:[%s6132_s29 + $0x30] sm:$0xf] }
  0x4a   : > { %5322 = vmatpush3.bf16.msra.mxu1 %v5856_v63  ;;  %5327 = vmatprep.subr.bf16.mxu0 %v6068_v1  ;;  %v5892_v63 = vld [vmem:[%s7178_s1 + $0x70] sm:$0xff]  }
  0x4b   : > { %5339 = vmatprep.subr.bf16.mxu1 %v6068_v1  ;;  %v1530_v0 = vshll.u32 %v4683_v62, 16 }
  0x4c   : > { %5312 = vmatmul.mubr.msk.bf16.vlgmr.msra.gmra.mxu0 %vm228_vm1, %v4608_v4  ;;  %v5895_v4 = vld [vmem:[%s7178_s1 + $0x40] sm:$0xff]  }
  0x4d   : > { %5324 = vmatmul.mubr.msk.bf16.vlgmr.msra.gmra.mxu1 %vm228_vm1, %v813_v5  ;;  %5328 = vmatpush3.bf16.msra.mxu0 %v5859_v6  ;;  %v5896_v5 = vld [vmem:[%s7178_s1 + $0x60] sm:$0xff]   ;;  %v1528_v6 = vshrl.u32 %v4683_v62, 16 }
  0x4e   : > { %5340 = vmatpush3.bf16.msra.mxu1 %v5860_v7  ;;  %5329 = vmatprep.subr.bf16.mxu0 %v6068_v1  ;;  %v1532_v7 = vrot.slane %v1530_v0, 1  ;;  %v5929_v0 = vld [vmem:[%s7178_s1 + $0x58] sm:$0xff]  }
  0x4f   : > { %5341 = vmatprep.subr.bf16.mxu1 %v6068_v1  ;;  %5335 = vmatprep.mubr.msk.bf16.mxu0 %vm6069_vm0, %v6068_v1 }
  0x50   : > { %5347 = vmatprep.mubr.msk.bf16.mxu1 %vm6069_vm0, %v6068_v1  ;;  %v1533_v11 = vor.u32 %v1532_v7, %v1528_v6  ;;  %v5933_v6 = vld [vmem:[%s7178_s1 + $0x48] sm:$0xff]  }
  0x51   : > { %5330 = vmatpush3.bf16.msra.mxu0 %v5861_v10  ;;  %v4676_v10 = vcombine.low %v4674_v59, %v4675_v8  ;;  %v4728_v59 = vld [vmem:[%s6132_s29 + $0x2c] sm:$0x3] }
  0x52   : > { %5342 = vmatpush3.bf16.msra.mxu1 %v5862_v12  ;;  %5331 = vmatprep.subr.bf16.mxu0 %v6068_v1  ;;  %v5900_v12 = vld [vmem:[%s7178_s1 + $0x18] sm:$0xff]   ;;  %v5934_v7 = vld [vmem:[%s7178_s1 + $0x68] sm:$0xff]  }
  0x53   : > { %5343 = vmatprep.subr.bf16.mxu1 %v6068_v1 }
  0x55   : > { %5332 = vmatpush3.bf16.msra.mxu0 %v5863_v14  ;;  %v4695_v14 = vld [vmem:[%s6132_s29 + $0x24] sm:$0x7] }
  0x56   : > { %5344 = vmatpush3.bf16.msra.mxu1 %v5864_v15  ;;  %5333 = vmatprep.subr.bf16.mxu0 %v6068_v1  ;;  %v5901_v15 = vld [vmem:[%s7178_s1 + $0x30] sm:$0xff]  }
  0x57   : > { %5345 = vmatprep.subr.bf16.mxu1 %v6068_v1 }
  0x59   : > { %5334 = vmatpush3.bf16.msra.mxu0 %v5865_v16  ;;  %v4696_v16 = vcombine.low %v4693_v13, %v4695_v14  ;;  %v5939_v14 = vld [vmem:[%s7178_s1 + $0x38] sm:$0xff]  }
  0x5a   : > { %5346 = vmatpush3.bf16.msra.mxu1 %v5866_v19  ;;  %5351 = vmatprep.subr.bf16.mxu0 %v6068_v1  ;;  %v5903_v19 = vld [vmem:[%s7178_s1 + $0x28] sm:$0xff]  }
  0x5b   : > { %5363 = vmatprep.subr.bf16.mxu1 %v6068_v1  ;;  %v1646_v18 = vshll.u32 %v4696_v16, 16 }
  0x5c   : > { %5336 = vmatmul.mubr.msk.bf16.vlgmr.msra.gmra.mxu0 %vm228_vm1, %v929_v23  ;;  %v1644_v23 = vshrl.u32 %v4696_v16, 16 }
  0x5d   : > { %5348 = vmatmul.mubr.msk.bf16.vlgmr.msra.gmra.mxu1 %vm228_vm1, %v4634_v24  ;;  %5352 = vmatpush3.bf16.msra.mxu0 %v5869_v21  ;;  %v5905_v21 = vld [vmem:[%s7178_s1 + $0x20] sm:$0xff]   ;;  %v1648_v24 = vrot.slane %v1646_v18, 1  ;;  %v4763_v18 = vld [vmem:[%s6132_s29 + $0x34] sm:$0x7] }
  0x5e   : > { %5364 = vmatpush3.bf16.msra.mxu1 %v5870_v22  ;;  %5353 = vmatprep.subr.bf16.mxu0 %v6068_v1  ;;  %v5906_v22 = vld [vmem:[%s7178_s1] sm:$0xff]  }
  0x5f   : > { %5365 = vmatprep.subr.bf16.mxu1 %v6068_v1  ;;  %5359 = vmatprep.mubr.msk.bf16.mxu0 %vm6069_vm0, %v6068_v1  ;;  %v1649_v27 = vor.u32 %v1648_v24, %v1644_v23  ;;  %v5943_v23 = vld [vmem:[%s7178_s1 + $0x28] sm:$0xff]  }
  0x60   : > { %5371 = vmatprep.mubr.msk.bf16.mxu1 %vm6069_vm0, %v6068_v1  ;;  %v5944_v24 = vld [vmem:[%s7178_s1 + $0x8] sm:$0xff]  }
  0x61   : > { %5354 = vmatpush3.bf16.msra.mxu0 %v5871_v28  ;;  %v4702_v28 = vcombine.low %v4693_v13, %v4694_v25 }
  0x62   : > { %5366 = vmatpush3.bf16.msra.mxu1 %v5872_v29  ;;  %5355 = vmatprep.subr.bf16.mxu0 %v6068_v1  ;;  %v5910_v29 = vld [vmem:[%s7178_s1 + $0x78] sm:$0xff]  }
  0x63   : > { %5367 = vmatprep.subr.bf16.mxu1 %v6068_v1 }
  0x65   : > { %5356 = vmatpush3.bf16.msra.mxu0 %v5873_v30  ;;  %v4708_v30 = vld [vmem:[%s6132_s29 + $0x28] sm:$0xf] }
  0x66   : > { %5368 = vmatpush3.bf16.msra.mxu1 %v5874_v32  ;;  %5357 = vmatprep.subr.bf16.mxu0 %v6068_v1  ;;  %v4717_v32 = vcombine.low %v4708_v30, %v4716_v31 }
  0x67   : > { %5369 = vmatprep.subr.bf16.mxu1 %v6068_v1 }
  0x68   : > { %v1890_v36 = vshll.u32 %v4717_v32, 16  ;;  %v1888_v40 = vshrl.u32 %v4717_v32, 16 }
  0x69   : > { %5358 = vmatpush3.bf16.msra.mxu0 %v5875_v33  ;;  %v5911_v33 = vld [vmem:[%s7178_s1 + $0x50] sm:$0xff]  }
  0x6a   : > { %5370 = vmatpush3.bf16.msra.mxu1 %v5876_v34  ;;  %5375 = vmatprep.subr.bf16.mxu0 %v6068_v1  ;;  %v5912_v34 = vld [vmem:[%s7178_s1 + $0x70] sm:$0xff]  }
  0x6b   : > { %5387 = vmatprep.subr.bf16.mxu1 %v6068_v1 }
  0x6c   : > { %5360 = vmatmul.mubr.msk.bf16.vlgmr.msra.gmra.mxu0 %vm228_vm1, %v4642_v41  ;;  %v1892_v41 = vrot.slane %v1890_v36, 1  ;;  %v4784_v36 = vld [vmem:[%s6132_s29 + $0x3c] sm:$0x7] }
  0x6d   : > { %5372 = vmatmul.mubr.msk.bf16.vlgmr.msra.gmra.mxu1 %vm228_vm1, %v1173_v42  ;;  %5376 = vmatpush3.bf16.msra.mxu0 %v5879_v38  ;;  %v5915_v38 = vld [vmem:[%s7178_s1 + $0x40] sm:$0xff]   ;;  %v4709_v42 = vld [vmem:[%s6132_s29 + $0x2c] sm:$0x3] }
  0x6e   : > { %5388 = vmatpush3.bf16.msra.mxu1 %v5880_v43  ;;  %5377 = vmatprep.subr.bf16.mxu0 %v6068_v1  ;;  %v4727_v43 = vld [vmem:[%s6132_s29 + $0x28] sm:$0xf] }
  0x6f   : > { %5389 = vmatprep.subr.bf16.mxu1 %v6068_v1  ;;  %5383 = vmatprep.mubr.msk.bf16.mxu0 %vm6069_vm0, %v6068_v1  ;;  %v4736_v62 = vcombine.low %v4727_v43, %v4728_v59  ;;  %v5960_v59 = vld [vmem:[%s7178_s1 + $0x18] sm:$0xff]  }
  0x70   : > { %5395 = vmatprep.mubr.msk.bf16.mxu1 %vm6069_vm0, %v6068_v1 }
  0x71   : > { %5378 = vmatpush3.bf16.msra.mxu0 %v5881_v45  ;;  %v4710_v45 = vcombine.low %v4708_v30, %v4709_v42 }
  0x72   : > { %5390 = vmatpush3.bf16.msra.mxu1 %v5882_v46  ;;  %5379 = vmatprep.subr.bf16.mxu0 %v6068_v1  ;;  %v1893_v46 = vor.u32 %v1892_v41, %v1888_v40  ;;  %v5951_v40 = vld [vmem:[%s7178_s1 + $0x50] sm:$0xff]  }
  0x73   : > { %5391 = vmatprep.subr.bf16.mxu1 %v6068_v1  ;;  %v5952_v41 = vld [vmem:[%s7178_s1 + $0x70] sm:$0xff]  }
  0x75   : > { %5380 = vmatpush3.bf16.msra.mxu0 %v5883_v47  ;;  %v4729_v47 = vld [vmem:[%s6132_s29 + $0x2c] sm:$0x7] }
  0x76   : > { %5392 = vmatpush3.bf16.msra.mxu1 %v5884_v49  ;;  %5381 = vmatprep.subr.bf16.mxu0 %v6068_v1  ;;  %v4730_v49 = vcombine.low %v4727_v43, %v4729_v47  ;;  %v5953_v47 = vld [vmem:[%s7178_s1 + $0x48] sm:$0xff]  }
  0x77   : > { %5393 = vmatprep.subr.bf16.mxu1 %v6068_v1 }
  0x79   : > { %5382 = vmatpush3.bf16.msra.mxu0 %v5885_v52  ;;  %v5923_v52 = vld [vmem:[%s7178_s1 + $0x28] sm:$0xff]  }
  0x7a   : > { %5394 = vmatpush3.bf16.msra.mxu1 %v5886_v53  ;;  %5399 = vmatprep.subr.bf16.mxu0 %v6068_v1  ;;  %v2006_v53 = vshll.u32 %v4730_v49, 16 }
  0x7b   : > { %5411 = vmatprep.subr.bf16.mxu1 %v6068_v1 }
  0x7c   : > { %5384 = vmatmul.mubr.msk.bf16.vlgmr.msra.gmra.mxu0 %vm228_vm1, %v1289_v56  ;;  %v5926_v56 = vld [vmem:[%s7178_s1] sm:$0xff]  }
  0x7d   : > { %5396 = vmatmul.mubr.msk.bf16.vlgmr.msra.gmra.mxu1 %vm228_vm1, %v4668_v57  ;;  %5400 = vmatpush3.bf16.msra.mxu0 %v5889_v55  ;;  %v5925_v55 = vld [vmem:[%s7178_s1 + $0x20] sm:$0xff]   ;;  %v2004_v57 = vshrl.u32 %v4730_v49, 16 }
  0x7e   : > { %5412 = vmatpush3.bf16.msra.mxu1 %v5890_v58  ;;  %5401 = vmatprep.subr.bf16.mxu0 %v6068_v1  ;;  %v2008_v58 = vrot.slane %v2006_v53, 1  ;;  %v5955_v53 = vld [vmem:[%s7178_s1 + $0x40] sm:$0xff]  }
  0x7f   : > { %5413 = vmatprep.subr.bf16.mxu1 %v6068_v1  ;;  %5407 = vmatprep.mubr.msk.bf16.mxu0 %vm6069_vm0, %v6068_v1 }
  0x80   : > { %5419 = vmatprep.mubr.msk.bf16.mxu1 %vm6069_vm0, %v6068_v1 }
  0x81   : > { %5402 = vmatpush3.bf16.msra.mxu0 %v5891_v61  ;;  %v2009_v61 = vor.u32 %v2008_v58, %v2004_v57  ;;  %v5959_v58 = vld [vmem:[%s7178_s1 + $0x38] sm:$0xff]  }
  0x82   : > { %5414 = vmatpush3.bf16.msra.mxu1 %v5892_v63  ;;  %5403 = vmatprep.subr.bf16.mxu0 %v6068_v1  ;;  %v4750_v63 = vld [vmem:[%s6132_s29 + $0x34] sm:$0x7] }
  0x83   : > { %5415 = vmatprep.subr.bf16.mxu1 %v6068_v1 }
  0x85   : > { %5404 = vmatpush3.bf16.msra.mxu0 %v5893_v2  ;;  %v5930_v2 = vld [vmem:[%s7178_s1 + $0x78] sm:$0xff]  }
  0x86   : > { %5416 = vmatpush3.bf16.msra.mxu1 %v5894_v3  ;;  %5405 = vmatprep.subr.bf16.mxu0 %v6068_v1  ;;  %v5931_v3 = vld [vmem:[%s7178_s1 + $0x50] sm:$0xff]  }
  0x87   : > { %5417 = vmatprep.subr.bf16.mxu1 %v6068_v1 }
  0x89   : > { %5406 = vmatpush3.bf16.msra.mxu0 %v5895_v4  ;;  %v5932_v4 = vld [vmem:[%s7178_s1 + $0x70] sm:$0xff]  }
  0x8a   : > { %5418 = vmatpush3.bf16.msra.mxu1 %v5896_v5  ;;  %5423 = vmatprep.subr.bf16.mxu0 %v6068_v1  ;;  %v4751_v5 = vcombine.low %v4742_v60, %v4750_v63 }
  0x8b   : > { %5435 = vmatprep.subr.bf16.mxu1 %v6068_v1 }
  0x8c   : > { %5408 = vmatmul.mubr.msk.bf16.vlgmr.msra.gmra.mxu0 %vm228_vm1, %v4676_v10  ;;  %v2250_v8 = vshll.u32 %v4751_v5, 16  ;;  %v5936_v10 = vld [vmem:[%s7178_s1 + $0x60] sm:$0xff]  }
  0x8d   : > { %5420 = vmatmul.mubr.msk.bf16.vlgmr.msra.gmra.mxu1 %vm228_vm1, %v1533_v11  ;;  %5424 = vmatpush3.bf16.msra.mxu0 %v5899_v9  ;;  %v5935_v9 = vld [vmem:[%s7178_s1 + $0x40] sm:$0xff]   ;;  %v4743_v11 = vld [vmem:[%s6132_s29 + $0x34] sm:$0x3] }
  0x8e   : > { %5436 = vmatpush3.bf16.msra.mxu1 %v5900_v12  ;;  %5425 = vmatprep.subr.bf16.mxu0 %v6068_v1  ;;  %v2248_v12 = vshrl.u32 %v4751_v5, 16  ;;  %v2252_v13 = vrot.slane %v2250_v8, 1  ;;  %v4744_v16 = vcombine.low %v4742_v60, %v4743_v11  ;;  %v6685_v60 = vld [vmem:[%s6132_s29 + $0x38] sm:$0xf]  ;;  %v5962_v5 = vld [vmem:[%s7178_s1 + $0x10] sm:$0xff]  }
  0x8f   : > { %5437 = vmatprep.subr.bf16.mxu1 %v6068_v1  ;;  %5431 = vmatprep.mubr.msk.bf16.mxu0 %vm6069_vm0, %v6068_v1 }
  0x90   : > { %5443 = vmatprep.mubr.msk.bf16.mxu1 %vm6069_vm0, %v6068_v1 }
  0x91   : > { %5426 = vmatpush3.bf16.msra.mxu0 %v5901_v15  ;;  %v4761_v15 = vld [vmem:[%s6132_s29 + $0x30] sm:$0xf] }
  0x92   : > { %5438 = vmatpush3.bf16.msra.mxu1 %v5902_v17  ;;  %5427 = vmatprep.subr.bf16.mxu0 %v6068_v1  ;;  %v2253_v17 = vor.u32 %v2252_v13, %v2248_v12 }
  0x93   : > { %5439 = vmatprep.subr.bf16.mxu1 %v6068_v1 }
  0x95   : > { %5428 = vmatpush3.bf16.msra.mxu0 %v5903_v19  ;;  %v5940_v19 = vld [vmem:[%s7178_s1 + $0x18] sm:$0xff]  }
  0x96   : > { %5440 = vmatpush3.bf16.msra.mxu1 %v5904_v20  ;;  %5429 = vmatprep.subr.bf16.mxu0 %v6068_v1  ;;  %v5941_v20 = vld [vmem:[%s7178_s1 + $0x30] sm:$0xff]  }
  0x97   : > { %5441 = vmatprep.subr.bf16.mxu1 %v6068_v1 }
  0x99   : > { %5430 = vmatpush3.bf16.msra.mxu0 %v5905_v21  ;;  %v5942_v21 = vld [vmem:[%s7178_s1 + $0x10] sm:$0xff]  }
  0x9a   : > { %5442 = vmatpush3.bf16.msra.mxu1 %v5906_v22  ;;  %5447 = vmatprep.subr.bf16.mxu0 %v6068_v1  ;;  %v4764_v22 = vcombine.low %v4761_v15, %v4763_v18 }
  0x9b   : > { %5459 = vmatprep.subr.bf16.mxu1 %v6068_v1 }
  0x9c   : > { %5432 = vmatmul.mubr.msk.bf16.vlgmr.msra.gmra.mxu0 %vm228_vm1, %v1649_v27  ;;  %v2366_v25 = vshll.u32 %v4764_v22, 16  ;;  %v5946_v27 = vld [vmem:[%s7178_s1] sm:$0xff]  }
  0x9d   : > { %5444 = vmatmul.mubr.msk.bf16.vlgmr.msra.gmra.mxu1 %vm228_vm1, %v4702_v28  ;;  %5448 = vmatpush3.bf16.msra.mxu0 %v5909_v26  ;;  %v5945_v26 = vld [vmem:[%s7178_s1 + $0x20] sm:$0xff]   ;;  %v4762_v28 = vld [vmem:[%s6132_s29 + $0x34] sm:$0x3] }
  0x9e   : > { %5460 = vmatpush3.bf16.msra.mxu1 %v5910_v29  ;;  %5449 = vmatprep.subr.bf16.mxu0 %v6068_v1  ;;  %v2364_v29 = vshrl.u32 %v4764_v22, 16  ;;  %v2368_v30 = vrot.slane %v2366_v25, 1  ;;  %v4770_v32 = vcombine.low %v4761_v15, %v4762_v28  ;;  %v4796_v28 = vld [vmem:[%s6132_s29 + $0x3c] sm:$0x3] }
  0x9f   : > { %5461 = vmatprep.subr.bf16.mxu1 %v6068_v1  ;;  %5455 = vmatprep.mubr.msk.bf16.mxu0 %vm6069_vm0, %v6068_v1 }
  0xa0   : > { %5467 = vmatprep.mubr.msk.bf16.mxu1 %vm6069_vm0, %v6068_v1  ;;  %v2369_v31 = vor.u32 %v2368_v30, %v2364_v29 }
  0xa1   : > { %5450 = vmatpush3.bf16.msra.mxu0 %v5911_v33  ;;  %v5949_v33 = vld [vmem:[%s7178_s1 + $0x58] sm:$0xff]  }
  0xa2   : > { %5462 = vmatpush3.bf16.msra.mxu1 %v5912_v34  ;;  %5451 = vmatprep.subr.bf16.mxu0 %v6068_v1  ;;  %v5950_v34 = vld [vmem:[%s7178_s1 + $0x78] sm:$0xff]  }
  0xa3   : > { %5463 = vmatprep.subr.bf16.mxu1 %v6068_v1 }
  0xa5   : > { %5452 = vmatpush3.bf16.msra.mxu0 %v5913_v35  ;;  %v4776_v35 = vld [vmem:[%s6132_s29 + $0x38] sm:$0xf] }
  0xa6   : > { %5464 = vmatpush3.bf16.msra.mxu1 %v5914_v37  ;;  %5453 = vmatprep.subr.bf16.mxu0 %v6068_v1 }
  0xa7   : > { %5465 = vmatprep.subr.bf16.mxu1 %v6068_v1 }
  0xa9   : > { %5454 = vmatpush3.bf16.msra.mxu0 %v5915_v38 }
  0xaa   : > { %5466 = vmatpush3.bf16.msra.mxu1 %v5916_v39  ;;  %5471 = vmatprep.subr.bf16.mxu0 %v6068_v1  ;;  %v4785_v39 = vcombine.low %v4776_v35, %v4784_v36  ;;  %v4818_v36 = vld [vmem:[%s6132_s29 + $0x44] sm:$0x7] }
  0xab   : > { %5483 = vmatprep.subr.bf16.mxu1 %v6068_v1 }
  0xac   : > { %5456 = vmatmul.mubr.msk.bf16.vlgmr.msra.gmra.mxu0 %vm228_vm1, %v4710_v45 }
  0xad   : > { %5468 = vmatmul.mubr.msk.bf16.vlgmr.msra.gmra.mxu1 %vm228_vm1, %v1893_v46  ;;  %5472 = vmatpush3.bf16.msra.mxu0 %v5919_v44  ;;  %v2610_v46 = vshll.u32 %v4785_v39, 16 }
  0xae   : > { %5484 = vmatpush3.bf16.msra.mxu1 %v5920_v48  ;;  %5473 = vmatprep.subr.bf16.mxu0 %v6068_v1  ;;  %v5954_v48 = vld [vmem:[%s7178_s1 + $0x68] sm:$0xff]  }
  0xaf   : > { %5485 = vmatprep.subr.bf16.mxu1 %v6068_v1  ;;  %5479 = vmatprep.mubr.msk.bf16.mxu0 %vm6069_vm0, %v6068_v1 }
  0xb0   : > { %5491 = vmatprep.mubr.msk.bf16.mxu1 %vm6069_vm0, %v6068_v1 }
  0xb1   : > { %5474 = vmatpush3.bf16.msra.mxu0 %v5921_v50 }
  0xb2   : > { %5486 = vmatpush3.bf16.msra.mxu1 %v5922_v51  ;;  %5475 = vmatprep.subr.bf16.mxu0 %v6068_v1  ;;  %v2608_v51 = vshrl.u32 %v4785_v39, 16 }
  0xb3   : > { %5487 = vmatprep.subr.bf16.mxu1 %v6068_v1 }
  0xb5   : > { %5476 = vmatpush3.bf16.msra.mxu0 %v5923_v52  ;;  %v2612_v52 = vrot.slane %v2610_v46, 1 }
  0xb6   : > { %5488 = vmatpush3.bf16.msra.mxu1 %v5924_v54  ;;  %5477 = vmatprep.subr.bf16.mxu0 %v6068_v1  ;;  %v5956_v54 = vld [vmem:[%s7178_s1 + $0x60] sm:$0xff]  }
  0xb7   : > { %5489 = vmatprep.subr.bf16.mxu1 %v6068_v1  ;;  %v2613_v57 = vor.u32 %v2612_v52, %v2608_v51 }
  0xb9   : > { %5478 = vmatpush3.bf16.msra.mxu0 %v5925_v55  ;;  %v4777_v55 = vld [vmem:[%s6132_s29 + $0x3c] sm:$0x3] }
  0xba   : > { %5490 = vmatpush3.bf16.msra.mxu1 %v5926_v56  ;;  %5495 = vmatprep.subr.bf16.mxu0 %v6068_v1  ;;  %v4778_v56 = vcombine.low %v4776_v35, %v4777_v55  ;;  %v4810_v35 = vld [vmem:[%s6132_s29 + $0x40] sm:$0xf]  ;;  %v4811_v55 = vld [vmem:[%s6132_s29 + $0x44] sm:$0x3] }
  0xbb   : > { %5507 = vmatprep.subr.bf16.mxu1 %v6068_v1  ;;  %v4819_v39 = vcombine.low %v4810_v35, %v4818_v36  ;;  %v4852_v36 = vld [vmem:[%s6132_s29 + $0x4c] sm:$0x7] }
  0xbc   : > { %5480 = vmatmul.mubr.msk.bf16.vlgmr.msra.gmra.mxu0 %vm228_vm1, %v2009_v61  ;;  %v4797_v61 = vld [vmem:[%s6132_s29 + $0x3c] sm:$0x7] }
  0xbd   : > { %5492 = vmatmul.mubr.msk.bf16.vlgmr.msra.gmra.mxu1 %vm228_vm1, %v4736_v62  ;;  %5496 = vmatpush3.bf16.msra.mxu0 %v5929_v0  ;;  %v2970_v46 = vshll.u32 %v4819_v39, 16  ;;  %v2968_v51 = vshrl.u32 %v4819_v39, 16 }
  0xbe   : > { %5508 = vmatpush3.bf16.msra.mxu1 %v5930_v2  ;;  %5497 = vmatprep.subr.bf16.mxu0 %v6068_v1  ;;  %v4798_v2 = vcombine.low %v6685_v60, %v4797_v61  ;;  %v4831_v61 = vld [vmem:[%s6132_s29 + $0x44] sm:$0x7] }
  0xbf   : > { %5509 = vmatprep.subr.bf16.mxu1 %v6068_v1  ;;  %5503 = vmatprep.mubr.msk.bf16.mxu0 %vm6069_vm0, %v6068_v1  ;;  %v2972_v52 = vrot.slane %v2970_v46, 1 }
  0xc0   : > { %5515 = vmatprep.mubr.msk.bf16.mxu1 %vm6069_vm0, %v6068_v1  ;;  %v2726_v13 = vshll.u32 %v4798_v2, 16  ;;  %v2724_v22 = vshrl.u32 %v4798_v2, 16 }
  0xc1   : > { %5498 = vmatpush3.bf16.msra.mxu0 %v5931_v3 }
  0xc2   : > { %5510 = vmatpush3.bf16.msra.mxu1 %v5932_v4  ;;  %5499 = vmatprep.subr.bf16.mxu0 %v6068_v1  ;;  %v5961_v4 = vld [vmem:[%s7178_s1 + $0x30] sm:$0xff]  }
  0xc3   : > { %5511 = vmatprep.subr.bf16.mxu1 %v6068_v1 }
  0xc5   : > { %5500 = vmatpush3.bf16.msra.mxu0 %v5933_v6  ;;  %v6702_v6 = vld [vmem:[%s7179_s2] ss:$0 sm:$0xff] }
  0xc6   : > { %5512 = vmatpush3.bf16.msra.mxu1 %v5934_v7  ;;  %5501 = vmatprep.subr.bf16.mxu0 %v6068_v1 }
  0xc7   : > { %5513 = vmatprep.subr.bf16.mxu1 %v6068_v1 }
  0xc9   : > { %5502 = vmatpush3.bf16.msra.mxu0 %v5935_v9 }
  0xca   : > { %5514 = vmatpush3.bf16.msra.mxu1 %v5936_v10  ;;  %5519 = vmatprep.subr.bf16.mxu0 %v6068_v1 }
  0xcb   : > { %5531 = vmatprep.subr.bf16.mxu1 %v6068_v1 }
  0xcc   : > { %5504 = vmatmul.mubr.msk.bf16.vlgmr.msra.gmra.mxu0 %vm228_vm1, %v4744_v16  ;;  %v5963_v16 = vld [vmem:[%s7178_s1 + $0x28] sm:$0xff]  }
  0xcd   : > { %5516 = vmatmul.mubr.msk.bf16.vlgmr.msra.gmra.mxu1 %vm228_vm1, %v2253_v17  ;;  %5520 = vmatpush3.bf16.msra.mxu0 %v5939_v14  ;;  %v5964_v17 = vld [vmem:[%s7178_s1 + $0x8] sm:$0xff]  }
  0xce   : > { %5532 = vmatpush3.bf16.msra.mxu1 %v5940_v19  ;;  %5521 = vmatprep.subr.bf16.mxu0 %v6068_v1 }
  0xcf   : > { %5533 = vmatprep.subr.bf16.mxu1 %v6068_v1  ;;  %5527 = vmatprep.mubr.msk.bf16.mxu0 %vm6069_vm0, %v6068_v1 }
  0xd0   : > { %5539 = vmatprep.mubr.msk.bf16.mxu1 %vm6069_vm0, %v6068_v1 }
  0xd1   : > { %5522 = vmatpush3.bf16.msra.mxu0 %v5941_v20 }
  0xd2   : > { %5534 = vmatpush3.bf16.msra.mxu1 %v5942_v21  ;;  %5523 = vmatprep.subr.bf16.mxu0 %v6068_v1 }
  0xd3   : > { %5535 = vmatprep.subr.bf16.mxu1 %v6068_v1 }
  0xd5   : > { %5524 = vmatpush3.bf16.msra.mxu0 %v5943_v23  ;;  %v2728_v23 = vrot.slane %v2726_v13, 1 }
  0xd6   : > { %5536 = vmatpush3.bf16.msra.mxu1 %v5944_v24  ;;  %5525 = vmatprep.subr.bf16.mxu0 %v6068_v1 }
  0xd7   : > { %5537 = vmatprep.subr.bf16.mxu1 %v6068_v1  ;;  %v2729_v30 = vor.u32 %v2728_v23, %v2724_v22 }
  0xd9   : > { %5526 = vmatpush3.bf16.msra.mxu0 %v5945_v26  ;;  %v5965_v26 = vld [vmem:[%s7178_s1 + $0x20] sm:$0xff]  }
  0xda   : > { %5538 = vmatpush3.bf16.msra.mxu1 %v5946_v27  ;;  %5543 = vmatprep.subr.bf16.mxu0 %v6068_v1  ;;  %v5966_v27 = vld [vmem:[%s7178_s1] sm:$0xff]  }
  0xdb   : > { %5555 = vmatprep.subr.bf16.mxu1 %v6068_v1 }
  0xdc   : > { %v266_v37 = vpop.f32.mrf.mxu0  ;;  %5528 = vmatmul.mubr.msk.bf16.vlgmr.msra.gmra.mxu0 %vm228_vm1, %v2369_v31  ;;  %v4804_v31 = vcombine.low %v6685_v60, %v4796_v28  ;;  %v6786_v60 = vld [vmem:[%s6132_s29 + $0x40] sm:$0xf]  ;;  %v4830_v28 = vld [vmem:[%s6132_s29 + $0x44] sm:$0x3] }
  0xdd   : > { %v337_v38 = vpop.f32.mrf.mxu1  ;;  %5540 = vmatmul.mubr.msk.bf16.vlgmr.msra.gmra.mxu1 %vm228_vm1, %v4770_v32  ;;  %5544 = vmatpush3.bf16.msra.mxu0 %v5949_v33  ;;  %v5969_v32 = vld [vmem:[%s7178_s1 + $0x58] sm:$0xff]   ;;  %v4832_v2 = vcombine.low %v6786_v60, %v4831_v61  ;;  %v4865_v61 = vld [vmem:[%s6132_s29 + $0x4c] sm:$0x7] }
  0xde   : > { %5556 = vmatpush3.bf16.msra.mxu1 %v5950_v34  ;;  %v5241_v42 = vpop.f32.mrf.mxu0  ;;  %5545 = vmatprep.subr.bf16.mxu0 %v6068_v1  ;;  %v338_v62 = vadd.f32 %v337_v38, %v266_v37  ;;  %v5970_v34 = vld [vmem:[%s7178_s1 + $0x78] sm:$0xff]  }
  0xdf   : > { %v5253_v43 = vpop.f32.mrf.mxu1  ;;  %5557 = vmatprep.subr.bf16.mxu1 %v6068_v1  ;;  %5551 = vmatprep.mubr.msk.bf16.mxu0 %vm6069_vm0, %v6068_v1  ;;  %v3086_v13 = vshll.u32 %v4832_v2, 16  ;;  %v3084_v22 = vshrl.u32 %v4832_v2, 16 }
  0xe0   : > { %5563 = vmatprep.mubr.msk.bf16.mxu1 %vm6069_vm0, %v6068_v1  ;;  %v269_v44 = vpop.f32.mrf.mxu0 }
  0xe1   : > { %v340_v45 = vpop.f32.mrf.mxu1  ;;  %5546 = vmatpush3.bf16.msra.mxu0 %v5951_v40  ;;  %v5971_v40 = vld [vmem:[%s7178_s1 + $0x50] sm:$0xff]   ;;  %v3088_v23 = vrot.slane %v3086_v13, 1 }
  0xe2   : > { %5558 = vmatpush3.bf16.msra.mxu1 %v5952_v41  ;;  %v5242_v49 = vpop.f32.mrf.mxu0  ;;  %5547 = vmatprep.subr.bf16.mxu0 %v6068_v1  ;;  %v341_v9 = vadd.f32 %v340_v45, %v269_v44  ;;  %v5972_v41 = vld [vmem:[%s7178_s1 + $0x70] sm:$0xff]  }
  0xe3   : > { %v5254_v50 = vpop.f32.mrf.mxu1  ;;  %5559 = vmatprep.subr.bf16.mxu1 %v6068_v1 }
  0xe5   : > { %5548 = vmatpush3.bf16.msra.mxu0 %v5953_v47  ;;  %v5973_v47 = vld [vmem:[%s7178_s1 + $0x48] sm:$0xff]  }
  0xe6   : > { %5560 = vmatpush3.bf16.msra.mxu1 %v5954_v48  ;;  %5549 = vmatprep.subr.bf16.mxu0 %v6068_v1  ;;  %v5974_v48 = vld [vmem:[%s7178_s1 + $0x68] sm:$0xff]  }
  0xe7   : > { %5561 = vmatprep.subr.bf16.mxu1 %v6068_v1 }
  0xe9   : > { %5550 = vmatpush3.bf16.msra.mxu0 %v5955_v53  ;;  %v5975_v53 = vld [vmem:[%s7178_s1 + $0x40] sm:$0xff]  }
  0xea   : > { %5562 = vmatpush3.bf16.msra.mxu1 %v5956_v54  ;;  %5567 = vmatprep.subr.bf16.mxu0 %v6068_v1  ;;  %v5976_v54 = vld [vmem:[%s7178_s1 + $0x60] sm:$0xff]  }
  0xeb   : > { %5579 = vmatprep.subr.bf16.mxu1 %v6068_v1 }
  0xec   : > { %v421_v63 = vpop.f32.mrf.mxu0  ;;  %5552 = vmatmul.mubr.msk.bf16.vlgmr.msra.gmra.mxu0 %vm228_vm1, %v4778_v56  ;;  %v4812_v56 = vcombine.low %v4810_v35, %v4811_v55  ;;  %v4844_v35 = vld [vmem:[%s6132_s29 + $0x48] sm:$0xf]  ;;  %v4845_v55 = vld [vmem:[%s6132_s29 + $0x4c] sm:$0x3] }
  0xed   : > { %v510_v0 = vpop.f32.mrf.mxu1  ;;  %5564 = vmatmul.mubr.msk.bf16.vlgmr.msra.gmra.mxu1 %vm228_vm1, %v2613_v57  ;;  %v428_v3 = vadd.f32 %v421_v63, %v338_v62  ;;  %5568 = vmatpush3.bf16.msra.mxu0 %v5959_v58  ;;  %v2973_v57 = vor.u32 %v2972_v52, %v2968_v51  ;;  %v5979_v58 = vld [vmem:[%s7178_s1 + $0x38] sm:$0xff]   ;;  %v4853_v39 = vcombine.low %v4844_v35, %v4852_v36  ;;  %v4886_v36 = vld [vmem:[%s6132_s29 + $0x54] sm:$0x7] }
  0xee   : > { %5580 = vmatpush3.bf16.msra.mxu1 %v5960_v59  ;;  %v5265_v7 = vpop.f32.mrf.mxu0  ;;  %5569 = vmatprep.subr.bf16.mxu0 %v6068_v1  ;;  %v5980_v59 = vld [vmem:[%s7178_s1 + $0x18] sm:$0xff]  }
  0xef   : > { %v5277_v8 = vpop.f32.mrf.mxu1  ;;  %5581 = vmatprep.subr.bf16.mxu1 %v6068_v1  ;;  %v517_v10 = vadd.f32 %v510_v0, %v428_v3  ;;  %5575 = vmatprep.mubr.msk.bf16.mxu0 %vm6069_vm0, %v6068_v1  ;;  %v3330_v46 = vshll.u32 %v4853_v39, 16  ;;  %v3328_v51 = vshrl.u32 %v4853_v39, 16 }
  0xf0   : > { %5587 = vmatprep.mubr.msk.bf16.mxu1 %vm6069_vm0, %v6068_v1  ;;  %v424_v11 = vpop.f32.mrf.mxu0 }
  0xf1   : > { %v513_v12 = vpop.f32.mrf.mxu1  ;;  %v525_v14 = vadd.f32 %v6702_v6, %v517_v10  ;;  %v429_v15 = vadd.f32 %v424_v11, %v341_v9  ;;  %5570 = vmatpush3.bf16.msra.mxu0 %v5961_v4  ;;  %v5981_v4 = vld [vmem:[%s7178_s1 + $0x30] sm:$0xff]   ;;  %v3332_v52 = vrot.slane %v3330_v46, 1 }
  0xf2   : > { %5582 = vmatpush3.bf16.msra.mxu1 %v5962_v5  ;;  %v5266_v18 = vpop.f32.mrf.mxu0  ;;  %5571 = vmatprep.subr.bf16.mxu0 %v6068_v1  ;;  %v5982_v5 = vld [vmem:[%s7178_s1 + $0x10] sm:$0xff]  }
  0xf3   : > { %v5278_v19 = vpop.f32.mrf.mxu1  ;;  %5583 = vmatprep.subr.bf16.mxu1 %v6068_v1  ;;  %v527_v20 = vmax.f32 %v525_v14, 0.0  ;;  %v518_v21 = vadd.f32 %v513_v12, %v429_v15 }
  0xf5   : > { %v4967_v24 = vpack.c.bf16 %v527_v20, %v527_v20  ;;  %v526_v25 = vadd.f32 %v6702_v6, %v518_v21  ;;  %5572 = vmatpush3.bf16.msra.mxu0 %v5963_v16  ;;  %v5983_v16 = vld [vmem:[%s7178_s1 + $0x28] sm:$0xff]  }
  0xf6   : > { %5584 = vmatpush3.bf16.msra.mxu1 %v5964_v17  ;;  %5573 = vmatprep.subr.bf16.mxu0 %v6068_v1  ;;  %v5984_v17 = vld [vmem:[%s7178_s1 + $0x8] sm:$0xff]  }
  0xf7   : > { %5585 = vmatprep.subr.bf16.mxu1 %v6068_v1  ;;  %537 = vst [vmem:[%s6723_s17] sm:$0xf] %v4967_v24  ;;  %v528_v29 = vmax.f32 %v526_v25, 0.0 }
  0xf9   : > { %v4968_v33 = vpack.c.bf16 %v528_v29, %v528_v29  ;;  %5574 = vmatpush3.bf16.msra.mxu0 %v5965_v26  ;;  %v5985_v26 = vld [vmem:[%s7178_s1 + $0x20] sm:$0xff]  }
  0xfa   : > { %5586 = vmatpush3.bf16.msra.mxu1 %v5966_v27  ;;  %5591 = vmatprep.subr.bf16.mxu0 %v6068_v1  ;;  %v5986_v27 = vld [vmem:[%s7178_s1] sm:$0xff]  }
  0xfb   : > { %5603 = vmatprep.subr.bf16.mxu1 %v6068_v1  ;;  %538 = vst [vmem:[%s6723_s17 + $0x4] sm:$0x3] %v4968_v33 }
  0xfc   : > { %v631_v37 = vpop.f32.mrf.mxu0  ;;  %5576 = vmatmul.mubr.msk.bf16.vlgmr.msra.gmra.mxu0 %vm228_vm1, %v2729_v30  ;;  %v3089_v30 = vor.u32 %v3088_v23, %v3084_v22 }
  0xfd   : > { %v702_v38 = vpop.f32.mrf.mxu1  ;;  %5588 = vmatmul.mubr.msk.bf16.vlgmr.msra.gmra.mxu1 %vm228_vm1, %v4804_v31  ;;  %5592 = vmatpush3.bf16.msra.mxu0 %v5969_v32  ;;  %v4838_v31 = vcombine.low %v6786_v60, %v4830_v28  ;;  %v5989_v32 = vld [vmem:[%s7178_s1 + $0x58] sm:$0xff]   ;;  %v6876_v60 = vld [vmem:[%s6132_s29 + $0x48] sm:$0xf]  ;;  %v4864_v28 = vld [vmem:[%s6132_s29 + $0x4c] sm:$0x3] }
  0xfe   : > { %5604 = vmatpush3.bf16.msra.mxu1 %v5970_v34  ;;  %v5289_v42 = vpop.f32.mrf.mxu0  ;;  %5593 = vmatprep.subr.bf16.mxu0 %v6068_v1  ;;  %v703_v62 = vadd.f32 %v702_v38, %v631_v37  ;;  %v5990_v34 = vld [vmem:[%s7178_s1 + $0x78] sm:$0xff]   ;;  %v4866_v2 = vcombine.low %v6876_v60, %v4865_v61  ;;  %v4899_v61 = vld [vmem:[%s6132_s29 + $0x54] sm:$0x7] }
  0xff   : > { %v5301_v43 = vpop.f32.mrf.mxu1  ;;  %5605 = vmatprep.subr.bf16.mxu1 %v6068_v1  ;;  %5599 = vmatprep.mubr.msk.bf16.mxu0 %vm6069_vm0, %v6068_v1 }
 0x100   : > { %5611 = vmatprep.mubr.msk.bf16.mxu1 %vm6069_vm0, %v6068_v1  ;;  %v634_v44 = vpop.f32.mrf.mxu0  ;;  %v3446_v13 = vshll.u32 %v4866_v2, 16  ;;  %v3444_v22 = vshrl.u32 %v4866_v2, 16 }
 0x101   : > { %v705_v45 = vpop.f32.mrf.mxu1  ;;  %5594 = vmatpush3.bf16.msra.mxu0 %v5971_v40  ;;  %v5991_v40 = vld [vmem:[%s7178_s1 + $0x50] sm:$0xff]  }
 0x102   : > { %5606 = vmatpush3.bf16.msra.mxu1 %v5972_v41  ;;  %v5290_v49 = vpop.f32.mrf.mxu0  ;;  %5595 = vmatprep.subr.bf16.mxu0 %v6068_v1  ;;  %v706_v9 = vadd.f32 %v705_v45, %v634_v44  ;;  %v5992_v41 = vld [vmem:[%s7178_s1 + $0x70] sm:$0xff]   ;;  %v3448_v23 = vrot.slane %v3446_v13, 1 }
 0x103   : > { %v5302_v50 = vpop.f32.mrf.mxu1  ;;  %5607 = vmatprep.subr.bf16.mxu1 %v6068_v1 }
 0x105   : > { %5596 = vmatpush3.bf16.msra.mxu0 %v5973_v47  ;;  %v5993_v47 = vld [vmem:[%s7178_s1 + $0x48] sm:$0xff]  }
 0x106   : > { %5608 = vmatpush3.bf16.msra.mxu1 %v5974_v48  ;;  %5597 = vmatprep.subr.bf16.mxu0 %v6068_v1  ;;  %v5994_v48 = vld [vmem:[%s7178_s1 + $0x68] sm:$0xff]  }
 0x107   : > { %5609 = vmatprep.subr.bf16.mxu1 %v6068_v1 }
 0x109   : > { %5598 = vmatpush3.bf16.msra.mxu0 %v5975_v53  ;;  %v5995_v53 = vld [vmem:[%s7178_s1 + $0x40] sm:$0xff]  }
 0x10a   : > { %5610 = vmatpush3.bf16.msra.mxu1 %v5976_v54  ;;  %5615 = vmatprep.subr.bf16.mxu0 %v6068_v1  ;;  %v5996_v54 = vld [vmem:[%s7178_s1 + $0x60] sm:$0xff]  }
 0x10b   : > { %5627 = vmatprep.subr.bf16.mxu1 %v6068_v1 }
 0x10c   : > { %v786_v63 = vpop.f32.mrf.mxu0  ;;  %5600 = vmatmul.mubr.msk.bf16.vlgmr.msra.gmra.mxu0 %vm228_vm1, %v4812_v56  ;;  %v4846_v56 = vcombine.low %v4844_v35, %v4845_v55  ;;  %v4878_v35 = vld [vmem:[%s6132_s29 + $0x50] sm:$0xf]  ;;  %v4879_v55 = vld [vmem:[%s6132_s29 + $0x54] sm:$0x3] }
 0x10d   : > { %v875_v0 = vpop.f32.mrf.mxu1  ;;  %5612 = vmatmul.mubr.msk.bf16.vlgmr.msra.gmra.mxu1 %vm228_vm1, %v2973_v57  ;;  %v793_v3 = vadd.f32 %v786_v63, %v703_v62  ;;  %5616 = vmatpush3.bf16.msra.mxu0 %v5979_v58  ;;  %v3333_v57 = vor.u32 %v3332_v52, %v3328_v51  ;;  %v5999_v58 = vld [vmem:[%s7178_s1 + $0x38] sm:$0xff]   ;;  %v4887_v39 = vcombine.low %v4878_v35, %v4886_v36 }
 0x10e   : > { %5628 = vmatpush3.bf16.msra.mxu1 %v5980_v59  ;;  %v5313_v7 = vpop.f32.mrf.mxu0  ;;  %5617 = vmatprep.subr.bf16.mxu0 %v6068_v1  ;;  %v6000_v59 = vld [vmem:[%s7178_s1 + $0x18] sm:$0xff]  }
 0x10f   : > { %v5325_v8 = vpop.f32.mrf.mxu1  ;;  %5629 = vmatprep.subr.bf16.mxu1 %v6068_v1  ;;  %v882_v10 = vadd.f32 %v875_v0, %v793_v3  ;;  %5623 = vmatprep.mubr.msk.bf16.mxu0 %vm6069_vm0, %v6068_v1  ;;  %v3690_v46 = vshll.u32 %v4887_v39, 16  ;;  %v3688_v51 = vshrl.u32 %v4887_v39, 16  ;;  %v4920_v36 = vld [vmem:[%s6132_s29 + $0x5c] sm:$0x7] }
 0x110   : > { %5635 = vmatprep.mubr.msk.bf16.mxu1 %vm6069_vm0, %v6068_v1  ;;  %v789_v11 = vpop.f32.mrf.mxu0 }
 0x111   : > { %v878_v12 = vpop.f32.mrf.mxu1  ;;  %v884_v14 = vadd.f32 %v6702_v6, %v882_v10  ;;  %v794_v15 = vadd.f32 %v789_v11, %v706_v9  ;;  %5618 = vmatpush3.bf16.msra.mxu0 %v5981_v4  ;;  %v6001_v4 = vld [vmem:[%s7178_s1 + $0x30] sm:$0xff]   ;;  %v3692_v52 = vrot.slane %v3690_v46, 1 }
 0x112   : > { %5630 = vmatpush3.bf16.msra.mxu1 %v5982_v5  ;;  %v5314_v18 = vpop.f32.mrf.mxu0  ;;  %5619 = vmatprep.subr.bf16.mxu0 %v6068_v1  ;;  %v6002_v5 = vld [vmem:[%s7178_s1 + $0x10] sm:$0xff]  }
 0x113   : > { %v5326_v19 = vpop.f32.mrf.mxu1  ;;  %5631 = vmatprep.subr.bf16.mxu1 %v6068_v1  ;;  %v886_v20 = vmax.f32 %v884_v14, 0.0  ;;  %v883_v21 = vadd.f32 %v878_v12, %v794_v15 }
 0x115   : > { %v4969_v24 = vpack.c.bf16 %v886_v20, %v886_v20  ;;  %v885_v25 = vadd.f32 %v6702_v6, %v883_v21  ;;  %5620 = vmatpush3.bf16.msra.mxu0 %v5983_v16  ;;  %v6003_v16 = vld [vmem:[%s7178_s1 + $0x28] sm:$0xff]  }
 0x116   : > { %5632 = vmatpush3.bf16.msra.mxu1 %v5984_v17  ;;  %5621 = vmatprep.subr.bf16.mxu0 %v6068_v1  ;;  %v6004_v17 = vld [vmem:[%s7178_s1 + $0x8] sm:$0xff]  }
 0x117   : > { %5633 = vmatprep.subr.bf16.mxu1 %v6068_v1  ;;  %4623 = vst [vmem:[%s6723_s17 + $0x8] sm:$0xf] %v4969_v24  ;;  %v887_v29 = vmax.f32 %v885_v25, 0.0 }
 0x119   : > { %v4970_v33 = vpack.c.bf16 %v887_v29, %v887_v29  ;;  %5622 = vmatpush3.bf16.msra.mxu0 %v5985_v26  ;;  %v6005_v26 = vld [vmem:[%s7178_s1 + $0x20] sm:$0xff]  }
 0x11a   : > { %5634 = vmatpush3.bf16.msra.mxu1 %v5986_v27  ;;  %5639 = vmatprep.subr.bf16.mxu0 %v6068_v1  ;;  %v6006_v27 = vld [vmem:[%s7178_s1] sm:$0xff]  }
 0x11b   : > { %5651 = vmatprep.subr.bf16.mxu1 %v6068_v1  ;;  %4624 = vst [vmem:[%s6723_s17 + $0xc] sm:$0x3] %v4970_v33 }
 0x11c   : > { %v991_v37 = vpop.f32.mrf.mxu0  ;;  %5624 = vmatmul.mubr.msk.bf16.vlgmr.msra.gmra.mxu0 %vm228_vm1, %v3089_v30  ;;  %v3449_v30 = vor.u32 %v3448_v23, %v3444_v22 }
 0x11d   : > { %v1062_v38 = vpop.f32.mrf.mxu1  ;;  %5636 = vmatmul.mubr.msk.bf16.vlgmr.msra.gmra.mxu1 %vm228_vm1, %v4838_v31  ;;  %5640 = vmatpush3.bf16.msra.mxu0 %v5989_v32  ;;  %v4872_v31 = vcombine.low %v6876_v60, %v4864_v28  ;;  %v6009_v32 = vld [vmem:[%s7178_s1 + $0x58] sm:$0xff]   ;;  %v6966_v60 = vld [vmem:[%s6132_s29 + $0x50] sm:$0xf]  ;;  %v4898_v28 = vld [vmem:[%s6132_s29 + $0x54] sm:$0x3] }
 0x11e   : > { %5652 = vmatpush3.bf16.msra.mxu1 %v5990_v34  ;;  %v5337_v42 = vpop.f32.mrf.mxu0  ;;  %5641 = vmatprep.subr.bf16.mxu0 %v6068_v1  ;;  %v1063_v62 = vadd.f32 %v1062_v38, %v991_v37  ;;  %v6010_v34 = vld [vmem:[%s7178_s1 + $0x78] sm:$0xff]   ;;  %v4900_v2 = vcombine.low %v6966_v60, %v4899_v61 }
 0x11f   : > { %v5349_v43 = vpop.f32.mrf.mxu1  ;;  %5653 = vmatprep.subr.bf16.mxu1 %v6068_v1  ;;  %5647 = vmatprep.mubr.msk.bf16.mxu0 %vm6069_vm0, %v6068_v1  ;;  %v4933_v61 = vld [vmem:[%s6132_s29 + $0x5c] sm:$0x7] }
 0x120   : > { %5659 = vmatprep.mubr.msk.bf16.mxu1 %vm6069_vm0, %v6068_v1  ;;  %v994_v44 = vpop.f32.mrf.mxu0  ;;  %v3806_v13 = vshll.u32 %v4900_v2, 16  ;;  %v3804_v22 = vshrl.u32 %v4900_v2, 16 }
 0x121   : > { %v1065_v45 = vpop.f32.mrf.mxu1  ;;  %5642 = vmatpush3.bf16.msra.mxu0 %v5991_v40  ;;  %v6011_v40 = vld [vmem:[%s7178_s1 + $0x50] sm:$0xff]  }
 0x122   : > { %5654 = vmatpush3.bf16.msra.mxu1 %v5992_v41  ;;  %v5338_v49 = vpop.f32.mrf.mxu0  ;;  %5643 = vmatprep.subr.bf16.mxu0 %v6068_v1  ;;  %v1066_v9 = vadd.f32 %v1065_v45, %v994_v44  ;;  %v6012_v41 = vld [vmem:[%s7178_s1 + $0x70] sm:$0xff]   ;;  %v3808_v23 = vrot.slane %v3806_v13, 1 }
 0x123   : > { %v5350_v50 = vpop.f32.mrf.mxu1  ;;  %5655 = vmatprep.subr.bf16.mxu1 %v6068_v1 }
 0x125   : > { %5644 = vmatpush3.bf16.msra.mxu0 %v5993_v47  ;;  %v6013_v47 = vld [vmem:[%s7178_s1 + $0x48] sm:$0xff]  }
 0x126   : > { %5656 = vmatpush3.bf16.msra.mxu1 %v5994_v48  ;;  %5645 = vmatprep.subr.bf16.mxu0 %v6068_v1  ;;  %v6014_v48 = vld [vmem:[%s7178_s1 + $0x68] sm:$0xff]  }
 0x127   : > { %5657 = vmatprep.subr.bf16.mxu1 %v6068_v1 }
 0x129   : > { %5646 = vmatpush3.bf16.msra.mxu0 %v5995_v53  ;;  %v6015_v53 = vld [vmem:[%s7178_s1 + $0x40] sm:$0xff]  }
 0x12a   : > { %5658 = vmatpush3.bf16.msra.mxu1 %v5996_v54  ;;  %5663 = vmatprep.subr.bf16.mxu0 %v6068_v1  ;;  %v6016_v54 = vld [vmem:[%s7178_s1 + $0x60] sm:$0xff]  }
 0x12b   : > { %5675 = vmatprep.subr.bf16.mxu1 %v6068_v1 }
 0x12c   : > { %v1146_v63 = vpop.f32.mrf.mxu0  ;;  %5648 = vmatmul.mubr.msk.bf16.vlgmr.msra.gmra.mxu0 %vm228_vm1, %v4846_v56  ;;  %v4880_v56 = vcombine.low %v4878_v35, %v4879_v55  ;;  %v4912_v35 = vld [vmem:[%s6132_s29 + $0x58] sm:$0xf]  ;;  %v4913_v55 = vld [vmem:[%s6132_s29 + $0x5c] sm:$0x3] }
 0x12d   : > { %v1235_v0 = vpop.f32.mrf.mxu1  ;;  %5660 = vmatmul.mubr.msk.bf16.vlgmr.msra.gmra.mxu1 %vm228_vm1, %v3333_v57  ;;  %v1153_v3 = vadd.f32 %v1146_v63, %v1063_v62  ;;  %5664 = vmatpush3.bf16.msra.mxu0 %v5999_v58  ;;  %v3693_v57 = vor.u32 %v3692_v52, %v3688_v51  ;;  %v6019_v58 = vld [vmem:[%s7178_s1 + $0x38] sm:$0xff]   ;;  %v4921_v39 = vcombine.low %v4912_v35, %v4920_v36 }
 0x12e   : > { %5676 = vmatpush3.bf16.msra.mxu1 %v6000_v59  ;;  %v5361_v7 = vpop.f32.mrf.mxu0  ;;  %5665 = vmatprep.subr.bf16.mxu0 %v6068_v1  ;;  %v6020_v59 = vld [vmem:[%s7178_s1 + $0x18] sm:$0xff]  }
 0x12f   : > { %v5373_v8 = vpop.f32.mrf.mxu1  ;;  %5677 = vmatprep.subr.bf16.mxu1 %v6068_v1  ;;  %v1242_v10 = vadd.f32 %v1235_v0, %v1153_v3  ;;  %5671 = vmatprep.mubr.msk.bf16.mxu0 %vm6069_vm0, %v6068_v1  ;;  %v4050_v46 = vshll.u32 %v4921_v39, 16  ;;  %v4048_v51 = vshrl.u32 %v4921_v39, 16  ;;  %v6051_v39 = vld [vmem:[%s7178_s1 + $0x50] sm:$0xff]  }
 0x130   : > { %5683 = vmatprep.mubr.msk.bf16.mxu1 %vm6069_vm0, %v6068_v1  ;;  %v1149_v11 = vpop.f32.mrf.mxu0 }
 0x131   : > { %v1238_v12 = vpop.f32.mrf.mxu1  ;;  %v1244_v14 = vadd.f32 %v6702_v6, %v1242_v10  ;;  %v1154_v15 = vadd.f32 %v1149_v11, %v1066_v9  ;;  %5666 = vmatpush3.bf16.msra.mxu0 %v6001_v4  ;;  %v6021_v4 = vld [vmem:[%s7178_s1 + $0x30] sm:$0xff]   ;;  %v4052_v52 = vrot.slane %v4050_v46, 1  ;;  %v6053_v46 = vld [vmem:[%s7178_s1 + $0x48] sm:$0xff]  }
 0x132   : > { %5678 = vmatpush3.bf16.msra.mxu1 %v6002_v5  ;;  %v5362_v18 = vpop.f32.mrf.mxu0  ;;  %5667 = vmatprep.subr.bf16.mxu0 %v6068_v1  ;;  %v6022_v5 = vld [vmem:[%s7178_s1 + $0x10] sm:$0xff]  }
 0x133   : > { %v5374_v19 = vpop.f32.mrf.mxu1  ;;  %5679 = vmatprep.subr.bf16.mxu1 %v6068_v1  ;;  %v1246_v20 = vmax.f32 %v1244_v14, 0.0  ;;  %v1243_v21 = vadd.f32 %v1238_v12, %v1154_v15 }
 0x135   : > { %v4971_v24 = vpack.c.bf16 %v1246_v20, %v1246_v20  ;;  %v1245_v25 = vadd.f32 %v6702_v6, %v1243_v21  ;;  %5668 = vmatpush3.bf16.msra.mxu0 %v6003_v16  ;;  %v6023_v16 = vld [vmem:[%s7178_s1 + $0x28] sm:$0xff]  }
 0x136   : > { %5680 = vmatpush3.bf16.msra.mxu1 %v6004_v17  ;;  %5669 = vmatprep.subr.bf16.mxu0 %v6068_v1  ;;  %v6024_v17 = vld [vmem:[%s7178_s1 + $0x8] sm:$0xff]  }
 0x137   : > { %5681 = vmatprep.subr.bf16.mxu1 %v6068_v1  ;;  %4657 = vst [vmem:[%s6723_s17 + $0x10] sm:$0xf] %v4971_v24  ;;  %v1247_v29 = vmax.f32 %v1245_v25, 0.0 }
 0x139   : > { %v4972_v33 = vpack.c.bf16 %v1247_v29, %v1247_v29  ;;  %5670 = vmatpush3.bf16.msra.mxu0 %v6005_v26  ;;  %v6025_v26 = vld [vmem:[%s7178_s1 + $0x20] sm:$0xff]  }
 0x13a   : > { %5682 = vmatpush3.bf16.msra.mxu1 %v6006_v27  ;;  %5687 = vmatprep.subr.bf16.mxu0 %v6068_v1  ;;  %v6026_v27 = vld [vmem:[%s7178_s1] sm:$0xff]  }
 0x13b   : > { %5699 = vmatprep.subr.bf16.mxu1 %v6068_v1  ;;  %4658 = vst [vmem:[%s6723_s17 + $0x14] sm:$0x3] %v4972_v33 }
 0x13c   : > { %v1351_v37 = vpop.f32.mrf.mxu0  ;;  %5672 = vmatmul.mubr.msk.bf16.vlgmr.msra.gmra.mxu0 %vm228_vm1, %v3449_v30  ;;  %v3809_v30 = vor.u32 %v3808_v23, %v3804_v22 }
 0x13d   : > { %v1422_v38 = vpop.f32.mrf.mxu1  ;;  %5684 = vmatmul.mubr.msk.bf16.vlgmr.msra.gmra.mxu1 %vm228_vm1, %v4872_v31  ;;  %5688 = vmatpush3.bf16.msra.mxu0 %v6009_v32  ;;  %v4906_v31 = vcombine.low %v6966_v60, %v4898_v28  ;;  %v6029_v32 = vld [vmem:[%s7178_s1 + $0x58] sm:$0xff]  }
 0x13e   : > { %5700 = vmatpush3.bf16.msra.mxu1 %v6010_v34  ;;  %v5385_v42 = vpop.f32.mrf.mxu0  ;;  %5689 = vmatprep.subr.bf16.mxu0 %v6068_v1  ;;  %v1423_v62 = vadd.f32 %v1422_v38, %v1351_v37  ;;  %v6030_v34 = vld [vmem:[%s7178_s1 + $0x78] sm:$0xff]  }
 0x13f   : > { %v5397_v43 = vpop.f32.mrf.mxu1  ;;  %5701 = vmatprep.subr.bf16.mxu1 %v6068_v1  ;;  %5695 = vmatprep.mubr.msk.bf16.mxu0 %vm6069_vm0, %v6068_v1  ;;  %v7056_v60 = vld [vmem:[%s6132_s29 + $0x58] sm:$0xf]  ;;  %v4932_v28 = vld [vmem:[%s6132_s29 + $0x5c] sm:$0x3] }
 0x140   : > { %5707 = vmatprep.mubr.msk.bf16.mxu1 %vm6069_vm0, %v6068_v1  ;;  %v1354_v44 = vpop.f32.mrf.mxu0  ;;  %v4934_v2 = vcombine.low %v7056_v60, %v4933_v61 }
 0x141   : > { %v1425_v45 = vpop.f32.mrf.mxu1  ;;  %5690 = vmatpush3.bf16.msra.mxu0 %v6011_v40  ;;  %v6031_v40 = vld [vmem:[%s7178_s1 + $0x50] sm:$0xff]  }
 0x142   : > { %5702 = vmatpush3.bf16.msra.mxu1 %v6012_v41  ;;  %v5386_v49 = vpop.f32.mrf.mxu0  ;;  %5691 = vmatprep.subr.bf16.mxu0 %v6068_v1  ;;  %v1426_v9 = vadd.f32 %v1425_v45, %v1354_v44  ;;  %v6032_v41 = vld [vmem:[%s7178_s1 + $0x70] sm:$0xff]   ;;  %v4166_v13 = vshll.u32 %v4934_v2, 16  ;;  %v4164_v22 = vshrl.u32 %v4934_v2, 16 }
 0x143   : > { %v5398_v50 = vpop.f32.mrf.mxu1  ;;  %5703 = vmatprep.subr.bf16.mxu1 %v6068_v1 }
 0x144   : > { %v4168_v23 = vrot.slane %v4166_v13, 1 }
 0x145   : > { %5692 = vmatpush3.bf16.msra.mxu0 %v6013_v47  ;;  %v6033_v47 = vld [vmem:[%s7178_s1 + $0x48] sm:$0xff]  }
 0x146   : > { %5704 = vmatpush3.bf16.msra.mxu1 %v6014_v48  ;;  %5693 = vmatprep.subr.bf16.mxu0 %v6068_v1  ;;  %v6034_v48 = vld [vmem:[%s7178_s1 + $0x68] sm:$0xff]  }
 0x147   : > { %5705 = vmatprep.subr.bf16.mxu1 %v6068_v1 }
 0x149   : > { %5694 = vmatpush3.bf16.msra.mxu0 %v6015_v53  ;;  %v6035_v53 = vld [vmem:[%s7178_s1 + $0x40] sm:$0xff]  }
 0x14a   : > { %5706 = vmatpush3.bf16.msra.mxu1 %v6016_v54  ;;  %5711 = vmatprep.subr.bf16.mxu0 %v6068_v1  ;;  %v6036_v54 = vld [vmem:[%s7178_s1 + $0x60] sm:$0xff]  }
 0x14b   : > { %5723 = vmatprep.subr.bf16.mxu1 %v6068_v1 }
 0x14c   : > { %v1506_v63 = vpop.f32.mrf.mxu0  ;;  %5696 = vmatmul.mubr.msk.bf16.vlgmr.msra.gmra.mxu0 %vm228_vm1, %v4880_v56  ;;  %v4914_v56 = vcombine.low %v4912_v35, %v4913_v55  ;;  %v4954_v35 = vld [vmem:[%s6132_s29 + $0x64] sm:$0x7] }
 0x14d   : > { %v1595_v0 = vpop.f32.mrf.mxu1  ;;  %5708 = vmatmul.mubr.msk.bf16.vlgmr.msra.gmra.mxu1 %vm228_vm1, %v3693_v57  ;;  %v1513_v3 = vadd.f32 %v1506_v63, %v1423_v62  ;;  %5712 = vmatpush3.bf16.msra.mxu0 %v6019_v58  ;;  %v4053_v57 = vor.u32 %v4052_v52, %v4048_v51  ;;  %v6039_v58 = vld [vmem:[%s7178_s1 + $0x38] sm:$0xff]   ;;  %v6055_v52 = vld [vmem:[%s7178_s1 + $0x40] sm:$0xff]  }
 0x14e   : > { %5724 = vmatpush3.bf16.msra.mxu1 %v6020_v59  ;;  %v5409_v7 = vpop.f32.mrf.mxu0  ;;  %5713 = vmatprep.subr.bf16.mxu0 %v6068_v1  ;;  %v6040_v59 = vld [vmem:[%s7178_s1 + $0x18] sm:$0xff]  }
 0x14f   : > { %v5421_v8 = vpop.f32.mrf.mxu1  ;;  %5725 = vmatprep.subr.bf16.mxu1 %v6068_v1  ;;  %v1602_v10 = vadd.f32 %v1595_v0, %v1513_v3  ;;  %5719 = vmatprep.mubr.msk.bf16.mxu0 %vm6069_vm0, %v6068_v1 }
 0x150   : > { %5731 = vmatprep.mubr.msk.bf16.mxu1 %vm6069_vm0, %v6068_v1  ;;  %v1509_v11 = vpop.f32.mrf.mxu0 }
 0x151   : > { %v1598_v12 = vpop.f32.mrf.mxu1  ;;  %v1604_v14 = vadd.f32 %v6702_v6, %v1602_v10  ;;  %v1514_v15 = vadd.f32 %v1509_v11, %v1426_v9  ;;  %5714 = vmatpush3.bf16.msra.mxu0 %v6021_v4  ;;  %v6041_v4 = vld [vmem:[%s7178_s1 + $0x30] sm:$0xff]  }
 0x152   : > { %5726 = vmatpush3.bf16.msra.mxu1 %v6022_v5  ;;  %v5410_v18 = vpop.f32.mrf.mxu0  ;;  %5715 = vmatprep.subr.bf16.mxu0 %v6068_v1  ;;  %v6042_v5 = vld [vmem:[%s7178_s1 + $0x10] sm:$0xff]  }
 0x153   : > { %v5422_v19 = vpop.f32.mrf.mxu1  ;;  %5727 = vmatprep.subr.bf16.mxu1 %v6068_v1  ;;  %v1606_v20 = vmax.f32 %v1604_v14, 0.0  ;;  %v1603_v21 = vadd.f32 %v1598_v12, %v1514_v15 }
 0x155   : > { %v4973_v24 = vpack.c.bf16 %v1606_v20, %v1606_v20  ;;  %v1605_v25 = vadd.f32 %v6702_v6, %v1603_v21  ;;  %5716 = vmatpush3.bf16.msra.mxu0 %v6023_v16  ;;  %v6043_v16 = vld [vmem:[%s7178_s1 + $0x28] sm:$0xff]  }
 0x156   : > { %5728 = vmatpush3.bf16.msra.mxu1 %v6024_v17  ;;  %5717 = vmatprep.subr.bf16.mxu0 %v6068_v1  ;;  %v6044_v17 = vld [vmem:[%s7178_s1 + $0x8] sm:$0xff]  }
 0x157   : > { %5729 = vmatprep.subr.bf16.mxu1 %v6068_v1  ;;  %4691 = vst [vmem:[%s6723_s17 + $0x18] sm:$0xf] %v4973_v24  ;;  %v1607_v29 = vmax.f32 %v1605_v25, 0.0 }
 0x159   : > { %v4974_v33 = vpack.c.bf16 %v1607_v29, %v1607_v29  ;;  %5718 = vmatpush3.bf16.msra.mxu0 %v6025_v26  ;;  %v6045_v26 = vld [vmem:[%s7178_s1 + $0x20] sm:$0xff]   ;;  %v4169_v29 = vor.u32 %v4168_v23, %v4164_v22 }
 0x15a   : > { %5730 = vmatpush3.bf16.msra.mxu1 %v6026_v27  ;;  %5735 = vmatprep.subr.bf16.mxu0 %v6068_v1  ;;  %v6046_v27 = vld [vmem:[%s7178_s1] sm:$0xff]  }
 0x15b   : > { %5747 = vmatprep.subr.bf16.mxu1 %v6068_v1  ;;  %4692 = vst [vmem:[%s6723_s17 + $0x1c] sm:$0x3] %v4974_v33  ;;  %v6050_v33 = vld [vmem:[%s7178_s1 + $0x78] sm:$0xff]  }
 0x15c   : > { %v1711_v37 = vpop.f32.mrf.mxu0  ;;  %5720 = vmatmul.mubr.msk.bf16.vlgmr.msra.gmra.mxu0 %vm228_vm1, %v3809_v30  ;;  %v4940_v30 = vcombine.low %v7056_v60, %v4932_v28 }
 0x15d   : > { %v1782_v38 = vpop.f32.mrf.mxu1  ;;  %5732 = vmatmul.mubr.msk.bf16.vlgmr.msra.gmra.mxu1 %vm228_vm1, %v4906_v31  ;;  %5736 = vmatpush3.bf16.msra.mxu0 %v6029_v32  ;;  %v6049_v31 = vld [vmem:[%s7178_s1 + $0x58] sm:$0xff]  }
 0x15e   : > { %5748 = vmatpush3.bf16.msra.mxu1 %v6030_v34  ;;  %v5433_v42 = vpop.f32.mrf.mxu0  ;;  %5737 = vmatprep.subr.bf16.mxu0 %v6068_v1  ;;  %v1783_v62 = vadd.f32 %v1782_v38, %v1711_v37  ;;  %v4946_v34 = vld [vmem:[%s6132_s29 + $0x60] sm:$0xf] }
 0x15f   : > { %v5445_v43 = vpop.f32.mrf.mxu1  ;;  %5749 = vmatprep.subr.bf16.mxu1 %v6068_v1  ;;  %5743 = vmatprep.mubr.msk.bf16.mxu0 %vm6069_vm0, %v6068_v1  ;;  %v4955_v38 = vcombine.low %v4946_v34, %v4954_v35 }
 0x160   : > { %5755 = vmatprep.mubr.msk.bf16.mxu1 %vm6069_vm0, %v6068_v1  ;;  %v1714_v44 = vpop.f32.mrf.mxu0 }
 0x161   : > { %v1785_v45 = vpop.f32.mrf.mxu1  ;;  %5738 = vmatpush3.bf16.msra.mxu0 %v6031_v40  ;;  %v6052_v40 = vld [vmem:[%s7178_s1 + $0x70] sm:$0xff]  }
 0x162   : > { %5750 = vmatpush3.bf16.msra.mxu1 %v6032_v41  ;;  %v5434_v49 = vpop.f32.mrf.mxu0  ;;  %5739 = vmatprep.subr.bf16.mxu0 %v6068_v1  ;;  %v1786_v9 = vadd.f32 %v1785_v45, %v1714_v44  ;;  %v4410_v45 = vshll.u32 %v4955_v38, 16 }
 0x163   : > { %v5446_v50 = vpop.f32.mrf.mxu1  ;;  %5751 = vmatprep.subr.bf16.mxu1 %v6068_v1 }
 0x164   : > { %v4408_v50 = vshrl.u32 %v4955_v38, 16  ;;  %v4412_v51 = vrot.slane %v4410_v45, 1 }
 0x165   : > { %5740 = vmatpush3.bf16.msra.mxu0 %v6033_v47  ;;  %v6054_v47 = vld [vmem:[%s7178_s1 + $0x68] sm:$0xff]  }
 0x166   : > { %5752 = vmatpush3.bf16.msra.mxu1 %v6034_v48  ;;  %5741 = vmatprep.subr.bf16.mxu0 %v6068_v1 }
 0x167   : > { %5753 = vmatprep.subr.bf16.mxu1 %v6068_v1 }
 0x169   : > { %5742 = vmatpush3.bf16.msra.mxu0 %v6035_v53  ;;  %v6056_v53 = vld [vmem:[%s7178_s1 + $0x60] sm:$0xff]  }
 0x16a   : > { %5754 = vmatpush3.bf16.msra.mxu1 %v6036_v54  ;;  %5759 = vmatprep.subr.bf16.mxu0 %v6068_v1  ;;  %v4947_v54 = vld [vmem:[%s6132_s29 + $0x64] sm:$0x3] }
 0x16b   : > { %5771 = vmatprep.subr.bf16.mxu1 %v6068_v1  ;;  %v4948_v55 = vcombine.low %v4946_v34, %v4947_v54 }
 0x16c   : > { %v1866_v63 = vpop.f32.mrf.mxu0  ;;  %5744 = vmatmul.mubr.msk.bf16.vlgmr.msra.gmra.mxu0 %vm228_vm1, %v4914_v56  ;;  %v4413_v56 = vor.u32 %v4412_v51, %v4408_v50 }
 0x16d   : > { %v1955_v0 = vpop.f32.mrf.mxu1  ;;  %5756 = vmatmul.mubr.msk.bf16.vlgmr.msra.gmra.mxu1 %vm228_vm1, %v4053_v57  ;;  %v1873_v3 = vadd.f32 %v1866_v63, %v1783_v62  ;;  %5760 = vmatpush3.bf16.msra.mxu0 %v6039_v58 }
 0x16e   : > { %5772 = vmatpush3.bf16.msra.mxu1 %v6040_v59  ;;  %v5457_v7 = vpop.f32.mrf.mxu0  ;;  %5761 = vmatprep.subr.bf16.mxu0 %v6068_v1 }
 0x16f   : > { %v5469_v8 = vpop.f32.mrf.mxu1  ;;  %5773 = vmatprep.subr.bf16.mxu1 %v6068_v1  ;;  %v1962_v10 = vadd.f32 %v1955_v0, %v1873_v3  ;;  %5767 = vmatprep.mubr.msk.bf16.mxu0 %vm6069_vm0, %v6068_v1  ;;  %v7144_v3 = vld [vmem:[%s7179_s2] ss:$0 sm:$0xff] }
 0x170   : > { %5779 = vmatprep.mubr.msk.bf16.mxu1 %vm6069_vm0, %v6068_v1  ;;  %v1869_v11 = vpop.f32.mrf.mxu0 }
 0x171   : > { %v1958_v12 = vpop.f32.mrf.mxu1  ;;  %v1964_v14 = vadd.f32 %v6702_v6, %v1962_v10  ;;  %v1874_v15 = vadd.f32 %v1869_v11, %v1786_v9  ;;  %5762 = vmatpush3.bf16.msra.mxu0 %v6041_v4 }
 0x172   : > { %5774 = vmatpush3.bf16.msra.mxu1 %v6042_v5  ;;  %v5458_v18 = vpop.f32.mrf.mxu0  ;;  %5763 = vmatprep.subr.bf16.mxu0 %v6068_v1 }
 0x173   : > { %v5470_v19 = vpop.f32.mrf.mxu1  ;;  %5775 = vmatprep.subr.bf16.mxu1 %v6068_v1  ;;  %v1966_v20 = vmax.f32 %v1964_v14, 0.0  ;;  %v1963_v21 = vadd.f32 %v1958_v12, %v1874_v15 }
 0x175   : > { %v4975_v24 = vpack.c.bf16 %v1966_v20, %v1966_v20  ;;  %v1965_v25 = vadd.f32 %v6702_v6, %v1963_v21  ;;  %5764 = vmatpush3.bf16.msra.mxu0 %v6043_v16 }
 0x176   : > { %5776 = vmatpush3.bf16.msra.mxu1 %v6044_v17  ;;  %5765 = vmatprep.subr.bf16.mxu0 %v6068_v1 }
 0x177   : > { %5777 = vmatprep.subr.bf16.mxu1 %v6068_v1  ;;  %4725 = vst [vmem:[%s6723_s17 + $0x20] sm:$0xf] %v4975_v24  ;;  %v1967_v6 = vmax.f32 %v1965_v25, 0.0 }
 0x179   : > { %v4976_v32 = vpack.c.bf16 %v1967_v6, %v1967_v6  ;;  %5766 = vmatpush3.bf16.msra.mxu0 %v6045_v26 }
 0x17a   : > { %5778 = vmatpush3.bf16.msra.mxu1 %v6046_v27  ;;  %5783 = vmatprep.subr.bf16.mxu0 %v6068_v1 }
 0x17b   : > { %5795 = vmatprep.subr.bf16.mxu1 %v6068_v1  ;;  %4726 = vst [vmem:[%s6723_s17 + $0x24] sm:$0x3] %v4976_v32 }
 0x17c   : > { %v2071_v36 = vpop.f32.mrf.mxu0  ;;  %5768 = vmatmul.mubr.msk.bf16.vlgmr.msra.gmra.mxu0 %vm228_vm1, %v4169_v29 }
 0x17d   : > { %v2142_v37 = vpop.f32.mrf.mxu1  ;;  %5780 = vmatmul.mubr.msk.bf16.vlgmr.msra.gmra.mxu1 %vm228_vm1, %v4940_v30  ;;  %5784 = vmatpush3.bf16.msra.mxu0 %v6049_v31 }
 0x17e   : > { %5796 = vmatpush3.bf16.msra.mxu1 %v6050_v33  ;;  %v5481_v41 = vpop.f32.mrf.mxu0  ;;  %5785 = vmatprep.subr.bf16.mxu0 %v6068_v1  ;;  %v2143_v57 = vadd.f32 %v2142_v37, %v2071_v36 }
 0x17f   : > { %v5493_v42 = vpop.f32.mrf.mxu1  ;;  %5797 = vmatprep.subr.bf16.mxu1 %v6068_v1  ;;  %5791 = vmatprep.mubr.msk.bf16.mxu0 %vm6069_vm0, %v6068_v1 }
 0x180   : > { %5803 = vmatprep.mubr.msk.bf16.mxu1 %vm6069_vm0, %v6068_v1  ;;  %v2074_v43 = vpop.f32.mrf.mxu0 }
 0x181   : > { %v2145_v44 = vpop.f32.mrf.mxu1  ;;  %5786 = vmatpush3.bf16.msra.mxu0 %v6051_v39 }
 0x182   : > { %5798 = vmatpush3.bf16.msra.mxu1 %v6052_v40  ;;  %v5482_v48 = vpop.f32.mrf.mxu0  ;;  %5787 = vmatprep.subr.bf16.mxu0 %v6068_v1  ;;  %v2146_v63 = vadd.f32 %v2145_v44, %v2074_v43 }
 0x183   : > { %v5494_v49 = vpop.f32.mrf.mxu1  ;;  %5799 = vmatprep.subr.bf16.mxu1 %v6068_v1 }
 0x185   : > { %5788 = vmatpush3.bf16.msra.mxu0 %v6053_v46 }
 0x186   : > { %5800 = vmatpush3.bf16.msra.mxu1 %v6054_v47  ;;  %5789 = vmatprep.subr.bf16.mxu0 %v6068_v1 }
 0x187   : > { %5801 = vmatprep.subr.bf16.mxu1 %v6068_v1 }
 0x189   : > { %5790 = vmatpush3.bf16.msra.mxu0 %v6055_v52 }
 0x18a   : > { %5802 = vmatpush3.bf16.msra.mxu1 %v6056_v53 }
 0x18c   : > { %v2226_v58 = vpop.f32.mrf.mxu0  ;;  %5792 = vmatmul.mubr.msk.bf16.vlgmr.msra.gmra.mxu0 %vm228_vm1, %v4948_v55 }
 0x18d   : > { %v2315_v59 = vpop.f32.mrf.mxu1  ;;  %5804 = vmatmul.mubr.msk.bf16.vlgmr.msra.gmra.mxu1 %vm228_vm1, %v4413_v56  ;;  %v2233_v60 = vadd.f32 %v2226_v58, %v2143_v57 }
 0x18e   : > { %v5505_v61 = vpop.f32.mrf.mxu0 }
 0x18f   : > { %v5517_v62 = vpop.f32.mrf.mxu1  ;;  %v2322_v0 = vadd.f32 %v2315_v59, %v2233_v60 }
 0x190   : > { %v2229_v2 = vpop.f32.mrf.mxu0 }
 0x191   : > { %v2318_v1 = vpop.f32.mrf.mxu1  ;;  %v2324_v4 = vadd.f32 %v7144_v3, %v2322_v0  ;;  %v2234_v5 = vadd.f32 %v2229_v2, %v2146_v63 }
 0x192   : > { %v5506_v7 = vpop.f32.mrf.mxu0 }
 0x193   : > { %v5518_v8 = vpop.f32.mrf.mxu1  ;;  %v2326_v9 = vmax.f32 %v2324_v4, 0.0  ;;  %v2323_v10 = vadd.f32 %v2318_v1, %v2234_v5 }
 0x195   : > { %v4977_v11 = vpack.c.bf16 %v2326_v9, %v2326_v9  ;;  %v2325_v12 = vadd.f32 %v7144_v3, %v2323_v10 }
 0x197   : > { %4759 = vst [vmem:[%s6723_s17 + $0x28] sm:$0xf] %v4977_v11  ;;  %v2327_v13 = vmax.f32 %v2325_v12, 0.0 }
 0x199   : > { %v4978_v14 = vpack.c.bf16 %v2327_v13, %v2327_v13 }
 0x19b   : > { %4760 = vst [vmem:[%s6723_s17 + $0x2c] sm:$0x3] %v4978_v14 }
 0x19c   : > { %v2431_v15 = vpop.f32.mrf.mxu0 }
 0x19d   : > { %v2502_v16 = vpop.f32.mrf.mxu1 }
 0x19e   : > { %v5529_v17 = vpop.f32.mrf.mxu0  ;;  %v2503_v23 = vadd.f32 %v2502_v16, %v2431_v15 }
 0x19f   : > { %v5541_v18 = vpop.f32.mrf.mxu1 }
 0x1a0   : > { %v2434_v19 = vpop.f32.mrf.mxu0 }
 0x1a1   : > { %v2505_v20 = vpop.f32.mrf.mxu1 }
 0x1a2   : > { %v5530_v21 = vpop.f32.mrf.mxu0  ;;  %v2506_v6 = vadd.f32 %v2505_v20, %v2434_v19 }
 0x1a3   : > { %v5542_v22 = vpop.f32.mrf.mxu1 }
 0x1ac   : > { %v2586_v24 = vpop.f32.mrf.mxu0 }
 0x1ad   : > { %v2675_v25 = vpop.f32.mrf.mxu1  ;;  %v2593_v26 = vadd.f32 %v2586_v24, %v2503_v23 }
 0x1ae   : > { %v5553_v27 = vpop.f32.mrf.mxu0 }
 0x1af   : > { %v5565_v28 = vpop.f32.mrf.mxu1  ;;  %v2682_v29 = vadd.f32 %v2675_v25, %v2593_v26 }
 0x1b0   : > { %v2589_v30 = vpop.f32.mrf.mxu0 }
 0x1b1   : > { %v2678_v31 = vpop.f32.mrf.mxu1  ;;  %v2684_v32 = vadd.f32 %v7144_v3, %v2682_v29  ;;  %v2594_v33 = vadd.f32 %v2589_v30, %v2506_v6 }
 0x1b2   : > { %v5554_v34 = vpop.f32.mrf.mxu0 }
 0x1b3   : > { %v5566_v35 = vpop.f32.mrf.mxu1  ;;  %v2686_v36 = vmax.f32 %v2684_v32, 0.0  ;;  %v2683_v37 = vadd.f32 %v2678_v31, %v2594_v33 }
 0x1b5   : > { %v4979_v38 = vpack.c.bf16 %v2686_v36, %v2686_v36  ;;  %v2685_v39 = vadd.f32 %v7144_v3, %v2683_v37 }
 0x1b7   : > { %4793 = vst [vmem:[%s6723_s17 + $0x30] sm:$0xf] %v4979_v38  ;;  %v2687_v40 = vmax.f32 %v2685_v39, 0.0 }
 0x1b9   : > { %v4980_v41 = vpack.c.bf16 %v2687_v40, %v2687_v40 }
 0x1bb   : > { %4794 = vst [vmem:[%s6723_s17 + $0x34] sm:$0x3] %v4980_v41 }
 0x1bc   : > { %v2791_v42 = vpop.f32.mrf.mxu0 }
 0x1bd   : > { %v2862_v43 = vpop.f32.mrf.mxu1 }
 0x1be   : > { %v5577_v44 = vpop.f32.mrf.mxu0  ;;  %v2863_v50 = vadd.f32 %v2862_v43, %v2791_v42 }
 0x1bf   : > { %v5589_v45 = vpop.f32.mrf.mxu1 }
 0x1c0   : > { %v2794_v46 = vpop.f32.mrf.mxu0 }
 0x1c1   : > { %v2865_v47 = vpop.f32.mrf.mxu1 }
 0x1c2   : > { %v5578_v48 = vpop.f32.mrf.mxu0  ;;  %v2866_v56 = vadd.f32 %v2865_v47, %v2794_v46 }
 0x1c3   : > { %v5590_v49 = vpop.f32.mrf.mxu1 }
 0x1cc   : > { %v2946_v51 = vpop.f32.mrf.mxu0 }
 0x1cd   : > { %v3035_v52 = vpop.f32.mrf.mxu1  ;;  %v2953_v53 = vadd.f32 %v2946_v51, %v2863_v50 }
 0x1ce   : > { %v5601_v54 = vpop.f32.mrf.mxu0 }
 0x1cf   : > { %v5613_v55 = vpop.f32.mrf.mxu1  ;;  %v3042_v57 = vadd.f32 %v3035_v52, %v2953_v53 }
 0x1d0   : > { %v2949_v58 = vpop.f32.mrf.mxu0 }
 0x1d1   : > { %v3038_v59 = vpop.f32.mrf.mxu1  ;;  %v3044_v60 = vadd.f32 %v7144_v3, %v3042_v57  ;;  %v2954_v61 = vadd.f32 %v2949_v58, %v2866_v56 }
 0x1d2   : > { %v5602_v62 = vpop.f32.mrf.mxu0 }
 0x1d3   : > { %v5614_v63 = vpop.f32.mrf.mxu1  ;;  %v3046_v0 = vmax.f32 %v3044_v60, 0.0  ;;  %v3043_v2 = vadd.f32 %v3038_v59, %v2954_v61 }
 0x1d5   : > { %v4981_v1 = vpack.c.bf16 %v3046_v0, %v3046_v0  ;;  %v3045_v4 = vadd.f32 %v7144_v3, %v3043_v2 }
 0x1d7   : > { %4827 = vst [vmem:[%s6723_s17 + $0x38] sm:$0xf] %v4981_v1  ;;  %v3047_v5 = vmax.f32 %v3045_v4, 0.0 }
 0x1d9   : > { %v4982_v7 = vpack.c.bf16 %v3047_v5, %v3047_v5 }
 0x1db   : > { %4828 = vst [vmem:[%s6723_s17 + $0x3c] sm:$0x3] %v4982_v7 }
 0x1dc   : > { %v3151_v8 = vpop.f32.mrf.mxu0 }
 0x1dd   : > { %v3222_v9 = vpop.f32.mrf.mxu1 }
 0x1de   : > { %v5625_v10 = vpop.f32.mrf.mxu0  ;;  %v3223_v16 = vadd.f32 %v3222_v9, %v3151_v8 }
 0x1df   : > { %v5637_v11 = vpop.f32.mrf.mxu1 }
 0x1e0   : > { %v3154_v12 = vpop.f32.mrf.mxu0 }
 0x1e1   : > { %v3225_v13 = vpop.f32.mrf.mxu1 }
 0x1e2   : > { %v5626_v14 = vpop.f32.mrf.mxu0  ;;  %v3226_v22 = vadd.f32 %v3225_v13, %v3154_v12 }
 0x1e3   : > { %v5638_v15 = vpop.f32.mrf.mxu1 }
 0x1ec   : > { %v3306_v17 = vpop.f32.mrf.mxu0 }
 0x1ed   : > { %v3395_v18 = vpop.f32.mrf.mxu1  ;;  %v3313_v19 = vadd.f32 %v3306_v17, %v3223_v16 }
 0x1ee   : > { %v5649_v20 = vpop.f32.mrf.mxu0 }
 0x1ef   : > { %v5661_v21 = vpop.f32.mrf.mxu1  ;;  %v3402_v23 = vadd.f32 %v3395_v18, %v3313_v19 }
 0x1f0   : > { %v3309_v24 = vpop.f32.mrf.mxu0 }
 0x1f1   : > { %v3398_v25 = vpop.f32.mrf.mxu1  ;;  %v3404_v26 = vadd.f32 %v7144_v3, %v3402_v23  ;;  %v3314_v27 = vadd.f32 %v3309_v24, %v3226_v22 }
 0x1f2   : > { %v5650_v28 = vpop.f32.mrf.mxu0 }
 0x1f3   : > { %v5662_v6 = vpop.f32.mrf.mxu1  ;;  %v3406_v29 = vmax.f32 %v3404_v26, 0.0  ;;  %v3403_v30 = vadd.f32 %v3398_v25, %v3314_v27 }
 0x1f5   : > { %v4983_v31 = vpack.c.bf16 %v3406_v29, %v3406_v29  ;;  %v3405_v32 = vadd.f32 %v7144_v3, %v3403_v30 }
 0x1f7   : > { %4861 = vst [vmem:[%s6723_s17 + $0x40] sm:$0xf] %v4983_v31  ;;  %v3407_v33 = vmax.f32 %v3405_v32, 0.0 }
 0x1f9   : > { %v4984_v34 = vpack.c.bf16 %v3407_v33, %v3407_v33 }
 0x1fb   : > { %4862 = vst [vmem:[%s6723_s17 + $0x44] sm:$0x3] %v4984_v34 }
 0x1fc   : > { %v3511_v35 = vpop.f32.mrf.mxu0 }
 0x1fd   : > { %v3582_v36 = vpop.f32.mrf.mxu1 }
 0x1fe   : > { %v5673_v37 = vpop.f32.mrf.mxu0  ;;  %v3583_v43 = vadd.f32 %v3582_v36, %v3511_v35 }
 0x1ff   : > { %v5685_v38 = vpop.f32.mrf.mxu1 }
 0x200   : > { %v3514_v39 = vpop.f32.mrf.mxu0 }
 0x201   : > { %v3585_v40 = vpop.f32.mrf.mxu1 }
 0x202   : > { %v5674_v41 = vpop.f32.mrf.mxu0  ;;  %v3586_v49 = vadd.f32 %v3585_v40, %v3514_v39 }
 0x203   : > { %v5686_v42 = vpop.f32.mrf.mxu1 }
 0x20c   : > { %v3666_v44 = vpop.f32.mrf.mxu0 }
 0x20d   : > { %v3755_v45 = vpop.f32.mrf.mxu1  ;;  %v3673_v46 = vadd.f32 %v3666_v44, %v3583_v43 }
 0x20e   : > { %v5697_v47 = vpop.f32.mrf.mxu0 }
 0x20f   : > { %v5709_v48 = vpop.f32.mrf.mxu1  ;;  %v3762_v50 = vadd.f32 %v3755_v45, %v3673_v46 }
 0x210   : > { %v3669_v51 = vpop.f32.mrf.mxu0 }
 0x211   : > { %v3758_v52 = vpop.f32.mrf.mxu1  ;;  %v3764_v53 = vadd.f32 %v7144_v3, %v3762_v50  ;;  %v3674_v54 = vadd.f32 %v3669_v51, %v3586_v49 }
 0x212   : > { %v5698_v55 = vpop.f32.mrf.mxu0 }
 0x213   : > { %v5710_v56 = vpop.f32.mrf.mxu1  ;;  %v3766_v57 = vmax.f32 %v3764_v53, 0.0  ;;  %v3763_v58 = vadd.f32 %v3758_v52, %v3674_v54 }
 0x215   : > { %v4985_v59 = vpack.c.bf16 %v3766_v57, %v3766_v57  ;;  %v3765_v60 = vadd.f32 %v7144_v3, %v3763_v58 }
 0x217   : > { %4895 = vst [vmem:[%s6723_s17 + $0x48] sm:$0xf] %v4985_v59  ;;  %v3767_v61 = vmax.f32 %v3765_v60, 0.0 }
 0x219   : > { %v4986_v62 = vpack.c.bf16 %v3767_v61, %v3767_v61 }
 0x21b   : > { %4896 = vst [vmem:[%s6723_s17 + $0x4c] sm:$0x3] %v4986_v62 }
 0x21c   : > { %v3871_v63 = vpop.f32.mrf.mxu0 }
 0x21d   : > { %v3942_v0 = vpop.f32.mrf.mxu1 }
 0x21e   : > { %v5721_v2 = vpop.f32.mrf.mxu0  ;;  %v3943_v9 = vadd.f32 %v3942_v0, %v3871_v63 }
 0x21f   : > { %v5733_v1 = vpop.f32.mrf.mxu1 }
 0x220   : > { %v3874_v4 = vpop.f32.mrf.mxu0 }
 0x221   : > { %v3945_v5 = vpop.f32.mrf.mxu1 }
 0x222   : > { %v5722_v7 = vpop.f32.mrf.mxu0  ;;  %v3946_v15 = vadd.f32 %v3945_v5, %v3874_v4 }
 0x223   : > { %v5734_v8 = vpop.f32.mrf.mxu1 }
 0x22c   : > { %v4026_v10 = vpop.f32.mrf.mxu0 }
 0x22d   : > { %v4115_v11 = vpop.f32.mrf.mxu1  ;;  %v4033_v12 = vadd.f32 %v4026_v10, %v3943_v9 }
 0x22e   : > { %v5745_v13 = vpop.f32.mrf.mxu0 }
 0x22f   : > { %v5757_v14 = vpop.f32.mrf.mxu1  ;;  %v4122_v16 = vadd.f32 %v4115_v11, %v4033_v12 }
 0x230   : > { %v4029_v17 = vpop.f32.mrf.mxu0 }
 0x231   : > { %v4118_v18 = vpop.f32.mrf.mxu1  ;;  %v4124_v19 = vadd.f32 %v7144_v3, %v4122_v16  ;;  %v4034_v20 = vadd.f32 %v4029_v17, %v3946_v15 }
 0x232   : > { %v5746_v21 = vpop.f32.mrf.mxu0 }
 0x233   : > { %v5758_v22 = vpop.f32.mrf.mxu1  ;;  %v4126_v23 = vmax.f32 %v4124_v19, 0.0  ;;  %v4123_v24 = vadd.f32 %v4118_v18, %v4034_v20 }
 0x235   : > { %v4987_v25 = vpack.c.bf16 %v4126_v23, %v4126_v23  ;;  %v4125_v26 = vadd.f32 %v7144_v3, %v4123_v24 }
 0x237   : > { %4929 = vst [vmem:[%s6723_s17 + $0x50] sm:$0xf] %v4987_v25  ;;  %v4127_v27 = vmax.f32 %v4125_v26, 0.0 }
 0x239   : > { %v4988_v28 = vpack.c.bf16 %v4127_v27, %v4127_v27 }
 0x23b   : > { %4930 = vst [vmem:[%s6723_s17 + $0x54] sm:$0x3] %v4988_v28 }
 0x23c   : > { %v4231_v6 = vpop.f32.mrf.mxu0 }
 0x23d   : > { %v4302_v29 = vpop.f32.mrf.mxu1 }
 0x23e   : > { %v5769_v30 = vpop.f32.mrf.mxu0  ;;  %v4303_v36 = vadd.f32 %v4302_v29, %v4231_v6 }
 0x23f   : > { %v5781_v31 = vpop.f32.mrf.mxu1 }
 0x240   : > { %v4234_v32 = vpop.f32.mrf.mxu0 }
 0x241   : > { %v4305_v33 = vpop.f32.mrf.mxu1 }
 0x242   : > { %v5770_v34 = vpop.f32.mrf.mxu0  ;;  %v4306_v42 = vadd.f32 %v4305_v33, %v4234_v32 }
 0x243   : > { %v5782_v35 = vpop.f32.mrf.mxu1 }
 0x24c   : > { %v4386_v37 = vpop.f32.mrf.mxu0 }
 0x24d   : > { %v4475_v38 = vpop.f32.mrf.mxu1  ;;  %v4393_v39 = vadd.f32 %v4386_v37, %v4303_v36 }
 0x24e   : > { %v5793_v40 = vpop.f32.mrf.mxu0 }
 0x24f   : > { %v5805_v41 = vpop.f32.mrf.mxu1  ;;  %v4482_v43 = vadd.f32 %v4475_v38, %v4393_v39 }
 0x250   : > { %v4389_v44 = vpop.f32.mrf.mxu0 }
 0x251   : > { %v4478_v45 = vpop.f32.mrf.mxu1  ;;  %v4484_v46 = vadd.f32 %v7144_v3, %v4482_v43  ;;  %v4394_v47 = vadd.f32 %v4389_v44, %v4306_v42 }
 0x252   : > { %v5794_v48 = vpop.f32.mrf.mxu0 }
 0x253   : > { %v5806_v49 = vpop.f32.mrf.mxu1  ;;  %v4486_v50 = vmax.f32 %v4484_v46, 0.0  ;;  %v4483_v51 = vadd.f32 %v4478_v45, %v4394_v47 }
 0x255   : > { %v4989_v52 = vpack.c.bf16 %v4486_v50, %v4486_v50  ;;  %v4485_v53 = vadd.f32 %v7144_v3, %v4483_v51 }
 0x257   : > { %4963 = vst [vmem:[%s6723_s17 + $0x58] sm:$0xf] %v4989_v52  ;;  %v4487_v54 = vmax.f32 %v4485_v53, 0.0 }
 0x259   : > { %v4990_v55 = vpack.c.bf16 %v4487_v54, %v4487_v54 }
 0x25b   : > { %4964 = vst [vmem:[%s6723_s17 + $0x5c] sm:$0x3] %v4990_v55 }
 0x25c PF: > { %s13_s12 = sadd.s32 1, %s6066_s12  }
 0x25d   : > { %p10_p4 = scmp.ge.s32.totalorder %s13_s12, 4  }
 0x25f   :  { %12 = sbr.rel (!%p10_p4) target bundleno = 1 (0x1), region = 85 }

// kernel: _lambda_.6
= control target key start
LH: loop header
LB: loop body
LE: loop exit
PB: predicated region body
PF: predicated region fallthrough
CT: control target
= control target key end

     0   :  { %s3248_s12 = smov 0   ;;  %s3820_s0 = inlined_call_operand.vmem [shape: bf16[2,5,5,64], index: 0, kind: input, shape index: {}]   ;;  %s3821_s1 = inlined_call_operand.vmem [shape: bf16[576,128], index: 1, kind: input, shape index: {}]   ;;  %s3822_s2 = inlined_call_operand.vmem [shape: f32[1,128], index: 2, kind: input, shape index: {}]   ;;  %s3823_s3 = inlined_call_operand.vmem [shape: f32[2,3,3,128], index: 3, kind: output, shape index: {}]  }
   0x1 LB: > { %s2440_s13 = sadd.s32 4294967295, %s3224_s12   ;;  %p2444_p0 = scmp.ge.s32.totalorder %s3224_s12, 1  ;;  %s3224_s12 = sphi %s3248_s12, %s13_s12  }
   0x2   : > { %p137_p1 = scmp.lt.s32.totalorder %s3224_s12, 3 }
   0x4   : > { %p138_p2 = pnand %p2444_p0, %p137_p1 }
   0x5   : > { %p161_p3 = scmp.lt.s32.totalorder (!%p138_p2), %s2440_s13, 1 }
   0x6   : > { %141 = sbr.rel (%p138_p2) target bundleno = 436 (0x1b4), region = 32 }
   0xb   : > { %v3092_v0 = vld [vmem:[%s3821_s1 + $0x38] sm:$0xff]   ;;  %v3226_v1 = vmov 0.0   ;;  %v3094_v3 = vld [vmem:[%s3821_s1 + $0x30] sm:$0xff]   ;;  %vm3227_vm0 = vmmov 0   ;;  %s3825_s13 = smov (!%p161_p3, %s2440_s13), 1  ;;  %v3096_v5 = vld [vmem:[%s3821_s1 + $0x28] sm:$0xff]  }
   0xc   : > { %2756 = vmatprep.subr.bf16.mxu0 %v3226_v1  ;;  %2768 = vmatprep.subr.bf16.mxu1 %v3226_v1  ;;  %v3093_v2 = vld [vmem:[%s3821_s1 + $0x18] sm:$0xff]   ;;  %v3095_v4 = vld [vmem:[%s3821_s1 + $0x10] sm:$0xff]   ;;  %s3080_s24 = smul.u32 20, %s3825_s13  ;;  %v3097_v6 = vld [vmem:[%s3821_s1 + $0x8] sm:$0xff]   ;;  %vm224_vm1 = vcmask 523264  }
   0xd   : > { %2757 = vmatpush3.bf16.msra.mxu0 %v3092_v0  ;;  %2764 = vmatprep.mubr.msk.bf16.mxu0 %vm3227_vm0, %v3226_v1  ;;  %v3098_v8 = vld [vmem:[%s3821_s1 + $0x20] sm:$0xff]   ;;  %v3101_v14 = vld [vmem:[%s3821_s1 + $0x58] sm:$0xff]   ;;  %v3103_v17 = vld [vmem:[%s3821_s1 + $0x50] sm:$0xff]  }
   0xe   : > { %2769 = vmatpush3.bf16.msra.mxu1 %v3093_v2  ;;  %2758 = vmatprep.subr.bf16.mxu0 %v3226_v1  ;;  %s3290_s29 = scalar_lea.vmem %s3820_s0, %s3080_s24  ;;  %v3099_v10 = vld [vmem:[%s3821_s1] sm:$0xff]   ;;  %v3102_v15 = vld [vmem:[%s3821_s1 + $0x78] sm:$0xff]   ;;  %v3104_v18 = vld [vmem:[%s3821_s1 + $0x70] sm:$0xff]  }
   0xf   : > { %2770 = vmatprep.subr.bf16.mxu1 %v3226_v1  ;;  %2776 = vmatprep.mubr.msk.bf16.mxu1 %vm3227_vm0, %v3226_v1  ;;  %v173_v7 = vld [vmem:[%s3290_s29] sm:$0x3]  ;;  %v3105_v19 = vld [vmem:[%s3821_s1 + $0x48] sm:$0xff]   ;;  %v3110_v25 = vld [vmem:[%s3821_s1 + $0x98] sm:$0xff]  }
  0x10   : > { %v2447_v9 = vcombine.low %v173_v7, %v173_v7  ;;  %v3106_v20 = vld [vmem:[%s3821_s1 + $0x68] sm:$0xff]   ;;  %v3109_v21 = vld [vmem:[%s3290_s29] ss:$0 sps:$4 sm:$0x66]   ;;  %v2464_v26 = vld [vmem:[%s3290_s29 + $0x4] sm:$0x3] }
  0x11   : > { %2759 = vmatpush3.bf16.msra.mxu0 %v3094_v3  ;;  %v3107_v22 = vld [vmem:[%s3821_s1 + $0x40] sm:$0xff]   ;;  %v347_v24 = vrot.slane %v3109_v21, 1  ;;  %v3112_v27 = vld [vmem:[%s3821_s1 + $0xb8] sm:$0xff]   ;;  %v2470_v28 = vcombine.low %v2464_v26, %v2464_v26  ;;  %v3113_v29 = vld [vmem:[%s3821_s1 + $0x90] sm:$0xff]  }
  0x12   : > { %2771 = vmatpush3.bf16.msra.mxu1 %v3095_v4  ;;  %2760 = vmatprep.subr.bf16.mxu0 %v3226_v1  ;;  %v194_v11 = vshrl.u32 %v2447_v9, 16  ;;  %v196_v12 = vshll.u32 %v2447_v9, 16  ;;  %v3108_v23 = vld [vmem:[%s3821_s1 + $0x60] sm:$0xff]   ;;  %v3114_v30 = vld [vmem:[%s3821_s1 + $0xb0] sm:$0xff]   ;;  %v3115_v32 = vld [vmem:[%s3821_s1 + $0x88] sm:$0xff]  }
  0x13   : > { %2772 = vmatprep.subr.bf16.mxu1 %v3226_v1  ;;  %v508_v31 = vshll.u32 %v2470_v28, 16  ;;  %v3116_v33 = vld [vmem:[%s3821_s1 + $0xa8] sm:$0xff]   ;;  %v506_v34 = vshrl.u32 %v2470_v28, 16  ;;  %v3117_v36 = vld [vmem:[%s3821_s1 + $0x80] sm:$0xff]   ;;  %v3119_v40 = vld [vmem:[%s3821_s1 + $0xd8] sm:$0xff]  }
  0x14   : > { %v198_v13 = vrot.slane %v196_v12, 1  ;;  %v3120_v37 = vld [vmem:[%s3290_s29 + $0x4] ss:$0 sps:$4 sm:$0x66]   ;;  %v3121_v42 = vld [vmem:[%s3821_s1 + $0xf8] sm:$0xff]   ;;  %v3122_v44 = vld [vmem:[%s3821_s1 + $0xd0] sm:$0xff]  }
  0x15   : > { %2761 = vmatpush3.bf16.msra.mxu0 %v3096_v5  ;;  %v510_v35 = vrot.slane %v508_v31, 1  ;;  %v3118_v38 = vld [vmem:[%s3821_s1 + $0xa0] sm:$0xff]   ;;  %v592_v41 = vrot.slane %v3120_v37, 1  ;;  %v2483_v43 = vld [vmem:[%s3290_s29 + $0x8] sm:$0x3]  ;;  %v3123_v46 = vld [vmem:[%s3821_s1 + $0xf0] sm:$0xff]  }
  0x16   : > { %2773 = vmatpush3.bf16.msra.mxu1 %v3097_v6  ;;  %2762 = vmatprep.subr.bf16.mxu0 %v3226_v1  ;;  %v199_v16 = vor.u32 %v198_v13, %v194_v11  ;;  %v2489_v45 = vcombine.low %v2483_v43, %v2483_v43  ;;  %v3124_v47 = vld [vmem:[%s3821_s1 + $0xc8] sm:$0xff]   ;;  %v3126_v50 = vld [vmem:[%s3821_s1 + $0xc0] sm:$0xff]   ;;  %v3129_v56 = vld [vmem:[%s3821_s1 + $0x118] sm:$0xff]  }
  0x17   : > { %2774 = vmatprep.subr.bf16.mxu1 %v3226_v1  ;;  %v511_v39 = vor.u32 %v510_v35, %v506_v34  ;;  %v3125_v49 = vld [vmem:[%s3821_s1 + $0xe8] sm:$0xff]   ;;  %v3127_v53 = vld [vmem:[%s3821_s1 + $0xe0] sm:$0xff]   ;;  %v3130_v57 = vld [vmem:[%s3821_s1 + $0x38] sm:$0xff]  }
  0x18   : > { %v753_v48 = vshll.u32 %v2489_v45, 16  ;;  %v751_v51 = vshrl.u32 %v2489_v45, 16  ;;  %v3420_v55 = vld [vmem:[%s3290_s29 + $0x4] sm:$0x3]  ;;  %v3131_v59 = vld [vmem:[%s3821_s1 + $0x110] sm:$0xff]   ;;  %v3133_v62 = vld [vmem:[%s3821_s1 + $0x108] sm:$0xff]  }
  0x19   : > { %2763 = vmatpush3.bf16.msra.mxu0 %v3098_v8  ;;  %v2504_v58 = vcombine.low %v3420_v55, %v3420_v55  ;;  %v3132_v60 = vld [vmem:[%s3821_s1 + $0x30] sm:$0xff]   ;;  %v3134_v63 = vld [vmem:[%s3821_s1 + $0x28] sm:$0xff]   ;;  %v3135_v2 = vld [vmem:[%s3821_s1 + $0x100] sm:$0xff]  }
  0x1a   : > { %2775 = vmatpush3.bf16.msra.mxu1 %v3099_v10  ;;  %2780 = vmatprep.subr.bf16.mxu0 %v3226_v1  ;;  %v755_v52 = vrot.slane %v753_v48, 1  ;;  %v3137_v0 = vld [vmem:[%s3290_s29 + $0x8] ss:$0 sps:$4 sm:$0x66]   ;;  %v3136_v5 = vld [vmem:[%s3821_s1 + $0x20] sm:$0xff]   ;;  %v3140_v9 = vld [vmem:[%s3821_s1 + $0x58] sm:$0xff]  }
  0x1b   : > { %2792 = vmatprep.subr.bf16.mxu1 %v3226_v1  ;;  %v938_v61 = vshll.u32 %v2504_v58, 16  ;;  %v936_v3 = vshrl.u32 %v2504_v58, 16  ;;  %v837_v6 = vrot.slane %v3137_v0, 1  ;;  %v3141_v10 = vld [vmem:[%s3821_s1 + $0x10] sm:$0xff]   ;;  %v3143_v12 = vld [vmem:[%s3821_s1 + $0x8] sm:$0xff]   ;;  %v3175_v58 = vld [vmem:[%s3821_s1 + $0x38] sm:$0xff]  }
  0x1c   : > { %2765 = vmatmul.mubr.msk.bf16.vlgmr.msra.gmra.mxu0 %vm224_vm1, %v199_v16  ;;  %v756_v54 = vor.u32 %v755_v52, %v751_v51  ;;  %v3142_v11 = vld [vmem:[%s3821_s1 + $0x50] sm:$0xff]   ;;  %v3144_v13 = vld [vmem:[%s3821_s1 + $0x48] sm:$0xff]   ;;  %v3146_v16 = vld [vmem:[%s3821_s1 + $0x40] sm:$0xff]  }
  0x1d   : > { %2777 = vmatmul.mubr.msk.bf16.vlgmr.msra.gmra.mxu1 %vm224_vm1, %v173_v7  ;;  %2781 = vmatpush3.bf16.msra.mxu0 %v3101_v14  ;;  %v940_v4 = vrot.slane %v938_v61, 1  ;;  %v3138_v7 = vld [vmem:[%s3821_s1 + $0x18] sm:$0xff]   ;;  %v3145_v14 = vld [vmem:[%s3821_s1] sm:$0xff]   ;;  %v3159_v34 = vld [vmem:[%s3821_s1 + $0xb0] sm:$0xff]  }
  0x1e   : > { %2793 = vmatpush3.bf16.msra.mxu1 %v3102_v15  ;;  %2782 = vmatprep.subr.bf16.mxu0 %v3226_v1  ;;  %v3148_v15 = vld [vmem:[%s3290_s29 + $0x4] ss:$0 sps:$4 sm:$0x66]   ;;  %v3160_v35 = vld [vmem:[%s3821_s1 + $0xd0] sm:$0xff]   ;;  %v3162_v37 = vld [vmem:[%s3821_s1 + $0xc8] sm:$0xff]  }
  0x1f   : > { %2794 = vmatprep.subr.bf16.mxu1 %v3226_v1  ;;  %2788 = vmatprep.mubr.msk.bf16.mxu0 %vm3227_vm0, %v3226_v1  ;;  %v941_v8 = vor.u32 %v940_v4, %v936_v3  ;;  %v3181_v3 = vld [vmem:[%s3821_s1 + $0x8] sm:$0xff]  }
  0x20   : > { %2800 = vmatprep.mubr.msk.bf16.mxu1 %vm3227_vm0, %v3226_v1 }
  0x21   : > { %2783 = vmatpush3.bf16.msra.mxu0 %v3103_v17  ;;  %v3147_v17 = vld [vmem:[%s3821_s1 + $0x78] sm:$0xff]  }
  0x22   : > { %2795 = vmatpush3.bf16.msra.mxu1 %v3104_v18  ;;  %2784 = vmatprep.subr.bf16.mxu0 %v3226_v1  ;;  %v1088_v18 = vrot.slane %v3148_v15, 1  ;;  %v3193_v15 = vld [vmem:[%s3290_s29 + $0x8] ss:$0 sps:$4 sm:$0x66]  }
  0x23   : > { %2796 = vmatprep.subr.bf16.mxu1 %v3226_v1 }
  0x25   : > { %2785 = vmatpush3.bf16.msra.mxu0 %v3105_v19  ;;  %v3149_v19 = vld [vmem:[%s3821_s1 + $0x98] sm:$0xff]  }
  0x26   : > { %2797 = vmatpush3.bf16.msra.mxu1 %v3106_v20  ;;  %2786 = vmatprep.subr.bf16.mxu0 %v3226_v1  ;;  %v2522_v20 = vld [vmem:[%s3290_s29 + $0x8] sm:$0x3] }
  0x27   : > { %2798 = vmatprep.subr.bf16.mxu1 %v3226_v1  ;;  %v2528_v21 = vcombine.low %v2522_v20, %v2522_v20 }
  0x29   : > { %2787 = vmatpush3.bf16.msra.mxu0 %v3107_v22  ;;  %v3150_v22 = vld [vmem:[%s3821_s1 + $0x70] sm:$0xff]   ;;  %v1246_v28 = vshrl.u32 %v2528_v21, 16 }
  0x2a   : > { %2799 = vmatpush3.bf16.msra.mxu1 %v3108_v23  ;;  %2804 = vmatprep.subr.bf16.mxu0 %v3226_v1  ;;  %v3151_v23 = vld [vmem:[%s3821_s1 + $0x90] sm:$0xff]  }
  0x2b   : > { %2816 = vmatprep.subr.bf16.mxu1 %v3226_v1 }
  0x2c   : > { %2789 = vmatmul.mubr.msk.bf16.vlgmr.msra.gmra.mxu0 %vm224_vm1, %v347_v24  ;;  %v3152_v24 = vld [vmem:[%s3821_s1 + $0x68] sm:$0xff]  }
  0x2d   : > { %2801 = vmatmul.mubr.msk.bf16.vlgmr.msra.gmra.mxu1 %vm224_vm1, %v2464_v26  ;;  %2805 = vmatpush3.bf16.msra.mxu0 %v3110_v25  ;;  %v1248_v25 = vshll.u32 %v2528_v21, 16  ;;  %v3153_v26 = vld [vmem:[%s3821_s1 + $0x88] sm:$0xff]   ;;  %v3196_v21 = vld [vmem:[%s3821_s1 + $0xb8] sm:$0xff]  }
  0x2e   : > { %2817 = vmatpush3.bf16.msra.mxu1 %v3112_v27  ;;  %2806 = vmatprep.subr.bf16.mxu0 %v3226_v1  ;;  %v3154_v27 = vld [vmem:[%s3821_s1 + $0x60] sm:$0xff]  }
  0x2f   : > { %2818 = vmatprep.subr.bf16.mxu1 %v3226_v1  ;;  %2812 = vmatprep.mubr.msk.bf16.mxu0 %vm3227_vm0, %v3226_v1 }
  0x30   : > { %2824 = vmatprep.mubr.msk.bf16.mxu1 %vm3227_vm0, %v3226_v1 }
  0x31   : > { %2807 = vmatpush3.bf16.msra.mxu0 %v3113_v29  ;;  %v1250_v29 = vrot.slane %v1248_v25, 1 }
  0x32   : > { %2819 = vmatpush3.bf16.msra.mxu1 %v3114_v30  ;;  %2808 = vmatprep.subr.bf16.mxu0 %v3226_v1  ;;  %v3155_v30 = vld [vmem:[%s3821_s1 + $0x80] sm:$0xff]  }
  0x33   : > { %2820 = vmatprep.subr.bf16.mxu1 %v3226_v1  ;;  %v1251_v31 = vor.u32 %v1250_v29, %v1246_v28 }
  0x35   : > { %2809 = vmatpush3.bf16.msra.mxu0 %v3115_v32  ;;  %v3157_v32 = vld [vmem:[%s3821_s1 + $0xb8] sm:$0xff]  }
  0x36   : > { %2821 = vmatpush3.bf16.msra.mxu1 %v3116_v33  ;;  %2810 = vmatprep.subr.bf16.mxu0 %v3226_v1  ;;  %v3158_v33 = vld [vmem:[%s3821_s1 + $0xd8] sm:$0xff]  }
  0x37   : > { %2822 = vmatprep.subr.bf16.mxu1 %v3226_v1 }
  0x39   : > { %2811 = vmatpush3.bf16.msra.mxu0 %v3117_v36  ;;  %v3161_v36 = vld [vmem:[%s3821_s1 + $0xa8] sm:$0xff]  }
  0x3a   : > { %2823 = vmatpush3.bf16.msra.mxu1 %v3118_v38  ;;  %2828 = vmatprep.subr.bf16.mxu0 %v3226_v1  ;;  %v3165_v38 = vld [vmem:[%s3290_s29 + $0x8] ss:$0 sps:$4 sm:$0x66]  }
  0x3b   : > { %2840 = vmatprep.subr.bf16.mxu1 %v3226_v1 }
  0x3c   : > { %2813 = vmatmul.mubr.msk.bf16.vlgmr.msra.gmra.mxu0 %vm224_vm1, %v511_v39  ;;  %v3163_v39 = vld [vmem:[%s3821_s1 + $0xa0] sm:$0xff]  }
  0x3d   : > { %2825 = vmatmul.mubr.msk.bf16.vlgmr.msra.gmra.mxu1 %vm224_vm1, %v592_v41  ;;  %2829 = vmatpush3.bf16.msra.mxu0 %v3119_v40  ;;  %v3164_v40 = vld [vmem:[%s3821_s1 + $0xc0] sm:$0xff]   ;;  %v1332_v41 = vrot.slane %v3165_v38, 1 }
  0x3e   : > { %2841 = vmatpush3.bf16.msra.mxu1 %v3121_v42  ;;  %2830 = vmatprep.subr.bf16.mxu0 %v3226_v1  ;;  %v3166_v42 = vld [vmem:[%s3821_s1 + $0xf8] sm:$0xff]  }
  0x3f   : > { %2842 = vmatprep.subr.bf16.mxu1 %v3226_v1  ;;  %2836 = vmatprep.mubr.msk.bf16.mxu0 %vm3227_vm0, %v3226_v1 }
  0x40   : > { %2848 = vmatprep.mubr.msk.bf16.mxu1 %vm3227_vm0, %v3226_v1 }
  0x41   : > { %2831 = vmatpush3.bf16.msra.mxu0 %v3122_v44  ;;  %v3168_v44 = vld [vmem:[%s3821_s1 + $0x118] sm:$0xff]  }
  0x42   : > { %2843 = vmatpush3.bf16.msra.mxu1 %v3123_v46  ;;  %2832 = vmatprep.subr.bf16.mxu0 %v3226_v1  ;;  %v3169_v46 = vld [vmem:[%s3821_s1 + $0xf0] sm:$0xff]  }
  0x43   : > { %2844 = vmatprep.subr.bf16.mxu1 %v3226_v1 }
  0x45   : > { %2833 = vmatpush3.bf16.msra.mxu0 %v3124_v47  ;;  %v3170_v47 = vld [vmem:[%s3821_s1 + $0x110] sm:$0xff]  }
  0x46   : > { %2845 = vmatpush3.bf16.msra.mxu1 %v3125_v49  ;;  %2834 = vmatprep.subr.bf16.mxu0 %v3226_v1  ;;  %v3171_v49 = vld [vmem:[%s3821_s1 + $0xe8] sm:$0xff]  }
  0x47   : > { %2846 = vmatprep.subr.bf16.mxu1 %v3226_v1 }
  0x49   : > { %2835 = vmatpush3.bf16.msra.mxu0 %v3126_v50  ;;  %v3172_v50 = vld [vmem:[%s3821_s1 + $0x108] sm:$0xff]  }
  0x4a   : > { %2847 = vmatpush3.bf16.msra.mxu1 %v3127_v53  ;;  %2852 = vmatprep.subr.bf16.mxu0 %v3226_v1  ;;  %v3176_v53 = vld [vmem:[%s3290_s29 + $0xc] ss:$0 sps:$4 sm:$0x66]  }
  0x4b   : > { %2864 = vmatprep.subr.bf16.mxu1 %v3226_v1 }
  0x4c   : > { %2837 = vmatmul.mubr.msk.bf16.vlgmr.msra.gmra.mxu0 %vm224_vm1, %v2483_v43  ;;  %v2541_v43 = vld [vmem:[%s3290_s29 + $0xc] sm:$0x3] }
  0x4d   : > { %2849 = vmatmul.mubr.msk.bf16.vlgmr.msra.gmra.mxu1 %vm224_vm1, %v756_v54  ;;  %2853 = vmatpush3.bf16.msra.mxu0 %v3129_v56  ;;  %v2547_v45 = vcombine.low %v2541_v43, %v2541_v43  ;;  %v3173_v54 = vld [vmem:[%s3821_s1 + $0xe0] sm:$0xff]  }
  0x4e   : > { %2865 = vmatpush3.bf16.msra.mxu1 %v3130_v57  ;;  %2854 = vmatprep.subr.bf16.mxu0 %v3226_v1  ;;  %v1577_v57 = vrot.slane %v3176_v53, 1 }
  0x4f   : > { %2866 = vmatprep.subr.bf16.mxu1 %v3226_v1  ;;  %2860 = vmatprep.mubr.msk.bf16.mxu0 %vm3227_vm0, %v3226_v1  ;;  %v1493_v48 = vshll.u32 %v2547_v45, 16  ;;  %v1491_v51 = vshrl.u32 %v2547_v45, 16 }
  0x50   : > { %2872 = vmatprep.mubr.msk.bf16.mxu1 %vm3227_vm0, %v3226_v1 }
  0x51   : > { %2855 = vmatpush3.bf16.msra.mxu0 %v3131_v59  ;;  %v1495_v52 = vrot.slane %v1493_v48, 1  ;;  %v3177_v59 = vld [vmem:[%s3821_s1 + $0x18] sm:$0xff]  }
  0x52   : > { %2867 = vmatpush3.bf16.msra.mxu1 %v3132_v60  ;;  %2856 = vmatprep.subr.bf16.mxu0 %v3226_v1  ;;  %v2561_v60 = vld [vmem:[%s3290_s29 + $0x8] sm:$0x3] }
  0x53   : > { %2868 = vmatprep.subr.bf16.mxu1 %v3226_v1  ;;  %v1496_v56 = vor.u32 %v1495_v52, %v1491_v51  ;;  %v2562_v61 = vcombine.low %v2561_v60, %v2561_v60  ;;  %v3214_v52 = vld [vmem:[%s3821_s1 + $0x110] sm:$0xff]  }
  0x55   : > { %2857 = vmatpush3.bf16.msra.mxu0 %v3133_v62  ;;  %v3178_v62 = vld [vmem:[%s3821_s1 + $0x30] sm:$0xff]   ;;  %v1673_v0 = vshll.u32 %v2562_v61, 16  ;;  %v1671_v4 = vshrl.u32 %v2562_v61, 16  ;;  %v3216_v61 = vld [vmem:[%s3821_s1 + $0x100] sm:$0xff]  }
  0x56   : > { %2869 = vmatpush3.bf16.msra.mxu1 %v3134_v63  ;;  %2858 = vmatprep.subr.bf16.mxu0 %v3226_v1  ;;  %v3179_v63 = vld [vmem:[%s3821_s1 + $0x10] sm:$0xff]  }
  0x57   : > { %2870 = vmatprep.subr.bf16.mxu1 %v3226_v1 }
  0x59   : > { %2859 = vmatpush3.bf16.msra.mxu0 %v3135_v2  ;;  %v3180_v2 = vld [vmem:[%s3821_s1 + $0x28] sm:$0xff]  }
  0x5a   : > { %2871 = vmatpush3.bf16.msra.mxu1 %v3136_v5  ;;  %2876 = vmatprep.subr.bf16.mxu0 %v3226_v1  ;;  %v1675_v5 = vrot.slane %v1673_v0, 1 }
  0x5b   : > { %2888 = vmatprep.subr.bf16.mxu1 %v3226_v1 }
  0x5c   : > { %2861 = vmatmul.mubr.msk.bf16.vlgmr.msra.gmra.mxu0 %vm224_vm1, %v837_v6  ;;  %v3182_v6 = vld [vmem:[%s3821_s1 + $0x20] sm:$0xff]  }
  0x5d   : > { %2873 = vmatmul.mubr.msk.bf16.vlgmr.msra.gmra.mxu1 %vm224_vm1, %v941_v8  ;;  %2877 = vmatpush3.bf16.msra.mxu0 %v3138_v7  ;;  %v3183_v7 = vld [vmem:[%s3821_s1] sm:$0xff]   ;;  %v1676_v8 = vor.u32 %v1675_v5, %v1671_v4 }
  0x5e   : > { %2889 = vmatpush3.bf16.msra.mxu1 %v3140_v9  ;;  %2878 = vmatprep.subr.bf16.mxu0 %v3226_v1  ;;  %v3185_v9 = vld [vmem:[%s3821_s1 + $0x58] sm:$0xff]  }
  0x5f   : > { %2890 = vmatprep.subr.bf16.mxu1 %v3226_v1  ;;  %2884 = vmatprep.mubr.msk.bf16.mxu0 %vm3227_vm0, %v3226_v1 }
  0x60   : > { %2896 = vmatprep.mubr.msk.bf16.mxu1 %vm3227_vm0, %v3226_v1 }
  0x61   : > { %2879 = vmatpush3.bf16.msra.mxu0 %v3141_v10  ;;  %v3186_v10 = vld [vmem:[%s3821_s1 + $0x78] sm:$0xff]  }
  0x62   : > { %2891 = vmatpush3.bf16.msra.mxu1 %v3142_v11  ;;  %2880 = vmatprep.subr.bf16.mxu0 %v3226_v1  ;;  %v3187_v11 = vld [vmem:[%s3821_s1 + $0x50] sm:$0xff]  }
  0x63   : > { %2892 = vmatprep.subr.bf16.mxu1 %v3226_v1 }
  0x65   : > { %2881 = vmatpush3.bf16.msra.mxu0 %v3143_v12  ;;  %v3188_v12 = vld [vmem:[%s3821_s1 + $0x70] sm:$0xff]  }
  0x66   : > { %2893 = vmatpush3.bf16.msra.mxu1 %v3144_v13  ;;  %2882 = vmatprep.subr.bf16.mxu0 %v3226_v1  ;;  %v3189_v13 = vld [vmem:[%s3821_s1 + $0x48] sm:$0xff]  }
  0x67   : > { %2894 = vmatprep.subr.bf16.mxu1 %v3226_v1 }
  0x69   : > { %2883 = vmatpush3.bf16.msra.mxu0 %v3145_v14  ;;  %v3190_v14 = vld [vmem:[%s3821_s1 + $0x68] sm:$0xff]  }
  0x6a   : > { %2895 = vmatpush3.bf16.msra.mxu1 %v3146_v16  ;;  %2900 = vmatprep.subr.bf16.mxu0 %v3226_v1  ;;  %v3191_v16 = vld [vmem:[%s3821_s1 + $0x40] sm:$0xff]  }
  0x6b   : > { %2912 = vmatprep.subr.bf16.mxu1 %v3226_v1 }
  0x6c   : > { %2885 = vmatmul.mubr.msk.bf16.vlgmr.msra.gmra.mxu0 %vm224_vm1, %v3420_v55  ;;  %v3174_v55 = vld [vmem:[%s3821_s1 + $0x100] sm:$0xff]  }
  0x6d   : > { %2897 = vmatmul.mubr.msk.bf16.vlgmr.msra.gmra.mxu1 %vm224_vm1, %v1088_v18  ;;  %2901 = vmatpush3.bf16.msra.mxu0 %v3147_v17  ;;  %v3192_v17 = vld [vmem:[%s3821_s1 + $0x60] sm:$0xff]   ;;  %v1823_v18 = vrot.slane %v3193_v15, 1 }
  0x6e   : > { %2913 = vmatpush3.bf16.msra.mxu1 %v3149_v19  ;;  %2902 = vmatprep.subr.bf16.mxu0 %v3226_v1  ;;  %v3194_v19 = vld [vmem:[%s3821_s1 + $0x98] sm:$0xff]  }
  0x6f   : > { %2914 = vmatprep.subr.bf16.mxu1 %v3226_v1  ;;  %2908 = vmatprep.mubr.msk.bf16.mxu0 %vm3227_vm0, %v3226_v1 }
  0x70   : > { %2920 = vmatprep.mubr.msk.bf16.mxu1 %vm3227_vm0, %v3226_v1 }
  0x71   : > { %2903 = vmatpush3.bf16.msra.mxu0 %v3150_v22 }
  0x72   : > { %2915 = vmatpush3.bf16.msra.mxu1 %v3151_v23  ;;  %2904 = vmatprep.subr.bf16.mxu0 %v3226_v1  ;;  %v3197_v23 = vld [vmem:[%s3821_s1 + $0x90] sm:$0xff]  }
  0x73   : > { %2916 = vmatprep.subr.bf16.mxu1 %v3226_v1 }
  0x75   : > { %2905 = vmatpush3.bf16.msra.mxu0 %v3152_v24  ;;  %v3198_v24 = vld [vmem:[%s3821_s1 + $0xb0] sm:$0xff]  }
  0x76   : > { %2917 = vmatpush3.bf16.msra.mxu1 %v3153_v26  ;;  %2906 = vmatprep.subr.bf16.mxu0 %v3226_v1  ;;  %v3199_v26 = vld [vmem:[%s3821_s1 + $0x88] sm:$0xff]  }
  0x77   : > { %2918 = vmatprep.subr.bf16.mxu1 %v3226_v1 }
  0x79   : > { %2907 = vmatpush3.bf16.msra.mxu0 %v3154_v27  ;;  %v3200_v27 = vld [vmem:[%s3821_s1 + $0xa8] sm:$0xff]  }
  0x7a   : > { %2919 = vmatpush3.bf16.msra.mxu1 %v3155_v30  ;;  %2924 = vmatprep.subr.bf16.mxu0 %v3226_v1  ;;  %v3204_v30 = vld [vmem:[%s3290_s29 + $0xc] ss:$0 sps:$4 sm:$0x66]  }
  0x7b   : > { %2936 = vmatprep.subr.bf16.mxu1 %v3226_v1 }
  0x7c   : > { %2909 = vmatmul.mubr.msk.bf16.vlgmr.msra.gmra.mxu0 %vm224_vm1, %v2522_v20  ;;  %v2580_v20 = vld [vmem:[%s3290_s29 + $0xc] sm:$0x3] }
  0x7d   : > { %2921 = vmatmul.mubr.msk.bf16.vlgmr.msra.gmra.mxu1 %vm224_vm1, %v1251_v31  ;;  %2925 = vmatpush3.bf16.msra.mxu0 %v3157_v32  ;;  %v2586_v22 = vcombine.low %v2580_v20, %v2580_v20  ;;  %v3201_v31 = vld [vmem:[%s3821_s1 + $0x80] sm:$0xff]  }
  0x7e   : > { %2937 = vmatpush3.bf16.msra.mxu1 %v3158_v33  ;;  %2926 = vmatprep.subr.bf16.mxu0 %v3226_v1  ;;  %v3202_v32 = vld [vmem:[%s3821_s1 + $0xa0] sm:$0xff]  }
  0x7f   : > { %2938 = vmatprep.subr.bf16.mxu1 %v3226_v1  ;;  %2932 = vmatprep.mubr.msk.bf16.mxu0 %vm3227_vm0, %v3226_v1  ;;  %v1983_v25 = vshll.u32 %v2586_v22, 16  ;;  %v1981_v28 = vshrl.u32 %v2586_v22, 16 }
  0x80   : > { %2944 = vmatprep.mubr.msk.bf16.mxu1 %vm3227_vm0, %v3226_v1 }
  0x81   : > { %2927 = vmatpush3.bf16.msra.mxu0 %v3159_v34  ;;  %v1985_v29 = vrot.slane %v1983_v25, 1  ;;  %v2067_v34 = vrot.slane %v3204_v30, 1  ;;  %v3804_v30 = vld [vmem:[%s3822_s2] ss:$0 sm:$0xff] }
  0x82   : > { %2939 = vmatpush3.bf16.msra.mxu1 %v3160_v35  ;;  %2928 = vmatprep.subr.bf16.mxu0 %v3226_v1  ;;  %v3203_v35 = vld [vmem:[%s3821_s1 + $0xd8] sm:$0xff]  }
  0x83   : > { %2940 = vmatprep.subr.bf16.mxu1 %v3226_v1  ;;  %v1986_v33 = vor.u32 %v1985_v29, %v1981_v28 }
  0x85   : > { %2929 = vmatpush3.bf16.msra.mxu0 %v3161_v36  ;;  %v3205_v36 = vld [vmem:[%s3821_s1 + $0xf8] sm:$0xff]  }
  0x86   : > { %2941 = vmatpush3.bf16.msra.mxu1 %v3162_v37  ;;  %2930 = vmatprep.subr.bf16.mxu0 %v3226_v1  ;;  %v2599_v37 = vld [vmem:[%s3290_s29 + $0x10] sm:$0x3] }
  0x87   : > { %2942 = vmatprep.subr.bf16.mxu1 %v3226_v1  ;;  %v2605_v38 = vcombine.low %v2599_v37, %v2599_v37 }
  0x89   : > { %2931 = vmatpush3.bf16.msra.mxu0 %v3163_v39  ;;  %v3206_v39 = vld [vmem:[%s3821_s1 + $0xd0] sm:$0xff]  }
  0x8a   : > { %2943 = vmatpush3.bf16.msra.mxu1 %v3164_v40  ;;  %2948 = vmatprep.subr.bf16.mxu0 %v3226_v1  ;;  %v3207_v40 = vld [vmem:[%s3821_s1 + $0xf0] sm:$0xff]  }
  0x8b   : > { %2960 = vmatprep.subr.bf16.mxu1 %v3226_v1 }
  0x8c   : > { %2933 = vmatmul.mubr.msk.bf16.vlgmr.msra.gmra.mxu0 %vm224_vm1, %v1332_v41  ;;  %v2228_v41 = vshll.u32 %v2605_v38, 16 }
  0x8d   : > { %2945 = vmatmul.mubr.msk.bf16.vlgmr.msra.gmra.mxu1 %vm224_vm1, %v2541_v43  ;;  %2949 = vmatpush3.bf16.msra.mxu0 %v3166_v42  ;;  %v3208_v42 = vld [vmem:[%s3821_s1 + $0xc8] sm:$0xff]  }
  0x8e   : > { %2961 = vmatpush3.bf16.msra.mxu1 %v3168_v44  ;;  %2950 = vmatprep.subr.bf16.mxu0 %v3226_v1  ;;  %v3209_v43 = vld [vmem:[%s3821_s1 + $0xe8] sm:$0xff]   ;;  %v2226_v44 = vshrl.u32 %v2605_v38, 16  ;;  %v2230_v45 = vrot.slane %v2228_v41, 1 }
  0x8f   : > { %2962 = vmatprep.subr.bf16.mxu1 %v3226_v1  ;;  %2956 = vmatprep.mubr.msk.bf16.mxu0 %vm3227_vm0, %v3226_v1 }
  0x90   : > { %2968 = vmatprep.mubr.msk.bf16.mxu1 %vm3227_vm0, %v3226_v1  ;;  %v2231_v48 = vor.u32 %v2230_v45, %v2226_v44 }
  0x91   : > { %2951 = vmatpush3.bf16.msra.mxu0 %v3169_v46  ;;  %v3210_v46 = vld [vmem:[%s3821_s1 + $0xc0] sm:$0xff]  }
  0x92   : > { %2963 = vmatpush3.bf16.msra.mxu1 %v3170_v47  ;;  %2952 = vmatprep.subr.bf16.mxu0 %v3226_v1  ;;  %v3211_v47 = vld [vmem:[%s3821_s1 + $0xe0] sm:$0xff]  }
  0x93   : > { %2964 = vmatprep.subr.bf16.mxu1 %v3226_v1 }
  0x95   : > { %2953 = vmatpush3.bf16.msra.mxu0 %v3171_v49  ;;  %v3213_v49 = vld [vmem:[%s3821_s1 + $0x118] sm:$0xff]  }
  0x96   : > { %2965 = vmatpush3.bf16.msra.mxu1 %v3172_v50  ;;  %2954 = vmatprep.subr.bf16.mxu0 %v3226_v1 }
  0x97   : > { %2966 = vmatprep.subr.bf16.mxu1 %v3226_v1 }
  0x99   : > { %2955 = vmatpush3.bf16.msra.mxu0 %v3173_v54 }
  0x9a   : > { %2967 = vmatpush3.bf16.msra.mxu1 %v3174_v55  ;;  %2972 = vmatprep.subr.bf16.mxu0 %v3226_v1 }
  0x9b   : > { %2984 = vmatprep.subr.bf16.mxu1 %v3226_v1 }
  0x9c   : > { %2957 = vmatmul.mubr.msk.bf16.vlgmr.msra.gmra.mxu0 %vm224_vm1, %v1496_v56 }
  0x9d   : > { %2969 = vmatmul.mubr.msk.bf16.vlgmr.msra.gmra.mxu1 %vm224_vm1, %v1577_v57  ;;  %2973 = vmatpush3.bf16.msra.mxu0 %v3175_v58  ;;  %v3215_v57 = vld [vmem:[%s3821_s1 + $0x108] sm:$0xff]  }
  0x9e   : > { %2985 = vmatpush3.bf16.msra.mxu1 %v3177_v59  ;;  %2974 = vmatprep.subr.bf16.mxu0 %v3226_v1 }
  0x9f   : > { %2986 = vmatprep.subr.bf16.mxu1 %v3226_v1  ;;  %2980 = vmatprep.mubr.msk.bf16.mxu0 %vm3227_vm0, %v3226_v1 }
  0xa0   : > { %2992 = vmatprep.mubr.msk.bf16.mxu1 %vm3227_vm0, %v3226_v1 }
  0xa1   : > { %2975 = vmatpush3.bf16.msra.mxu0 %v3178_v62 }
  0xa2   : > { %2987 = vmatpush3.bf16.msra.mxu1 %v3179_v63  ;;  %2976 = vmatprep.subr.bf16.mxu0 %v3226_v1 }
  0xa3   : > { %2988 = vmatprep.subr.bf16.mxu1 %v3226_v1 }
  0xa5   : > { %2977 = vmatpush3.bf16.msra.mxu0 %v3180_v2 }
  0xa6   : > { %2989 = vmatpush3.bf16.msra.mxu1 %v3181_v3  ;;  %2978 = vmatprep.subr.bf16.mxu0 %v3226_v1 }
  0xa7   : > { %2990 = vmatprep.subr.bf16.mxu1 %v3226_v1 }
  0xa9   : > { %2979 = vmatpush3.bf16.msra.mxu0 %v3182_v6 }
  0xaa   : > { %2991 = vmatpush3.bf16.msra.mxu1 %v3183_v7  ;;  %2996 = vmatprep.subr.bf16.mxu0 %v3226_v1 }
  0xab   : > { %3008 = vmatprep.subr.bf16.mxu1 %v3226_v1 }
  0xac   : > { %2981 = vmatmul.mubr.msk.bf16.vlgmr.msra.gmra.mxu0 %vm224_vm1, %v1676_v8 }
  0xad   : > { %2993 = vmatmul.mubr.msk.bf16.vlgmr.msra.gmra.mxu1 %vm224_vm1, %v2561_v60  ;;  %2997 = vmatpush3.bf16.msra.mxu0 %v3185_v9  ;;  %v3217_v60 = vld [vmem:[%s3290_s29 + $0x10] ss:$0 sps:$4 sm:$0x66]   ;;  %s3081_s29 = smul.u32 12, %s3825_s13 }
  0xae   : > { %3009 = vmatpush3.bf16.msra.mxu1 %v3186_v10  ;;  %2998 = vmatprep.subr.bf16.mxu0 %v3226_v1  ;;  %v2312_v62 = vrot.slane %v3217_v60, 1 }
  0xaf   : > { %3010 = vmatprep.subr.bf16.mxu1 %v3226_v1  ;;  %3004 = vmatprep.mubr.msk.bf16.mxu0 %vm3227_vm0, %v3226_v1  ;;  %s3810_s21 = scalar_lea.vmem %s3823_s3, %s3081_s29 }
  0xb0   : > { %3016 = vmatprep.mubr.msk.bf16.mxu1 %vm3227_vm0, %v3226_v1 }
  0xb1   : > { %2999 = vmatpush3.bf16.msra.mxu0 %v3187_v11 }
  0xb2   : > { %3011 = vmatpush3.bf16.msra.mxu1 %v3188_v12  ;;  %3000 = vmatprep.subr.bf16.mxu0 %v3226_v1 }
  0xb3   : > { %3012 = vmatprep.subr.bf16.mxu1 %v3226_v1 }
  0xb5   : > { %3001 = vmatpush3.bf16.msra.mxu0 %v3189_v13 }
  0xb6   : > { %3013 = vmatpush3.bf16.msra.mxu1 %v3190_v14  ;;  %3002 = vmatprep.subr.bf16.mxu0 %v3226_v1 }
  0xb7   : > { %3014 = vmatprep.subr.bf16.mxu1 %v3226_v1 }
  0xb9   : > { %3003 = vmatpush3.bf16.msra.mxu0 %v3191_v16 }
  0xba   : > { %3015 = vmatpush3.bf16.msra.mxu1 %v3192_v17  ;;  %3020 = vmatprep.subr.bf16.mxu0 %v3226_v1 }
  0xbb   : > { %3032 = vmatprep.subr.bf16.mxu1 %v3226_v1 }
  0xbc   : > { %3005 = vmatmul.mubr.msk.bf16.vlgmr.msra.gmra.mxu0 %vm224_vm1, %v1823_v18 }
  0xbd   : > { %3017 = vmatmul.mubr.msk.bf16.vlgmr.msra.gmra.mxu1 %vm224_vm1, %v2580_v20  ;;  %3021 = vmatpush3.bf16.msra.mxu0 %v3194_v19 }
  0xbe   : > { %3033 = vmatpush3.bf16.msra.mxu1 %v3196_v21  ;;  %3022 = vmatprep.subr.bf16.mxu0 %v3226_v1 }
  0xbf   : > { %3034 = vmatprep.subr.bf16.mxu1 %v3226_v1  ;;  %3028 = vmatprep.mubr.msk.bf16.mxu0 %vm3227_vm0, %v3226_v1 }
  0xc0   : > { %3040 = vmatprep.mubr.msk.bf16.mxu1 %vm3227_vm0, %v3226_v1 }
  0xc1   : > { %3023 = vmatpush3.bf16.msra.mxu0 %v3197_v23 }
  0xc2   : > { %3035 = vmatpush3.bf16.msra.mxu1 %v3198_v24  ;;  %3024 = vmatprep.subr.bf16.mxu0 %v3226_v1 }
  0xc3   : > { %3036 = vmatprep.subr.bf16.mxu1 %v3226_v1 }
  0xc5   : > { %3025 = vmatpush3.bf16.msra.mxu0 %v3199_v26 }
  0xc6   : > { %3037 = vmatpush3.bf16.msra.mxu1 %v3200_v27  ;;  %3026 = vmatprep.subr.bf16.mxu0 %v3226_v1 }
  0xc7   : > { %3038 = vmatprep.subr.bf16.mxu1 %v3226_v1 }
  0xc9   : > { %3027 = vmatpush3.bf16.msra.mxu0 %v3201_v31 }
  0xca   : > { %3039 = vmatpush3.bf16.msra.mxu1 %v3202_v32  ;;  %3044 = vmatprep.subr.bf16.mxu0 %v3226_v1 }
  0xcb   : > { %3056 = vmatprep.subr.bf16.mxu1 %v3226_v1 }
  0xcc   : > { %3029 = vmatmul.mubr.msk.bf16.vlgmr.msra.gmra.mxu0 %vm224_vm1, %v1986_v33 }
  0xcd   : > { %3041 = vmatmul.mubr.msk.bf16.vlgmr.msra.gmra.mxu1 %vm224_vm1, %v2067_v34  ;;  %3045 = vmatpush3.bf16.msra.mxu0 %v3203_v35 }
  0xce   : > { %3057 = vmatpush3.bf16.msra.mxu1 %v3205_v36  ;;  %3046 = vmatprep.subr.bf16.mxu0 %v3226_v1 }
  0xcf   : > { %3058 = vmatprep.subr.bf16.mxu1 %v3226_v1  ;;  %3052 = vmatprep.mubr.msk.bf16.mxu0 %vm3227_vm0, %v3226_v1 }
  0xd0   : > { %3064 = vmatprep.mubr.msk.bf16.mxu1 %vm3227_vm0, %v3226_v1 }
  0xd1   : > { %3047 = vmatpush3.bf16.msra.mxu0 %v3206_v39 }
  0xd2   : > { %3059 = vmatpush3.bf16.msra.mxu1 %v3207_v40  ;;  %3048 = vmatprep.subr.bf16.mxu0 %v3226_v1 }
  0xd3   : > { %3060 = vmatprep.subr.bf16.mxu1 %v3226_v1 }
  0xd5   : > { %3049 = vmatpush3.bf16.msra.mxu0 %v3208_v42 }
  0xd6   : > { %3061 = vmatpush3.bf16.msra.mxu1 %v3209_v43  ;;  %3050 = vmatprep.subr.bf16.mxu0 %v3226_v1 }
  0xd7   : > { %3062 = vmatprep.subr.bf16.mxu1 %v3226_v1 }
  0xd9   : > { %3051 = vmatpush3.bf16.msra.mxu0 %v3210_v46 }
  0xda   : > { %3063 = vmatpush3.bf16.msra.mxu1 %v3211_v47  ;;  %3068 = vmatprep.subr.bf16.mxu0 %v3226_v1 }
  0xdc   : > { %v262_v50 = vpop.f32.mrf.mxu0  ;;  %3053 = vmatmul.mubr.msk.bf16.vlgmr.msra.gmra.mxu0 %vm224_vm1, %v2599_v37 }
  0xdd   : > { %v329_v51 = vpop.f32.mrf.mxu1  ;;  %3065 = vmatmul.mubr.msk.bf16.vlgmr.msra.gmra.mxu1 %vm224_vm1, %v2231_v48  ;;  %3069 = vmatpush3.bf16.msra.mxu0 %v3213_v49 }
  0xde   : > { %3076 = vmatprep.mubr.msk.bf16.mxu0 %vm3227_vm0, %v3226_v1  ;;  %v2766_v53 = vpop.f32.mrf.mxu0  ;;  %3070 = vmatprep.subr.bf16.mxu0 %v3226_v1  ;;  %v330_v15 = vadd.f32 %v329_v51, %v262_v50 }
  0xdf   : > { %v2778_v54 = vpop.f32.mrf.mxu1 }
  0xe0   : > { %v265_v55 = vpop.f32.mrf.mxu0 }
  0xe1   : > { %v332_v56 = vpop.f32.mrf.mxu1  ;;  %3071 = vmatpush3.bf16.msra.mxu0 %v3214_v52 }
  0xe2   : > { %v2767_v58 = vpop.f32.mrf.mxu0  ;;  %3072 = vmatprep.subr.bf16.mxu0 %v3226_v1 }
  0xe3   : > { %v2779_v59 = vpop.f32.mrf.mxu1 }
  0xe5   : > { %3073 = vmatpush3.bf16.msra.mxu0 %v3215_v57 }
  0xe6   : > { %3074 = vmatprep.subr.bf16.mxu0 %v3226_v1 }
  0xe9   : > { %3075 = vmatpush3.bf16.msra.mxu0 %v3216_v61 }
  0xec   : > { %v409_v63 = vpop.f32.mrf.mxu0  ;;  %3077 = vmatmul.mubr.msk.bf16.vlgmr.msra.gmra.mxu0 %vm224_vm1, %v2312_v62 }
  0xed   : > { %v487_v0 = vpop.f32.mrf.mxu1  ;;  %v415_v16 = vadd.f32 %v409_v63, %v330_v15 }
  0xee   : > { %v2790_v2 = vpop.f32.mrf.mxu0 }
  0xef   : > { %v2802_v3 = vpop.f32.mrf.mxu1  ;;  %v493_v21 = vadd.f32 %v487_v0, %v415_v16 }
  0xf0   : > { %v412_v4 = vpop.f32.mrf.mxu0 }
  0xf1   : > { %v490_v5 = vpop.f32.mrf.mxu1 }
  0xf2   : > { %v2791_v6 = vpop.f32.mrf.mxu0 }
  0xf3   : > { %v2803_v7 = vpop.f32.mrf.mxu1 }
  0xfc   : > { %v573_v8 = vpop.f32.mrf.mxu0 }
  0xfd   : > { %v654_v9 = vpop.f32.mrf.mxu1  ;;  %v579_v24 = vadd.f32 %v573_v8, %v493_v21 }
  0xfe   : > { %v2814_v10 = vpop.f32.mrf.mxu0 }
  0xff   : > { %v2826_v11 = vpop.f32.mrf.mxu1  ;;  %v660_v27 = vadd.f32 %v654_v9, %v579_v24 }
 0x100   : > { %v576_v12 = vpop.f32.mrf.mxu0 }
 0x101   : > { %v657_v13 = vpop.f32.mrf.mxu1 }
 0x102   : > { %v2815_v14 = vpop.f32.mrf.mxu0 }
 0x103   : > { %v2827_v1 = vpop.f32.mrf.mxu1 }
 0x10c   : > { %v732_v17 = vpop.f32.mrf.mxu0 }
 0x10d   : > { %v818_v18 = vpop.f32.mrf.mxu1  ;;  %v738_v28 = vadd.f32 %v732_v17, %v660_v27 }
 0x10e   : > { %v2838_v19 = vpop.f32.mrf.mxu0 }
 0x10f   : > { %v2850_v20 = vpop.f32.mrf.mxu1  ;;  %v824_v29 = vadd.f32 %v818_v18, %v738_v28 }
 0x110   : > { %v735_v22 = vpop.f32.mrf.mxu0 }
 0x111   : > { %v821_v23 = vpop.f32.mrf.mxu1 }
 0x112   : > { %v2839_v25 = vpop.f32.mrf.mxu0 }
 0x113   : > { %v2851_v26 = vpop.f32.mrf.mxu1 }
 0x11c   : > { %v899_v31 = vpop.f32.mrf.mxu0 }
 0x11d   : > { %v1003_v32 = vpop.f32.mrf.mxu1  ;;  %v905_v33 = vadd.f32 %v899_v31, %v824_v29 }
 0x11e   : > { %v2862_v34 = vpop.f32.mrf.mxu0 }
 0x11f   : > { %v2874_v35 = vpop.f32.mrf.mxu1  ;;  %v912_v36 = vadd.f32 %v3804_v30, %v905_v33 }
 0x120   : > { %v902_v37 = vpop.f32.mrf.mxu0 }
 0x121   : > { %v1006_v38 = vpop.f32.mrf.mxu1  ;;  %v913_v39 = vmax.f32 %v912_v36, 0.0 }
 0x122   : > { %v2863_v40 = vpop.f32.mrf.mxu0 }
 0x123   : > { %v2875_v41 = vpop.f32.mrf.mxu1  ;;  %914 = vst [vmem:[%s3810_s21] sm:$0x7] %v913_v39 }
 0x12c   : > { %v1070_v42 = vpop.f32.mrf.mxu0 }
 0x12d   : > { %v1150_v43 = vpop.f32.mrf.mxu1  ;;  %v1071_v58 = vadd.f32 %v1070_v42, %v1003_v32 }
 0x12e   : > { %v2886_v44 = vpop.f32.mrf.mxu0 }
 0x12f   : > { %v2898_v45 = vpop.f32.mrf.mxu1  ;;  %v1156_v63 = vadd.f32 %v1150_v43, %v1071_v58 }
 0x130   : > { %v1073_v46 = vpop.f32.mrf.mxu0 }
 0x131   : > { %v1153_v47 = vpop.f32.mrf.mxu1 }
 0x132   : > { %v2887_v48 = vpop.f32.mrf.mxu0 }
 0x133   : > { %v2899_v49 = vpop.f32.mrf.mxu1 }
 0x13c   : > { %v1227_v50 = vpop.f32.mrf.mxu0 }
 0x13d   : > { %v1313_v51 = vpop.f32.mrf.mxu1  ;;  %v1233_v3 = vadd.f32 %v1227_v50, %v1156_v63 }
 0x13e   : > { %v2910_v52 = vpop.f32.mrf.mxu0 }
 0x13f   : > { %v2922_v53 = vpop.f32.mrf.mxu1  ;;  %v1319_v6 = vadd.f32 %v1313_v51, %v1233_v3 }
 0x140   : > { %v1230_v54 = vpop.f32.mrf.mxu0 }
 0x141   : > { %v1316_v55 = vpop.f32.mrf.mxu1 }
 0x142   : > { %v2911_v56 = vpop.f32.mrf.mxu0 }
 0x143   : > { %v2923_v57 = vpop.f32.mrf.mxu1 }
 0x14c   : > { %v1394_v59 = vpop.f32.mrf.mxu0 }
 0x14d   : > { %v1472_v60 = vpop.f32.mrf.mxu1  ;;  %v1400_v7 = vadd.f32 %v1394_v59, %v1319_v6 }
 0x14e   : > { %v2934_v61 = vpop.f32.mrf.mxu0 }
 0x14f   : > { %v2946_v62 = vpop.f32.mrf.mxu1  ;;  %v1478_v8 = vadd.f32 %v1472_v60, %v1400_v7 }
 0x150   : > { %v1397_v0 = vpop.f32.mrf.mxu0 }
 0x151   : > { %v1475_v2 = vpop.f32.mrf.mxu1 }
 0x152   : > { %v2935_v4 = vpop.f32.mrf.mxu0 }
 0x153   : > { %v2947_v5 = vpop.f32.mrf.mxu1 }
 0x15c   : > { %v1558_v9 = vpop.f32.mrf.mxu0 }
 0x15d   : > { %v1639_v10 = vpop.f32.mrf.mxu1  ;;  %v1564_v11 = vadd.f32 %v1558_v9, %v1478_v8 }
 0x15e   : > { %v2958_v12 = vpop.f32.mrf.mxu0 }
 0x15f   : > { %v2970_v13 = vpop.f32.mrf.mxu1  ;;  %v1645_v14 = vadd.f32 %v1639_v10, %v1564_v11 }
 0x160   : > { %v1561_v1 = vpop.f32.mrf.mxu0 }
 0x161   : > { %v1642_v15 = vpop.f32.mrf.mxu1  ;;  %v1646_v16 = vadd.f32 %v3804_v30, %v1645_v14 }
 0x162   : > { %v2959_v17 = vpop.f32.mrf.mxu0 }
 0x163   : > { %v2971_v18 = vpop.f32.mrf.mxu1  ;;  %v1647_v19 = vmax.f32 %v1646_v16, 0.0 }
 0x165   : > { %2560 = vst [vmem:[%s3810_s21 + $0x4] sm:$0x7] %v1647_v19 }
 0x16c   : > { %v1738_v20 = vpop.f32.mrf.mxu0 }
 0x16d   : > { %v1805_v21 = vpop.f32.mrf.mxu1 }
 0x16e   : > { %v2982_v22 = vpop.f32.mrf.mxu0  ;;  %v1806_v45 = vadd.f32 %v1805_v21, %v1738_v20 }
 0x16f   : > { %v2994_v23 = vpop.f32.mrf.mxu1 }
 0x170   : > { %v1741_v24 = vpop.f32.mrf.mxu0 }
 0x171   : > { %v1808_v25 = vpop.f32.mrf.mxu1 }
 0x172   : > { %v2983_v26 = vpop.f32.mrf.mxu0 }
 0x173   : > { %v2995_v27 = vpop.f32.mrf.mxu1 }
 0x17c   : > { %v1885_v28 = vpop.f32.mrf.mxu0 }
 0x17d   : > { %v1962_v29 = vpop.f32.mrf.mxu1  ;;  %v1891_v46 = vadd.f32 %v1885_v28, %v1806_v45 }
 0x17e   : > { %v3006_v31 = vpop.f32.mrf.mxu0 }
 0x17f   : > { %v3018_v32 = vpop.f32.mrf.mxu1  ;;  %v1968_v51 = vadd.f32 %v1962_v29, %v1891_v46 }
 0x180   : > { %v1888_v33 = vpop.f32.mrf.mxu0 }
 0x181   : > { %v1965_v34 = vpop.f32.mrf.mxu1 }
 0x182   : > { %v3007_v35 = vpop.f32.mrf.mxu0 }
 0x183   : > { %v3019_v36 = vpop.f32.mrf.mxu1 }
 0x18c   : > { %v2048_v37 = vpop.f32.mrf.mxu0 }
 0x18d   : > { %v2129_v38 = vpop.f32.mrf.mxu1  ;;  %v2054_v54 = vadd.f32 %v2048_v37, %v1968_v51 }
 0x18e   : > { %v3030_v39 = vpop.f32.mrf.mxu0 }
 0x18f   : > { %v3042_v40 = vpop.f32.mrf.mxu1  ;;  %v2135_v57 = vadd.f32 %v2129_v38, %v2054_v54 }
 0x190   : > { %v2051_v41 = vpop.f32.mrf.mxu0 }
 0x191   : > { %v2132_v42 = vpop.f32.mrf.mxu1 }
 0x192   : > { %v3031_v43 = vpop.f32.mrf.mxu0 }
 0x193   : > { %v3043_v44 = vpop.f32.mrf.mxu1 }
 0x19c   : > { %v2207_v47 = vpop.f32.mrf.mxu0 }
 0x19d   : > { %v2293_v48 = vpop.f32.mrf.mxu1  ;;  %v2213_v58 = vadd.f32 %v2207_v47, %v2135_v57 }
 0x19e   : > { %v3054_v49 = vpop.f32.mrf.mxu0 }
 0x19f   : > { %v3066_v50 = vpop.f32.mrf.mxu1  ;;  %v2299_v59 = vadd.f32 %v2293_v48, %v2213_v58 }
 0x1a0   : > { %v2210_v52 = vpop.f32.mrf.mxu0 }
 0x1a1   : > { %v2296_v53 = vpop.f32.mrf.mxu1 }
 0x1a2   : > { %v3055_v55 = vpop.f32.mrf.mxu0 }
 0x1a3   : > { %v3067_v56 = vpop.f32.mrf.mxu1 }
 0x1ac   : > { %v2374_v60 = vpop.f32.mrf.mxu0 }
 0x1ad   : > { %v2380_v61 = vadd.f32 %v2374_v60, %v2299_v59 }
 0x1ae   : > { %v3078_v62 = vpop.f32.mrf.mxu0 }
 0x1af   : > { %v2381_v63 = vadd.f32 %v3804_v30, %v2380_v61 }
 0x1b0   : > { %v2377_v0 = vpop.f32.mrf.mxu0 }
 0x1b1   : > { %v2382_v2 = vmax.f32 %v2381_v63, 0.0 }
 0x1b2   : > { %v3079_v3 = vpop.f32.mrf.mxu0 }
 0x1b3   : > { %2618 = vst [vmem:[%s3810_s21 + $0x8] sm:$0x7] %v2382_v2 }
 0x1b4 PF: > { %s13_s12 = sadd.s32 1, %s3224_s12  }
 0x1b5   : > { %p10_p4 = scmp.ge.s32.totalorder %s13_s12, 4  }
 0x1b7   :  { %12 = sbr.rel (!%p10_p4) target bundleno = 1 (0x1), region = 68 }

// kernel: _lambda_.5
= control target key start
LH: loop header
LB: loop body
LE: loop exit
PB: predicated region body
PF: predicated region fallthrough
CT: control target
= control target key end

     0   :  { %s3475_s12 = smov 0   ;;  %s4230_s0 = inlined_call_operand.vmem [shape: bf16[2,6,6,128], index: 0, kind: input, shape index: {}]   ;;  %s4231_s1 = inlined_call_operand.vmem [shape: bf16[512,128], index: 1, kind: input, shape index: {}]   ;;  %s4232_s2 = inlined_call_operand.vmem [shape: f32[1,128], index: 2, kind: input, shape index: {}]   ;;  %s4233_s3 = inlined_call_operand.vmem [shape: bf16[2,5,5,128], index: 3, kind: output, shape index: {}]  }
   0x1 LB: > { %s2486_s13 = sadd.s32 4294967295, %s3451_s12   ;;  %p2490_p0 = scmp.ge.s32.totalorder %s3451_s12, 1  ;;  %s3451_s12 = sphi %s3475_s12, %s13_s12  }
   0x2   : > { %p137_p1 = scmp.lt.s32.totalorder %s3451_s12, 3 }
   0x4   : > { %p138_p2 = pnand %p2490_p0, %p137_p1 }
   0x5   : > { %p161_p3 = scmp.lt.s32.totalorder (!%p138_p2), %s2486_s13, 1 }
   0x6   : > { %141 = sbr.rel (%p138_p2) target bundleno = 537 (0x219), region = 32 }
   0xb   : > { %v3275_v0 = vld [vmem:[%s4231_s1 + $0x78] sm:$0xff]   ;;  %v3453_v1 = vmov 0.0   ;;  %v3277_v3 = vld [vmem:[%s4231_s1 + $0x70] sm:$0xff]   ;;  %vm3454_vm0 = vmmov 0   ;;  %s4237_s13 = smov (!%p161_p3, %s2486_s13), 1  ;;  %v3279_v5 = vld [vmem:[%s4231_s1 + $0x68] sm:$0xff]  }
   0xc   : > { %2863 = vmatprep.subr.bf16.mxu0 %v3453_v1  ;;  %2883 = vmatprep.subr.bf16.mxu1 %v3453_v1  ;;  %v3276_v2 = vld [vmem:[%s4231_s1 + $0x38] sm:$0xff]   ;;  %v3278_v4 = vld [vmem:[%s4231_s1 + $0x30] sm:$0xff]   ;;  %v3280_v6 = vld [vmem:[%s4231_s1 + $0x28] sm:$0xff]   ;;  %s3263_s26 = smul.u32 24, %s4237_s13  ;;  %vm625_vm1 = vcmask 1042432  }
   0xd   : > { %2864 = vmatpush3.bf16.msra.mxu0 %v3275_v0  ;;  %2879 = vmatprep.mubr.msk.bf16.mxu0 %vm3454_vm0, %v3453_v1  ;;  %v3281_v7 = vld [vmem:[%s4231_s1 + $0x60] sm:$0xff]   ;;  %v3283_v9 = vld [vmem:[%s4231_s1 + $0x58] sm:$0xff]   ;;  %v3285_v13 = vld [vmem:[%s4231_s1 + $0x50] sm:$0xff]   ;;  %s3264_s11 = smul.u32 20, %s4237_s13  ;;  %vm626_vm2 = vsmask.f32 2304 }
   0xe   : > { %2884 = vmatpush3.bf16.msra.mxu1 %v3276_v2  ;;  %2865 = vmatprep.subr.bf16.mxu0 %v3453_v1  ;;  %v3282_v8 = vld [vmem:[%s4231_s1 + $0x20] sm:$0xff]   ;;  %s3525_s6 = scalar_lea.vmem %s4230_s0, %s3263_s26  ;;  %v3284_v10 = vld [vmem:[%s4231_s1 + $0x18] sm:$0xff]   ;;  %v3286_v14 = vld [vmem:[%s4231_s1 + $0x10] sm:$0xff]  }
   0xf   : > { %2885 = vmatprep.subr.bf16.mxu1 %v3453_v1  ;;  %2899 = vmatprep.mubr.msk.bf16.mxu1 %vm3454_vm0, %v3453_v1  ;;  %v173_v11 = vld [vmem:[%s3525_s6] sm:$0x7]  ;;  %v3287_v16 = vld [vmem:[%s4231_s1 + $0x48] sm:$0xff]   ;;  %v3292_v23 = vld [vmem:[%s4231_s1 + $0xb8] sm:$0xff]   ;;  %s4078_s21 = scalar_lea.vmem %s4233_s3, %s3264_s11 }
  0x10   : > { %v2493_v12 = vcombine.low %v173_v11, %v173_v11  ;;  %v3288_v17 = vld [vmem:[%s4231_s1 + $0x8] sm:$0xff]   ;;  %v3289_v20 = vld [vmem:[%s4231_s1 + $0x40] sm:$0xff]   ;;  %v3293_v24 = vld [vmem:[%s4231_s1 + $0xf8] sm:$0xff]  }
  0x11   : > { %2866 = vmatpush3.bf16.msra.mxu0 %v3277_v3  ;;  %v3290_v21 = vld [vmem:[%s4231_s1] sm:$0xff]   ;;  %v3294_v25 = vld [vmem:[%s4231_s1 + $0xb0] sm:$0xff]   ;;  %v3296_v27 = vld [vmem:[%s4231_s1 + $0xa8] sm:$0xff]  }
  0x12   : > { %2886 = vmatpush3.bf16.msra.mxu1 %v3278_v4  ;;  %2867 = vmatprep.subr.bf16.mxu0 %v3453_v1  ;;  %v212_v15 = vshll.u32 %v2493_v12, 16  ;;  %v210_v18 = vshrl.u32 %v2493_v12, 16  ;;  %v3295_v26 = vld [vmem:[%s4231_s1 + $0xf0] sm:$0xff]   ;;  %v3297_v28 = vld [vmem:[%s4231_s1 + $0xe8] sm:$0xff]   ;;  %v3298_v29 = vld [vmem:[%s4231_s1 + $0xa0] sm:$0xff]  }
  0x13   : > { %2887 = vmatprep.subr.bf16.mxu1 %v3453_v1  ;;  %v3299_v30 = vld [vmem:[%s4231_s1 + $0xe0] sm:$0xff]   ;;  %v3300_v31 = vld [vmem:[%s4231_s1 + $0x98] sm:$0xff]   ;;  %v3302_v34 = vld [vmem:[%s4231_s1 + $0x90] sm:$0xff]  }
  0x14   : > { %v214_v19 = vrot.slane %v212_v15, 1  ;;  %v3301_v32 = vld [vmem:[%s4231_s1 + $0xd8] sm:$0xff]   ;;  %v2510_v33 = vld [vmem:[%s3525_s6 + $0x4] sm:$0x7]  ;;  %v3303_v36 = vld [vmem:[%s4231_s1 + $0xd0] sm:$0xff]  }
  0x15   : > { %2868 = vmatpush3.bf16.msra.mxu0 %v3279_v5  ;;  %v2519_v35 = vcombine.low %v2510_v33, %v2510_v33  ;;  %v3304_v37 = vld [vmem:[%s4231_s1 + $0x88] sm:$0xff]   ;;  %v3306_v40 = vld [vmem:[%s4231_s1 + $0x80] sm:$0xff]   ;;  %v3309_v45 = vld [vmem:[%s4231_s1 + $0x78] sm:$0xff]  }
  0x16   : > { %2888 = vmatpush3.bf16.msra.mxu1 %v3280_v6  ;;  %2869 = vmatprep.subr.bf16.mxu0 %v3453_v1  ;;  %v215_v22 = vor.u32 %v214_v19, %v210_v18  ;;  %v3305_v39 = vld [vmem:[%s4231_s1 + $0xc8] sm:$0xff]   ;;  %v3307_v43 = vld [vmem:[%s4231_s1 + $0xc0] sm:$0xff]   ;;  %v3310_v46 = vld [vmem:[%s4231_s1 + $0x38] sm:$0xff]  }
  0x17   : > { %2889 = vmatprep.subr.bf16.mxu1 %v3453_v1  ;;  %v522_v38 = vshll.u32 %v2519_v35, 16  ;;  %v520_v41 = vshrl.u32 %v2519_v35, 16  ;;  %v3311_v47 = vld [vmem:[%s4231_s1 + $0x70] sm:$0xff]   ;;  %v3313_v49 = vld [vmem:[%s4231_s1 + $0x68] sm:$0xff]   ;;  %v3315_v51 = vld [vmem:[%s4231_s1 + $0x60] sm:$0xff]  }
  0x18   : > { %v3312_v48 = vld [vmem:[%s4231_s1 + $0x30] sm:$0xff]   ;;  %v3314_v50 = vld [vmem:[%s4231_s1 + $0x28] sm:$0xff]   ;;  %v3316_v52 = vld [vmem:[%s4231_s1 + $0x20] sm:$0xff]  }
  0x19   : > { %2870 = vmatpush3.bf16.msra.mxu0 %v3281_v7  ;;  %v524_v42 = vrot.slane %v522_v38, 1  ;;  %v3317_v53 = vld [vmem:[%s4231_s1 + $0x58] sm:$0xff]   ;;  %v2529_v54 = vld [vmem:[%s3525_s6 + $0x4] sm:$0x7]  ;;  %v3319_v57 = vld [vmem:[%s4231_s1 + $0x50] sm:$0xff]  }
  0x1a   : > { %2890 = vmatpush3.bf16.msra.mxu1 %v3282_v8  ;;  %2871 = vmatprep.subr.bf16.mxu0 %v3453_v1  ;;  %v3318_v55 = vld [vmem:[%s4231_s1 + $0x18] sm:$0xff]   ;;  %v2530_v56 = vcombine.low %v2529_v54, %v2529_v54  ;;  %v3320_v58 = vld [vmem:[%s4231_s1 + $0x10] sm:$0xff]   ;;  %v3321_v60 = vld [vmem:[%s4231_s1 + $0x48] sm:$0xff]  }
  0x1b   : > { %2891 = vmatprep.subr.bf16.mxu1 %v3453_v1  ;;  %v525_v44 = vor.u32 %v524_v42, %v520_v41  ;;  %v3322_v61 = vld [vmem:[%s4231_s1 + $0x8] sm:$0xff]   ;;  %v3323_v0 = vld [vmem:[%s4231_s1 + $0x40] sm:$0xff]   ;;  %v3326_v4 = vld [vmem:[%s4231_s1 + $0xb8] sm:$0xff]  }
  0x1c   : > { %v670_v59 = vshll.u32 %v2530_v56, 16  ;;  %v668_v62 = vshrl.u32 %v2530_v56, 16  ;;  %v3324_v2 = vld [vmem:[%s4231_s1] sm:$0xff]   ;;  %v3327_v5 = vld [vmem:[%s4231_s1 + $0xf8] sm:$0xff]   ;;  %v3328_v6 = vld [vmem:[%s4231_s1 + $0xb0] sm:$0xff]  }
  0x1d   : > { %2872 = vmatpush3.bf16.msra.mxu0 %v3283_v9  ;;  %v3329_v7 = vld [vmem:[%s4231_s1 + $0xf0] sm:$0xff]   ;;  %v3330_v8 = vld [vmem:[%s4231_s1 + $0xa8] sm:$0xff]   ;;  %v3334_v12 = vld [vmem:[%s4231_s1 + $0x98] sm:$0xff]  }
  0x1e   : > { %2892 = vmatpush3.bf16.msra.mxu1 %v3284_v10  ;;  %2873 = vmatprep.subr.bf16.mxu0 %v3453_v1  ;;  %v672_v63 = vrot.slane %v670_v59, 1  ;;  %v3331_v9 = vld [vmem:[%s4231_s1 + $0xe8] sm:$0xff]   ;;  %v3332_v10 = vld [vmem:[%s4231_s1 + $0xa0] sm:$0xff]   ;;  %v3336_v15 = vld [vmem:[%s4231_s1 + $0x90] sm:$0xff]  }
  0x1f   : > { %2893 = vmatprep.subr.bf16.mxu1 %v3453_v1  ;;  %v3338_v18 = vld [vmem:[%s4231_s1 + $0x88] sm:$0xff]   ;;  %v3352_v35 = vld [vmem:[%s4231_s1 + $0x18] sm:$0xff]   ;;  %v3354_v38 = vld [vmem:[%s4231_s1 + $0x10] sm:$0xff]  }
  0x20   : > { %v673_v3 = vor.u32 %v672_v63, %v668_v62  ;;  %v3356_v41 = vld [vmem:[%s4231_s1 + $0x8] sm:$0xff]   ;;  %v3368_v56 = vld [vmem:[%s4231_s1 + $0x98] sm:$0xff]   ;;  %v3370_v59 = vld [vmem:[%s4231_s1 + $0x90] sm:$0xff]  }
  0x21   : > { %2874 = vmatpush3.bf16.msra.mxu0 %v3285_v13  ;;  %v3335_v13 = vld [vmem:[%s4231_s1 + $0xd8] sm:$0xff]   ;;  %v3372_v62 = vld [vmem:[%s4231_s1 + $0x88] sm:$0xff]   ;;  %vm4089_vm3 = vmand %vm625_vm1, %vm626_vm2 }
  0x22   : > { %2894 = vmatpush3.bf16.msra.mxu1 %v3286_v14  ;;  %2875 = vmatprep.subr.bf16.mxu0 %v3453_v1  ;;  %v2547_v14 = vld [vmem:[%s3525_s6 + $0x8] sm:$0x7] }
  0x23   : > { %2895 = vmatprep.subr.bf16.mxu1 %v3453_v1 }
  0x25   : > { %2876 = vmatpush3.bf16.msra.mxu0 %v3287_v16  ;;  %v2556_v16 = vcombine.low %v2547_v14, %v2547_v14 }
  0x26   : > { %2896 = vmatpush3.bf16.msra.mxu1 %v3288_v17  ;;  %2877 = vmatprep.subr.bf16.mxu0 %v3453_v1  ;;  %v3337_v17 = vld [vmem:[%s4231_s1 + $0xd0] sm:$0xff]  }
  0x27   : > { %2897 = vmatprep.subr.bf16.mxu1 %v3453_v1  ;;  %v980_v19 = vshll.u32 %v2556_v16, 16 }
  0x29   : > { %2878 = vmatpush3.bf16.msra.mxu0 %v3289_v20  ;;  %v3339_v20 = vld [vmem:[%s4231_s1 + $0xc8] sm:$0xff]  }
  0x2a   : > { %2898 = vmatpush3.bf16.msra.mxu1 %v3290_v21  ;;  %2903 = vmatprep.subr.bf16.mxu0 %v3453_v1  ;;  %v3340_v21 = vld [vmem:[%s4231_s1 + $0x80] sm:$0xff]  }
  0x2b   : > { %2923 = vmatprep.subr.bf16.mxu1 %v3453_v1 }
  0x2c   : > { %2880 = vmatmul.mubr.bf16.vlgmr.msra.gmra.mxu0 %v215_v22  ;;  %v978_v22 = vshrl.u32 %v2556_v16, 16  ;;  %v2605_v16 = vld [vmem:[%s3525_s6 + $0xc] sm:$0x7] }
  0x2d   : > { %2900 = vmatmul.mubr.bf16.vlgmr.msra.gmra.mxu1 %v173_v11  ;;  %2904 = vmatpush3.bf16.msra.mxu0 %v3292_v23  ;;  %v3333_v11 = vld [vmem:[%s4231_s1 + $0xe0] sm:$0xff]   ;;  %v982_v23 = vrot.slane %v980_v19, 1  ;;  %v3387_v19 = vld [vmem:[%s4231_s1 + $0x50] sm:$0xff]  }
  0x2e   : > { %2924 = vmatpush3.bf16.msra.mxu1 %v3293_v24  ;;  %2905 = vmatprep.subr.bf16.mxu0 %v3453_v1  ;;  %v3341_v24 = vld [vmem:[%s4231_s1 + $0xc0] sm:$0xff]  }
  0x2f   : > { %2925 = vmatprep.subr.bf16.mxu1 %v3453_v1  ;;  %2919 = vmatprep.mubr.msk.bf16.mxu0 %vm3454_vm0, %v3453_v1 }
  0x30   : > { %2939 = vmatprep.mubr.msk.bf16.mxu1 %vm3454_vm0, %v3453_v1 }
  0x31   : > { %2906 = vmatpush3.bf16.msra.mxu0 %v3294_v25  ;;  %v983_v25 = vor.u32 %v982_v23, %v978_v22  ;;  %v3389_v22 = vld [vmem:[%s4231_s1 + $0x48] sm:$0xff]  }
  0x32   : > { %2926 = vmatpush3.bf16.msra.mxu1 %v3295_v26  ;;  %2907 = vmatprep.subr.bf16.mxu0 %v3453_v1  ;;  %v3343_v26 = vld [vmem:[%s4231_s1 + $0x78] sm:$0xff]   ;;  %v3390_v23 = vld [vmem:[%s4231_s1 + $0x8] sm:$0xff]  }
  0x33   : > { %2927 = vmatprep.subr.bf16.mxu1 %v3453_v1 }
  0x35   : > { %2908 = vmatpush3.bf16.msra.mxu0 %v3296_v27  ;;  %v3344_v27 = vld [vmem:[%s4231_s1 + $0x38] sm:$0xff]  }
  0x36   : > { %2928 = vmatpush3.bf16.msra.mxu1 %v3297_v28  ;;  %2909 = vmatprep.subr.bf16.mxu0 %v3453_v1  ;;  %v3345_v28 = vld [vmem:[%s4231_s1 + $0x70] sm:$0xff]  }
  0x37   : > { %2929 = vmatprep.subr.bf16.mxu1 %v3453_v1 }
  0x39   : > { %2910 = vmatpush3.bf16.msra.mxu0 %v3298_v29  ;;  %v3346_v29 = vld [vmem:[%s4231_s1 + $0x30] sm:$0xff]  }
  0x3a   : > { %2930 = vmatpush3.bf16.msra.mxu1 %v3299_v30  ;;  %2911 = vmatprep.subr.bf16.mxu0 %v3453_v1  ;;  %v3347_v30 = vld [vmem:[%s4231_s1 + $0x68] sm:$0xff]  }
  0x3b   : > { %2931 = vmatprep.subr.bf16.mxu1 %v3453_v1 }
  0x3d   : > { %2912 = vmatpush3.bf16.msra.mxu0 %v3300_v31  ;;  %v3348_v31 = vld [vmem:[%s4231_s1 + $0x28] sm:$0xff]  }
  0x3e   : > { %2932 = vmatpush3.bf16.msra.mxu1 %v3301_v32  ;;  %2913 = vmatprep.subr.bf16.mxu0 %v3453_v1  ;;  %v3349_v32 = vld [vmem:[%s4231_s1 + $0x60] sm:$0xff]  }
  0x3f   : > { %2933 = vmatprep.subr.bf16.mxu1 %v3453_v1 }
  0x41   : > { %2914 = vmatpush3.bf16.msra.mxu0 %v3302_v34  ;;  %v3351_v34 = vld [vmem:[%s4231_s1 + $0x58] sm:$0xff]  }
  0x42   : > { %2934 = vmatpush3.bf16.msra.mxu1 %v3303_v36  ;;  %2915 = vmatprep.subr.bf16.mxu0 %v3453_v1  ;;  %v2567_v36 = vld [vmem:[%s3525_s6 + $0x8] sm:$0x7] }
  0x43   : > { %2935 = vmatprep.subr.bf16.mxu1 %v3453_v1 }
  0x45   : > { %2916 = vmatpush3.bf16.msra.mxu0 %v3304_v37  ;;  %v3353_v37 = vld [vmem:[%s4231_s1 + $0x50] sm:$0xff]  }
  0x46   : > { %2936 = vmatpush3.bf16.msra.mxu1 %v3305_v39  ;;  %2917 = vmatprep.subr.bf16.mxu0 %v3453_v1  ;;  %v2568_v39 = vcombine.low %v2567_v36, %v2567_v36 }
  0x47   : > { %2937 = vmatprep.subr.bf16.mxu1 %v3453_v1 }
  0x48   : > { %v1120_v42 = vshll.u32 %v2568_v39, 16 }
  0x49   : > { %2918 = vmatpush3.bf16.msra.mxu0 %v3306_v40  ;;  %v3355_v40 = vld [vmem:[%s4231_s1 + $0x48] sm:$0xff]  }
  0x4a   : > { %2938 = vmatpush3.bf16.msra.mxu1 %v3307_v43  ;;  %2943 = vmatprep.subr.bf16.mxu0 %v3453_v1  ;;  %v3357_v43 = vld [vmem:[%s4231_s1 + $0x40] sm:$0xff]  }
  0x4b   : > { %2963 = vmatprep.subr.bf16.mxu1 %v3453_v1 }
  0x4c   : > { %2920 = vmatmul.mubr.bf16.vlgmr.msra.gmra.mxu0 %v2510_v33  ;;  %v3350_v33 = vld [vmem:[%s4231_s1 + $0x20] sm:$0xff]  }
  0x4d   : > { %2940 = vmatmul.mubr.bf16.vlgmr.msra.gmra.mxu1 %v525_v44  ;;  %2944 = vmatpush3.bf16.msra.mxu0 %v3309_v45  ;;  %v3358_v44 = vld [vmem:[%s4231_s1] sm:$0xff]   ;;  %v1118_v45 = vshrl.u32 %v2568_v39, 16  ;;  %v3398_v39 = vld [vmem:[%s4231_s1 + $0xa8] sm:$0xff]  }
  0x4e   : > { %2964 = vmatpush3.bf16.msra.mxu1 %v3310_v46  ;;  %2945 = vmatprep.subr.bf16.mxu0 %v3453_v1  ;;  %v1122_v46 = vrot.slane %v1120_v42, 1 }
  0x4f   : > { %2965 = vmatprep.subr.bf16.mxu1 %v3453_v1  ;;  %2959 = vmatprep.mubr.msk.bf16.mxu0 %vm3454_vm0, %v3453_v1 }
  0x50   : > { %2979 = vmatprep.mubr.msk.bf16.mxu1 %vm3454_vm0, %v3453_v1 }
  0x51   : > { %2946 = vmatpush3.bf16.msra.mxu0 %v3311_v47  ;;  %v1123_v47 = vor.u32 %v1122_v46, %v1118_v45  ;;  %v3402_v45 = vld [vmem:[%s4231_s1 + $0x98] sm:$0xff]  }
  0x52   : > { %2966 = vmatpush3.bf16.msra.mxu1 %v3312_v48  ;;  %2947 = vmatprep.subr.bf16.mxu0 %v3453_v1  ;;  %v3360_v48 = vld [vmem:[%s4231_s1 + $0xb8] sm:$0xff]  }
  0x53   : > { %2967 = vmatprep.subr.bf16.mxu1 %v3453_v1  ;;  %v3403_v46 = vld [vmem:[%s4231_s1 + $0xd8] sm:$0xff]  }
  0x55   : > { %2948 = vmatpush3.bf16.msra.mxu0 %v3313_v49  ;;  %v3361_v49 = vld [vmem:[%s4231_s1 + $0xf8] sm:$0xff]  }
  0x56   : > { %2968 = vmatpush3.bf16.msra.mxu1 %v3314_v50  ;;  %2949 = vmatprep.subr.bf16.mxu0 %v3453_v1  ;;  %v3362_v50 = vld [vmem:[%s4231_s1 + $0xb0] sm:$0xff]  }
  0x57   : > { %2969 = vmatprep.subr.bf16.mxu1 %v3453_v1 }
  0x59   : > { %2950 = vmatpush3.bf16.msra.mxu0 %v3315_v51  ;;  %v3363_v51 = vld [vmem:[%s4231_s1 + $0xf0] sm:$0xff]  }
  0x5a   : > { %2970 = vmatpush3.bf16.msra.mxu1 %v3316_v52  ;;  %2951 = vmatprep.subr.bf16.mxu0 %v3453_v1  ;;  %v3364_v52 = vld [vmem:[%s4231_s1 + $0xa8] sm:$0xff]  }
  0x5b   : > { %2971 = vmatprep.subr.bf16.mxu1 %v3453_v1 }
  0x5d   : > { %2952 = vmatpush3.bf16.msra.mxu0 %v3317_v53  ;;  %v3365_v53 = vld [vmem:[%s4231_s1 + $0xe8] sm:$0xff]  }
  0x5e   : > { %2972 = vmatpush3.bf16.msra.mxu1 %v3318_v55  ;;  %2953 = vmatprep.subr.bf16.mxu0 %v3453_v1  ;;  %v3367_v55 = vld [vmem:[%s4231_s1 + $0xe0] sm:$0xff]  }
  0x5f   : > { %2973 = vmatprep.subr.bf16.mxu1 %v3453_v1 }
  0x61   : > { %2954 = vmatpush3.bf16.msra.mxu0 %v3319_v57  ;;  %v3369_v57 = vld [vmem:[%s4231_s1 + $0xd8] sm:$0xff]  }
  0x62   : > { %2974 = vmatpush3.bf16.msra.mxu1 %v3320_v58  ;;  %2955 = vmatprep.subr.bf16.mxu0 %v3453_v1  ;;  %v2585_v58 = vld [vmem:[%s3525_s6 + $0xc] sm:$0x7] }
  0x63   : > { %2975 = vmatprep.subr.bf16.mxu1 %v3453_v1 }
  0x65   : > { %2956 = vmatpush3.bf16.msra.mxu0 %v3321_v60  ;;  %v2594_v60 = vcombine.low %v2585_v58, %v2585_v58 }
  0x66   : > { %2976 = vmatpush3.bf16.msra.mxu1 %v3322_v61  ;;  %2957 = vmatprep.subr.bf16.mxu0 %v3453_v1  ;;  %v3371_v61 = vld [vmem:[%s4231_s1 + $0xd0] sm:$0xff]  }
  0x67   : > { %2977 = vmatprep.subr.bf16.mxu1 %v3453_v1  ;;  %v1430_v63 = vshll.u32 %v2594_v60, 16 }
  0x69   : > { %2958 = vmatpush3.bf16.msra.mxu0 %v3323_v0  ;;  %v3373_v0 = vld [vmem:[%s4231_s1 + $0xc8] sm:$0xff]  }
  0x6a   : > { %2978 = vmatpush3.bf16.msra.mxu1 %v3324_v2  ;;  %2983 = vmatprep.subr.bf16.mxu0 %v3453_v1  ;;  %v3374_v2 = vld [vmem:[%s4231_s1 + $0x80] sm:$0xff]  }
  0x6b   : > { %3003 = vmatprep.subr.bf16.mxu1 %v3453_v1 }
  0x6c   : > { %2960 = vmatmul.mubr.bf16.vlgmr.msra.gmra.mxu0 %v673_v3  ;;  %v1428_v3 = vshrl.u32 %v2594_v60, 16  ;;  %v3412_v60 = vld [vmem:[%s4231_s1 + $0x38] sm:$0xff]  }
  0x6d   : > { %2980 = vmatmul.mubr.bf16.vlgmr.msra.gmra.mxu1 %v2529_v54  ;;  %2984 = vmatpush3.bf16.msra.mxu0 %v3326_v4  ;;  %v3366_v54 = vld [vmem:[%s4231_s1 + $0xa0] sm:$0xff]   ;;  %v1432_v4 = vrot.slane %v1430_v63, 1 }
  0x6e   : > { %3004 = vmatpush3.bf16.msra.mxu1 %v3327_v5  ;;  %2985 = vmatprep.subr.bf16.mxu0 %v3453_v1  ;;  %v3375_v5 = vld [vmem:[%s4231_s1 + $0xc0] sm:$0xff]  }
  0x6f   : > { %3005 = vmatprep.subr.bf16.mxu1 %v3453_v1  ;;  %2999 = vmatprep.mubr.msk.bf16.mxu0 %vm3454_vm0, %v3453_v1 }
  0x70   : > { %3019 = vmatprep.mubr.msk.bf16.mxu1 %vm3454_vm0, %v3453_v1 }
  0x71   : > { %2986 = vmatpush3.bf16.msra.mxu0 %v3328_v6  ;;  %v1433_v6 = vor.u32 %v1432_v4, %v1428_v3  ;;  %v4064_v3 = vld [vmem:[%s4232_s2] ss:$0 sm:$0xff] }
  0x72   : > { %3006 = vmatpush3.bf16.msra.mxu1 %v3329_v7  ;;  %2987 = vmatprep.subr.bf16.mxu0 %v3453_v1  ;;  %v3377_v7 = vld [vmem:[%s4231_s1 + $0x78] sm:$0xff]  }
  0x73   : > { %3007 = vmatprep.subr.bf16.mxu1 %v3453_v1 }
  0x75   : > { %2988 = vmatpush3.bf16.msra.mxu0 %v3330_v8  ;;  %v3378_v8 = vld [vmem:[%s4231_s1 + $0x38] sm:$0xff]  }
  0x76   : > { %3008 = vmatpush3.bf16.msra.mxu1 %v3331_v9  ;;  %2989 = vmatprep.subr.bf16.mxu0 %v3453_v1  ;;  %v3379_v9 = vld [vmem:[%s4231_s1 + $0x70] sm:$0xff]  }
  0x77   : > { %3009 = vmatprep.subr.bf16.mxu1 %v3453_v1 }
  0x79   : > { %2990 = vmatpush3.bf16.msra.mxu0 %v3332_v10  ;;  %v3380_v10 = vld [vmem:[%s4231_s1 + $0x30] sm:$0xff]  }
  0x7a   : > { %3010 = vmatpush3.bf16.msra.mxu1 %v3333_v11  ;;  %2991 = vmatprep.subr.bf16.mxu0 %v3453_v1  ;;  %v3381_v11 = vld [vmem:[%s4231_s1 + $0x68] sm:$0xff]  }
  0x7b   : > { %3011 = vmatprep.subr.bf16.mxu1 %v3453_v1 }
  0x7d   : > { %2992 = vmatpush3.bf16.msra.mxu0 %v3334_v12  ;;  %v3382_v12 = vld [vmem:[%s4231_s1 + $0x28] sm:$0xff]  }
  0x7e   : > { %3012 = vmatpush3.bf16.msra.mxu1 %v3335_v13  ;;  %2993 = vmatprep.subr.bf16.mxu0 %v3453_v1  ;;  %v3383_v13 = vld [vmem:[%s4231_s1 + $0x60] sm:$0xff]  }
  0x7f   : > { %3013 = vmatprep.subr.bf16.mxu1 %v3453_v1 }
  0x81   : > { %2994 = vmatpush3.bf16.msra.mxu0 %v3336_v15  ;;  %v3385_v15 = vld [vmem:[%s4231_s1 + $0x58] sm:$0xff]  }
  0x82   : > { %3014 = vmatpush3.bf16.msra.mxu1 %v3337_v17  ;;  %2995 = vmatprep.subr.bf16.mxu0 %v3453_v1  ;;  %v3386_v17 = vld [vmem:[%s4231_s1 + $0x18] sm:$0xff]  }
  0x83   : > { %3015 = vmatprep.subr.bf16.mxu1 %v3453_v1 }
  0x85   : > { %2996 = vmatpush3.bf16.msra.mxu0 %v3338_v18  ;;  %v2606_v18 = vcombine.low %v2605_v16, %v2605_v16 }
  0x86   : > { %3016 = vmatpush3.bf16.msra.mxu1 %v3339_v20  ;;  %2997 = vmatprep.subr.bf16.mxu0 %v3453_v1  ;;  %v3388_v20 = vld [vmem:[%s4231_s1 + $0x10] sm:$0xff]  }
  0x87   : > { %3017 = vmatprep.subr.bf16.mxu1 %v3453_v1 }
  0x89   : > { %2998 = vmatpush3.bf16.msra.mxu0 %v3340_v21  ;;  %v1570_v21 = vshll.u32 %v2606_v18, 16 }
  0x8a   : > { %3018 = vmatpush3.bf16.msra.mxu1 %v3341_v24  ;;  %3023 = vmatprep.subr.bf16.mxu0 %v3453_v1  ;;  %v1568_v24 = vshrl.u32 %v2606_v18, 16 }
  0x8b   : > { %3043 = vmatprep.subr.bf16.mxu1 %v3453_v1 }
  0x8c   : > { %3000 = vmatmul.mubr.bf16.vlgmr.msra.gmra.mxu0 %v2547_v14  ;;  %v3384_v14 = vld [vmem:[%s4231_s1 + $0x20] sm:$0xff]  }
  0x8d   : > { %3020 = vmatmul.mubr.bf16.vlgmr.msra.gmra.mxu1 %v983_v25  ;;  %3024 = vmatpush3.bf16.msra.mxu0 %v3343_v26  ;;  %v1572_v25 = vrot.slane %v1570_v21, 1  ;;  %v3391_v26 = vld [vmem:[%s4231_s1 + $0x40] sm:$0xff]  }
  0x8e   : > { %3044 = vmatpush3.bf16.msra.mxu1 %v3344_v27  ;;  %3025 = vmatprep.subr.bf16.mxu0 %v3453_v1  ;;  %v3392_v27 = vld [vmem:[%s4231_s1] sm:$0xff]  }
  0x8f   : > { %3045 = vmatprep.subr.bf16.mxu1 %v3453_v1  ;;  %3039 = vmatprep.mubr.msk.bf16.mxu0 %vm3454_vm0, %v3453_v1 }
  0x90   : > { %3059 = vmatprep.mubr.msk.bf16.mxu1 %vm3454_vm0, %v3453_v1 }
  0x91   : > { %3026 = vmatpush3.bf16.msra.mxu0 %v3345_v28  ;;  %v1573_v28 = vor.u32 %v1572_v25, %v1568_v24  ;;  %v3420_v24 = vld [vmem:[%s4231_s1 + $0x18] sm:$0xff]  }
  0x92   : > { %3046 = vmatpush3.bf16.msra.mxu1 %v3346_v29  ;;  %3027 = vmatprep.subr.bf16.mxu0 %v3453_v1  ;;  %v3394_v29 = vld [vmem:[%s4231_s1 + $0xb8] sm:$0xff]  }
  0x93   : > { %3047 = vmatprep.subr.bf16.mxu1 %v3453_v1 }
  0x95   : > { %3028 = vmatpush3.bf16.msra.mxu0 %v3347_v30  ;;  %v3395_v30 = vld [vmem:[%s4231_s1 + $0xf8] sm:$0xff]  }
  0x96   : > { %3048 = vmatpush3.bf16.msra.mxu1 %v3348_v31  ;;  %3029 = vmatprep.subr.bf16.mxu0 %v3453_v1 }
  0x97   : > { %3049 = vmatprep.subr.bf16.mxu1 %v3453_v1 }
  0x99   : > { %3030 = vmatpush3.bf16.msra.mxu0 %v3349_v32 }
  0x9a   : > { %3050 = vmatpush3.bf16.msra.mxu1 %v3350_v33  ;;  %3031 = vmatprep.subr.bf16.mxu0 %v3453_v1  ;;  %v3396_v33 = vld [vmem:[%s4231_s1 + $0xb0] sm:$0xff]  }
  0x9b   : > { %3051 = vmatprep.subr.bf16.mxu1 %v3453_v1 }
  0x9d   : > { %3032 = vmatpush3.bf16.msra.mxu0 %v3351_v34 }
  0x9e   : > { %3052 = vmatpush3.bf16.msra.mxu1 %v3352_v35  ;;  %3033 = vmatprep.subr.bf16.mxu0 %v3453_v1  ;;  %v3397_v35 = vld [vmem:[%s4231_s1 + $0xf0] sm:$0xff]  }
  0x9f   : > { %3053 = vmatprep.subr.bf16.mxu1 %v3453_v1 }
  0xa1   : > { %3034 = vmatpush3.bf16.msra.mxu0 %v3353_v37 }
  0xa2   : > { %3054 = vmatpush3.bf16.msra.mxu1 %v3354_v38  ;;  %3035 = vmatprep.subr.bf16.mxu0 %v3453_v1 }
  0xa3   : > { %3055 = vmatprep.subr.bf16.mxu1 %v3453_v1 }
  0xa5   : > { %3036 = vmatpush3.bf16.msra.mxu0 %v3355_v40 }
  0xa6   : > { %3056 = vmatpush3.bf16.msra.mxu1 %v3356_v41  ;;  %3037 = vmatprep.subr.bf16.mxu0 %v3453_v1  ;;  %v3399_v41 = vld [vmem:[%s4231_s1 + $0xe8] sm:$0xff]  }
  0xa7   : > { %3057 = vmatprep.subr.bf16.mxu1 %v3453_v1 }
  0xa9   : > { %3038 = vmatpush3.bf16.msra.mxu0 %v3357_v43  ;;  %v3400_v43 = vld [vmem:[%s4231_s1 + $0xa0] sm:$0xff]  }
  0xaa   : > { %3058 = vmatpush3.bf16.msra.mxu1 %v3358_v44  ;;  %3063 = vmatprep.subr.bf16.mxu0 %v3453_v1  ;;  %v3401_v44 = vld [vmem:[%s4231_s1 + $0xe0] sm:$0xff]  }
  0xab   : > { %3083 = vmatprep.subr.bf16.mxu1 %v3453_v1 }
  0xac   : > { %3040 = vmatmul.mubr.bf16.vlgmr.msra.gmra.mxu0 %v1123_v47  ;;  %v2623_v47 = vld [vmem:[%s3525_s6 + $0x10] sm:$0x7] }
  0xad   : > { %3060 = vmatmul.mubr.bf16.vlgmr.msra.gmra.mxu1 %v2567_v36  ;;  %3064 = vmatpush3.bf16.msra.mxu0 %v3360_v48  ;;  %v3404_v48 = vld [vmem:[%s4231_s1 + $0x90] sm:$0xff]  }
  0xae   : > { %3084 = vmatpush3.bf16.msra.mxu1 %v3361_v49  ;;  %3065 = vmatprep.subr.bf16.mxu0 %v3453_v1  ;;  %v2632_v49 = vcombine.low %v2623_v47, %v2623_v47 }
  0xaf   : > { %3085 = vmatprep.subr.bf16.mxu1 %v3453_v1  ;;  %3079 = vmatprep.mubr.msk.bf16.mxu0 %vm3454_vm0, %v3453_v1 }
  0xb0   : > { %3099 = vmatprep.mubr.msk.bf16.mxu1 %vm3454_vm0, %v3453_v1 }
  0xb1   : > { %3066 = vmatpush3.bf16.msra.mxu0 %v3362_v50  ;;  %v3405_v50 = vld [vmem:[%s4231_s1 + $0xd0] sm:$0xff]  }
  0xb2   : > { %3086 = vmatpush3.bf16.msra.mxu1 %v3363_v51  ;;  %3067 = vmatprep.subr.bf16.mxu0 %v3453_v1  ;;  %v3406_v51 = vld [vmem:[%s4231_s1 + $0x88] sm:$0xff]  }
  0xb3   : > { %3087 = vmatprep.subr.bf16.mxu1 %v3453_v1 }
  0xb5   : > { %3068 = vmatpush3.bf16.msra.mxu0 %v3364_v52  ;;  %v1880_v52 = vshll.u32 %v2632_v49, 16 }
  0xb6   : > { %3088 = vmatpush3.bf16.msra.mxu1 %v3365_v53  ;;  %3069 = vmatprep.subr.bf16.mxu0 %v3453_v1  ;;  %v3407_v53 = vld [vmem:[%s4231_s1 + $0xc8] sm:$0xff]  }
  0xb7   : > { %3089 = vmatprep.subr.bf16.mxu1 %v3453_v1 }
  0xb9   : > { %3070 = vmatpush3.bf16.msra.mxu0 %v3366_v54  ;;  %v3408_v54 = vld [vmem:[%s4231_s1 + $0x80] sm:$0xff]  }
  0xba   : > { %3090 = vmatpush3.bf16.msra.mxu1 %v3367_v55  ;;  %3071 = vmatprep.subr.bf16.mxu0 %v3453_v1  ;;  %v1878_v55 = vshrl.u32 %v2632_v49, 16 }
  0xbb   : > { %3091 = vmatprep.subr.bf16.mxu1 %v3453_v1 }
  0xbd   : > { %3072 = vmatpush3.bf16.msra.mxu0 %v3368_v56  ;;  %v1882_v56 = vrot.slane %v1880_v52, 1  ;;  %v3436_v52 = vld [vmem:[%s4231_s1 + $0x98] sm:$0xff]  }
  0xbe   : > { %3092 = vmatpush3.bf16.msra.mxu1 %v3369_v57  ;;  %3073 = vmatprep.subr.bf16.mxu0 %v3453_v1  ;;  %v3409_v57 = vld [vmem:[%s4231_s1 + $0xc0] sm:$0xff]  }
  0xbf   : > { %3093 = vmatprep.subr.bf16.mxu1 %v3453_v1 }
  0xc1   : > { %3074 = vmatpush3.bf16.msra.mxu0 %v3370_v59  ;;  %v3411_v59 = vld [vmem:[%s4231_s1 + $0x78] sm:$0xff]  }
  0xc2   : > { %3094 = vmatpush3.bf16.msra.mxu1 %v3371_v61  ;;  %3075 = vmatprep.subr.bf16.mxu0 %v3453_v1 }
  0xc3   : > { %3095 = vmatprep.subr.bf16.mxu1 %v3453_v1 }
  0xc5   : > { %3076 = vmatpush3.bf16.msra.mxu0 %v3372_v62 }
  0xc6   : > { %3096 = vmatpush3.bf16.msra.mxu1 %v3373_v0  ;;  %3077 = vmatprep.subr.bf16.mxu0 %v3453_v1 }
  0xc7   : > { %3097 = vmatprep.subr.bf16.mxu1 %v3453_v1 }
  0xc9   : > { %3078 = vmatpush3.bf16.msra.mxu0 %v3374_v2  ;;  %v3413_v2 = vld [vmem:[%s4231_s1 + $0x70] sm:$0xff]  }
  0xca   : > { %3098 = vmatpush3.bf16.msra.mxu1 %v3375_v5  ;;  %3103 = vmatprep.subr.bf16.mxu0 %v3453_v1  ;;  %v3414_v5 = vld [vmem:[%s4231_s1 + $0x30] sm:$0xff]  }
  0xcb   : > { %3123 = vmatprep.subr.bf16.mxu1 %v3453_v1 }
  0xcc   : > { %3080 = vmatmul.mubr.bf16.vlgmr.msra.gmra.mxu0 %v2585_v58  ;;  %v1883_v58 = vor.u32 %v1882_v56, %v1878_v55  ;;  %v3438_v55 = vld [vmem:[%s4231_s1 + $0x90] sm:$0xff]  }
  0xcd   : > { %3100 = vmatmul.mubr.bf16.vlgmr.msra.gmra.mxu1 %v1433_v6  ;;  %3104 = vmatpush3.bf16.msra.mxu0 %v3377_v7 }
  0xce   : > { %3124 = vmatpush3.bf16.msra.mxu1 %v3378_v8  ;;  %3105 = vmatprep.subr.bf16.mxu0 %v3453_v1 }
  0xcf   : > { %3125 = vmatprep.subr.bf16.mxu1 %v3453_v1  ;;  %3119 = vmatprep.mubr.msk.bf16.mxu0 %vm3454_vm0, %v3453_v1 }
  0xd0   : > { %3139 = vmatprep.mubr.msk.bf16.mxu1 %vm3454_vm0, %v3453_v1 }
  0xd1   : > { %3106 = vmatpush3.bf16.msra.mxu0 %v3379_v9 }
  0xd2   : > { %3126 = vmatpush3.bf16.msra.mxu1 %v3380_v10  ;;  %3107 = vmatprep.subr.bf16.mxu0 %v3453_v1 }
  0xd3   : > { %3127 = vmatprep.subr.bf16.mxu1 %v3453_v1 }
  0xd5   : > { %3108 = vmatpush3.bf16.msra.mxu0 %v3381_v11  ;;  %v3415_v11 = vld [vmem:[%s4231_s1 + $0x68] sm:$0xff]  }
  0xd6   : > { %3128 = vmatpush3.bf16.msra.mxu1 %v3382_v12  ;;  %3109 = vmatprep.subr.bf16.mxu0 %v3453_v1 }
  0xd7   : > { %3129 = vmatprep.subr.bf16.mxu1 %v3453_v1 }
  0xd9   : > { %3110 = vmatpush3.bf16.msra.mxu0 %v3383_v13  ;;  %v3416_v13 = vld [vmem:[%s4231_s1 + $0x28] sm:$0xff]  }
  0xda   : > { %3130 = vmatpush3.bf16.msra.mxu1 %v3384_v14  ;;  %3111 = vmatprep.subr.bf16.mxu0 %v3453_v1 }
  0xdb   : > { %3131 = vmatprep.subr.bf16.mxu1 %v3453_v1 }
  0xdd   : > { %3112 = vmatpush3.bf16.msra.mxu0 %v3385_v15 }
  0xde   : > { %3132 = vmatpush3.bf16.msra.mxu1 %v3386_v17  ;;  %3113 = vmatprep.subr.bf16.mxu0 %v3453_v1  ;;  %v628_v17 = vld [vmem:[%s4078_s21] sm:$0x7] }
  0xdf   : > { %3133 = vmatprep.subr.bf16.mxu1 %v3453_v1 }
  0xe1   : > { %3114 = vmatpush3.bf16.msra.mxu0 %v3387_v19  ;;  %v3417_v19 = vld [vmem:[%s4231_s1 + $0x60] sm:$0xff]  }
  0xe2   : > { %3134 = vmatpush3.bf16.msra.mxu1 %v3388_v20  ;;  %3115 = vmatprep.subr.bf16.mxu0 %v3453_v1  ;;  %v3418_v20 = vld [vmem:[%s4231_s1 + $0x20] sm:$0xff]  }
  0xe3   : > { %3135 = vmatprep.subr.bf16.mxu1 %v3453_v1 }
  0xe5   : > { %3116 = vmatpush3.bf16.msra.mxu0 %v3389_v22  ;;  %v3419_v22 = vld [vmem:[%s4231_s1 + $0x58] sm:$0xff]  }
  0xe6   : > { %3136 = vmatpush3.bf16.msra.mxu1 %v3390_v23  ;;  %3117 = vmatprep.subr.bf16.mxu0 %v3453_v1  ;;  %v2643_v23 = vld [vmem:[%s3525_s6 + $0x10] sm:$0x7] }
  0xe7   : > { %3137 = vmatprep.subr.bf16.mxu1 %v3453_v1  ;;  %v2644_v25 = vcombine.low %v2643_v23, %v2643_v23 }
  0xe9   : > { %3118 = vmatpush3.bf16.msra.mxu0 %v3391_v26  ;;  %v3421_v26 = vld [vmem:[%s4231_s1 + $0x50] sm:$0xff]  }
  0xea   : > { %3138 = vmatpush3.bf16.msra.mxu1 %v3392_v27  ;;  %3143 = vmatprep.subr.bf16.mxu0 %v3453_v1  ;;  %v3422_v27 = vld [vmem:[%s4231_s1 + $0x10] sm:$0xff]  }
  0xeb   : > { %3163 = vmatprep.subr.bf16.mxu1 %v3453_v1 }
  0xec   : > { %v3982_v31 = vpop.f32.mrf.mxu0  ;;  %3120 = vmatmul.mubr.bf16.vlgmr.msra.gmra.mxu0 %v1573_v28  ;;  %v2020_v28 = vshll.u32 %v2644_v25, 16 }
  0xed   : > { %v3984_v32 = vpop.f32.mrf.mxu1  ;;  %3140 = vmatmul.mubr.bf16.vlgmr.msra.gmra.mxu1 %v2605_v16  ;;  %3144 = vmatpush3.bf16.msra.mxu0 %v3394_v29  ;;  %v3423_v29 = vld [vmem:[%s4231_s1 + $0x48] sm:$0xff]  }
  0xee   : > { %3164 = vmatpush3.bf16.msra.mxu1 %v3395_v30  ;;  %v2881_v34 = vpop.f32.mrf.mxu0  ;;  %3145 = vmatprep.subr.bf16.mxu0 %v3453_v1  ;;  %v388_v61 = vadd.f32 %v3984_v32, %v3982_v31  ;;  %v3424_v30 = vld [vmem:[%s4231_s1 + $0x8] sm:$0xff]   ;;  %v2018_v31 = vshrl.u32 %v2644_v25, 16  ;;  %v2022_v32 = vrot.slane %v2020_v28, 1 }
  0xef   : > { %v2901_v36 = vpop.f32.mrf.mxu1  ;;  %3165 = vmatprep.subr.bf16.mxu1 %v3453_v1  ;;  %3159 = vmatprep.mubr.msk.bf16.mxu0 %vm3454_vm0, %v3453_v1  ;;  %v3426_v34 = vld [vmem:[%s4231_s1] sm:$0xff]  }
  0xf0   : > { %v302_v37 = vpop.f32.mrf.mxu0  ;;  %3179 = vmatprep.mubr.msk.bf16.mxu1 %vm3454_vm0, %v3453_v1  ;;  %v3428_v36 = vld [vmem:[%s4231_s1 + $0xb8] sm:$0xff]  }
  0xf1   : > { %v390_v38 = vpop.f32.mrf.mxu1  ;;  %3146 = vmatpush3.bf16.msra.mxu0 %v3396_v33  ;;  %v3425_v33 = vld [vmem:[%s4231_s1 + $0x40] sm:$0xff]   ;;  %v3429_v37 = vld [vmem:[%s4231_s1 + $0xf8] sm:$0xff]  }
  0xf2   : > { %3166 = vmatpush3.bf16.msra.mxu1 %v3397_v35  ;;  %v2882_v40 = vpop.f32.mrf.mxu0  ;;  %3147 = vmatprep.subr.bf16.mxu0 %v3453_v1  ;;  %v2023_v35 = vor.u32 %v2022_v32, %v2018_v31 }
  0xf3   : > { %v2902_v42 = vpop.f32.mrf.mxu1  ;;  %3167 = vmatprep.subr.bf16.mxu1 %v3453_v1  ;;  %v3430_v40 = vld [vmem:[%s4231_s1 + $0xb0] sm:$0xff]  }
  0xf4   : > { %v3431_v42 = vld [vmem:[%s4231_s1 + $0xf0] sm:$0xff]  }
  0xf5   : > { %3148 = vmatpush3.bf16.msra.mxu0 %v3398_v39 }
  0xf6   : > { %3168 = vmatpush3.bf16.msra.mxu1 %v3399_v41  ;;  %3149 = vmatprep.subr.bf16.mxu0 %v3453_v1 }
  0xf7   : > { %3169 = vmatprep.subr.bf16.mxu1 %v3453_v1 }
  0xf9   : > { %3150 = vmatpush3.bf16.msra.mxu0 %v3400_v43 }
  0xfa   : > { %3170 = vmatpush3.bf16.msra.mxu1 %v3401_v44  ;;  %3151 = vmatprep.subr.bf16.mxu0 %v3453_v1 }
  0xfb   : > { %3171 = vmatprep.subr.bf16.mxu1 %v3453_v1 }
  0xfd   : > { %3152 = vmatpush3.bf16.msra.mxu0 %v3402_v45 }
  0xfe   : > { %3172 = vmatpush3.bf16.msra.mxu1 %v3403_v46  ;;  %3153 = vmatprep.subr.bf16.mxu0 %v3453_v1  ;;  %v3432_v46 = vld [vmem:[%s4231_s1 + $0xa8] sm:$0xff]  }
  0xff   : > { %3173 = vmatprep.subr.bf16.mxu1 %v3453_v1 }
 0x101   : > { %3154 = vmatpush3.bf16.msra.mxu0 %v3404_v48  ;;  %v3433_v48 = vld [vmem:[%s4231_s1 + $0xe8] sm:$0xff]  }
 0x102   : > { %3174 = vmatpush3.bf16.msra.mxu1 %v3405_v50  ;;  %3155 = vmatprep.subr.bf16.mxu0 %v3453_v1  ;;  %v3434_v50 = vld [vmem:[%s4231_s1 + $0xa0] sm:$0xff]  }
 0x103   : > { %3175 = vmatprep.subr.bf16.mxu1 %v3453_v1 }
 0x105   : > { %3156 = vmatpush3.bf16.msra.mxu0 %v3406_v51  ;;  %v3435_v51 = vld [vmem:[%s4231_s1 + $0xe0] sm:$0xff]  }
 0x106   : > { %3176 = vmatpush3.bf16.msra.mxu1 %v3407_v53  ;;  %3157 = vmatprep.subr.bf16.mxu0 %v3453_v1  ;;  %v3437_v53 = vld [vmem:[%s4231_s1 + $0xd8] sm:$0xff]  }
 0x107   : > { %3177 = vmatprep.subr.bf16.mxu1 %v3453_v1 }
 0x109   : > { %3158 = vmatpush3.bf16.msra.mxu0 %v3408_v54  ;;  %v2661_v54 = vld [vmem:[%s3525_s6 + $0x14] sm:$0x7] }
 0x10a   : > { %3178 = vmatpush3.bf16.msra.mxu1 %v3409_v57  ;;  %3183 = vmatprep.subr.bf16.mxu0 %v3453_v1  ;;  %v2670_v56 = vcombine.low %v2661_v54, %v2661_v54  ;;  %v3439_v57 = vld [vmem:[%s4231_s1 + $0xd0] sm:$0xff]  }
 0x10b   : > { %3203 = vmatprep.subr.bf16.mxu1 %v3453_v1 }
 0x10c   : > { %v493_v62 = vpop.f32.mrf.mxu0  ;;  %3160 = vmatmul.mubr.bf16.vlgmr.msra.gmra.mxu0 %v2623_v47 }
 0x10d   : > { %v499_v63 = vadd.f32 %v493_v62, %v388_v61  ;;  %v609_v0 = vpop.f32.mrf.mxu1  ;;  %3180 = vmatmul.mubr.bf16.vlgmr.msra.gmra.mxu1 %v1883_v58  ;;  %3184 = vmatpush3.bf16.msra.mxu0 %v3411_v59  ;;  %v3440_v58 = vld [vmem:[%s4231_s1 + $0x88] sm:$0xff]   ;;  %v2330_v59 = vshll.u32 %v2670_v56, 16  ;;  %v3442_v61 = vld [vmem:[%s4231_s1 + $0x80] sm:$0xff]   ;;  %v2328_v62 = vshrl.u32 %v2670_v56, 16 }
 0x10e   : > { %3204 = vmatpush3.bf16.msra.mxu1 %v3412_v60  ;;  %v2921_v4 = vpop.f32.mrf.mxu0  ;;  %3185 = vmatprep.subr.bf16.mxu0 %v3453_v1  ;;  %v3441_v60 = vld [vmem:[%s4231_s1 + $0xc8] sm:$0xff]  }
 0x10f   : > { %v615_v6 = vadd.f32 %v609_v0, %v499_v63  ;;  %v2941_v7 = vpop.f32.mrf.mxu1  ;;  %3205 = vmatprep.subr.bf16.mxu1 %v3453_v1  ;;  %3199 = vmatprep.mubr.msk.bf16.mxu0 %vm3454_vm0, %v3453_v1  ;;  %v2332_v63 = vrot.slane %v2330_v59, 1  ;;  %v3443_v0 = vld [vmem:[%s4231_s1 + $0xc0] sm:$0xff]  }
 0x110   : > { %v496_v8 = vpop.f32.mrf.mxu0  ;;  %3219 = vmatprep.mubr.msk.bf16.mxu1 %vm3454_vm0, %v3453_v1 }
 0x111   : > { %v622_v9 = vadd.f32 %v4064_v3, %v615_v6  ;;  %v612_v10 = vpop.f32.mrf.mxu1  ;;  %3186 = vmatpush3.bf16.msra.mxu0 %v3413_v2  ;;  %v2333_v2 = vor.u32 %v2332_v63, %v2328_v62 }
 0x112   : > { %3206 = vmatpush3.bf16.msra.mxu1 %v3414_v5  ;;  %v2922_v12 = vpop.f32.mrf.mxu0  ;;  %3187 = vmatprep.subr.bf16.mxu0 %v3453_v1 }
 0x113   : > { %v623_v14 = vmax.f32 %v622_v9, 0.0  ;;  %v2942_v15 = vpop.f32.mrf.mxu1  ;;  %3207 = vmatprep.subr.bf16.mxu1 %v3453_v1 }
 0x115   : > { %v624_v18 = vpack.c.bf16 %v623_v14, %v623_v14  ;;  %3188 = vmatpush3.bf16.msra.mxu0 %v3415_v11 }
 0x116   : > { %3208 = vmatpush3.bf16.msra.mxu1 %v3416_v13  ;;  %3189 = vmatprep.subr.bf16.mxu0 %v3453_v1 }
 0x117   : > { %v629_v21 = vsel %vm4089_vm3, %v624_v18, %v628_v17  ;;  %3209 = vmatprep.subr.bf16.mxu1 %v3453_v1  ;;  %v2565_v17 = vld [vmem:[%s4078_s21 + $0x4] sm:$0x7] }
 0x118   : > { %630 = vst [vmem:[%s4078_s21] sm:$0x7] %v629_v21 }
 0x119   : > { %3190 = vmatpush3.bf16.msra.mxu0 %v3417_v19 }
 0x11a   : > { %3210 = vmatpush3.bf16.msra.mxu1 %v3418_v20  ;;  %3191 = vmatprep.subr.bf16.mxu0 %v3453_v1 }
 0x11b   : > { %3211 = vmatprep.subr.bf16.mxu1 %v3453_v1 }
 0x11d   : > { %3192 = vmatpush3.bf16.msra.mxu0 %v3419_v22 }
 0x11e   : > { %3212 = vmatpush3.bf16.msra.mxu1 %v3420_v24  ;;  %3193 = vmatprep.subr.bf16.mxu0 %v3453_v1 }
 0x11f   : > { %3213 = vmatprep.subr.bf16.mxu1 %v3453_v1 }
 0x121   : > { %3194 = vmatpush3.bf16.msra.mxu0 %v3421_v26 }
 0x122   : > { %3214 = vmatpush3.bf16.msra.mxu1 %v3422_v27  ;;  %3195 = vmatprep.subr.bf16.mxu0 %v3453_v1 }
 0x123   : > { %3215 = vmatprep.subr.bf16.mxu1 %v3453_v1 }
 0x125   : > { %3196 = vmatpush3.bf16.msra.mxu0 %v3423_v29 }
 0x126   : > { %3216 = vmatpush3.bf16.msra.mxu1 %v3424_v30  ;;  %3197 = vmatprep.subr.bf16.mxu0 %v3453_v1 }
 0x127   : > { %3217 = vmatprep.subr.bf16.mxu1 %v3453_v1 }
 0x129   : > { %3198 = vmatpush3.bf16.msra.mxu0 %v3425_v33 }
 0x12a   : > { %3218 = vmatpush3.bf16.msra.mxu1 %v3426_v34  ;;  %3223 = vmatprep.subr.bf16.mxu0 %v3453_v1 }
 0x12b   : > { %3243 = vmatprep.subr.bf16.mxu1 %v3453_v1 }
 0x12c   : > { %v757_v38 = vpop.f32.mrf.mxu0  ;;  %3200 = vmatmul.mubr.bf16.vlgmr.msra.gmra.mxu0 %v2023_v35 }
 0x12d   : > { %v845_v39 = vpop.f32.mrf.mxu1  ;;  %3220 = vmatmul.mubr.bf16.vlgmr.msra.gmra.mxu1 %v2643_v23  ;;  %3224 = vmatpush3.bf16.msra.mxu0 %v3428_v36 }
 0x12e   : > { %3244 = vmatpush3.bf16.msra.mxu1 %v3429_v37  ;;  %v2961_v41 = vpop.f32.mrf.mxu0  ;;  %3225 = vmatprep.subr.bf16.mxu0 %v3453_v1  ;;  %v846_v4 = vadd.f32 %v845_v39, %v757_v38 }
 0x12f   : > { %v2981_v43 = vpop.f32.mrf.mxu1  ;;  %3245 = vmatprep.subr.bf16.mxu1 %v3453_v1  ;;  %3239 = vmatprep.mubr.msk.bf16.mxu0 %vm3454_vm0, %v3453_v1  ;;  %v2603_v41 = vld [vmem:[%s4078_s21 + $0x8] sm:$0x7] }
 0x130   : > { %v760_v44 = vpop.f32.mrf.mxu0  ;;  %3259 = vmatprep.mubr.msk.bf16.mxu1 %vm3454_vm0, %v3453_v1 }
 0x131   : > { %v848_v45 = vpop.f32.mrf.mxu1  ;;  %3226 = vmatpush3.bf16.msra.mxu0 %v3430_v40 }
 0x132   : > { %3246 = vmatpush3.bf16.msra.mxu1 %v3431_v42  ;;  %v2962_v47 = vpop.f32.mrf.mxu0  ;;  %3227 = vmatprep.subr.bf16.mxu0 %v3453_v1 }
 0x133   : > { %v2982_v49 = vpop.f32.mrf.mxu1  ;;  %3247 = vmatprep.subr.bf16.mxu1 %v3453_v1 }
 0x135   : > { %3228 = vmatpush3.bf16.msra.mxu0 %v3432_v46 }
 0x136   : > { %3248 = vmatpush3.bf16.msra.mxu1 %v3433_v48  ;;  %3229 = vmatprep.subr.bf16.mxu0 %v3453_v1 }
 0x137   : > { %3249 = vmatprep.subr.bf16.mxu1 %v3453_v1 }
 0x139   : > { %3230 = vmatpush3.bf16.msra.mxu0 %v3434_v50 }
 0x13a   : > { %3250 = vmatpush3.bf16.msra.mxu1 %v3435_v51  ;;  %3231 = vmatprep.subr.bf16.mxu0 %v3453_v1 }
 0x13b   : > { %3251 = vmatprep.subr.bf16.mxu1 %v3453_v1 }
 0x13d   : > { %3232 = vmatpush3.bf16.msra.mxu0 %v3436_v52 }
 0x13e   : > { %3252 = vmatpush3.bf16.msra.mxu1 %v3437_v53  ;;  %3233 = vmatprep.subr.bf16.mxu0 %v3453_v1 }
 0x13f   : > { %3253 = vmatprep.subr.bf16.mxu1 %v3453_v1 }
 0x141   : > { %3234 = vmatpush3.bf16.msra.mxu0 %v3438_v55 }
 0x142   : > { %3254 = vmatpush3.bf16.msra.mxu1 %v3439_v57  ;;  %3235 = vmatprep.subr.bf16.mxu0 %v3453_v1 }
 0x143   : > { %3255 = vmatprep.subr.bf16.mxu1 %v3453_v1 }
 0x145   : > { %3236 = vmatpush3.bf16.msra.mxu0 %v3440_v58 }
 0x146   : > { %3256 = vmatpush3.bf16.msra.mxu1 %v3441_v60  ;;  %3237 = vmatprep.subr.bf16.mxu0 %v3453_v1 }
 0x147   : > { %3257 = vmatprep.subr.bf16.mxu1 %v3453_v1 }
 0x149   : > { %3238 = vmatpush3.bf16.msra.mxu0 %v3442_v61 }
 0x14a   : > { %3258 = vmatpush3.bf16.msra.mxu1 %v3443_v0 }
 0x14c   : > { %v951_v5 = vpop.f32.mrf.mxu0  ;;  %3240 = vmatmul.mubr.bf16.vlgmr.msra.gmra.mxu0 %v2661_v54 }
 0x14d   : > { %v957_v6 = vadd.f32 %v951_v5, %v846_v4  ;;  %v1067_v7 = vpop.f32.mrf.mxu1  ;;  %3260 = vmatmul.mubr.bf16.vlgmr.msra.gmra.mxu1 %v2333_v2  ;;  %v2641_v2 = vld [vmem:[%s4078_s21 + $0xc] sm:$0x7] }
 0x14e   : > { %v3001_v8 = vpop.f32.mrf.mxu0 }
 0x14f   : > { %v1073_v9 = vadd.f32 %v1067_v7, %v957_v6  ;;  %v3021_v10 = vpop.f32.mrf.mxu1 }
 0x150   : > { %v954_v11 = vpop.f32.mrf.mxu0 }
 0x151   : > { %v1074_v12 = vadd.f32 %v4064_v3, %v1073_v9  ;;  %v1070_v13 = vpop.f32.mrf.mxu1 }
 0x152   : > { %v3002_v14 = vpop.f32.mrf.mxu0 }
 0x153   : > { %v1075_v1 = vmax.f32 %v1074_v12, 0.0  ;;  %v3022_v15 = vpop.f32.mrf.mxu1 }
 0x155   : > { %v1076_v18 = vpack.c.bf16 %v1075_v1, %v1075_v1 }
 0x157   : > { %v1079_v19 = vsel %vm4089_vm3, %v1076_v18, %v2565_v17 }
 0x158   : > { %2566 = vst [vmem:[%s4078_s21 + $0x4] sm:$0x7] %v1079_v19 }
 0x16c   : > { %v1207_v20 = vpop.f32.mrf.mxu0 }
 0x16d   : > { %v1295_v21 = vpop.f32.mrf.mxu1 }
 0x16e   : > { %v3041_v22 = vpop.f32.mrf.mxu0  ;;  %v1296_v28 = vadd.f32 %v1295_v21, %v1207_v20 }
 0x16f   : > { %v3061_v23 = vpop.f32.mrf.mxu1 }
 0x170   : > { %v1210_v24 = vpop.f32.mrf.mxu0 }
 0x171   : > { %v1298_v25 = vpop.f32.mrf.mxu1 }
 0x172   : > { %v3042_v26 = vpop.f32.mrf.mxu0 }
 0x173   : > { %v3062_v27 = vpop.f32.mrf.mxu1 }
 0x174   : > { %v2679_v27 = vld [vmem:[%s4078_s21 + $0x10] sm:$0x7] }
 0x18c   : > { %v1401_v29 = vpop.f32.mrf.mxu0 }
 0x18d   : > { %v1407_v30 = vadd.f32 %v1401_v29, %v1296_v28  ;;  %v1517_v31 = vpop.f32.mrf.mxu1 }
 0x18e   : > { %v3081_v32 = vpop.f32.mrf.mxu0 }
 0x18f   : > { %v1523_v33 = vadd.f32 %v1517_v31, %v1407_v30  ;;  %v3101_v34 = vpop.f32.mrf.mxu1 }
 0x190   : > { %v1404_v35 = vpop.f32.mrf.mxu0 }
 0x191   : > { %v1524_v36 = vadd.f32 %v4064_v3, %v1523_v33  ;;  %v1520_v37 = vpop.f32.mrf.mxu1 }
 0x192   : > { %v3082_v38 = vpop.f32.mrf.mxu0 }
 0x193   : > { %v1525_v39 = vmax.f32 %v1524_v36, 0.0  ;;  %v3102_v40 = vpop.f32.mrf.mxu1 }
 0x195   : > { %v1526_v42 = vpack.c.bf16 %v1525_v39, %v1525_v39 }
 0x197   : > { %v1529_v43 = vsel %vm4089_vm3, %v1526_v42, %v2603_v41 }
 0x198   : > { %2604 = vst [vmem:[%s4078_s21 + $0x8] sm:$0x7] %v1529_v43 }
 0x1ac   : > { %v1657_v44 = vpop.f32.mrf.mxu0 }
 0x1ad   : > { %v1745_v45 = vpop.f32.mrf.mxu1 }
 0x1ae   : > { %v3121_v46 = vpop.f32.mrf.mxu0  ;;  %v1746_v52 = vadd.f32 %v1745_v45, %v1657_v44 }
 0x1af   : > { %v3141_v47 = vpop.f32.mrf.mxu1 }
 0x1b0   : > { %v1660_v48 = vpop.f32.mrf.mxu0 }
 0x1b1   : > { %v1748_v49 = vpop.f32.mrf.mxu1 }
 0x1b2   : > { %v3122_v50 = vpop.f32.mrf.mxu0 }
 0x1b3   : > { %v3142_v51 = vpop.f32.mrf.mxu1 }
 0x1cc   : > { %v1851_v53 = vpop.f32.mrf.mxu0 }
 0x1cd   : > { %v1857_v54 = vadd.f32 %v1851_v53, %v1746_v52  ;;  %v1967_v55 = vpop.f32.mrf.mxu1 }
 0x1ce   : > { %v3161_v56 = vpop.f32.mrf.mxu0 }
 0x1cf   : > { %v1973_v57 = vadd.f32 %v1967_v55, %v1857_v54  ;;  %v3181_v58 = vpop.f32.mrf.mxu1 }
 0x1d0   : > { %v1854_v59 = vpop.f32.mrf.mxu0 }
 0x1d1   : > { %v1974_v60 = vadd.f32 %v4064_v3, %v1973_v57  ;;  %v1970_v61 = vpop.f32.mrf.mxu1 }
 0x1d2   : > { %v3162_v62 = vpop.f32.mrf.mxu0 }
 0x1d3   : > { %v1975_v63 = vmax.f32 %v1974_v60, 0.0  ;;  %v3182_v0 = vpop.f32.mrf.mxu1 }
 0x1d5   : > { %v1976_v4 = vpack.c.bf16 %v1975_v63, %v1975_v63 }
 0x1d7   : > { %v1979_v5 = vsel %vm4089_vm3, %v1976_v4, %v2641_v2 }
 0x1d8   : > { %2642 = vst [vmem:[%s4078_s21 + $0xc] sm:$0x7] %v1979_v5 }
 0x1ec   : > { %v2107_v6 = vpop.f32.mrf.mxu0 }
 0x1ed   : > { %v2195_v7 = vpop.f32.mrf.mxu1 }
 0x1ee   : > { %v3201_v8 = vpop.f32.mrf.mxu0  ;;  %v2196_v14 = vadd.f32 %v2195_v7, %v2107_v6 }
 0x1ef   : > { %v3221_v9 = vpop.f32.mrf.mxu1 }
 0x1f0   : > { %v2110_v10 = vpop.f32.mrf.mxu0 }
 0x1f1   : > { %v2198_v11 = vpop.f32.mrf.mxu1 }
 0x1f2   : > { %v3202_v12 = vpop.f32.mrf.mxu0 }
 0x1f3   : > { %v3222_v13 = vpop.f32.mrf.mxu1 }
 0x20c   : > { %v2301_v1 = vpop.f32.mrf.mxu0 }
 0x20d   : > { %v2307_v15 = vadd.f32 %v2301_v1, %v2196_v14  ;;  %v2417_v17 = vpop.f32.mrf.mxu1 }
 0x20e   : > { %v3241_v18 = vpop.f32.mrf.mxu0 }
 0x20f   : > { %v2423_v19 = vadd.f32 %v2417_v17, %v2307_v15  ;;  %v3261_v20 = vpop.f32.mrf.mxu1 }
 0x210   : > { %v2304_v21 = vpop.f32.mrf.mxu0 }
 0x211   : > { %v2424_v22 = vadd.f32 %v4064_v3, %v2423_v19  ;;  %v2420_v23 = vpop.f32.mrf.mxu1 }
 0x212   : > { %v3242_v24 = vpop.f32.mrf.mxu0 }
 0x213   : > { %v2425_v25 = vmax.f32 %v2424_v22, 0.0  ;;  %v3262_v26 = vpop.f32.mrf.mxu1 }
 0x215   : > { %v2426_v28 = vpack.c.bf16 %v2425_v25, %v2425_v25 }
 0x217   : > { %v2429_v29 = vsel %vm4089_vm3, %v2426_v28, %v2679_v27 }
 0x218   : > { %2680 = vst [vmem:[%s4078_s21 + $0x10] sm:$0x7] %v2429_v29 }
 0x219 PF: > { %s13_s12 = sadd.s32 1, %s3451_s12  }
 0x21a   : > { %p10_p4 = scmp.ge.s32.totalorder %s13_s12, 4  }
 0x21c   :  { %12 = sbr.rel (!%p10_p4) target bundleno = 1 (0x1), region = 71 }

// kernel: _lambda_.7
= control target key start
LH: loop header
LB: loop body
LE: loop exit
PB: predicated region body
PF: predicated region fallthrough
CT: control target
= control target key end

     0   :  { %v801_v21 = vmov 1983009808   ;;  %v102_v23 = vlaneseq  ;;  %v802_v40 = vmov 0.0   ;;  %vm803_vm0 = vmmov 0   ;;  %s983_s1 = inlined_call_operand.vmem [shape: bf16[576,128], index: 1, kind: input, shape index: {}]   ;;  %s984_s0 = inlined_call_operand.vmem [shape: f32[2,576], index: 0, kind: input, shape index: {}]   ;;  %s985_s3 = inlined_call_operand.vmem [shape: bf16[128,128], index: 3, kind: input, shape index: {}]   ;;  %s986_s2 = inlined_call_operand.vmem [shape: f32[1,128], index: 2, kind: input, shape index: {}]   ;;  %s987_s4 = inlined_call_operand.vmem [shape: f32[1,128], index: 4, kind: input, shape index: {}]   ;;  %s988_s5 = inlined_call_operand.vmem [shape: f32[2,128], index: 5, kind: output, shape index: {}]  }
   0x1   :  { %v756_v0 = vld [vmem:[%s983_s1 + $0x78] sm:$0xff]   ;;  %v760_v4 = vld [vmem:[%s983_s1 + $0x70] sm:$0xff]   ;;  %v764_v8 = vld [vmem:[%s983_s1 + $0x68] sm:$0xff]   ;;  %v100_v22 = vunpack.c.l.s4 %v801_v21  ;;  %vm354_vm1 = vcmask 523264   ;;  %vm595_vm5 = vcmask 1041408  }
   0x2   :  { %v757_v1 = vld [vmem:[%s983_s1 + $0x38] sm:$0xff]   ;;  %663 = vmatprep.subr.bf16.mxu0 %v756_v0  ;;  %v761_v5 = vld [vmem:[%s983_s1 + $0x30] sm:$0xff]   ;;  %v765_v9 = vld [vmem:[%s983_s1 + $0x28] sm:$0xff]   ;;  %v103_v29 = vshrl.u32 %v102_v23, 7 }
   0x3   :  { %v758_v2 = vld [vmem:[%s983_s1 + $0xf8] sm:$0xff]   ;;  %664 = vmatpush3.bf16.msra.mxu0 %v757_v1  ;;  %v762_v6 = vld [vmem:[%s983_s1 + $0xf0] sm:$0xff]   ;;  %v766_v10 = vld [vmem:[%s983_s1 + $0xe8] sm:$0xff]   ;;  %v101_v28 = vunpack.c.0.s8 %v100_v22 }
   0x4   :  { %v759_v3 = vld [vmem:[%s983_s1 + $0xb8] sm:$0xff]   ;;  %685 = vmatprep.subr.bf16.mxu1 %v758_v2  ;;  %665 = vmatprep.subr.bf16.mxu0 %v760_v4  ;;  %v763_v7 = vld [vmem:[%s983_s1 + $0xb0] sm:$0xff]   ;;  %v767_v11 = vld [vmem:[%s983_s1 + $0xa8] sm:$0xff]  }
   0x5   :  { %686 = vmatpush3.bf16.msra.mxu1 %v759_v3  ;;  %v768_v12 = vld [vmem:[%s983_s1 + $0x60] sm:$0xff]   ;;  %v772_v16 = vld [vmem:[%s983_s1 + $0x58] sm:$0xff]   ;;  %v776_v20 = vld [vmem:[%s983_s1 + $0x50] sm:$0xff]   ;;  %v104_v34 = vsub.s32 %v101_v28, %v103_v29 }
   0x6   :  { %687 = vmatprep.subr.bf16.mxu1 %v762_v6  ;;  %v769_v13 = vld [vmem:[%s983_s1 + $0x20] sm:$0xff]   ;;  %v773_v17 = vld [vmem:[%s983_s1 + $0x18] sm:$0xff]   ;;  %v777_v24 = vld [vmem:[%s983_s1 + $0x10] sm:$0xff]  }
   0x7   :  { %666 = vmatpush3.bf16.msra.mxu0 %v761_v5  ;;  %v770_v14 = vld [vmem:[%s983_s1 + $0xe0] sm:$0xff]   ;;  %v774_v18 = vld [vmem:[%s983_s1 + $0xd8] sm:$0xff]   ;;  %v778_v25 = vld [vmem:[%s983_s1 + $0xd0] sm:$0xff]  }
   0x8   :  { %667 = vmatprep.subr.bf16.mxu0 %v764_v8  ;;  %v771_v15 = vld [vmem:[%s983_s1 + $0xa0] sm:$0xff]   ;;  %v775_v19 = vld [vmem:[%s983_s1 + $0x98] sm:$0xff]   ;;  %v779_v26 = vld [vmem:[%s983_s1 + $0x90] sm:$0xff]  }
   0x9   :  { %688 = vmatpush3.bf16.msra.mxu1 %v763_v7  ;;  %v780_v27 = vld [vmem:[%s983_s1 + $0x48] sm:$0xff]   ;;  %v784_v33 = vld [vmem:[%s983_s1 + $0x40] sm:$0xff]   ;;  %v789_v47 = vld [vmem:[%s983_s1 + $0x118] sm:$0xff]  }
   0xa   :  { %689 = vmatprep.subr.bf16.mxu1 %v766_v10  ;;  %v781_v30 = vld [vmem:[%s983_s1 + $0x8] sm:$0xff]   ;;  %v785_v35 = vld [vmem:[%s983_s1] sm:$0xff]   ;;  %v790_v50 = vld [vmem:[%s983_s1 + $0x110] sm:$0xff]  }
   0xb   :  { %668 = vmatpush3.bf16.msra.mxu0 %v765_v9  ;;  %v782_v31 = vld [vmem:[%s983_s1 + $0xc8] sm:$0xff]   ;;  %v786_v36 = vld [vmem:[%s983_s1 + $0xc0] sm:$0xff]   ;;  %v793_v51 = vld [vmem:[%s985_s3 + $0x38] sm:$0xff]  }
   0xc   :  { %669 = vmatprep.subr.bf16.mxu0 %v768_v12  ;;  %v783_v32 = vld [vmem:[%s983_s1 + $0x88] sm:$0xff]   ;;  %v21_v37 = vld [vmem:[%s984_s0] sm:$0xff]  ;;  %v794_v52 = vld [vmem:[%s985_s3 + $0x30] sm:$0xff]  }
   0xd   :  { %690 = vmatpush3.bf16.msra.mxu1 %v767_v11  ;;  %v787_v38 = vld [vmem:[%s983_s1 + $0x80] sm:$0xff]   ;;  %v105_v39 = vrot.slane %v21_v37, %v104_v34  ;;  %v98_v41 = vcombine.high %v21_v37, %v21_v37  ;;  %v791_v53 = vld [vmem:[%s983_s1 + $0x108] sm:$0xff]   ;;  %v797_v59 = vld [vmem:[%s985_s3 + $0x18] sm:$0xff]  }
   0xe   :  { %691 = vmatprep.subr.bf16.mxu1 %v770_v14  ;;  %v615_v54 = vld.sshfl [vmem:[%s984_s0 + $0x8] sm:$0x3 pattern:$0x76325410]  ;;  %v792_v55 = vld [vmem:[%s983_s1 + $0x100] sm:$0xff]   ;;  %v798_v60 = vld [vmem:[%s985_s3 + $0x10] sm:$0xff]  }
   0xf   :  { %670 = vmatpush3.bf16.msra.mxu0 %v769_v13  ;;  %v113_v42 = vcombine.high %v105_v39, %v105_v39  ;;  %v112_v43 = vrot.slane %v98_v41, %v104_v34  ;;  %v127_v44 = vpack.c.bf16 %v105_v39, %v105_v39  ;;  %v131_v56 = vpack.c.bf16 %v615_v54, %v615_v54  ;;  %v795_v57 = vld [vmem:[%s985_s3 + $0x28] sm:$0xff]   ;;  %v796_v58 = vld [vmem:[%s985_s3 + $0x20] sm:$0xff]  }
  0x10   :  { %671 = vmatprep.subr.bf16.mxu0 %v772_v16  ;;  %v799_v61 = vld [vmem:[%s985_s3 + $0x8] sm:$0xff]   ;;  %v800_v62 = vld [vmem:[%s985_s3] sm:$0xff]  }
  0x11   :  { %692 = vmatpush3.bf16.msra.mxu1 %v771_v15  ;;  %v128_v45 = vpack.c.bf16 %v113_v42, %v113_v42  ;;  %v114_v46 = vcombine.high %v112_v43, %v112_v43  ;;  %v129_v48 = vpack.c.bf16 %v112_v43, %v112_v43  ;;  %v616_v7 = vld [vmem:[%s986_s2] ss:$0 sm:$0xff] }
  0x12   :  { %693 = vmatprep.subr.bf16.mxu1 %v774_v18 }
  0x13   :  { %672 = vmatpush3.bf16.msra.mxu0 %v773_v17  ;;  %390 = vmatprep.mubr.bf16.mxu0 %v128_v45  ;;  %v130_v49 = vpack.c.bf16 %v114_v46, %v114_v46 }
  0x14   :  { %673 = vmatprep.subr.bf16.mxu0 %v776_v20  ;;  %v654_v20 = vld [vmem:[%s987_s4] ss:$0 sm:$0xff] }
  0x15   :  { %694 = vmatpush3.bf16.msra.mxu1 %v775_v19  ;;  %430 = vmatprep.mubr.bf16.mxu1 %v130_v49  ;;  %v592_v19 = vand.u32 127, %v102_v23 }
  0x16   :  { %695 = vmatprep.subr.bf16.mxu1 %v778_v25 }
  0x17   :  { %674 = vmatpush3.bf16.msra.mxu0 %v777_v24  ;;  %vm599_vm2 = vcmp.ge.s32.totalorder %v592_v19, 1  ;;  %vm600_vm3 = vcmp.le.s32.totalorder %v592_v19, 6  ;;  %vm593_vm4 = vcmp.eq.s32.totalorder %v592_v19, 0 }
  0x18   :  { %675 = vmatprep.subr.bf16.mxu0 %v780_v27  ;;  %vm601_vm6 = vmand %vm599_vm2, %vm600_vm3 }
  0x19   :  { %696 = vmatpush3.bf16.msra.mxu1 %v779_v26 }
  0x1a   :  { %697 = vmatprep.subr.bf16.mxu1 %v782_v31 }
  0x1b   :  { %676 = vmatpush3.bf16.msra.mxu0 %v781_v30 }
  0x1c   :  { %677 = vmatprep.subr.bf16.mxu0 %v784_v33 }
  0x1d   :  { %698 = vmatpush3.bf16.msra.mxu1 %v783_v32 }
  0x1e   :  { %699 = vmatprep.subr.bf16.mxu1 %v786_v36 }
  0x1f   :  { %678 = vmatpush3.bf16.msra.mxu0 %v785_v35 }
  0x20   :  { %721 = vmatprep.subr.bf16.mxu0 %v802_v40 }
  0x21   :  { %700 = vmatpush3.bf16.msra.mxu1 %v787_v38 }
  0x22   :  { %733 = vmatprep.subr.bf16.mxu1 %v802_v40  ;;  %391 = vmatmul.mubr.bf16.vlgmr.msra.gmra.mxu0 %v127_v44 }
  0x23   :  { %722 = vmatpush3.bf16.msra.mxu0 %v789_v47  ;;  %729 = vmatprep.mubr.msk.bf16.mxu0 %vm803_vm0, %v802_v40 }
  0x24   :  { %431 = vmatmul.mubr.bf16.vlgmr.msra.gmra.mxu1 %v129_v48  ;;  %723 = vmatprep.subr.bf16.mxu0 %v802_v40 }
  0x25   :  { %734 = vmatpush3.bf16.msra.mxu1 %v793_v51  ;;  %749 = vmatprep.mubr.msk.bf16.mxu1 %vm803_vm0, %v802_v40 }
  0x26   :  { %735 = vmatprep.subr.bf16.mxu1 %v802_v40 }
  0x27   :  { %724 = vmatpush3.bf16.msra.mxu0 %v790_v50 }
  0x28   :  { %725 = vmatprep.subr.bf16.mxu0 %v802_v40 }
  0x29   :  { %736 = vmatpush3.bf16.msra.mxu1 %v794_v52 }
  0x2a   :  { %737 = vmatprep.subr.bf16.mxu1 %v802_v40 }
  0x2b   :  { %726 = vmatpush3.bf16.msra.mxu0 %v791_v53 }
  0x2c   :  { %727 = vmatprep.subr.bf16.mxu0 %v802_v40 }
  0x2d   :  { %738 = vmatpush3.bf16.msra.mxu1 %v795_v57 }
  0x2e   :  { %739 = vmatprep.subr.bf16.mxu1 %v802_v40 }
  0x2f   :  { %728 = vmatpush3.bf16.msra.mxu0 %v792_v55 }
  0x31   :  { %740 = vmatpush3.bf16.msra.mxu1 %v796_v58 }
  0x32   :  { %730 = vmatmul.mubr.msk.bf16.vlgmr.msra.gmra.mxu0 %vm354_vm1, %v131_v56  ;;  %741 = vmatprep.subr.bf16.mxu1 %v802_v40 }
  0x35   :  { %742 = vmatpush3.bf16.msra.mxu1 %v797_v59 }
  0x36   :  { %743 = vmatprep.subr.bf16.mxu1 %v802_v40 }
  0x39   :  { %744 = vmatpush3.bf16.msra.mxu1 %v798_v60 }
  0x3a   :  { %745 = vmatprep.subr.bf16.mxu1 %v802_v40 }
  0x3d   :  { %746 = vmatpush3.bf16.msra.mxu1 %v799_v61 }
  0x3e   :  { %747 = vmatprep.subr.bf16.mxu1 %v802_v40 }
  0x41   :  { %748 = vmatpush3.bf16.msra.mxu1 %v800_v62 }
  0xe2   :  { %v679_v63 = vpop.f32.mrf.mxu0 }
  0xe4   :  { %v680_v0 = vpop.f32.mrf.mxu0  ;;  %v701_v1 = vpop.f32.mrf.mxu1 }
  0xe5   :  { %v681_v6 = vadd.f32 %v680_v0, %v679_v63 }
  0xe6   :  { %v682_v2 = vpop.f32.mrf.mxu0  ;;  %v702_v3 = vpop.f32.mrf.mxu1 }
  0xe7   :  { %v393_v9 = vadd.f32 %v681_v6, %v616_v7  ;;  %v703_v10 = vadd.f32 %v702_v3, %v701_v1 }
  0xe8   :  { %v683_v4 = vpop.f32.mrf.mxu0  ;;  %v704_v5 = vpop.f32.mrf.mxu1 }
  0xe9   :  { %v433_v11 = vadd.f32 %v703_v10, %v393_v9 }
  0xea   :  { %v705_v8 = vpop.f32.mrf.mxu1 }
  0xf2   :  { %v472_v12 = vpop.f32.mrf.mxu0 }
  0xf3   :  { %v473_v13 = vadd.f32 %v472_v12, %v433_v11 }
  0xf4   :  { %v731_v14 = vpop.f32.mrf.mxu0 }
  0xf5   :  { %v478_v15 = vmax.f32 %v473_v13, 0.0 }
  0xf6   :  { %v475_v16 = vpop.f32.mrf.mxu0 }
  0xf7   :  { %v496_v17 = vpack.c.bf16 %v478_v15, %v478_v15 }
  0xf8   :  { %v732_v18 = vpop.f32.mrf.mxu0 }
  0xf9   :  { %750 = vmatmul.mubr.bf16.vlgmr.msra.gmra.mxu1 %v496_v17 }
 0x1b9   :  { %v585_v21 = vpop.f32.mrf.mxu1 }
 0x1ba   :  { %v586_v22 = vadd.f32 %v654_v20, %v585_v21 }
 0x1bb   :  { %v751_v24 = vpop.f32.mrf.mxu1 }
 0x1bc   :  { %v594_v25 = vsel %vm593_vm4, %v586_v22, 0.0  ;;  %v602_v28 = vsel %vm601_vm6, %v586_v22, 0.0 }
 0x1bd   :  { %v588_v26 = vpop.f32.mrf.mxu1  ;;  %v596_v27 = vsel %vm595_vm5, %v594_v25, 0.0  ;;  %v603_v30 = vsel %vm595_vm5, %v602_v28, 0.0 }
 0x1be   :  { %597 = vadd.xlane.f32.xlu0 %v596_v27 }
 0x1bf   :  { %v752_v29 = vpop.f32.mrf.mxu1 }
 0x1c2   :  { %604 = vadd.xlane.f32.xlu0 %v603_v30 }
 0x247   :  { %v598_v23 = vpop.xlane.xlu0 %597 }
 0x248   :  { %v608_v32 = vadd.f32 %v598_v23, %v586_v22 }
 0x24b   :  { %v605_v31 = vpop.xlane.xlu0 %604 }
 0x24c   :  { %v607_v33 = vmul.f32 0.16666667, %v605_v31 }
 0x24e   :  { %v609_v34 = vsub.f32 %v608_v32, %v607_v33 }
 0x250   :  { %610 = vst [vmem:[%s988_s5] sm:$0x3] %v609_v34 }

</bundles_post_ra>
